<compile_context>
chip_gen: v7x
topology: tpu7x:2x2x1
jax: 0.10.0
libtpu: 0.0.40
codegen_flags: <defaults>
</compile_context>

<pallas_src>
import functools

import numpy as np
import jax
import jax.numpy as jnp
from jax.experimental import pallas as pl
from jax.experimental.pallas import tpu as pltpu


_COMPILER_PARAMS = pltpu.CompilerParams(
    dimension_semantics=("parallel",),       # batch grid -> sharded across TCs on v7x
    vmem_limit_bytes=32 * 1024 * 1024,       # blocks here are tiny; 32 MiB fits all gens
)


def _round_up(x, m):
    return ((x + m - 1) // m) * m


# ----------------------------------------------------------------------------
# Shared conv3x3 + InstanceNorm + ReLU core (tap-fused, staged in VMEM)
# ----------------------------------------------------------------------------

def _conv_block_core(xs, w_ref, g_ref, b_ref, xpad_ref, H, W, Pa, cpad):
    """3x3 'same' conv (no bias) + InstanceNorm2d(affine, eps=1e-5) + ReLU.

    xs:       list of (C_i, N) arrays (channel-concatenated input, any float dtype)
    w_ref:    (3, Cout, 3*cpad) bf16 weights, tap-fused over ki per kj
    xpad_ref: (3*cpad, N + 2*Pa) bf16 staging scratch

    The scratch holds three row-shifted, zero-padded bf16 copies of the input
    (block ki at lane offset Pa - (ki-1)*W), so each kj tap group is ONE
    (Cout, 3*cpad) @ (3*cpad, N) MXU dot with K = 3*Cin.  Row out-of-bounds
    falls into the zero padding; only column wrap-around needs masking.
    """
    N = H * W
    cout = g_ref.shape[0]

    # Stage (single hoisted bf16 cast; re-zeroed every grid step so the kernel
    # is stateless across steps -> safe under megacore batch splitting).
    xpad_ref[...] = jnp.zeros_like(xpad_ref)
    for ki in range(3):
        q = Pa - (ki - 1) * W                  # lane offset of row-shift block ki
        r = ki * cpad                          # sublane offset (cpad multiple of 8)
        for x in xs:
            c = x.shape[0]
            xpad_ref[r:r + c, q:q + N] = x.astype(jnp.bfloat16)
            r += c

    col = jax.lax.broadcasted_iota(jnp.int32, (1, N), 1) % W
    ok_left = col >= 1                         # taps j-1 invalid at j == 0
    ok_right = col <= W - 2                    # taps j+1 invalid at j == W-1

    acc = jnp.zeros((cout, N), jnp.float32)
    for kj in range(3):
        s = Pa + (kj - 1)
        part = jnp.dot(w_ref[kj], xpad_ref[:, s:s + N],
                       preferred_element_type=jnp.float32)
        if kj == 0:
            part = jnp.where(ok_left, part, 0.0)
        elif kj == 2:
            part = jnp.where(ok_right, part, 0.0)
        acc = acc + part

    # InstanceNorm (biased variance, like PyTorch) + affine + ReLU, in f32.
    mean = jnp.mean(acc, axis=1, keepdims=True)
    var = jnp.mean(jnp.square(acc - mean), axis=1, keepdims=True)
    h = (acc - mean) * jax.lax.rsqrt(var + 1e-5)
    return jnp.maximum(h * g_ref[...] + b_ref[...], 0.0)


# ----------------------------------------------------------------------------
# Kernels
# ----------------------------------------------------------------------------

def conv_block_kernel(*refs, n_in, H, W, Pa, cpad):
    """AttentionBlock conv+IN+ReLU; concat of the n_in inputs is done in-kernel."""
    x_refs = refs[:n_in]
    w_ref, g_ref, b_ref, o_ref, xpad_ref = refs[n_in:]
    xs = [r[0] for r in x_refs]
    h = _conv_block_core(xs, w_ref, g_ref, b_ref, xpad_ref, H, W, Pa, cpad)
    o_ref[0] = h.astype(o_ref.dtype)


def conv_block_out_kernel(*refs, n_in, H, W, Pa, cpad):
    """Last AttentionBlock fused with the 1x1 output conv + log-sigmoid."""
    x_refs = refs[:n_in]
    w_ref, g_ref, b_ref, wo_ref, bo_ref, o_ref, xpad_ref = refs[n_in:]
    xs = [r[0] for r in x_refs]
    h = _conv_block_core(xs, w_ref, g_ref, b_ref, xpad_ref, H, W, Pa, cpad)
    y = jnp.dot(wo_ref[...], h.astype(jnp.bfloat16),
                preferred_element_type=jnp.float32) + bo_ref[...]
    # log_sigmoid(y) = min(y, 0) - log(1 + exp(-|y|))  (log1p delta < 1e-7 here)
    o_ref[0] = (jnp.minimum(y, 0.0)
                - jnp.log(1.0 + jnp.exp(-jnp.abs(y)))).astype(o_ref.dtype)


def bottleneck_kernel(x_ref, w5_ref, g5_ref, b5_ref, wqkv_ref, bqkv_ref, gamma_ref,
                      w2_ref, g2_ref, b2_ref, o_ref, pad5_ref, pad2_ref,
                      *, Cq, H, W, Pa, cpad5, cpad2):
    """Fused bottleneck: down5 (conv+IN+ReLU) -> Self_Attn_MultiC -> up2 (conv+IN+ReLU).

    All intermediates (skip5, q/k/v, attention map, residual) stay in VMEM /
    vregs; only the tiny bottleneck input and up2's output touch HBM.
    """
    x = x_ref[0]                                                    # (C, N) bf16
    skip5 = _conv_block_core([x], w5_ref, g5_ref, b5_ref, pad5_ref,
                             H, W, Pa, cpad5)                       # (C, N) f32
    s5b = skip5.astype(jnp.bfloat16)

    # --- Self_Attn_MultiC: fused q/k/v 1x1 projections + softmax + residual ---
    qkv = jnp.dot(wqkv_ref[...], s5b,
                  preferred_element_type=jnp.float32) + bqkv_ref[...]
    q = qkv[:Cq]                                                    # (Cq, N)
    k = qkv[Cq:2 * Cq]                                              # (Cq, N)
    v = qkv[2 * Cq:]                                                # (C, N)
    # energy[i, j] = sum_c q[c, i] * k[c, j]  (== proj_query @ proj_key);
    # the q transpose is one tiny bottleneck tile through the XLU.
    energy = jnp.dot(q.T, k, preferred_element_type=jnp.float32)    # (N, N)
    m = jnp.max(energy, axis=-1, keepdims=True)
    p = jnp.exp(energy - m)
    attn = p * pl.reciprocal(jnp.sum(p, axis=-1, keepdims=True), approx=True)
    # out[c, i] = sum_j v[c, j] * attn[i, j]  (== bmm(value, attn^T), no transpose)
    out = jax.lax.dot_general(v, attn, (((1,), (1,)), ((), ())),
                              preferred_element_type=jnp.float32)   # (C, N)
    attn_out = gamma_ref[0] * out + skip5                           # f32 residual

    # --- up2: conv3x3(concat(attn_out, skip5)) + IN + ReLU ---
    h = _conv_block_core([attn_out.astype(jnp.bfloat16), s5b],
                         w2_ref, g2_ref, b2_ref, pad2_ref, H, W, Pa, cpad2)
    o_ref[0] = h.astype(o_ref.dtype)


# ----------------------------------------------------------------------------
# Pallas wrappers
# ----------------------------------------------------------------------------

def _pack_w3(w, cpad):
    """(Cout, Cin, 3, 3) -> (3[kj], Cout, 3*cpad) bf16, taps fused over ki.

    Column ki*cpad + c holds w[:, c, ki, kj]; Cin is zero-padded to cpad
    (multiple of 8) so the staged operand's row blocks stay sublane aligned.
    """
    cout, cin = w.shape[0], w.shape[1]
    wk = jnp.transpose(w, (3, 2, 0, 1))                              # (kj, ki, Cout, Cin)
    wk = jnp.pad(wk, ((0, 0), (0, 0), (0, 0), (0, cpad - cin)))
    wk = jnp.transpose(wk, (0, 2, 1, 3)).reshape(3, cout, 3 * cpad)  # (kj, Cout, ki*cpad+c)
    return wk.astype(jnp.bfloat16)


def pallas_conv_block(inputs, H, W, conv_w, norm_g, norm_b, out_w=None, out_b=None):
    """conv3x3(pad=1, no bias) + InstanceNorm2d(affine) + ReLU on channel-major
    (B, C, H*W) inputs.  Multiple inputs are channel-concatenated inside the
    kernel (no XLA concat, no XLA pad).  Optionally fuses the trailing 1x1
    output conv + log-sigmoid (network head)."""
    B = inputs[0].shape[0]
    N = H * W
    cins = tuple(int(a.shape[1]) for a in inputs)
    ctot = sum(cins)
    cpad = _round_up(ctot, 8)
    Pa = _round_up(max(W, 1), 128)           # lane-aligned zero pad, >= W
    cout = conv_w.shape[0]

    w3 = _pack_w3(conv_w, cpad)
    g = norm_g.reshape(cout, 1)
    b = norm_b.reshape(cout, 1)

    in_specs = [pl.BlockSpec((1, c, N), lambda bb: (bb, 0, 0)) for c in cins]
    in_specs += [pl.BlockSpec((3, cout, 3 * cpad), lambda bb: (0, 0, 0)),
                 pl.BlockSpec((cout, 1), lambda bb: (0, 0)),
                 pl.BlockSpec((cout, 1), lambda bb: (0, 0))]
    args = list(inputs) + [w3, g, b]

    if out_w is None:
        kern = functools.partial(conv_block_kernel, n_in=len(inputs),
                                 H=H, W=W, Pa=Pa, cpad=cpad)
        co, out_dtype = cout, jnp.bfloat16
    else:
        co = out_w.shape[0]
        in_specs += [pl.BlockSpec((co, cout), lambda bb: (0, 0)),
                     pl.BlockSpec((co, 1), lambda bb: (0, 0))]
        args += [out_w.reshape(co, cout).astype(jnp.bfloat16),
                 out_b.reshape(co, 1)]
        kern = functools.partial(conv_block_out_kernel, n_in=len(inputs),
                                 H=H, W=W, Pa=Pa, cpad=cpad)
        out_dtype = jnp.float32

    return pl.pallas_call(
        kern,
        out_shape=jax.ShapeDtypeStruct((B, co, N), out_dtype),
        grid=(B,),
        in_specs=in_specs,
        out_specs=pl.BlockSpec((1, co, N), lambda bb: (bb, 0, 0)),
        scratch_shapes=[pltpu.VMEM((3 * cpad, N + 2 * Pa), jnp.bfloat16)],
        compiler_params=_COMPILER_PARAMS,
    )(*args)


def pallas_bottleneck(p_down5, p_attn, p_up2, x, H, W):
    """Fused down5 -> Self_Attn_MultiC -> up2 on channel-major x (B, C, H*W)."""
    B, C, N = x.shape
    Cq = p_attn['wq'].shape[0]
    Pa = _round_up(max(W, 1), 128)
    cpad5 = _round_up(C, 8)
    cpad2 = _round_up(2 * C, 8)
    c5out = p_down5['w'].shape[0]
    c2out = p_up2['w'].shape[0]

    w5 = _pack_w3(p_down5['w'], cpad5)
    w2 = _pack_w3(p_up2['w'], cpad2)
    g5 = p_down5['g'].reshape(c5out, 1)
    b5 = p_down5['b'].reshape(c5out, 1)
    g2 = p_up2['g'].reshape(c2out, 1)
    b2 = p_up2['b'].reshape(c2out, 1)
    wqkv = jnp.concatenate(
        [p_attn['wq'].reshape(Cq, C), p_attn['wk'].reshape(Cq, C),
         p_attn['wv'].reshape(C, C)], axis=0).astype(jnp.bfloat16)   # (2Cq + C, C)
    bqkv = jnp.concatenate(
        [p_attn['bq'], p_attn['bk'], p_attn['bv']]).reshape(2 * Cq + C, 1)

    kern = functools.partial(bottleneck_kernel, Cq=Cq, H=H, W=W, Pa=Pa,
                             cpad5=cpad5, cpad2=cpad2)
    return pl.pallas_call(
        kern,
        out_shape=jax.ShapeDtypeStruct((B, c2out, N), jnp.bfloat16),
        grid=(B,),
        in_specs=[
            pl.BlockSpec((1, C, N), lambda bb: (bb, 0, 0)),
            pl.BlockSpec((3, c5out, 3 * cpad5), lambda bb: (0, 0, 0)),
            pl.BlockSpec((c5out, 1), lambda bb: (0, 0)),
            pl.BlockSpec((c5out, 1), lambda bb: (0, 0)),
            pl.BlockSpec((2 * Cq + C, C), lambda bb: (0, 0)),
            pl.BlockSpec((2 * Cq + C, 1), lambda bb: (0, 0)),
            pl.BlockSpec(memory_space=pltpu.MemorySpace.SMEM),
            pl.BlockSpec((3, c2out, 3 * cpad2), lambda bb: (0, 0, 0)),
            pl.BlockSpec((c2out, 1), lambda bb: (0, 0)),
            pl.BlockSpec((c2out, 1), lambda bb: (0, 0)),
        ],
        out_specs=pl.BlockSpec((1, c2out, N), lambda bb: (bb, 0, 0)),
        scratch_shapes=[pltpu.VMEM((3 * cpad5, N + 2 * Pa), jnp.bfloat16),
                        pltpu.VMEM((3 * cpad2, N + 2 * Pa), jnp.bfloat16)],
        compiler_params=_COMPILER_PARAMS,
    )(x, w5, g5, b5, wqkv, bqkv, p_attn['gamma'], w2, g2, b2)


# ----------------------------------------------------------------------------
# Network glue (nearest resize kept in XLA for now; see TODO at top)
# ----------------------------------------------------------------------------

def _nearest_down2(x, H, W):
    B, C, _ = x.shape
    return x.reshape(B, C, H, W)[:, :, ::2, ::2].reshape(B, C, -1)


def _nearest_up2(x, H, W):
    B, C, _ = x.shape
    x4 = jnp.repeat(jnp.repeat(x.reshape(B, C, H, W), 2, axis=2), 2, axis=3)
    return x4.reshape(B, C, -1)


def attention_block(p, inputs, H, W, resize):
    """AttentionBlock.forward on channel-major (B, C, H*W) activations."""
    downsampling = len(inputs) == 1
    skip = pallas_conv_block(inputs, H, W, p['w'], p['g'], p['b'])
    out = skip
    if resize:
        out = _nearest_down2(skip, H, W) if downsampling else _nearest_up2(skip, H, W)
    return (out, skip) if downsampling else out


def attention_forward(params, x, log_s_k):
    """Attention.forward with full_res=False, use_attn=True (NCHW in/out)."""
    B, _, H, W = x.shape
    # First-layer concat is only 4 channels; kept in XLA (sub-8-row staging of
    # separate refs would need sublane-unaligned stores for no measurable win).
    x0 = jnp.concatenate((x, log_s_k), axis=1).reshape(B, -1, H * W)
    h, skip1 = attention_block(params['down1'], (x0,), H, W, True)
    h, skip2 = attention_block(params['down2'], (h,), H // 2, W // 2, True)
    h, skip3 = attention_block(params['down3'], (h,), H // 4, W // 4, True)
    h, skip4 = attention_block(params['down4'], (h,), H // 8, W // 8, True)
    # Fused bottleneck: down5 -> self-attention -> up2, all at H/16 x W/16.
    h = pallas_bottleneck(params['down5'], params['sattn'], params['up2'],
                          h, H // 16, W // 16)
    h = _nearest_up2(h, H // 16, W // 16)                 # up2's resize
    h = attention_block(params['up3'], (h, skip4), H // 8, W // 8, True)
    h = attention_block(params['up4'], (h, skip3), H // 4, W // 4, True)
    h = attention_block(params['up5'], (h, skip2), H // 2, W // 2, True)
    # Final AttentionBlock (up6, concat folded) + 1x1 output conv + log-sigmoid.
    y = pallas_conv_block((h, skip1), H, W,
                          params['up6']['w'], params['up6']['g'],
                          params['up6']['b'],
                          out_w=params['out_w'], out_b=params['out_b'])
    return y.reshape(B, -1, H, W)


# ----------------------------------------------------------------------------
# Pure-JAX reference (for correctness check)
# ----------------------------------------------------------------------------

def _ref_conv3x3(x, w):
    return jax.lax.conv_general_dilated(
        x, w, (1, 1), 'SAME', dimension_numbers=('NCHW', 'OIHW', 'NCHW'))


def _ref_in_relu(x, g, b, eps=1e-5):
    m = x.mean(axis=(2, 3), keepdims=True)
    v = ((x - m) ** 2).mean(axis=(2, 3), keepdims=True)
    y = (x - m) * jax.lax.rsqrt(v + eps)
    y = y * g[None, :, None, None] + b[None, :, None, None]
    return jnp.maximum(y, 0.0)


def _ref_block(p, inputs, resize):
    down = len(inputs) == 1
    x = inputs[0] if down else jnp.concatenate(inputs, axis=1)
    skip = _ref_in_relu(_ref_conv3x3(x, p['w']), p['g'], p['b'])
    out = skip
    if resize:
        out = skip[:, :, ::2, ::2] if down else jnp.repeat(jnp.repeat(skip, 2, 2), 2, 3)
    return (out, skip) if down else out


def _ref_conv1x1(x, w, b):
    y = jnp.einsum('bchw,oc->bohw', x, w.reshape(w.shape[0], w.shape[1]))
    return y + b[None, :, None, None]


def _ref_self_attn(p, x):
    B, C, H, W = x.shape
    N = H * W
    q = _ref_conv1x1(x, p['wq'], p['bq']).reshape(B, -1, N).transpose(0, 2, 1)
    k = _ref_conv1x1(x, p['wk'], p['bk']).reshape(B, -1, N)
    e = jnp.einsum('bnc,bcm->bnm', q, k)
    a = jax.nn.softmax(e, axis=-1)
    v = _ref_conv1x1(x, p['wv'], p['bv']).reshape(B, C, N)
    out = jnp.einsum('bcn,bmn->bcm', v, a).reshape(B, C, H, W)
    return p['gamma'][0] * out + x, a


def reference_forward(params, x, log_s_k):
    h, skip1 = _ref_block(params['down1'], (jnp.concatenate((x, log_s_k), 1),), True)
    h, skip2 = _ref_block(params['down2'], (h,), True)
    h, skip3 = _ref_block(params['down3'], (h,), True)
    h, skip4 = _ref_block(params['down4'], (h,), True)
    h, skip5 = _ref_block(params['down5'], (h,), False)
    h, _ = _ref_self_attn(params['sattn'], skip5)
    h = _ref_block(params['up2'], (h, skip5), True)
    h = _ref_block(params['up3'], (h, skip4), True)
    h = _ref_block(params['up4'], (h, skip3), True)
    h = _ref_block(params['up5'], (h, skip2), True)
    h = _ref_block(params['up6'], (h, skip1), False)
    y = _ref_conv1x1(h, params['out_w'], params['out_b'])
    return jax.nn.log_sigmoid(y)


# ----------------------------------------------------------------------------
# Deterministic parameter initialization (shapes from the module's __init__)
# ----------------------------------------------------------------------------

def _conv_init(key, cout, cin, ks):
    bound = 1.0 / np.sqrt(cin * ks * ks)
    kw, kb = jax.random.split(key)
    w = jax.random.uniform(kw, (cout, cin, ks, ks), jnp.float32, -bound, bound)
    b = jax.random.uniform(kb, (cout,), jnp.float32, -bound, bound)
    return w, b


def _block_params(key, cin, cout):
    w, _ = _conv_init(key, cout, cin, 3)                    # conv has bias=False
    return {'w': w,
            'g': jnp.ones((cout,), jnp.float32),            # InstanceNorm2d affine init
            'b': jnp.zeros((cout,), jnp.float32)}


def _sattn_params(key, c):
    kq, kk, kv = jax.random.split(key, 3)
    wq, bq = _conv_init(kq, c // 8, c, 1)
    wk, bk = _conv_init(kk, c // 8, c, 1)
    wv, bv = _conv_init(kv, c, c, 1)
    # PyTorch inits gamma to 0 (which would zero-out the attention branch);
    # use a nonzero deterministic value so the attention path is exercised.
    return {'wq': wq, 'bq': bq, 'wk': wk, 'bk': bk, 'wv': wv, 'bv': bv,
            'gamma': jnp.array([0.5], jnp.float32)}


def make_params(key, input_nc, output_nc, ngf):
    ks = jax.random.split(key, 12)
    params = {
        'down1': _block_params(ks[0], input_nc + 1, ngf),
        'down2': _block_params(ks[1], ngf, ngf * 2),
        'down3': _block_params(ks[2], ngf * 2, ngf * 4),
        'down4': _block_params(ks[3], ngf * 4, ngf * 8),
        'down5': _block_params(ks[4], ngf * 8, ngf * 8),
        'sattn': _sattn_params(ks[5], ngf * 8),
        'up2': _block_params(ks[6], 2 * ngf * 8, ngf * 8),
        'up3': _block_params(ks[7], 2 * ngf * 8, ngf * 4),
        'up4': _block_params(ks[8], 2 * ngf * 4, ngf * 2),
        'up5': _block_params(ks[9], 2 * ngf * 2, ngf),
        'up6': _block_params(ks[10], 2 * ngf, ngf),
    }
    params['out_w'], params['out_b'] = _conv_init(ks[11], output_nc, ngf, 1)
    return params


# ----------------------------------------------------------------------------
# Main
# ----------------------------------------------------------------------------

if __name__ == "__main__":
    key = jax.random.PRNGKey(0)
    k_params, k_x, k_s = jax.random.split(key, 3)

    input_nc, output_nc, ngf = 3, 1, 8
    B, H, W = 2, 32, 32                                     # 32x32 -> 2x2 bottleneck

    params = make_params(k_params, input_nc, output_nc, ngf)
    x = jax.random.normal(k_x, (B, input_nc, H, W), jnp.float32)
    log_s_k = jax.random.normal(k_s, (B, 1, H, W), jnp.float32)

    out = jax.jit(attention_forward)(params, x, log_s_k)
    out = jax.block_until_ready(out)
    assert out.shape == (B, output_nc, H, W)
    assert bool(jnp.all(jnp.isfinite(out)))

    ref = reference_forward(params, x, log_s_k)
    # Kernels use bf16 MXU operands / bf16 activation storage with f32
    # accumulation; compare against the pure-f32 reference with a
    # correspondingly relaxed tolerance.
    np.testing.assert_allclose(np.asarray(out), np.asarray(ref),
                               rtol=5e-2, atol=2e-2)

    print("KERNEL_OK")
</pallas_src>

<mosaic_0001>
module attributes {stable_mosaic.version = 11 : i64} {
  func.func @conv_block_kernel(%arg0: i32, %arg1: memref<1x4x1024xf32, #tpu.memory_space<vmem>>, %arg2: memref<3x8x24xbf16, #tpu.memory_space<vmem>>, %arg3: memref<8x1xf32, #tpu.memory_space<vmem>>, %arg4: memref<8x1xf32, #tpu.memory_space<vmem>>, %arg5: memref<1x8x1024xbf16, #tpu.memory_space<vmem>>, %arg6: memref<24x1280xbf16, #tpu.memory_space<vmem>>) attributes {dimension_semantics = [#tpu.dimension_semantics<parallel>], iteration_bounds = array<i64: 2>, scalar_prefetch = 0 : i64, scratch_operands = 1 : i64, tpu.core_type = #tpu.core_type<tc>, window_params = [{transform_indices = @transform_0, window_bounds = array<i64: 1, 4, 1024>}, {pipeline_mode = #tpu.pipeline_mode<synchronous>, transform_indices = @transform_1, window_bounds = array<i64: 3, 8, 24>}, {pipeline_mode = #tpu.pipeline_mode<synchronous>, transform_indices = @transform_2, window_bounds = array<i64: 8, 1>}, {pipeline_mode = #tpu.pipeline_mode<synchronous>, transform_indices = @transform_3, window_bounds = array<i64: 8, 1>}, {transform_indices = @transform_4, window_bounds = array<i64: 1, 8, 1024>}]} {
    %c0 = arith.constant 0 : index
    %c0_0 = arith.constant 0 : index
    %c0_1 = arith.constant 0 : index
    %0 = vector.load %arg1[%c0, %c0_0, %c0_1] : memref<1x4x1024xf32, #tpu.memory_space<vmem>>, vector<1x4x1024xf32>
    %1 = vector.shape_cast %0 : vector<1x4x1024xf32> to vector<4x1024xf32>
    %cst = arith.constant 0.000000e+00 : bf16
    %2 = vector.broadcast %cst : bf16 to vector<24x1280xbf16>
    %c0_2 = arith.constant 0 : index
    %c0_3 = arith.constant 0 : index
    %3 = vector.load %arg6[%c0_2, %c0_3] : memref<24x1280xbf16, #tpu.memory_space<vmem>>, vector<24x1280xbf16>
    tpu.vector_store %arg6[%c0_2, %c0_3], %2 {strides = array<i32>} : memref<24x1280xbf16, #tpu.memory_space<vmem>>, vector<24x1280xbf16>,
    %4 = arith.truncf %1 : vector<4x1024xf32> to vector<4x1024xbf16>
    %c0_4 = arith.constant 0 : index
    %c160 = arith.constant 160 : index
    %5 = vector.load %arg6[%c0_4, %c160] : memref<24x1280xbf16, #tpu.memory_space<vmem>>, vector<4x1024xbf16>
    tpu.vector_store %arg6[%c0_4, %c160], %4 {strides = array<i32>} : memref<24x1280xbf16, #tpu.memory_space<vmem>>, vector<4x1024xbf16>,
    %6 = arith.truncf %1 : vector<4x1024xf32> to vector<4x1024xbf16>
    %c8 = arith.constant 8 : index
    %c128 = arith.constant 128 : index
    %7 = vector.load %arg6[%c8, %c128] : memref<24x1280xbf16, #tpu.memory_space<vmem>>, vector<4x1024xbf16>
    tpu.vector_store %arg6[%c8, %c128], %6 {strides = array<i32>} : memref<24x1280xbf16, #tpu.memory_space<vmem>>, vector<4x1024xbf16>,
    %8 = arith.truncf %1 : vector<4x1024xf32> to vector<4x1024xbf16>
    %c16 = arith.constant 16 : index
    %c96 = arith.constant 96 : index
    %9 = vector.load %arg6[%c16, %c96] : memref<24x1280xbf16, #tpu.memory_space<vmem>>, vector<4x1024xbf16>
    tpu.vector_store %arg6[%c16, %c96], %8 {strides = array<i32>} : memref<24x1280xbf16, #tpu.memory_space<vmem>>, vector<4x1024xbf16>,
    %10 = tpu.iota {dimensions = array<i32: 1>} : vector<1x1024xi32>
    %c32_i32 = arith.constant 32 : i32
    %c0_i32 = arith.constant 0 : i32
    %11 = arith.cmpi eq, %c32_i32, %c0_i32 : i32
    %c1_i32 = arith.constant 1 : i32
    %12 = arith.select %11, %c1_i32, %c32_i32 : i32
    %13 = vector.broadcast %12 : i32 to vector<1x1024xi32>
    %14 = arith.remsi %10, %13 : vector<1x1024xi32>
    %c0_i32_5 = arith.constant 0 : i32
    %15 = vector.broadcast %c0_i32_5 : i32 to vector<1x1024xi32>
    %16 = arith.cmpi ne, %14, %15 : vector<1x1024xi32>
    %c0_i32_6 = arith.constant 0 : i32
    %17 = vector.broadcast %c0_i32_6 : i32 to vector<1x1024xi32>
    %18 = arith.cmpi slt, %14, %17 : vector<1x1024xi32>
    %c0_i32_7 = arith.constant 0 : i32
    %19 = arith.cmpi slt, %12, %c0_i32_7 : i32
    %20 = vector.broadcast %19 : i1 to vector<1x1024xi1>
    %21 = vector.broadcast %20 : vector<1x1024xi1> to vector<1x1024xi1>
    %22 = arith.xori %18, %21 : vector<1x1024xi1>
    %23 = arith.andi %22, %16 : vector<1x1024xi1>
    %24 = vector.broadcast %12 : i32 to vector<1x1024xi32>
    %25 = arith.addi %14, %24 : vector<1x1024xi32>
    %26 = arith.select %23, %25, %14 : vector<1x1024xi1>, vector<1x1024xi32>
    %c1_i32_8 = arith.constant 1 : i32
    %27 = vector.broadcast %c1_i32_8 : i32 to vector<1x1024xi32>
    %28 = arith.cmpi sge, %26, %27 : vector<1x1024xi32>
    %c30_i32 = arith.constant 30 : i32
    %29 = vector.broadcast %c30_i32 : i32 to vector<1x1024xi32>
    %30 = arith.cmpi sle, %26, %29 : vector<1x1024xi32>
    %cst_9 = arith.constant 0.000000e+00 : f32
    %31 = vector.broadcast %cst_9 : f32 to vector<8x1024xf32>
    %c0_10 = arith.constant 0 : index
    %c0_11 = arith.constant 0 : index
    %c0_12 = arith.constant 0 : index
    %32 = vector.load %arg2[%c0_10, %c0_11, %c0_12] : memref<3x8x24xbf16, #tpu.memory_space<vmem>>, vector<1x8x24xbf16>
    %33 = vector.shape_cast %32 : vector<1x8x24xbf16> to vector<8x24xbf16>
    %c0_13 = arith.constant 0 : index
    %c127 = arith.constant 127 : index
    %34 = vector.load %arg6[%c0_13, %c127] : memref<24x1280xbf16, #tpu.memory_space<vmem>>, vector<24x1024xbf16>
    %cst_14 = arith.constant dense<0.000000e+00> : vector<8x1024xf32>
    %35 = tpu.matmul %33, %34, %cst_14 {dimension_numbers = #tpu.dot_dimension_numbers<[1], [0], [0], [1], [0, 0, 1, 1], [], []>} : vector<8x24xbf16>, vector<24x1024xbf16>, vector<8x1024xf32> -> vector<8x1024xf32>
    %cst_15 = arith.constant 0.000000e+00 : f32
    %36 = vector.shape_cast %28 : vector<1x1024xi1> to vector<1x1024xi1>
    %37 = vector.broadcast %36 : vector<1x1024xi1> to vector<8x1024xi1>
    %38 = vector.broadcast %cst_15 : f32 to vector<8x1024xf32>
    %39 = arith.select %37, %35, %38 : vector<8x1024xi1>, vector<8x1024xf32>
    %40 = arith.addf %31, %39 : vector<8x1024xf32>
    %c1 = arith.constant 1 : index
    %c0_16 = arith.constant 0 : index
    %c0_17 = arith.constant 0 : index
    %41 = vector.load %arg2[%c1, %c0_16, %c0_17] : memref<3x8x24xbf16, #tpu.memory_space<vmem>>, vector<1x8x24xbf16>
    %42 = vector.shape_cast %41 : vector<1x8x24xbf16> to vector<8x24xbf16>
    %c0_18 = arith.constant 0 : index
    %c128_19 = arith.constant 128 : index
    %43 = vector.load %arg6[%c0_18, %c128_19] : memref<24x1280xbf16, #tpu.memory_space<vmem>>, vector<24x1024xbf16>
    %cst_20 = arith.constant dense<0.000000e+00> : vector<8x1024xf32>
    %44 = tpu.matmul %42, %43, %cst_20 {dimension_numbers = #tpu.dot_dimension_numbers<[1], [0], [0], [1], [0, 0, 1, 1], [], []>} : vector<8x24xbf16>, vector<24x1024xbf16>, vector<8x1024xf32> -> vector<8x1024xf32>
    %45 = arith.addf %40, %44 : vector<8x1024xf32>
    %c2 = arith.constant 2 : index
    %c0_21 = arith.constant 0 : index
    %c0_22 = arith.constant 0 : index
    %46 = vector.load %arg2[%c2, %c0_21, %c0_22] : memref<3x8x24xbf16, #tpu.memory_space<vmem>>, vector<1x8x24xbf16>
    %47 = vector.shape_cast %46 : vector<1x8x24xbf16> to vector<8x24xbf16>
    %c0_23 = arith.constant 0 : index
    %c129 = arith.constant 129 : index
    %48 = vector.load %arg6[%c0_23, %c129] : memref<24x1280xbf16, #tpu.memory_space<vmem>>, vector<24x1024xbf16>
    %cst_24 = arith.constant dense<0.000000e+00> : vector<8x1024xf32>
    %49 = tpu.matmul %47, %48, %cst_24 {dimension_numbers = #tpu.dot_dimension_numbers<[1], [0], [0], [1], [0, 0, 1, 1], [], []>} : vector<8x24xbf16>, vector<24x1024xbf16>, vector<8x1024xf32> -> vector<8x1024xf32>
    %cst_25 = arith.constant 0.000000e+00 : f32
    %50 = vector.shape_cast %30 : vector<1x1024xi1> to vector<1x1024xi1>
    %51 = vector.broadcast %50 : vector<1x1024xi1> to vector<8x1024xi1>
    %52 = vector.broadcast %cst_25 : f32 to vector<8x1024xf32>
    %53 = arith.select %51, %49, %52 : vector<8x1024xi1>, vector<8x1024xf32>
    %54 = arith.addf %45, %53 : vector<8x1024xf32>
    %cst_26 = arith.constant dense<0.000000e+00> : vector<8xf32>
    %55 = vector.multi_reduction <add>, %54, %cst_26 [1] : vector<8x1024xf32> to vector<8xf32>
    %56 = vector.shape_cast %55 : vector<8xf32> to vector<8x1xf32>
    %cst_27 = arith.constant 1.024000e+03 : f32
    %57 = vector.broadcast %cst_27 : f32 to vector<8x1xf32>
    %58 = arith.divf %56, %57 : vector<8x1xf32>
    %59 = vector.broadcast %58 : vector<8x1xf32> to vector<8x1024xf32>
    %60 = arith.subf %54, %59 : vector<8x1024xf32>
    %61 = arith.mulf %60, %60 : vector<8x1024xf32>
    %cst_28 = arith.constant dense<0.000000e+00> : vector<8xf32>
    %62 = vector.multi_reduction <add>, %61, %cst_28 [1] : vector<8x1024xf32> to vector<8xf32>
    %63 = vector.shape_cast %62 : vector<8xf32> to vector<8x1xf32>
    %cst_29 = arith.constant 1.024000e+03 : f32
    %64 = vector.broadcast %cst_29 : f32 to vector<8x1xf32>
    %65 = arith.divf %63, %64 : vector<8x1xf32>
    %66 = vector.broadcast %58 : vector<8x1xf32> to vector<8x1024xf32>
    %67 = arith.subf %54, %66 : vector<8x1024xf32>
    %cst_30 = arith.constant 9.99999974E-6 : f32
    %68 = vector.broadcast %cst_30 : f32 to vector<8x1xf32>
    %69 = arith.addf %65, %68 : vector<8x1xf32>
    %70 = math.rsqrt %69 : vector<8x1xf32>
    %71 = vector.broadcast %70 : vector<8x1xf32> to vector<8x1024xf32>
    %72 = arith.mulf %67, %71 : vector<8x1024xf32>
    %c0_31 = arith.constant 0 : index
    %c0_32 = arith.constant 0 : index
    %73 = vector.load %arg3[%c0_31, %c0_32] : memref<8x1xf32, #tpu.memory_space<vmem>>, vector<8x1xf32>
    %74 = vector.broadcast %73 : vector<8x1xf32> to vector<8x1024xf32>
    %75 = arith.mulf %72, %74 : vector<8x1024xf32>
    %c0_33 = arith.constant 0 : index
    %c0_34 = arith.constant 0 : index
    %76 = vector.load %arg4[%c0_33, %c0_34] : memref<8x1xf32, #tpu.memory_space<vmem>>, vector<8x1xf32>
    %77 = vector.broadcast %76 : vector<8x1xf32> to vector<8x1024xf32>
    %78 = arith.addf %75, %77 : vector<8x1024xf32>
    %cst_35 = arith.constant 0.000000e+00 : f32
    %79 = vector.broadcast %cst_35 : f32 to vector<8x1024xf32>
    %80 = arith.maximumf %78, %79 : vector<8x1024xf32>
    %81 = arith.truncf %80 : vector<8x1024xf32> to vector<8x1024xbf16>
    %c0_36 = arith.constant 0 : index
    %c0_37 = arith.constant 0 : index
    %c0_38 = arith.constant 0 : index
    %82 = vector.load %arg5[%c0_36, %c0_37, %c0_38] : memref<1x8x1024xbf16, #tpu.memory_space<vmem>>, vector<1x8x1024xbf16>
    %83 = vector.shape_cast %82 : vector<1x8x1024xbf16> to vector<8x1024xbf16>
    %84 = vector.shape_cast %81 : vector<8x1024xbf16> to vector<1x8x1024xbf16>
    tpu.vector_store %arg5[%c0_36, %c0_37, %c0_38], %84 {strides = array<i32>} : memref<1x8x1024xbf16, #tpu.memory_space<vmem>>, vector<1x8x1024xbf16>,
    return
  }
  func.func @transform_0(%arg0: i32) -> (i32, i32, i32) {
    %c0_i32 = arith.constant 0 : i32
    %c0_i32_0 = arith.constant 0 : i32
    %c0_i32_1 = arith.constant 0 : i32
    return %arg0, %c0_i32, %c0_i32_0 : i32, i32, i32
  }
  func.func @transform_1(%arg0: i32) -> (i32, i32, i32) {
    %c0_i32 = arith.constant 0 : i32
    %c0_i32_0 = arith.constant 0 : i32
    %c0_i32_1 = arith.constant 0 : i32
    %c0_i32_2 = arith.constant 0 : i32
    return %c0_i32, %c0_i32_0, %c0_i32_1 : i32, i32, i32
  }
  func.func @transform_2(%arg0: i32) -> (i32, i32) {
    %c0_i32 = arith.constant 0 : i32
    %c0_i32_0 = arith.constant 0 : i32
    %c0_i32_1 = arith.constant 0 : i32
    return %c0_i32, %c0_i32_0 : i32, i32
  }
  func.func @transform_3(%arg0: i32) -> (i32, i32) {
    %c0_i32 = arith.constant 0 : i32
    %c0_i32_0 = arith.constant 0 : i32
    %c0_i32_1 = arith.constant 0 : i32
    return %c0_i32, %c0_i32_0 : i32, i32
  }
  func.func @transform_4(%arg0: i32) -> (i32, i32, i32) {
    %c0_i32 = arith.constant 0 : i32
    %c0_i32_0 = arith.constant 0 : i32
    %c0_i32_1 = arith.constant 0 : i32
    return %arg0, %c0_i32, %c0_i32_0 : i32, i32, i32
  }
}

module attributes {stable_mosaic.version = 11 : i64} {
  func.func @conv_block_kernel(%arg0: i32, %arg1: memref<1x8x256xbf16, #tpu.memory_space<vmem>>, %arg2: memref<3x16x24xbf16, #tpu.memory_space<vmem>>, %arg3: memref<16x1xf32, #tpu.memory_space<vmem>>, %arg4: memref<16x1xf32, #tpu.memory_space<vmem>>, %arg5: memref<1x16x256xbf16, #tpu.memory_space<vmem>>, %arg6: memref<24x512xbf16, #tpu.memory_space<vmem>>) attributes {dimension_semantics = [#tpu.dimension_semantics<parallel>], iteration_bounds = array<i64: 2>, scalar_prefetch = 0 : i64, scratch_operands = 1 : i64, tpu.core_type = #tpu.core_type<tc>, window_params = [{transform_indices = @transform_0, window_bounds = array<i64: 1, 8, 256>}, {pipeline_mode = #tpu.pipeline_mode<synchronous>, transform_indices = @transform_1, window_bounds = array<i64: 3, 16, 24>}, {pipeline_mode = #tpu.pipeline_mode<synchronous>, transform_indices = @transform_2, window_bounds = array<i64: 16, 1>}, {pipeline_mode = #tpu.pipeline_mode<synchronous>, transform_indices = @transform_3, window_bounds = array<i64: 16, 1>}, {transform_indices = @transform_4, window_bounds = array<i64: 1, 16, 256>}]} {
    %c0 = arith.constant 0 : index
    %c0_0 = arith.constant 0 : index
    %c0_1 = arith.constant 0 : index
    %0 = vector.load %arg1[%c0, %c0_0, %c0_1] : memref<1x8x256xbf16, #tpu.memory_space<vmem>>, vector<1x8x256xbf16>
    %1 = vector.shape_cast %0 : vector<1x8x256xbf16> to vector<8x256xbf16>
    %cst = arith.constant 0.000000e+00 : bf16
    %2 = vector.broadcast %cst : bf16 to vector<24x512xbf16>
    %c0_2 = arith.constant 0 : index
    %c0_3 = arith.constant 0 : index
    %3 = vector.load %arg6[%c0_2, %c0_3] : memref<24x512xbf16, #tpu.memory_space<vmem>>, vector<24x512xbf16>
    tpu.vector_store %arg6[%c0_2, %c0_3], %2 {strides = array<i32>} : memref<24x512xbf16, #tpu.memory_space<vmem>>, vector<24x512xbf16>,
    %c0_4 = arith.constant 0 : index
    %c144 = arith.constant 144 : index
    %4 = vector.load %arg6[%c0_4, %c144] : memref<24x512xbf16, #tpu.memory_space<vmem>>, vector<8x256xbf16>
    tpu.vector_store %arg6[%c0_4, %c144], %1 {strides = array<i32>} : memref<24x512xbf16, #tpu.memory_space<vmem>>, vector<8x256xbf16>,
    %c8 = arith.constant 8 : index
    %c128 = arith.constant 128 : index
    %5 = vector.load %arg6[%c8, %c128] : memref<24x512xbf16, #tpu.memory_space<vmem>>, vector<8x256xbf16>
    tpu.vector_store %arg6[%c8, %c128], %1 {strides = array<i32>} : memref<24x512xbf16, #tpu.memory_space<vmem>>, vector<8x256xbf16>,
    %c16 = arith.constant 16 : index
    %c112 = arith.constant 112 : index
    %6 = vector.load %arg6[%c16, %c112] : memref<24x512xbf16, #tpu.memory_space<vmem>>, vector<8x256xbf16>
    tpu.vector_store %arg6[%c16, %c112], %1 {strides = array<i32>} : memref<24x512xbf16, #tpu.memory_space<vmem>>, vector<8x256xbf16>,
    %7 = tpu.iota {dimensions = array<i32: 1>} : vector<1x256xi32>
    %c16_i32 = arith.constant 16 : i32
    %c0_i32 = arith.constant 0 : i32
    %8 = arith.cmpi eq, %c16_i32, %c0_i32 : i32
    %c1_i32 = arith.constant 1 : i32
    %9 = arith.select %8, %c1_i32, %c16_i32 : i32
    %10 = vector.broadcast %9 : i32 to vector<1x256xi32>
    %11 = arith.remsi %7, %10 : vector<1x256xi32>
    %c0_i32_5 = arith.constant 0 : i32
    %12 = vector.broadcast %c0_i32_5 : i32 to vector<1x256xi32>
    %13 = arith.cmpi ne, %11, %12 : vector<1x256xi32>
    %c0_i32_6 = arith.constant 0 : i32
    %14 = vector.broadcast %c0_i32_6 : i32 to vector<1x256xi32>
    %15 = arith.cmpi slt, %11, %14 : vector<1x256xi32>
    %c0_i32_7 = arith.constant 0 : i32
    %16 = arith.cmpi slt, %9, %c0_i32_7 : i32
    %17 = vector.broadcast %16 : i1 to vector<1x256xi1>
    %18 = vector.broadcast %17 : vector<1x256xi1> to vector<1x256xi1>
    %19 = arith.xori %15, %18 : vector<1x256xi1>
    %20 = arith.andi %19, %13 : vector<1x256xi1>
    %21 = vector.broadcast %9 : i32 to vector<1x256xi32>
    %22 = arith.addi %11, %21 : vector<1x256xi32>
    %23 = arith.select %20, %22, %11 : vector<1x256xi1>, vector<1x256xi32>
    %c1_i32_8 = arith.constant 1 : i32
    %24 = vector.broadcast %c1_i32_8 : i32 to vector<1x256xi32>
    %25 = arith.cmpi sge, %23, %24 : vector<1x256xi32>
    %c14_i32 = arith.constant 14 : i32
    %26 = vector.broadcast %c14_i32 : i32 to vector<1x256xi32>
    %27 = arith.cmpi sle, %23, %26 : vector<1x256xi32>
    %cst_9 = arith.constant 0.000000e+00 : f32
    %28 = vector.broadcast %cst_9 : f32 to vector<16x256xf32>
    %c0_10 = arith.constant 0 : index
    %c0_11 = arith.constant 0 : index
    %c0_12 = arith.constant 0 : index
    %29 = vector.load %arg2[%c0_10, %c0_11, %c0_12] : memref<3x16x24xbf16, #tpu.memory_space<vmem>>, vector<1x16x24xbf16>
    %30 = vector.shape_cast %29 : vector<1x16x24xbf16> to vector<16x24xbf16>
    %c0_13 = arith.constant 0 : index
    %c127 = arith.constant 127 : index
    %31 = vector.load %arg6[%c0_13, %c127] : memref<24x512xbf16, #tpu.memory_space<vmem>>, vector<24x256xbf16>
    %cst_14 = arith.constant dense<0.000000e+00> : vector<16x256xf32>
    %32 = tpu.matmul %30, %31, %cst_14 {dimension_numbers = #tpu.dot_dimension_numbers<[1], [0], [0], [1], [0, 0, 1, 1], [], []>} : vector<16x24xbf16>, vector<24x256xbf16>, vector<16x256xf32> -> vector<16x256xf32>
    %cst_15 = arith.constant 0.000000e+00 : f32
    %33 = vector.shape_cast %25 : vector<1x256xi1> to vector<1x256xi1>
    %34 = vector.broadcast %33 : vector<1x256xi1> to vector<16x256xi1>
    %35 = vector.broadcast %cst_15 : f32 to vector<16x256xf32>
    %36 = arith.select %34, %32, %35 : vector<16x256xi1>, vector<16x256xf32>
    %37 = arith.addf %28, %36 : vector<16x256xf32>
    %c1 = arith.constant 1 : index
    %c0_16 = arith.constant 0 : index
    %c0_17 = arith.constant 0 : index
    %38 = vector.load %arg2[%c1, %c0_16, %c0_17] : memref<3x16x24xbf16, #tpu.memory_space<vmem>>, vector<1x16x24xbf16>
    %39 = vector.shape_cast %38 : vector<1x16x24xbf16> to vector<16x24xbf16>
    %c0_18 = arith.constant 0 : index
    %c128_19 = arith.constant 128 : index
    %40 = vector.load %arg6[%c0_18, %c128_19] : memref<24x512xbf16, #tpu.memory_space<vmem>>, vector<24x256xbf16>
    %cst_20 = arith.constant dense<0.000000e+00> : vector<16x256xf32>
    %41 = tpu.matmul %39, %40, %cst_20 {dimension_numbers = #tpu.dot_dimension_numbers<[1], [0], [0], [1], [0, 0, 1, 1], [], []>} : vector<16x24xbf16>, vector<24x256xbf16>, vector<16x256xf32> -> vector<16x256xf32>
    %42 = arith.addf %37, %41 : vector<16x256xf32>
    %c2 = arith.constant 2 : index
    %c0_21 = arith.constant 0 : index
    %c0_22 = arith.constant 0 : index
    %43 = vector.load %arg2[%c2, %c0_21, %c0_22] : memref<3x16x24xbf16, #tpu.memory_space<vmem>>, vector<1x16x24xbf16>
    %44 = vector.shape_cast %43 : vector<1x16x24xbf16> to vector<16x24xbf16>
    %c0_23 = arith.constant 0 : index
    %c129 = arith.constant 129 : index
    %45 = vector.load %arg6[%c0_23, %c129] : memref<24x512xbf16, #tpu.memory_space<vmem>>, vector<24x256xbf16>
    %cst_24 = arith.constant dense<0.000000e+00> : vector<16x256xf32>
    %46 = tpu.matmul %44, %45, %cst_24 {dimension_numbers = #tpu.dot_dimension_numbers<[1], [0], [0], [1], [0, 0, 1, 1], [], []>} : vector<16x24xbf16>, vector<24x256xbf16>, vector<16x256xf32> -> vector<16x256xf32>
    %cst_25 = arith.constant 0.000000e+00 : f32
    %47 = vector.shape_cast %27 : vector<1x256xi1> to vector<1x256xi1>
    %48 = vector.broadcast %47 : vector<1x256xi1> to vector<16x256xi1>
    %49 = vector.broadcast %cst_25 : f32 to vector<16x256xf32>
    %50 = arith.select %48, %46, %49 : vector<16x256xi1>, vector<16x256xf32>
    %51 = arith.addf %42, %50 : vector<16x256xf32>
    %cst_26 = arith.constant dense<0.000000e+00> : vector<16xf32>
    %52 = vector.multi_reduction <add>, %51, %cst_26 [1] : vector<16x256xf32> to vector<16xf32>
    %53 = vector.shape_cast %52 : vector<16xf32> to vector<16x1xf32>
    %cst_27 = arith.constant 2.560000e+02 : f32
    %54 = vector.broadcast %cst_27 : f32 to vector<16x1xf32>
    %55 = arith.divf %53, %54 : vector<16x1xf32>
    %56 = vector.broadcast %55 : vector<16x1xf32> to vector<16x256xf32>
    %57 = arith.subf %51, %56 : vector<16x256xf32>
    %58 = arith.mulf %57, %57 : vector<16x256xf32>
    %cst_28 = arith.constant dense<0.000000e+00> : vector<16xf32>
    %59 = vector.multi_reduction <add>, %58, %cst_28 [1] : vector<16x256xf32> to vector<16xf32>
    %60 = vector.shape_cast %59 : vector<16xf32> to vector<16x1xf32>
    %cst_29 = arith.constant 2.560000e+02 : f32
    %61 = vector.broadcast %cst_29 : f32 to vector<16x1xf32>
    %62 = arith.divf %60, %61 : vector<16x1xf32>
    %63 = vector.broadcast %55 : vector<16x1xf32> to vector<16x256xf32>
    %64 = arith.subf %51, %63 : vector<16x256xf32>
    %cst_30 = arith.constant 9.99999974E-6 : f32
    %65 = vector.broadcast %cst_30 : f32 to vector<16x1xf32>
    %66 = arith.addf %62, %65 : vector<16x1xf32>
    %67 = math.rsqrt %66 : vector<16x1xf32>
    %68 = vector.broadcast %67 : vector<16x1xf32> to vector<16x256xf32>
    %69 = arith.mulf %64, %68 : vector<16x256xf32>
    %c0_31 = arith.constant 0 : index
    %c0_32 = arith.constant 0 : index
    %70 = vector.load %arg3[%c0_31, %c0_32] : memref<16x1xf32, #tpu.memory_space<vmem>>, vector<16x1xf32>
    %71 = vector.broadcast %70 : vector<16x1xf32> to vector<16x256xf32>
    %72 = arith.mulf %69, %71 : vector<16x256xf32>
    %c0_33 = arith.constant 0 : index
    %c0_34 = arith.constant 0 : index
    %73 = vector.load %arg4[%c0_33, %c0_34] : memref<16x1xf32, #tpu.memory_space<vmem>>, vector<16x1xf32>
    %74 = vector.broadcast %73 : vector<16x1xf32> to vector<16x256xf32>
    %75 = arith.addf %72, %74 : vector<16x256xf32>
    %cst_35 = arith.constant 0.000000e+00 : f32
    %76 = vector.broadcast %cst_35 : f32 to vector<16x256xf32>
    %77 = arith.maximumf %75, %76 : vector<16x256xf32>
    %78 = arith.truncf %77 : vector<16x256xf32> to vector<16x256xbf16>
    %c0_36 = arith.constant 0 : index
    %c0_37 = arith.constant 0 : index
    %c0_38 = arith.constant 0 : index
    %79 = vector.load %arg5[%c0_36, %c0_37, %c0_38] : memref<1x16x256xbf16, #tpu.memory_space<vmem>>, vector<1x16x256xbf16>
    %80 = vector.shape_cast %79 : vector<1x16x256xbf16> to vector<16x256xbf16>
    %81 = vector.shape_cast %78 : vector<16x256xbf16> to vector<1x16x256xbf16>
    tpu.vector_store %arg5[%c0_36, %c0_37, %c0_38], %81 {strides = array<i32>} : memref<1x16x256xbf16, #tpu.memory_space<vmem>>, vector<1x16x256xbf16>,
    return
  }
  func.func @transform_0(%arg0: i32) -> (i32, i32, i32) {
    %c0_i32 = arith.constant 0 : i32
    %c0_i32_0 = arith.constant 0 : i32
    %c0_i32_1 = arith.constant 0 : i32
    return %arg0, %c0_i32, %c0_i32_0 : i32, i32, i32
  }
  func.func @transform_1(%arg0: i32) -> (i32, i32, i32) {
    %c0_i32 = arith.constant 0 : i32
    %c0_i32_0 = arith.constant 0 : i32
    %c0_i32_1 = arith.constant 0 : i32
    %c0_i32_2 = arith.constant 0 : i32
    return %c0_i32, %c0_i32_0, %c0_i32_1 : i32, i32, i32
  }
  func.func @transform_2(%arg0: i32) -> (i32, i32) {
    %c0_i32 = arith.constant 0 : i32
    %c0_i32_0 = arith.constant 0 : i32
    %c0_i32_1 = arith.constant 0 : i32
    return %c0_i32, %c0_i32_0 : i32, i32
  }
  func.func @transform_3(%arg0: i32) -> (i32, i32) {
    %c0_i32 = arith.constant 0 : i32
    %c0_i32_0 = arith.constant 0 : i32
    %c0_i32_1 = arith.constant 0 : i32
    return %c0_i32, %c0_i32_0 : i32, i32
  }
  func.func @transform_4(%arg0: i32) -> (i32, i32, i32) {
    %c0_i32 = arith.constant 0 : i32
    %c0_i32_0 = arith.constant 0 : i32
    %c0_i32_1 = arith.constant 0 : i32
    return %arg0, %c0_i32, %c0_i32_0 : i32, i32, i32
  }
}

module attributes {stable_mosaic.version = 11 : i64} {
  func.func @conv_block_kernel(%arg0: i32, %arg1: memref<1x16x64xbf16, #tpu.memory_space<vmem>>, %arg2: memref<3x32x48xbf16, #tpu.memory_space<vmem>>, %arg3: memref<32x1xf32, #tpu.memory_space<vmem>>, %arg4: memref<32x1xf32, #tpu.memory_space<vmem>>, %arg5: memref<1x32x64xbf16, #tpu.memory_space<vmem>>, %arg6: memref<48x320xbf16, #tpu.memory_space<vmem>>) attributes {dimension_semantics = [#tpu.dimension_semantics<parallel>], iteration_bounds = array<i64: 2>, scalar_prefetch = 0 : i64, scratch_operands = 1 : i64, tpu.core_type = #tpu.core_type<tc>, window_params = [{transform_indices = @transform_0, window_bounds = array<i64: 1, 16, 64>}, {pipeline_mode = #tpu.pipeline_mode<synchronous>, transform_indices = @transform_1, window_bounds = array<i64: 3, 32, 48>}, {pipeline_mode = #tpu.pipeline_mode<synchronous>, transform_indices = @transform_2, window_bounds = array<i64: 32, 1>}, {pipeline_mode = #tpu.pipeline_mode<synchronous>, transform_indices = @transform_3, window_bounds = array<i64: 32, 1>}, {transform_indices = @transform_4, window_bounds = array<i64: 1, 32, 64>}]} {
    %c0 = arith.constant 0 : index
    %c0_0 = arith.constant 0 : index
    %c0_1 = arith.constant 0 : index
    %0 = vector.load %arg1[%c0, %c0_0, %c0_1] : memref<1x16x64xbf16, #tpu.memory_space<vmem>>, vector<1x16x64xbf16>
    %1 = vector.shape_cast %0 : vector<1x16x64xbf16> to vector<16x64xbf16>
    %cst = arith.constant 0.000000e+00 : bf16
    %2 = vector.broadcast %cst : bf16 to vector<48x320xbf16>
    %c0_2 = arith.constant 0 : index
    %c0_3 = arith.constant 0 : index
    %3 = vector.load %arg6[%c0_2, %c0_3] : memref<48x320xbf16, #tpu.memory_space<vmem>>, vector<48x320xbf16>
    tpu.vector_store %arg6[%c0_2, %c0_3], %2 {strides = array<i32>} : memref<48x320xbf16, #tpu.memory_space<vmem>>, vector<48x320xbf16>,
    %c0_4 = arith.constant 0 : index
    %c136 = arith.constant 136 : index
    %4 = vector.load %arg6[%c0_4, %c136] : memref<48x320xbf16, #tpu.memory_space<vmem>>, vector<16x64xbf16>
    tpu.vector_store %arg6[%c0_4, %c136], %1 {strides = array<i32>} : memref<48x320xbf16, #tpu.memory_space<vmem>>, vector<16x64xbf16>,
    %c16 = arith.constant 16 : index
    %c128 = arith.constant 128 : index
    %5 = vector.load %arg6[%c16, %c128] : memref<48x320xbf16, #tpu.memory_space<vmem>>, vector<16x64xbf16>
    tpu.vector_store %arg6[%c16, %c128], %1 {strides = array<i32>} : memref<48x320xbf16, #tpu.memory_space<vmem>>, vector<16x64xbf16>,
    %c32 = arith.constant 32 : index
    %c120 = arith.constant 120 : index
    %6 = vector.load %arg6[%c32, %c120] : memref<48x320xbf16, #tpu.memory_space<vmem>>, vector<16x64xbf16>
    tpu.vector_store %arg6[%c32, %c120], %1 {strides = array<i32>} : memref<48x320xbf16, #tpu.memory_space<vmem>>, vector<16x64xbf16>,
    %7 = tpu.iota {dimensions = array<i32: 1>} : vector<1x64xi32>
    %c8_i32 = arith.constant 8 : i32
    %c0_i32 = arith.constant 0 : i32
    %8 = arith.cmpi eq, %c8_i32, %c0_i32 : i32
    %c1_i32 = arith.constant 1 : i32
    %9 = arith.select %8, %c1_i32, %c8_i32 : i32
    %10 = vector.broadcast %9 : i32 to vector<1x64xi32>
    %11 = arith.remsi %7, %10 : vector<1x64xi32>
    %c0_i32_5 = arith.constant 0 : i32
    %12 = vector.broadcast %c0_i32_5 : i32 to vector<1x64xi32>
    %13 = arith.cmpi ne, %11, %12 : vector<1x64xi32>
    %c0_i32_6 = arith.constant 0 : i32
    %14 = vector.broadcast %c0_i32_6 : i32 to vector<1x64xi32>
    %15 = arith.cmpi slt, %11, %14 : vector<1x64xi32>
    %c0_i32_7 = arith.constant 0 : i32
    %16 = arith.cmpi slt, %9, %c0_i32_7 : i32
    %17 = vector.broadcast %16 : i1 to vector<1x64xi1>
    %18 = vector.broadcast %17 : vector<1x64xi1> to vector<1x64xi1>
    %19 = arith.xori %15, %18 : vector<1x64xi1>
    %20 = arith.andi %19, %13 : vector<1x64xi1>
    %21 = vector.broadcast %9 : i32 to vector<1x64xi32>
    %22 = arith.addi %11, %21 : vector<1x64xi32>
    %23 = arith.select %20, %22, %11 : vector<1x64xi1>, vector<1x64xi32>
    %c1_i32_8 = arith.constant 1 : i32
    %24 = vector.broadcast %c1_i32_8 : i32 to vector<1x64xi32>
    %25 = arith.cmpi sge, %23, %24 : vector<1x64xi32>
    %c6_i32 = arith.constant 6 : i32
    %26 = vector.broadcast %c6_i32 : i32 to vector<1x64xi32>
    %27 = arith.cmpi sle, %23, %26 : vector<1x64xi32>
    %cst_9 = arith.constant 0.000000e+00 : f32
    %28 = vector.broadcast %cst_9 : f32 to vector<32x64xf32>
    %c0_10 = arith.constant 0 : index
    %c0_11 = arith.constant 0 : index
    %c0_12 = arith.constant 0 : index
    %29 = vector.load %arg2[%c0_10, %c0_11, %c0_12] : memref<3x32x48xbf16, #tpu.memory_space<vmem>>, vector<1x32x48xbf16>
    %30 = vector.shape_cast %29 : vector<1x32x48xbf16> to vector<32x48xbf16>
    %c0_13 = arith.constant 0 : index
    %c127 = arith.constant 127 : index
    %31 = vector.load %arg6[%c0_13, %c127] : memref<48x320xbf16, #tpu.memory_space<vmem>>, vector<48x64xbf16>
    %cst_14 = arith.constant dense<0.000000e+00> : vector<32x64xf32>
    %32 = tpu.matmul %30, %31, %cst_14 {dimension_numbers = #tpu.dot_dimension_numbers<[1], [0], [0], [1], [0, 0, 1, 1], [], []>} : vector<32x48xbf16>, vector<48x64xbf16>, vector<32x64xf32> -> vector<32x64xf32>
    %cst_15 = arith.constant 0.000000e+00 : f32
    %33 = vector.shape_cast %25 : vector<1x64xi1> to vector<1x64xi1>
    %34 = vector.broadcast %33 : vector<1x64xi1> to vector<32x64xi1>
    %35 = vector.broadcast %cst_15 : f32 to vector<32x64xf32>
    %36 = arith.select %34, %32, %35 : vector<32x64xi1>, vector<32x64xf32>
    %37 = arith.addf %28, %36 : vector<32x64xf32>
    %c1 = arith.constant 1 : index
    %c0_16 = arith.constant 0 : index
    %c0_17 = arith.constant 0 : index
    %38 = vector.load %arg2[%c1, %c0_16, %c0_17] : memref<3x32x48xbf16, #tpu.memory_space<vmem>>, vector<1x32x48xbf16>
    %39 = vector.shape_cast %38 : vector<1x32x48xbf16> to vector<32x48xbf16>
    %c0_18 = arith.constant 0 : index
    %c128_19 = arith.constant 128 : index
    %40 = vector.load %arg6[%c0_18, %c128_19] : memref<48x320xbf16, #tpu.memory_space<vmem>>, vector<48x64xbf16>
    %cst_20 = arith.constant dense<0.000000e+00> : vector<32x64xf32>
    %41 = tpu.matmul %39, %40, %cst_20 {dimension_numbers = #tpu.dot_dimension_numbers<[1], [0], [0], [1], [0, 0, 1, 1], [], []>} : vector<32x48xbf16>, vector<48x64xbf16>, vector<32x64xf32> -> vector<32x64xf32>
    %42 = arith.addf %37, %41 : vector<32x64xf32>
    %c2 = arith.constant 2 : index
    %c0_21 = arith.constant 0 : index
    %c0_22 = arith.constant 0 : index
    %43 = vector.load %arg2[%c2, %c0_21, %c0_22] : memref<3x32x48xbf16, #tpu.memory_space<vmem>>, vector<1x32x48xbf16>
    %44 = vector.shape_cast %43 : vector<1x32x48xbf16> to vector<32x48xbf16>
    %c0_23 = arith.constant 0 : index
    %c129 = arith.constant 129 : index
    %45 = vector.load %arg6[%c0_23, %c129] : memref<48x320xbf16, #tpu.memory_space<vmem>>, vector<48x64xbf16>
    %cst_24 = arith.constant dense<0.000000e+00> : vector<32x64xf32>
    %46 = tpu.matmul %44, %45, %cst_24 {dimension_numbers = #tpu.dot_dimension_numbers<[1], [0], [0], [1], [0, 0, 1, 1], [], []>} : vector<32x48xbf16>, vector<48x64xbf16>, vector<32x64xf32> -> vector<32x64xf32>
    %cst_25 = arith.constant 0.000000e+00 : f32
    %47 = vector.shape_cast %27 : vector<1x64xi1> to vector<1x64xi1>
    %48 = vector.broadcast %47 : vector<1x64xi1> to vector<32x64xi1>
    %49 = vector.broadcast %cst_25 : f32 to vector<32x64xf32>
    %50 = arith.select %48, %46, %49 : vector<32x64xi1>, vector<32x64xf32>
    %51 = arith.addf %42, %50 : vector<32x64xf32>
    %cst_26 = arith.constant dense<0.000000e+00> : vector<32xf32>
    %52 = vector.multi_reduction <add>, %51, %cst_26 [1] : vector<32x64xf32> to vector<32xf32>
    %53 = vector.shape_cast %52 : vector<32xf32> to vector<32x1xf32>
    %cst_27 = arith.constant 6.400000e+01 : f32
    %54 = vector.broadcast %cst_27 : f32 to vector<32x1xf32>
    %55 = arith.divf %53, %54 : vector<32x1xf32>
    %56 = vector.broadcast %55 : vector<32x1xf32> to vector<32x64xf32>
    %57 = arith.subf %51, %56 : vector<32x64xf32>
    %58 = arith.mulf %57, %57 : vector<32x64xf32>
    %cst_28 = arith.constant dense<0.000000e+00> : vector<32xf32>
    %59 = vector.multi_reduction <add>, %58, %cst_28 [1] : vector<32x64xf32> to vector<32xf32>
    %60 = vector.shape_cast %59 : vector<32xf32> to vector<32x1xf32>
    %cst_29 = arith.constant 6.400000e+01 : f32
    %61 = vector.broadcast %cst_29 : f32 to vector<32x1xf32>
    %62 = arith.divf %60, %61 : vector<32x1xf32>
    %63 = vector.broadcast %55 : vector<32x1xf32> to vector<32x64xf32>
    %64 = arith.subf %51, %63 : vector<32x64xf32>
    %cst_30 = arith.constant 9.99999974E-6 : f32
    %65 = vector.broadcast %cst_30 : f32 to vector<32x1xf32>
    %66 = arith.addf %62, %65 : vector<32x1xf32>
    %67 = math.rsqrt %66 : vector<32x1xf32>
    %68 = vector.broadcast %67 : vector<32x1xf32> to vector<32x64xf32>
    %69 = arith.mulf %64, %68 : vector<32x64xf32>
    %c0_31 = arith.constant 0 : index
    %c0_32 = arith.constant 0 : index
    %70 = vector.load %arg3[%c0_31, %c0_32] : memref<32x1xf32, #tpu.memory_space<vmem>>, vector<32x1xf32>
    %71 = vector.broadcast %70 : vector<32x1xf32> to vector<32x64xf32>
    %72 = arith.mulf %69, %71 : vector<32x64xf32>
    %c0_33 = arith.constant 0 : index
    %c0_34 = arith.constant 0 : index
    %73 = vector.load %arg4[%c0_33, %c0_34] : memref<32x1xf32, #tpu.memory_space<vmem>>, vector<32x1xf32>
    %74 = vector.broadcast %73 : vector<32x1xf32> to vector<32x64xf32>
    %75 = arith.addf %72, %74 : vector<32x64xf32>
    %cst_35 = arith.constant 0.000000e+00 : f32
    %76 = vector.broadcast %cst_35 : f32 to vector<32x64xf32>
    %77 = arith.maximumf %75, %76 : vector<32x64xf32>
    %78 = arith.truncf %77 : vector<32x64xf32> to vector<32x64xbf16>
    %c0_36 = arith.constant 0 : index
    %c0_37 = arith.constant 0 : index
    %c0_38 = arith.constant 0 : index
    %79 = vector.load %arg5[%c0_36, %c0_37, %c0_38] : memref<1x32x64xbf16, #tpu.memory_space<vmem>>, vector<1x32x64xbf16>
    %80 = vector.shape_cast %79 : vector<1x32x64xbf16> to vector<32x64xbf16>
    %81 = vector.shape_cast %78 : vector<32x64xbf16> to vector<1x32x64xbf16>
    tpu.vector_store %arg5[%c0_36, %c0_37, %c0_38], %81 {strides = array<i32>} : memref<1x32x64xbf16, #tpu.memory_space<vmem>>, vector<1x32x64xbf16>,
    return
  }
  func.func @transform_0(%arg0: i32) -> (i32, i32, i32) {
    %c0_i32 = arith.constant 0 : i32
    %c0_i32_0 = arith.constant 0 : i32
    %c0_i32_1 = arith.constant 0 : i32
    return %arg0, %c0_i32, %c0_i32_0 : i32, i32, i32
  }
  func.func @transform_1(%arg0: i32) -> (i32, i32, i32) {
    %c0_i32 = arith.constant 0 : i32
    %c0_i32_0 = arith.constant 0 : i32
    %c0_i32_1 = arith.constant 0 : i32
    %c0_i32_2 = arith.constant 0 : i32
    return %c0_i32, %c0_i32_0, %c0_i32_1 : i32, i32, i32
  }
  func.func @transform_2(%arg0: i32) -> (i32, i32) {
    %c0_i32 = arith.constant 0 : i32
    %c0_i32_0 = arith.constant 0 : i32
    %c0_i32_1 = arith.constant 0 : i32
    return %c0_i32, %c0_i32_0 : i32, i32
  }
  func.func @transform_3(%arg0: i32) -> (i32, i32) {
    %c0_i32 = arith.constant 0 : i32
    %c0_i32_0 = arith.constant 0 : i32
    %c0_i32_1 = arith.constant 0 : i32
    return %c0_i32, %c0_i32_0 : i32, i32
  }
  func.func @transform_4(%arg0: i32) -> (i32, i32, i32) {
    %c0_i32 = arith.constant 0 : i32
    %c0_i32_0 = arith.constant 0 : i32
    %c0_i32_1 = arith.constant 0 : i32
    return %arg0, %c0_i32, %c0_i32_0 : i32, i32, i32
  }
}

module attributes {stable_mosaic.version = 11 : i64} {
  func.func @conv_block_kernel(%arg0: i32, %arg1: memref<1x32x16xbf16, #tpu.memory_space<vmem>>, %arg2: memref<3x64x96xbf16, #tpu.memory_space<vmem>>, %arg3: memref<64x1xf32, #tpu.memory_space<vmem>>, %arg4: memref<64x1xf32, #tpu.memory_space<vmem>>, %arg5: memref<1x64x16xbf16, #tpu.memory_space<vmem>>, %arg6: memref<96x272xbf16, #tpu.memory_space<vmem>>) attributes {dimension_semantics = [#tpu.dimension_semantics<parallel>], iteration_bounds = array<i64: 2>, scalar_prefetch = 0 : i64, scratch_operands = 1 : i64, tpu.core_type = #tpu.core_type<tc>, window_params = [{transform_indices = @transform_0, window_bounds = array<i64: 1, 32, 16>}, {pipeline_mode = #tpu.pipeline_mode<synchronous>, transform_indices = @transform_1, window_bounds = array<i64: 3, 64, 96>}, {pipeline_mode = #tpu.pipeline_mode<synchronous>, transform_indices = @transform_2, window_bounds = array<i64: 64, 1>}, {pipeline_mode = #tpu.pipeline_mode<synchronous>, transform_indices = @transform_3, window_bounds = array<i64: 64, 1>}, {transform_indices = @transform_4, window_bounds = array<i64: 1, 64, 16>}]} {
    %c0 = arith.constant 0 : index
    %c0_0 = arith.constant 0 : index
    %c0_1 = arith.constant 0 : index
    %0 = vector.load %arg1[%c0, %c0_0, %c0_1] : memref<1x32x16xbf16, #tpu.memory_space<vmem>>, vector<1x32x16xbf16>
    %1 = vector.shape_cast %0 : vector<1x32x16xbf16> to vector<32x16xbf16>
    %cst = arith.constant 0.000000e+00 : bf16
    %2 = vector.broadcast %cst : bf16 to vector<96x272xbf16>
    %c0_2 = arith.constant 0 : index
    %c0_3 = arith.constant 0 : index
    %3 = vector.load %arg6[%c0_2, %c0_3] : memref<96x272xbf16, #tpu.memory_space<vmem>>, vector<96x272xbf16>
    tpu.vector_store %arg6[%c0_2, %c0_3], %2 {strides = array<i32>} : memref<96x272xbf16, #tpu.memory_space<vmem>>, vector<96x272xbf16>,
    %c0_4 = arith.constant 0 : index
    %c132 = arith.constant 132 : index
    %4 = vector.load %arg6[%c0_4, %c132] : memref<96x272xbf16, #tpu.memory_space<vmem>>, vector<32x16xbf16>
    tpu.vector_store %arg6[%c0_4, %c132], %1 {strides = array<i32>} : memref<96x272xbf16, #tpu.memory_space<vmem>>, vector<32x16xbf16>,
    %c32 = arith.constant 32 : index
    %c128 = arith.constant 128 : index
    %5 = vector.load %arg6[%c32, %c128] : memref<96x272xbf16, #tpu.memory_space<vmem>>, vector<32x16xbf16>
    tpu.vector_store %arg6[%c32, %c128], %1 {strides = array<i32>} : memref<96x272xbf16, #tpu.memory_space<vmem>>, vector<32x16xbf16>,
    %c64 = arith.constant 64 : index
    %c124 = arith.constant 124 : index
    %6 = vector.load %arg6[%c64, %c124] : memref<96x272xbf16, #tpu.memory_space<vmem>>, vector<32x16xbf16>
    tpu.vector_store %arg6[%c64, %c124], %1 {strides = array<i32>} : memref<96x272xbf16, #tpu.memory_space<vmem>>, vector<32x16xbf16>,
    %7 = tpu.iota {dimensions = array<i32: 1>} : vector<1x16xi32>
    %c4_i32 = arith.constant 4 : i32
    %c0_i32 = arith.constant 0 : i32
    %8 = arith.cmpi eq, %c4_i32, %c0_i32 : i32
    %c1_i32 = arith.constant 1 : i32
    %9 = arith.select %8, %c1_i32, %c4_i32 : i32
    %10 = vector.broadcast %9 : i32 to vector<1x16xi32>
    %11 = arith.remsi %7, %10 : vector<1x16xi32>
    %c0_i32_5 = arith.constant 0 : i32
    %12 = vector.broadcast %c0_i32_5 : i32 to vector<1x16xi32>
    %13 = arith.cmpi ne, %11, %12 : vector<1x16xi32>
    %c0_i32_6 = arith.constant 0 : i32
    %14 = vector.broadcast %c0_i32_6 : i32 to vector<1x16xi32>
    %15 = arith.cmpi slt, %11, %14 : vector<1x16xi32>
    %c0_i32_7 = arith.constant 0 : i32
    %16 = arith.cmpi slt, %9, %c0_i32_7 : i32
    %17 = vector.broadcast %16 : i1 to vector<1x16xi1>
    %18 = vector.broadcast %17 : vector<1x16xi1> to vector<1x16xi1>
    %19 = arith.xori %15, %18 : vector<1x16xi1>
    %20 = arith.andi %19, %13 : vector<1x16xi1>
    %21 = vector.broadcast %9 : i32 to vector<1x16xi32>
    %22 = arith.addi %11, %21 : vector<1x16xi32>
    %23 = arith.select %20, %22, %11 : vector<1x16xi1>, vector<1x16xi32>
    %c1_i32_8 = arith.constant 1 : i32
    %24 = vector.broadcast %c1_i32_8 : i32 to vector<1x16xi32>
    %25 = arith.cmpi sge, %23, %24 : vector<1x16xi32>
    %c2_i32 = arith.constant 2 : i32
    %26 = vector.broadcast %c2_i32 : i32 to vector<1x16xi32>
    %27 = arith.cmpi sle, %23, %26 : vector<1x16xi32>
    %cst_9 = arith.constant 0.000000e+00 : f32
    %28 = vector.broadcast %cst_9 : f32 to vector<64x16xf32>
    %c0_10 = arith.constant 0 : index
    %c0_11 = arith.constant 0 : index
    %c0_12 = arith.constant 0 : index
    %29 = vector.load %arg2[%c0_10, %c0_11, %c0_12] : memref<3x64x96xbf16, #tpu.memory_space<vmem>>, vector<1x64x96xbf16>
    %30 = vector.shape_cast %29 : vector<1x64x96xbf16> to vector<64x96xbf16>
    %c0_13 = arith.constant 0 : index
    %c127 = arith.constant 127 : index
    %31 = vector.load %arg6[%c0_13, %c127] : memref<96x272xbf16, #tpu.memory_space<vmem>>, vector<96x16xbf16>
    %cst_14 = arith.constant dense<0.000000e+00> : vector<64x16xf32>
    %32 = tpu.matmul %30, %31, %cst_14 {dimension_numbers = #tpu.dot_dimension_numbers<[1], [0], [0], [1], [0, 0, 1, 1], [], []>} : vector<64x96xbf16>, vector<96x16xbf16>, vector<64x16xf32> -> vector<64x16xf32>
    %cst_15 = arith.constant 0.000000e+00 : f32
    %33 = vector.shape_cast %25 : vector<1x16xi1> to vector<1x16xi1>
    %34 = vector.broadcast %33 : vector<1x16xi1> to vector<64x16xi1>
    %35 = vector.broadcast %cst_15 : f32 to vector<64x16xf32>
    %36 = arith.select %34, %32, %35 : vector<64x16xi1>, vector<64x16xf32>
    %37 = arith.addf %28, %36 : vector<64x16xf32>
    %c1 = arith.constant 1 : index
    %c0_16 = arith.constant 0 : index
    %c0_17 = arith.constant 0 : index
    %38 = vector.load %arg2[%c1, %c0_16, %c0_17] : memref<3x64x96xbf16, #tpu.memory_space<vmem>>, vector<1x64x96xbf16>
    %39 = vector.shape_cast %38 : vector<1x64x96xbf16> to vector<64x96xbf16>
    %c0_18 = arith.constant 0 : index
    %c128_19 = arith.constant 128 : index
    %40 = vector.load %arg6[%c0_18, %c128_19] : memref<96x272xbf16, #tpu.memory_space<vmem>>, vector<96x16xbf16>
    %cst_20 = arith.constant dense<0.000000e+00> : vector<64x16xf32>
    %41 = tpu.matmul %39, %40, %cst_20 {dimension_numbers = #tpu.dot_dimension_numbers<[1], [0], [0], [1], [0, 0, 1, 1], [], []>} : vector<64x96xbf16>, vector<96x16xbf16>, vector<64x16xf32> -> vector<64x16xf32>
    %42 = arith.addf %37, %41 : vector<64x16xf32>
    %c2 = arith.constant 2 : index
    %c0_21 = arith.constant 0 : index
    %c0_22 = arith.constant 0 : index
    %43 = vector.load %arg2[%c2, %c0_21, %c0_22] : memref<3x64x96xbf16, #tpu.memory_space<vmem>>, vector<1x64x96xbf16>
    %44 = vector.shape_cast %43 : vector<1x64x96xbf16> to vector<64x96xbf16>
    %c0_23 = arith.constant 0 : index
    %c129 = arith.constant 129 : index
    %45 = vector.load %arg6[%c0_23, %c129] : memref<96x272xbf16, #tpu.memory_space<vmem>>, vector<96x16xbf16>
    %cst_24 = arith.constant dense<0.000000e+00> : vector<64x16xf32>
    %46 = tpu.matmul %44, %45, %cst_24 {dimension_numbers = #tpu.dot_dimension_numbers<[1], [0], [0], [1], [0, 0, 1, 1], [], []>} : vector<64x96xbf16>, vector<96x16xbf16>, vector<64x16xf32> -> vector<64x16xf32>
    %cst_25 = arith.constant 0.000000e+00 : f32
    %47 = vector.shape_cast %27 : vector<1x16xi1> to vector<1x16xi1>
    %48 = vector.broadcast %47 : vector<1x16xi1> to vector<64x16xi1>
    %49 = vector.broadcast %cst_25 : f32 to vector<64x16xf32>
    %50 = arith.select %48, %46, %49 : vector<64x16xi1>, vector<64x16xf32>
    %51 = arith.addf %42, %50 : vector<64x16xf32>
    %cst_26 = arith.constant dense<0.000000e+00> : vector<64xf32>
    %52 = vector.multi_reduction <add>, %51, %cst_26 [1] : vector<64x16xf32> to vector<64xf32>
    %53 = vector.shape_cast %52 : vector<64xf32> to vector<64x1xf32>
    %cst_27 = arith.constant 1.600000e+01 : f32
    %54 = vector.broadcast %cst_27 : f32 to vector<64x1xf32>
    %55 = arith.divf %53, %54 : vector<64x1xf32>
    %56 = vector.broadcast %55 : vector<64x1xf32> to vector<64x16xf32>
    %57 = arith.subf %51, %56 : vector<64x16xf32>
    %58 = arith.mulf %57, %57 : vector<64x16xf32>
    %cst_28 = arith.constant dense<0.000000e+00> : vector<64xf32>
    %59 = vector.multi_reduction <add>, %58, %cst_28 [1] : vector<64x16xf32> to vector<64xf32>
    %60 = vector.shape_cast %59 : vector<64xf32> to vector<64x1xf32>
    %cst_29 = arith.constant 1.600000e+01 : f32
    %61 = vector.broadcast %cst_29 : f32 to vector<64x1xf32>
    %62 = arith.divf %60, %61 : vector<64x1xf32>
    %63 = vector.broadcast %55 : vector<64x1xf32> to vector<64x16xf32>
    %64 = arith.subf %51, %63 : vector<64x16xf32>
    %cst_30 = arith.constant 9.99999974E-6 : f32
    %65 = vector.broadcast %cst_30 : f32 to vector<64x1xf32>
    %66 = arith.addf %62, %65 : vector<64x1xf32>
    %67 = math.rsqrt %66 : vector<64x1xf32>
    %68 = vector.broadcast %67 : vector<64x1xf32> to vector<64x16xf32>
    %69 = arith.mulf %64, %68 : vector<64x16xf32>
    %c0_31 = arith.constant 0 : index
    %c0_32 = arith.constant 0 : index
    %70 = vector.load %arg3[%c0_31, %c0_32] : memref<64x1xf32, #tpu.memory_space<vmem>>, vector<64x1xf32>
    %71 = vector.broadcast %70 : vector<64x1xf32> to vector<64x16xf32>
    %72 = arith.mulf %69, %71 : vector<64x16xf32>
    %c0_33 = arith.constant 0 : index
    %c0_34 = arith.constant 0 : index
    %73 = vector.load %arg4[%c0_33, %c0_34] : memref<64x1xf32, #tpu.memory_space<vmem>>, vector<64x1xf32>
    %74 = vector.broadcast %73 : vector<64x1xf32> to vector<64x16xf32>
    %75 = arith.addf %72, %74 : vector<64x16xf32>
    %cst_35 = arith.constant 0.000000e+00 : f32
    %76 = vector.broadcast %cst_35 : f32 to vector<64x16xf32>
    %77 = arith.maximumf %75, %76 : vector<64x16xf32>
    %78 = arith.truncf %77 : vector<64x16xf32> to vector<64x16xbf16>
    %c0_36 = arith.constant 0 : index
    %c0_37 = arith.constant 0 : index
    %c0_38 = arith.constant 0 : index
    %79 = vector.load %arg5[%c0_36, %c0_37, %c0_38] : memref<1x64x16xbf16, #tpu.memory_space<vmem>>, vector<1x64x16xbf16>
    %80 = vector.shape_cast %79 : vector<1x64x16xbf16> to vector<64x16xbf16>
    %81 = vector.shape_cast %78 : vector<64x16xbf16> to vector<1x64x16xbf16>
    tpu.vector_store %arg5[%c0_36, %c0_37, %c0_38], %81 {strides = array<i32>} : memref<1x64x16xbf16, #tpu.memory_space<vmem>>, vector<1x64x16xbf16>,
    return
  }
  func.func @transform_0(%arg0: i32) -> (i32, i32, i32) {
    %c0_i32 = arith.constant 0 : i32
    %c0_i32_0 = arith.constant 0 : i32
    %c0_i32_1 = arith.constant 0 : i32
    return %arg0, %c0_i32, %c0_i32_0 : i32, i32, i32
  }
  func.func @transform_1(%arg0: i32) -> (i32, i32, i32) {
    %c0_i32 = arith.constant 0 : i32
    %c0_i32_0 = arith.constant 0 : i32
    %c0_i32_1 = arith.constant 0 : i32
    %c0_i32_2 = arith.constant 0 : i32
    return %c0_i32, %c0_i32_0, %c0_i32_1 : i32, i32, i32
  }
  func.func @transform_2(%arg0: i32) -> (i32, i32) {
    %c0_i32 = arith.constant 0 : i32
    %c0_i32_0 = arith.constant 0 : i32
    %c0_i32_1 = arith.constant 0 : i32
    return %c0_i32, %c0_i32_0 : i32, i32
  }
  func.func @transform_3(%arg0: i32) -> (i32, i32) {
    %c0_i32 = arith.constant 0 : i32
    %c0_i32_0 = arith.constant 0 : i32
    %c0_i32_1 = arith.constant 0 : i32
    return %c0_i32, %c0_i32_0 : i32, i32
  }
  func.func @transform_4(%arg0: i32) -> (i32, i32, i32) {
    %c0_i32 = arith.constant 0 : i32
    %c0_i32_0 = arith.constant 0 : i32
    %c0_i32_1 = arith.constant 0 : i32
    return %arg0, %c0_i32, %c0_i32_0 : i32, i32, i32
  }
}

module attributes {stable_mosaic.version = 11 : i64} {
  func.func @bottleneck_kernel(%arg0: i32, %arg1: memref<1x64x4xbf16, #tpu.memory_space<vmem>>, %arg2: memref<3x64x192xbf16, #tpu.memory_space<vmem>>, %arg3: memref<64x1xf32, #tpu.memory_space<vmem>>, %arg4: memref<64x1xf32, #tpu.memory_space<vmem>>, %arg5: memref<80x64xbf16, #tpu.memory_space<vmem>>, %arg6: memref<80x1xf32, #tpu.memory_space<vmem>>, %arg7: memref<1xf32, #tpu.memory_space<smem>>, %arg8: memref<3x64x384xbf16, #tpu.memory_space<vmem>>, %arg9: memref<64x1xf32, #tpu.memory_space<vmem>>, %arg10: memref<64x1xf32, #tpu.memory_space<vmem>>, %arg11: memref<1x64x4xbf16, #tpu.memory_space<vmem>>, %arg12: memref<192x260xbf16, #tpu.memory_space<vmem>>, %arg13: memref<384x260xbf16, #tpu.memory_space<vmem>>) attributes {dimension_semantics = [#tpu.dimension_semantics<parallel>], iteration_bounds = array<i64: 2>, scalar_prefetch = 0 : i64, scratch_operands = 2 : i64, tpu.core_type = #tpu.core_type<tc>, window_params = [{transform_indices = @transform_0, window_bounds = array<i64: 1, 64, 4>}, {pipeline_mode = #tpu.pipeline_mode<synchronous>, transform_indices = @transform_1, window_bounds = array<i64: 3, 64, 192>}, {pipeline_mode = #tpu.pipeline_mode<synchronous>, transform_indices = @transform_2, window_bounds = array<i64: 64, 1>}, {pipeline_mode = #tpu.pipeline_mode<synchronous>, transform_indices = @transform_3, window_bounds = array<i64: 64, 1>}, {pipeline_mode = #tpu.pipeline_mode<synchronous>, transform_indices = @transform_4, window_bounds = array<i64: 80, 64>}, {pipeline_mode = #tpu.pipeline_mode<synchronous>, transform_indices = @transform_5, window_bounds = array<i64: 80, 1>}, {transform_indices = @transform_6, window_bounds = array<i64: 1>}, {pipeline_mode = #tpu.pipeline_mode<synchronous>, transform_indices = @transform_7, window_bounds = array<i64: 3, 64, 384>}, {pipeline_mode = #tpu.pipeline_mode<synchronous>, transform_indices = @transform_8, window_bounds = array<i64: 64, 1>}, {pipeline_mode = #tpu.pipeline_mode<synchronous>, transform_indices = @transform_9, window_bounds = array<i64: 64, 1>}, {transform_indices = @transform_10, window_bounds = array<i64: 1, 64, 4>}]} {
    %c0 = arith.constant 0 : index
    %c0_0 = arith.constant 0 : index
    %c0_1 = arith.constant 0 : index
    %0 = vector.load %arg1[%c0, %c0_0, %c0_1] : memref<1x64x4xbf16, #tpu.memory_space<vmem>>, vector<1x64x4xbf16>
    %1 = vector.shape_cast %0 : vector<1x64x4xbf16> to vector<64x4xbf16>
    %cst = arith.constant 0.000000e+00 : bf16
    %2 = vector.broadcast %cst : bf16 to vector<192x260xbf16>
    %c0_2 = arith.constant 0 : index
    %c0_3 = arith.constant 0 : index
    %3 = vector.load %arg12[%c0_2, %c0_3] : memref<192x260xbf16, #tpu.memory_space<vmem>>, vector<192x260xbf16>
    tpu.vector_store %arg12[%c0_2, %c0_3], %2 {strides = array<i32>} : memref<192x260xbf16, #tpu.memory_space<vmem>>, vector<192x260xbf16>,
    %c0_4 = arith.constant 0 : index
    %c130 = arith.constant 130 : index
    %4 = vector.load %arg12[%c0_4, %c130] : memref<192x260xbf16, #tpu.memory_space<vmem>>, vector<64x4xbf16>
    tpu.vector_store %arg12[%c0_4, %c130], %1 {strides = array<i32>} : memref<192x260xbf16, #tpu.memory_space<vmem>>, vector<64x4xbf16>,
    %c64 = arith.constant 64 : index
    %c128 = arith.constant 128 : index
    %5 = vector.load %arg12[%c64, %c128] : memref<192x260xbf16, #tpu.memory_space<vmem>>, vector<64x4xbf16>
    tpu.vector_store %arg12[%c64, %c128], %1 {strides = array<i32>} : memref<192x260xbf16, #tpu.memory_space<vmem>>, vector<64x4xbf16>,
    %c128_5 = arith.constant 128 : index
    %c126 = arith.constant 126 : index
    %6 = vector.load %arg12[%c128_5, %c126] : memref<192x260xbf16, #tpu.memory_space<vmem>>, vector<64x4xbf16>
    tpu.vector_store %arg12[%c128_5, %c126], %1 {strides = array<i32>} : memref<192x260xbf16, #tpu.memory_space<vmem>>, vector<64x4xbf16>,
    %7 = tpu.iota {dimensions = array<i32: 1>} : vector<1x4xi32>
    %c2_i32 = arith.constant 2 : i32
    %c0_i32 = arith.constant 0 : i32
    %8 = arith.cmpi eq, %c2_i32, %c0_i32 : i32
    %c1_i32 = arith.constant 1 : i32
    %9 = arith.select %8, %c1_i32, %c2_i32 : i32
    %10 = vector.broadcast %9 : i32 to vector<1x4xi32>
    %11 = arith.remsi %7, %10 : vector<1x4xi32>
    %c0_i32_6 = arith.constant 0 : i32
    %12 = vector.broadcast %c0_i32_6 : i32 to vector<1x4xi32>
    %13 = arith.cmpi ne, %11, %12 : vector<1x4xi32>
    %c0_i32_7 = arith.constant 0 : i32
    %14 = vector.broadcast %c0_i32_7 : i32 to vector<1x4xi32>
    %15 = arith.cmpi slt, %11, %14 : vector<1x4xi32>
    %c0_i32_8 = arith.constant 0 : i32
    %16 = arith.cmpi slt, %9, %c0_i32_8 : i32
    %17 = vector.broadcast %16 : i1 to vector<1x4xi1>
    %18 = vector.broadcast %17 : vector<1x4xi1> to vector<1x4xi1>
    %19 = arith.xori %15, %18 : vector<1x4xi1>
    %20 = arith.andi %19, %13 : vector<1x4xi1>
    %21 = vector.broadcast %9 : i32 to vector<1x4xi32>
    %22 = arith.addi %11, %21 : vector<1x4xi32>
    %23 = arith.select %20, %22, %11 : vector<1x4xi1>, vector<1x4xi32>
    %c1_i32_9 = arith.constant 1 : i32
    %24 = vector.broadcast %c1_i32_9 : i32 to vector<1x4xi32>
    %25 = arith.cmpi sge, %23, %24 : vector<1x4xi32>
    %c0_i32_10 = arith.constant 0 : i32
    %26 = vector.broadcast %c0_i32_10 : i32 to vector<1x4xi32>
    %27 = arith.cmpi sle, %23, %26 : vector<1x4xi32>
    %cst_11 = arith.constant 0.000000e+00 : f32
    %28 = vector.broadcast %cst_11 : f32 to vector<64x4xf32>
    %c0_12 = arith.constant 0 : index
    %c0_13 = arith.constant 0 : index
    %c0_14 = arith.constant 0 : index
    %29 = vector.load %arg2[%c0_12, %c0_13, %c0_14] : memref<3x64x192xbf16, #tpu.memory_space<vmem>>, vector<1x64x192xbf16>
    %30 = vector.shape_cast %29 : vector<1x64x192xbf16> to vector<64x192xbf16>
    %c0_15 = arith.constant 0 : index
    %c127 = arith.constant 127 : index
    %31 = vector.load %arg12[%c0_15, %c127] : memref<192x260xbf16, #tpu.memory_space<vmem>>, vector<192x4xbf16>
    %cst_16 = arith.constant dense<0.000000e+00> : vector<64x4xf32>
    %32 = tpu.matmul %30, %31, %cst_16 {dimension_numbers = #tpu.dot_dimension_numbers<[1], [0], [0], [1], [0, 0, 1, 1], [], []>} : vector<64x192xbf16>, vector<192x4xbf16>, vector<64x4xf32> -> vector<64x4xf32>
    %cst_17 = arith.constant 0.000000e+00 : f32
    %33 = vector.shape_cast %25 : vector<1x4xi1> to vector<1x4xi1>
    %34 = vector.broadcast %33 : vector<1x4xi1> to vector<64x4xi1>
    %35 = vector.broadcast %cst_17 : f32 to vector<64x4xf32>
    %36 = arith.select %34, %32, %35 : vector<64x4xi1>, vector<64x4xf32>
    %37 = arith.addf %28, %36 : vector<64x4xf32>
    %c1 = arith.constant 1 : index
    %c0_18 = arith.constant 0 : index
    %c0_19 = arith.constant 0 : index
    %38 = vector.load %arg2[%c1, %c0_18, %c0_19] : memref<3x64x192xbf16, #tpu.memory_space<vmem>>, vector<1x64x192xbf16>
    %39 = vector.shape_cast %38 : vector<1x64x192xbf16> to vector<64x192xbf16>
    %c0_20 = arith.constant 0 : index
    %c128_21 = arith.constant 128 : index
    %40 = vector.load %arg12[%c0_20, %c128_21] : memref<192x260xbf16, #tpu.memory_space<vmem>>, vector<192x4xbf16>
    %cst_22 = arith.constant dense<0.000000e+00> : vector<64x4xf32>
    %41 = tpu.matmul %39, %40, %cst_22 {dimension_numbers = #tpu.dot_dimension_numbers<[1], [0], [0], [1], [0, 0, 1, 1], [], []>} : vector<64x192xbf16>, vector<192x4xbf16>, vector<64x4xf32> -> vector<64x4xf32>
    %42 = arith.addf %37, %41 : vector<64x4xf32>
    %c2 = arith.constant 2 : index
    %c0_23 = arith.constant 0 : index
    %c0_24 = arith.constant 0 : index
    %43 = vector.load %arg2[%c2, %c0_23, %c0_24] : memref<3x64x192xbf16, #tpu.memory_space<vmem>>, vector<1x64x192xbf16>
    %44 = vector.shape_cast %43 : vector<1x64x192xbf16> to vector<64x192xbf16>
    %c0_25 = arith.constant 0 : index
    %c129 = arith.constant 129 : index
    %45 = vector.load %arg12[%c0_25, %c129] : memref<192x260xbf16, #tpu.memory_space<vmem>>, vector<192x4xbf16>
    %cst_26 = arith.constant dense<0.000000e+00> : vector<64x4xf32>
    %46 = tpu.matmul %44, %45, %cst_26 {dimension_numbers = #tpu.dot_dimension_numbers<[1], [0], [0], [1], [0, 0, 1, 1], [], []>} : vector<64x192xbf16>, vector<192x4xbf16>, vector<64x4xf32> -> vector<64x4xf32>
    %cst_27 = arith.constant 0.000000e+00 : f32
    %47 = vector.shape_cast %27 : vector<1x4xi1> to vector<1x4xi1>
    %48 = vector.broadcast %47 : vector<1x4xi1> to vector<64x4xi1>
    %49 = vector.broadcast %cst_27 : f32 to vector<64x4xf32>
    %50 = arith.select %48, %46, %49 : vector<64x4xi1>, vector<64x4xf32>
    %51 = arith.addf %42, %50 : vector<64x4xf32>
    %cst_28 = arith.constant dense<0.000000e+00> : vector<64xf32>
    %52 = vector.multi_reduction <add>, %51, %cst_28 [1] : vector<64x4xf32> to vector<64xf32>
    %53 = vector.shape_cast %52 : vector<64xf32> to vector<64x1xf32>
    %cst_29 = arith.constant 4.000000e+00 : f32
    %54 = vector.broadcast %cst_29 : f32 to vector<64x1xf32>
    %55 = arith.divf %53, %54 : vector<64x1xf32>
    %56 = vector.broadcast %55 : vector<64x1xf32> to vector<64x4xf32>
    %57 = arith.subf %51, %56 : vector<64x4xf32>
    %58 = arith.mulf %57, %57 : vector<64x4xf32>
    %cst_30 = arith.constant dense<0.000000e+00> : vector<64xf32>
    %59 = vector.multi_reduction <add>, %58, %cst_30 [1] : vector<64x4xf32> to vector<64xf32>
    %60 = vector.shape_cast %59 : vector<64xf32> to vector<64x1xf32>
    %cst_31 = arith.constant 4.000000e+00 : f32
    %61 = vector.broadcast %cst_31 : f32 to vector<64x1xf32>
    %62 = arith.divf %60, %61 : vector<64x1xf32>
    %63 = vector.broadcast %55 : vector<64x1xf32> to vector<64x4xf32>
    %64 = arith.subf %51, %63 : vector<64x4xf32>
    %cst_32 = arith.constant 9.99999974E-6 : f32
    %65 = vector.broadcast %cst_32 : f32 to vector<64x1xf32>
    %66 = arith.addf %62, %65 : vector<64x1xf32>
    %67 = math.rsqrt %66 : vector<64x1xf32>
    %68 = vector.broadcast %67 : vector<64x1xf32> to vector<64x4xf32>
    %69 = arith.mulf %64, %68 : vector<64x4xf32>
    %c0_33 = arith.constant 0 : index
    %c0_34 = arith.constant 0 : index
    %70 = vector.load %arg3[%c0_33, %c0_34] : memref<64x1xf32, #tpu.memory_space<vmem>>, vector<64x1xf32>
    %71 = vector.broadcast %70 : vector<64x1xf32> to vector<64x4xf32>
    %72 = arith.mulf %69, %71 : vector<64x4xf32>
    %c0_35 = arith.constant 0 : index
    %c0_36 = arith.constant 0 : index
    %73 = vector.load %arg4[%c0_35, %c0_36] : memref<64x1xf32, #tpu.memory_space<vmem>>, vector<64x1xf32>
    %74 = vector.broadcast %73 : vector<64x1xf32> to vector<64x4xf32>
    %75 = arith.addf %72, %74 : vector<64x4xf32>
    %cst_37 = arith.constant 0.000000e+00 : f32
    %76 = vector.broadcast %cst_37 : f32 to vector<64x4xf32>
    %77 = arith.maximumf %75, %76 : vector<64x4xf32>
    %78 = arith.truncf %77 : vector<64x4xf32> to vector<64x4xbf16>
    %c0_38 = arith.constant 0 : index
    %c0_39 = arith.constant 0 : index
    %79 = vector.load %arg5[%c0_38, %c0_39] : memref<80x64xbf16, #tpu.memory_space<vmem>>, vector<80x64xbf16>
    %cst_40 = arith.constant dense<0.000000e+00> : vector<80x4xf32>
    %80 = tpu.matmul %79, %78, %cst_40 {dimension_numbers = #tpu.dot_dimension_numbers<[1], [0], [0], [1], [0, 0, 1, 1], [], []>} : vector<80x64xbf16>, vector<64x4xbf16>, vector<80x4xf32> -> vector<80x4xf32>
    %c0_41 = arith.constant 0 : index
    %c0_42 = arith.constant 0 : index
    %81 = vector.load %arg6[%c0_41, %c0_42] : memref<80x1xf32, #tpu.memory_space<vmem>>, vector<80x1xf32>
    %82 = vector.broadcast %81 : vector<80x1xf32> to vector<80x4xf32>
    %83 = arith.addf %80, %82 : vector<80x4xf32>
    %84 = vector.extract_strided_slice %83 {offsets = [0, 0], sizes = [8, 4], strides = [1, 1]} : vector<80x4xf32> to vector<8x4xf32>
    %85 = vector.extract_strided_slice %83 {offsets = [8, 0], sizes = [8, 4], strides = [1, 1]} : vector<80x4xf32> to vector<8x4xf32>
    %86 = vector.extract_strided_slice %83 {offsets = [16, 0], sizes = [64, 4], strides = [1, 1]} : vector<80x4xf32> to vector<64x4xf32>
    %87 = tpu.transpose %84, [1, 0] : vector<8x4xf32> -> vector<4x8xf32>
    %cst_43 = arith.constant dense<0.000000e+00> : vector<4x4xf32>
    %88 = tpu.matmul %87, %85, %cst_43 {dimension_numbers = #tpu.dot_dimension_numbers<[1], [0], [0], [1], [0, 0, 1, 1], [], []>} : vector<4x8xf32>, vector<8x4xf32>, vector<4x4xf32> -> vector<4x4xf32>
    %cst_44 = arith.constant dense<0xFF800000> : vector<4xf32>
    %89 = vector.multi_reduction <maximumf>, %88, %cst_44 [1] : vector<4x4xf32> to vector<4xf32>
    %90 = vector.shape_cast %89 : vector<4xf32> to vector<4x1xf32>
    %91 = vector.broadcast %90 : vector<4x1xf32> to vector<4x4xf32>
    %92 = arith.subf %88, %91 : vector<4x4xf32>
    %93 = math.exp %92 : vector<4x4xf32>
    %cst_45 = arith.constant dense<0.000000e+00> : vector<4xf32>
    %94 = vector.multi_reduction <add>, %93, %cst_45 [1] : vector<4x4xf32> to vector<4xf32>
    %95 = vector.shape_cast %94 : vector<4xf32> to vector<4x1xf32>
    %96 = tpu.reciprocal %95 {approx = true} : vector<4x1xf32> -> vector<4x1xf32>
    %97 = vector.broadcast %96 : vector<4x1xf32> to vector<4x4xf32>
    %98 = arith.mulf %93, %97 : vector<4x4xf32>
    %cst_46 = arith.constant dense<0.000000e+00> : vector<64x4xf32>
    %99 = tpu.matmul %86, %98, %cst_46 {dimension_numbers = #tpu.dot_dimension_numbers<[1], [1], [0], [0], [0, 0, 1, 0], [], []>} : vector<64x4xf32>, vector<4x4xf32>, vector<64x4xf32> -> vector<64x4xf32>
    %c0_47 = arith.constant 0 : index
    %100 = memref.load %arg7[%c0_47] : memref<1xf32, #tpu.memory_space<smem>>
    %101 = vector.broadcast %100 : f32 to vector<64x4xf32>
    %102 = arith.mulf %101, %99 : vector<64x4xf32>
    %103 = arith.addf %102, %77 : vector<64x4xf32>
    %104 = arith.truncf %103 : vector<64x4xf32> to vector<64x4xbf16>
    %cst_48 = arith.constant 0.000000e+00 : bf16
    %105 = vector.broadcast %cst_48 : bf16 to vector<384x260xbf16>
    %c0_49 = arith.constant 0 : index
    %c0_50 = arith.constant 0 : index
    %106 = vector.load %arg13[%c0_49, %c0_50] : memref<384x260xbf16, #tpu.memory_space<vmem>>, vector<384x260xbf16>
    tpu.vector_store %arg13[%c0_49, %c0_50], %105 {strides = array<i32>} : memref<384x260xbf16, #tpu.memory_space<vmem>>, vector<384x260xbf16>,
    %c0_51 = arith.constant 0 : index
    %c130_52 = arith.constant 130 : index
    %107 = vector.load %arg13[%c0_51, %c130_52] : memref<384x260xbf16, #tpu.memory_space<vmem>>, vector<64x4xbf16>
    tpu.vector_store %arg13[%c0_51, %c130_52], %104 {strides = array<i32>} : memref<384x260xbf16, #tpu.memory_space<vmem>>, vector<64x4xbf16>,
    %c64_53 = arith.constant 64 : index
    %c130_54 = arith.constant 130 : index
    %108 = vector.load %arg13[%c64_53, %c130_54] : memref<384x260xbf16, #tpu.memory_space<vmem>>, vector<64x4xbf16>
    tpu.vector_store %arg13[%c64_53, %c130_54], %78 {strides = array<i32>} : memref<384x260xbf16, #tpu.memory_space<vmem>>, vector<64x4xbf16>,
    %c128_55 = arith.constant 128 : index
    %c128_56 = arith.constant 128 : index
    %109 = vector.load %arg13[%c128_55, %c128_56] : memref<384x260xbf16, #tpu.memory_space<vmem>>, vector<64x4xbf16>
    tpu.vector_store %arg13[%c128_55, %c128_56], %104 {strides = array<i32>} : memref<384x260xbf16, #tpu.memory_space<vmem>>, vector<64x4xbf16>,
    %c192 = arith.constant 192 : index
    %c128_57 = arith.constant 128 : index
    %110 = vector.load %arg13[%c192, %c128_57] : memref<384x260xbf16, #tpu.memory_space<vmem>>, vector<64x4xbf16>
    tpu.vector_store %arg13[%c192, %c128_57], %78 {strides = array<i32>} : memref<384x260xbf16, #tpu.memory_space<vmem>>, vector<64x4xbf16>,
    %c256 = arith.constant 256 : index
    %c126_58 = arith.constant 126 : index
    %111 = vector.load %arg13[%c256, %c126_58] : memref<384x260xbf16, #tpu.memory_space<vmem>>, vector<64x4xbf16>
    tpu.vector_store %arg13[%c256, %c126_58], %104 {strides = array<i32>} : memref<384x260xbf16, #tpu.memory_space<vmem>>, vector<64x4xbf16>,
    %c320 = arith.constant 320 : index
    %c126_59 = arith.constant 126 : index
    %112 = vector.load %arg13[%c320, %c126_59] : memref<384x260xbf16, #tpu.memory_space<vmem>>, vector<64x4xbf16>
    tpu.vector_store %arg13[%c320, %c126_59], %78 {strides = array<i32>} : memref<384x260xbf16, #tpu.memory_space<vmem>>, vector<64x4xbf16>,
    %113 = tpu.iota {dimensions = array<i32: 1>} : vector<1x4xi32>
    %c2_i32_60 = arith.constant 2 : i32
    %c0_i32_61 = arith.constant 0 : i32
    %114 = arith.cmpi eq, %c2_i32_60, %c0_i32_61 : i32
    %c1_i32_62 = arith.constant 1 : i32
    %115 = arith.select %114, %c1_i32_62, %c2_i32_60 : i32
    %116 = vector.broadcast %115 : i32 to vector<1x4xi32>
    %117 = arith.remsi %113, %116 : vector<1x4xi32>
    %c0_i32_63 = arith.constant 0 : i32
    %118 = vector.broadcast %c0_i32_63 : i32 to vector<1x4xi32>
    %119 = arith.cmpi ne, %117, %118 : vector<1x4xi32>
    %c0_i32_64 = arith.constant 0 : i32
    %120 = vector.broadcast %c0_i32_64 : i32 to vector<1x4xi32>
    %121 = arith.cmpi slt, %117, %120 : vector<1x4xi32>
    %c0_i32_65 = arith.constant 0 : i32
    %122 = arith.cmpi slt, %115, %c0_i32_65 : i32
    %123 = vector.broadcast %122 : i1 to vector<1x4xi1>
    %124 = vector.broadcast %123 : vector<1x4xi1> to vector<1x4xi1>
    %125 = arith.xori %121, %124 : vector<1x4xi1>
    %126 = arith.andi %125, %119 : vector<1x4xi1>
    %127 = vector.broadcast %115 : i32 to vector<1x4xi32>
    %128 = arith.addi %117, %127 : vector<1x4xi32>
    %129 = arith.select %126, %128, %117 : vector<1x4xi1>, vector<1x4xi32>
    %c1_i32_66 = arith.constant 1 : i32
    %130 = vector.broadcast %c1_i32_66 : i32 to vector<1x4xi32>
    %131 = arith.cmpi sge, %129, %130 : vector<1x4xi32>
    %c0_i32_67 = arith.constant 0 : i32
    %132 = vector.broadcast %c0_i32_67 : i32 to vector<1x4xi32>
    %133 = arith.cmpi sle, %129, %132 : vector<1x4xi32>
    %cst_68 = arith.constant 0.000000e+00 : f32
    %134 = vector.broadcast %cst_68 : f32 to vector<64x4xf32>
    %c0_69 = arith.constant 0 : index
    %c0_70 = arith.constant 0 : index
    %c0_71 = arith.constant 0 : index
    %135 = vector.load %arg8[%c0_69, %c0_70, %c0_71] : memref<3x64x384xbf16, #tpu.memory_space<vmem>>, vector<1x64x384xbf16>
    %136 = vector.shape_cast %135 : vector<1x64x384xbf16> to vector<64x384xbf16>
    %c0_72 = arith.constant 0 : index
    %c127_73 = arith.constant 127 : index
    %137 = vector.load %arg13[%c0_72, %c127_73] : memref<384x260xbf16, #tpu.memory_space<vmem>>, vector<384x4xbf16>
    %cst_74 = arith.constant dense<0.000000e+00> : vector<64x4xf32>
    %138 = tpu.matmul %136, %137, %cst_74 {dimension_numbers = #tpu.dot_dimension_numbers<[1], [0], [0], [1], [0, 0, 1, 1], [], []>} : vector<64x384xbf16>, vector<384x4xbf16>, vector<64x4xf32> -> vector<64x4xf32>
    %cst_75 = arith.constant 0.000000e+00 : f32
    %139 = vector.shape_cast %131 : vector<1x4xi1> to vector<1x4xi1>
    %140 = vector.broadcast %139 : vector<1x4xi1> to vector<64x4xi1>
    %141 = vector.broadcast %cst_75 : f32 to vector<64x4xf32>
    %142 = arith.select %140, %138, %141 : vector<64x4xi1>, vector<64x4xf32>
    %143 = arith.addf %134, %142 : vector<64x4xf32>
    %c1_76 = arith.constant 1 : index
    %c0_77 = arith.constant 0 : index
    %c0_78 = arith.constant 0 : index
    %144 = vector.load %arg8[%c1_76, %c0_77, %c0_78] : memref<3x64x384xbf16, #tpu.memory_space<vmem>>, vector<1x64x384xbf16>
    %145 = vector.shape_cast %144 : vector<1x64x384xbf16> to vector<64x384xbf16>
    %c0_79 = arith.constant 0 : index
    %c128_80 = arith.constant 128 : index
    %146 = vector.load %arg13[%c0_79, %c128_80] : memref<384x260xbf16, #tpu.memory_space<vmem>>, vector<384x4xbf16>
    %cst_81 = arith.constant dense<0.000000e+00> : vector<64x4xf32>
    %147 = tpu.matmul %145, %146, %cst_81 {dimension_numbers = #tpu.dot_dimension_numbers<[1], [0], [0], [1], [0, 0, 1, 1], [], []>} : vector<64x384xbf16>, vector<384x4xbf16>, vector<64x4xf32> -> vector<64x4xf32>
    %148 = arith.addf %143, %147 : vector<64x4xf32>
    %c2_82 = arith.constant 2 : index
    %c0_83 = arith.constant 0 : index
    %c0_84 = arith.constant 0 : index
    %149 = vector.load %arg8[%c2_82, %c0_83, %c0_84] : memref<3x64x384xbf16, #tpu.memory_space<vmem>>, vector<1x64x384xbf16>
    %150 = vector.shape_cast %149 : vector<1x64x384xbf16> to vector<64x384xbf16>
    %c0_85 = arith.constant 0 : index
    %c129_86 = arith.constant 129 : index
    %151 = vector.load %arg13[%c0_85, %c129_86] : memref<384x260xbf16, #tpu.memory_space<vmem>>, vector<384x4xbf16>
    %cst_87 = arith.constant dense<0.000000e+00> : vector<64x4xf32>
    %152 = tpu.matmul %150, %151, %cst_87 {dimension_numbers = #tpu.dot_dimension_numbers<[1], [0], [0], [1], [0, 0, 1, 1], [], []>} : vector<64x384xbf16>, vector<384x4xbf16>, vector<64x4xf32> -> vector<64x4xf32>
    %cst_88 = arith.constant 0.000000e+00 : f32
    %153 = vector.shape_cast %133 : vector<1x4xi1> to vector<1x4xi1>
    %154 = vector.broadcast %153 : vector<1x4xi1> to vector<64x4xi1>
    %155 = vector.broadcast %cst_88 : f32 to vector<64x4xf32>
    %156 = arith.select %154, %152, %155 : vector<64x4xi1>, vector<64x4xf32>
    %157 = arith.addf %148, %156 : vector<64x4xf32>
    %cst_89 = arith.constant dense<0.000000e+00> : vector<64xf32>
    %158 = vector.multi_reduction <add>, %157, %cst_89 [1] : vector<64x4xf32> to vector<64xf32>
    %159 = vector.shape_cast %158 : vector<64xf32> to vector<64x1xf32>
    %cst_90 = arith.constant 4.000000e+00 : f32
    %160 = vector.broadcast %cst_90 : f32 to vector<64x1xf32>
    %161 = arith.divf %159, %160 : vector<64x1xf32>
    %162 = vector.broadcast %161 : vector<64x1xf32> to vector<64x4xf32>
    %163 = arith.subf %157, %162 : vector<64x4xf32>
    %164 = arith.mulf %163, %163 : vector<64x4xf32>
    %cst_91 = arith.constant dense<0.000000e+00> : vector<64xf32>
    %165 = vector.multi_reduction <add>, %164, %cst_91 [1] : vector<64x4xf32> to vector<64xf32>
    %166 = vector.shape_cast %165 : vector<64xf32> to vector<64x1xf32>
    %cst_92 = arith.constant 4.000000e+00 : f32
    %167 = vector.broadcast %cst_92 : f32 to vector<64x1xf32>
    %168 = arith.divf %166, %167 : vector<64x1xf32>
    %169 = vector.broadcast %161 : vector<64x1xf32> to vector<64x4xf32>
    %170 = arith.subf %157, %169 : vector<64x4xf32>
    %cst_93 = arith.constant 9.99999974E-6 : f32
    %171 = vector.broadcast %cst_93 : f32 to vector<64x1xf32>
    %172 = arith.addf %168, %171 : vector<64x1xf32>
    %173 = math.rsqrt %172 : vector<64x1xf32>
    %174 = vector.broadcast %173 : vector<64x1xf32> to vector<64x4xf32>
    %175 = arith.mulf %170, %174 : vector<64x4xf32>
    %c0_94 = arith.constant 0 : index
    %c0_95 = arith.constant 0 : index
    %176 = vector.load %arg9[%c0_94, %c0_95] : memref<64x1xf32, #tpu.memory_space<vmem>>, vector<64x1xf32>
    %177 = vector.broadcast %176 : vector<64x1xf32> to vector<64x4xf32>
    %178 = arith.mulf %175, %177 : vector<64x4xf32>
    %c0_96 = arith.constant 0 : index
    %c0_97 = arith.constant 0 : index
    %179 = vector.load %arg10[%c0_96, %c0_97] : memref<64x1xf32, #tpu.memory_space<vmem>>, vector<64x1xf32>
    %180 = vector.broadcast %179 : vector<64x1xf32> to vector<64x4xf32>
    %181 = arith.addf %178, %180 : vector<64x4xf32>
    %cst_98 = arith.constant 0.000000e+00 : f32
    %182 = vector.broadcast %cst_98 : f32 to vector<64x4xf32>
    %183 = arith.maximumf %181, %182 : vector<64x4xf32>
    %184 = arith.truncf %183 : vector<64x4xf32> to vector<64x4xbf16>
    %c0_99 = arith.constant 0 : index
    %c0_100 = arith.constant 0 : index
    %c0_101 = arith.constant 0 : index
    %185 = vector.load %arg11[%c0_99, %c0_100, %c0_101] : memref<1x64x4xbf16, #tpu.memory_space<vmem>>, vector<1x64x4xbf16>
    %186 = vector.shape_cast %185 : vector<1x64x4xbf16> to vector<64x4xbf16>
    %187 = vector.shape_cast %184 : vector<64x4xbf16> to vector<1x64x4xbf16>
    tpu.vector_store %arg11[%c0_99, %c0_100, %c0_101], %187 {strides = array<i32>} : memref<1x64x4xbf16, #tpu.memory_space<vmem>>, vector<1x64x4xbf16>,
    return
  }
  func.func @transform_0(%arg0: i32) -> (i32, i32, i32) {
    %c0_i32 = arith.constant 0 : i32
    %c0_i32_0 = arith.constant 0 : i32
    %c0_i32_1 = arith.constant 0 : i32
    return %arg0, %c0_i32, %c0_i32_0 : i32, i32, i32
  }
  func.func @transform_1(%arg0: i32) -> (i32, i32, i32) {
    %c0_i32 = arith.constant 0 : i32
    %c0_i32_0 = arith.constant 0 : i32
    %c0_i32_1 = arith.constant 0 : i32
    %c0_i32_2 = arith.constant 0 : i32
    return %c0_i32, %c0_i32_0, %c0_i32_1 : i32, i32, i32
  }
  func.func @transform_2(%arg0: i32) -> (i32, i32) {
    %c0_i32 = arith.constant 0 : i32
    %c0_i32_0 = arith.constant 0 : i32
    %c0_i32_1 = arith.constant 0 : i32
    return %c0_i32, %c0_i32_0 : i32, i32
  }
  func.func @transform_3(%arg0: i32) -> (i32, i32) {
    %c0_i32 = arith.constant 0 : i32
    %c0_i32_0 = arith.constant 0 : i32
    %c0_i32_1 = arith.constant 0 : i32
    return %c0_i32, %c0_i32_0 : i32, i32
  }
  func.func @transform_4(%arg0: i32) -> (i32, i32) {
    %c0_i32 = arith.constant 0 : i32
    %c0_i32_0 = arith.constant 0 : i32
    %c0_i32_1 = arith.constant 0 : i32
    return %c0_i32, %c0_i32_0 : i32, i32
  }
  func.func @transform_5(%arg0: i32) -> (i32, i32) {
    %c0_i32 = arith.constant 0 : i32
    %c0_i32_0 = arith.constant 0 : i32
    %c0_i32_1 = arith.constant 0 : i32
    return %c0_i32, %c0_i32_0 : i32, i32
  }
  func.func @transform_6(%arg0: i32) -> i32 {
    %c0_i32 = arith.constant 0 : i32
    %c0_i32_0 = arith.constant 0 : i32
    return %c0_i32 : i32
  }
  func.func @transform_7(%arg0: i32) -> (i32, i32, i32) {
    %c0_i32 = arith.constant 0 : i32
    %c0_i32_0 = arith.constant 0 : i32
    %c0_i32_1 = arith.constant 0 : i32
    %c0_i32_2 = arith.constant 0 : i32
    return %c0_i32, %c0_i32_0, %c0_i32_1 : i32, i32, i32
  }
  func.func @transform_8(%arg0: i32) -> (i32, i32) {
    %c0_i32 = arith.constant 0 : i32
    %c0_i32_0 = arith.constant 0 : i32
    %c0_i32_1 = arith.constant 0 : i32
    return %c0_i32, %c0_i32_0 : i32, i32
  }
  func.func @transform_9(%arg0: i32) -> (i32, i32) {
    %c0_i32 = arith.constant 0 : i32
    %c0_i32_0 = arith.constant 0 : i32
    %c0_i32_1 = arith.constant 0 : i32
    return %c0_i32, %c0_i32_0 : i32, i32
  }
  func.func @transform_10(%arg0: i32) -> (i32, i32, i32) {
    %c0_i32 = arith.constant 0 : i32
    %c0_i32_0 = arith.constant 0 : i32
    %c0_i32_1 = arith.constant 0 : i32
    return %arg0, %c0_i32, %c0_i32_0 : i32, i32, i32
  }
}

module attributes {stable_mosaic.version = 11 : i64} {
  func.func @conv_block_kernel(%arg0: i32, %arg1: memref<1x64x16xbf16, #tpu.memory_space<vmem>>, %arg2: memref<1x64x16xbf16, #tpu.memory_space<vmem>>, %arg3: memref<3x32x384xbf16, #tpu.memory_space<vmem>>, %arg4: memref<32x1xf32, #tpu.memory_space<vmem>>, %arg5: memref<32x1xf32, #tpu.memory_space<vmem>>, %arg6: memref<1x32x16xbf16, #tpu.memory_space<vmem>>, %arg7: memref<384x272xbf16, #tpu.memory_space<vmem>>) attributes {dimension_semantics = [#tpu.dimension_semantics<parallel>], iteration_bounds = array<i64: 2>, scalar_prefetch = 0 : i64, scratch_operands = 1 : i64, tpu.core_type = #tpu.core_type<tc>, window_params = [{transform_indices = @transform_0, window_bounds = array<i64: 1, 64, 16>}, {transform_indices = @transform_1, window_bounds = array<i64: 1, 64, 16>}, {pipeline_mode = #tpu.pipeline_mode<synchronous>, transform_indices = @transform_2, window_bounds = array<i64: 3, 32, 384>}, {pipeline_mode = #tpu.pipeline_mode<synchronous>, transform_indices = @transform_3, window_bounds = array<i64: 32, 1>}, {pipeline_mode = #tpu.pipeline_mode<synchronous>, transform_indices = @transform_4, window_bounds = array<i64: 32, 1>}, {transform_indices = @transform_5, window_bounds = array<i64: 1, 32, 16>}]} {
    %c0 = arith.constant 0 : index
    %c0_0 = arith.constant 0 : index
    %c0_1 = arith.constant 0 : index
    %0 = vector.load %arg1[%c0, %c0_0, %c0_1] : memref<1x64x16xbf16, #tpu.memory_space<vmem>>, vector<1x64x16xbf16>
    %1 = vector.shape_cast %0 : vector<1x64x16xbf16> to vector<64x16xbf16>
    %c0_2 = arith.constant 0 : index
    %c0_3 = arith.constant 0 : index
    %c0_4 = arith.constant 0 : index
    %2 = vector.load %arg2[%c0_2, %c0_3, %c0_4] : memref<1x64x16xbf16, #tpu.memory_space<vmem>>, vector<1x64x16xbf16>
    %3 = vector.shape_cast %2 : vector<1x64x16xbf16> to vector<64x16xbf16>
    %cst = arith.constant 0.000000e+00 : bf16
    %4 = vector.broadcast %cst : bf16 to vector<384x272xbf16>
    %c0_5 = arith.constant 0 : index
    %c0_6 = arith.constant 0 : index
    %5 = vector.load %arg7[%c0_5, %c0_6] : memref<384x272xbf16, #tpu.memory_space<vmem>>, vector<384x272xbf16>
    tpu.vector_store %arg7[%c0_5, %c0_6], %4 {strides = array<i32>} : memref<384x272xbf16, #tpu.memory_space<vmem>>, vector<384x272xbf16>,
    %c0_7 = arith.constant 0 : index
    %c132 = arith.constant 132 : index
    %6 = vector.load %arg7[%c0_7, %c132] : memref<384x272xbf16, #tpu.memory_space<vmem>>, vector<64x16xbf16>
    tpu.vector_store %arg7[%c0_7, %c132], %1 {strides = array<i32>} : memref<384x272xbf16, #tpu.memory_space<vmem>>, vector<64x16xbf16>,
    %c64 = arith.constant 64 : index
    %c132_8 = arith.constant 132 : index
    %7 = vector.load %arg7[%c64, %c132_8] : memref<384x272xbf16, #tpu.memory_space<vmem>>, vector<64x16xbf16>
    tpu.vector_store %arg7[%c64, %c132_8], %3 {strides = array<i32>} : memref<384x272xbf16, #tpu.memory_space<vmem>>, vector<64x16xbf16>,
    %c128 = arith.constant 128 : index
    %c128_9 = arith.constant 128 : index
    %8 = vector.load %arg7[%c128, %c128_9] : memref<384x272xbf16, #tpu.memory_space<vmem>>, vector<64x16xbf16>
    tpu.vector_store %arg7[%c128, %c128_9], %1 {strides = array<i32>} : memref<384x272xbf16, #tpu.memory_space<vmem>>, vector<64x16xbf16>,
    %c192 = arith.constant 192 : index
    %c128_10 = arith.constant 128 : index
    %9 = vector.load %arg7[%c192, %c128_10] : memref<384x272xbf16, #tpu.memory_space<vmem>>, vector<64x16xbf16>
    tpu.vector_store %arg7[%c192, %c128_10], %3 {strides = array<i32>} : memref<384x272xbf16, #tpu.memory_space<vmem>>, vector<64x16xbf16>,
    %c256 = arith.constant 256 : index
    %c124 = arith.constant 124 : index
    %10 = vector.load %arg7[%c256, %c124] : memref<384x272xbf16, #tpu.memory_space<vmem>>, vector<64x16xbf16>
    tpu.vector_store %arg7[%c256, %c124], %1 {strides = array<i32>} : memref<384x272xbf16, #tpu.memory_space<vmem>>, vector<64x16xbf16>,
    %c320 = arith.constant 320 : index
    %c124_11 = arith.constant 124 : index
    %11 = vector.load %arg7[%c320, %c124_11] : memref<384x272xbf16, #tpu.memory_space<vmem>>, vector<64x16xbf16>
    tpu.vector_store %arg7[%c320, %c124_11], %3 {strides = array<i32>} : memref<384x272xbf16, #tpu.memory_space<vmem>>, vector<64x16xbf16>,
    %12 = tpu.iota {dimensions = array<i32: 1>} : vector<1x16xi32>
    %c4_i32 = arith.constant 4 : i32
    %c0_i32 = arith.constant 0 : i32
    %13 = arith.cmpi eq, %c4_i32, %c0_i32 : i32
    %c1_i32 = arith.constant 1 : i32
    %14 = arith.select %13, %c1_i32, %c4_i32 : i32
    %15 = vector.broadcast %14 : i32 to vector<1x16xi32>
    %16 = arith.remsi %12, %15 : vector<1x16xi32>
    %c0_i32_12 = arith.constant 0 : i32
    %17 = vector.broadcast %c0_i32_12 : i32 to vector<1x16xi32>
    %18 = arith.cmpi ne, %16, %17 : vector<1x16xi32>
    %c0_i32_13 = arith.constant 0 : i32
    %19 = vector.broadcast %c0_i32_13 : i32 to vector<1x16xi32>
    %20 = arith.cmpi slt, %16, %19 : vector<1x16xi32>
    %c0_i32_14 = arith.constant 0 : i32
    %21 = arith.cmpi slt, %14, %c0_i32_14 : i32
    %22 = vector.broadcast %21 : i1 to vector<1x16xi1>
    %23 = vector.broadcast %22 : vector<1x16xi1> to vector<1x16xi1>
    %24 = arith.xori %20, %23 : vector<1x16xi1>
    %25 = arith.andi %24, %18 : vector<1x16xi1>
    %26 = vector.broadcast %14 : i32 to vector<1x16xi32>
    %27 = arith.addi %16, %26 : vector<1x16xi32>
    %28 = arith.select %25, %27, %16 : vector<1x16xi1>, vector<1x16xi32>
    %c1_i32_15 = arith.constant 1 : i32
    %29 = vector.broadcast %c1_i32_15 : i32 to vector<1x16xi32>
    %30 = arith.cmpi sge, %28, %29 : vector<1x16xi32>
    %c2_i32 = arith.constant 2 : i32
    %31 = vector.broadcast %c2_i32 : i32 to vector<1x16xi32>
    %32 = arith.cmpi sle, %28, %31 : vector<1x16xi32>
    %cst_16 = arith.constant 0.000000e+00 : f32
    %33 = vector.broadcast %cst_16 : f32 to vector<32x16xf32>
    %c0_17 = arith.constant 0 : index
    %c0_18 = arith.constant 0 : index
    %c0_19 = arith.constant 0 : index
    %34 = vector.load %arg3[%c0_17, %c0_18, %c0_19] : memref<3x32x384xbf16, #tpu.memory_space<vmem>>, vector<1x32x384xbf16>
    %35 = vector.shape_cast %34 : vector<1x32x384xbf16> to vector<32x384xbf16>
    %c0_20 = arith.constant 0 : index
    %c127 = arith.constant 127 : index
    %36 = vector.load %arg7[%c0_20, %c127] : memref<384x272xbf16, #tpu.memory_space<vmem>>, vector<384x16xbf16>
    %cst_21 = arith.constant dense<0.000000e+00> : vector<32x16xf32>
    %37 = tpu.matmul %35, %36, %cst_21 {dimension_numbers = #tpu.dot_dimension_numbers<[1], [0], [0], [1], [0, 0, 1, 1], [], []>} : vector<32x384xbf16>, vector<384x16xbf16>, vector<32x16xf32> -> vector<32x16xf32>
    %cst_22 = arith.constant 0.000000e+00 : f32
    %38 = vector.shape_cast %30 : vector<1x16xi1> to vector<1x16xi1>
    %39 = vector.broadcast %38 : vector<1x16xi1> to vector<32x16xi1>
    %40 = vector.broadcast %cst_22 : f32 to vector<32x16xf32>
    %41 = arith.select %39, %37, %40 : vector<32x16xi1>, vector<32x16xf32>
    %42 = arith.addf %33, %41 : vector<32x16xf32>
    %c1 = arith.constant 1 : index
    %c0_23 = arith.constant 0 : index
    %c0_24 = arith.constant 0 : index
    %43 = vector.load %arg3[%c1, %c0_23, %c0_24] : memref<3x32x384xbf16, #tpu.memory_space<vmem>>, vector<1x32x384xbf16>
    %44 = vector.shape_cast %43 : vector<1x32x384xbf16> to vector<32x384xbf16>
    %c0_25 = arith.constant 0 : index
    %c128_26 = arith.constant 128 : index
    %45 = vector.load %arg7[%c0_25, %c128_26] : memref<384x272xbf16, #tpu.memory_space<vmem>>, vector<384x16xbf16>
    %cst_27 = arith.constant dense<0.000000e+00> : vector<32x16xf32>
    %46 = tpu.matmul %44, %45, %cst_27 {dimension_numbers = #tpu.dot_dimension_numbers<[1], [0], [0], [1], [0, 0, 1, 1], [], []>} : vector<32x384xbf16>, vector<384x16xbf16>, vector<32x16xf32> -> vector<32x16xf32>
    %47 = arith.addf %42, %46 : vector<32x16xf32>
    %c2 = arith.constant 2 : index
    %c0_28 = arith.constant 0 : index
    %c0_29 = arith.constant 0 : index
    %48 = vector.load %arg3[%c2, %c0_28, %c0_29] : memref<3x32x384xbf16, #tpu.memory_space<vmem>>, vector<1x32x384xbf16>
    %49 = vector.shape_cast %48 : vector<1x32x384xbf16> to vector<32x384xbf16>
    %c0_30 = arith.constant 0 : index
    %c129 = arith.constant 129 : index
    %50 = vector.load %arg7[%c0_30, %c129] : memref<384x272xbf16, #tpu.memory_space<vmem>>, vector<384x16xbf16>
    %cst_31 = arith.constant dense<0.000000e+00> : vector<32x16xf32>
    %51 = tpu.matmul %49, %50, %cst_31 {dimension_numbers = #tpu.dot_dimension_numbers<[1], [0], [0], [1], [0, 0, 1, 1], [], []>} : vector<32x384xbf16>, vector<384x16xbf16>, vector<32x16xf32> -> vector<32x16xf32>
    %cst_32 = arith.constant 0.000000e+00 : f32
    %52 = vector.shape_cast %32 : vector<1x16xi1> to vector<1x16xi1>
    %53 = vector.broadcast %52 : vector<1x16xi1> to vector<32x16xi1>
    %54 = vector.broadcast %cst_32 : f32 to vector<32x16xf32>
    %55 = arith.select %53, %51, %54 : vector<32x16xi1>, vector<32x16xf32>
    %56 = arith.addf %47, %55 : vector<32x16xf32>
    %cst_33 = arith.constant dense<0.000000e+00> : vector<32xf32>
    %57 = vector.multi_reduction <add>, %56, %cst_33 [1] : vector<32x16xf32> to vector<32xf32>
    %58 = vector.shape_cast %57 : vector<32xf32> to vector<32x1xf32>
    %cst_34 = arith.constant 1.600000e+01 : f32
    %59 = vector.broadcast %cst_34 : f32 to vector<32x1xf32>
    %60 = arith.divf %58, %59 : vector<32x1xf32>
    %61 = vector.broadcast %60 : vector<32x1xf32> to vector<32x16xf32>
    %62 = arith.subf %56, %61 : vector<32x16xf32>
    %63 = arith.mulf %62, %62 : vector<32x16xf32>
    %cst_35 = arith.constant dense<0.000000e+00> : vector<32xf32>
    %64 = vector.multi_reduction <add>, %63, %cst_35 [1] : vector<32x16xf32> to vector<32xf32>
    %65 = vector.shape_cast %64 : vector<32xf32> to vector<32x1xf32>
    %cst_36 = arith.constant 1.600000e+01 : f32
    %66 = vector.broadcast %cst_36 : f32 to vector<32x1xf32>
    %67 = arith.divf %65, %66 : vector<32x1xf32>
    %68 = vector.broadcast %60 : vector<32x1xf32> to vector<32x16xf32>
    %69 = arith.subf %56, %68 : vector<32x16xf32>
    %cst_37 = arith.constant 9.99999974E-6 : f32
    %70 = vector.broadcast %cst_37 : f32 to vector<32x1xf32>
    %71 = arith.addf %67, %70 : vector<32x1xf32>
    %72 = math.rsqrt %71 : vector<32x1xf32>
    %73 = vector.broadcast %72 : vector<32x1xf32> to vector<32x16xf32>
    %74 = arith.mulf %69, %73 : vector<32x16xf32>
    %c0_38 = arith.constant 0 : index
    %c0_39 = arith.constant 0 : index
    %75 = vector.load %arg4[%c0_38, %c0_39] : memref<32x1xf32, #tpu.memory_space<vmem>>, vector<32x1xf32>
    %76 = vector.broadcast %75 : vector<32x1xf32> to vector<32x16xf32>
    %77 = arith.mulf %74, %76 : vector<32x16xf32>
    %c0_40 = arith.constant 0 : index
    %c0_41 = arith.constant 0 : index
    %78 = vector.load %arg5[%c0_40, %c0_41] : memref<32x1xf32, #tpu.memory_space<vmem>>, vector<32x1xf32>
    %79 = vector.broadcast %78 : vector<32x1xf32> to vector<32x16xf32>
    %80 = arith.addf %77, %79 : vector<32x16xf32>
    %cst_42 = arith.constant 0.000000e+00 : f32
    %81 = vector.broadcast %cst_42 : f32 to vector<32x16xf32>
    %82 = arith.maximumf %80, %81 : vector<32x16xf32>
    %83 = arith.truncf %82 : vector<32x16xf32> to vector<32x16xbf16>
    %c0_43 = arith.constant 0 : index
    %c0_44 = arith.constant 0 : index
    %c0_45 = arith.constant 0 : index
    %84 = vector.load %arg6[%c0_43, %c0_44, %c0_45] : memref<1x32x16xbf16, #tpu.memory_space<vmem>>, vector<1x32x16xbf16>
    %85 = vector.shape_cast %84 : vector<1x32x16xbf16> to vector<32x16xbf16>
    %86 = vector.shape_cast %83 : vector<32x16xbf16> to vector<1x32x16xbf16>
    tpu.vector_store %arg6[%c0_43, %c0_44, %c0_45], %86 {strides = array<i32>} : memref<1x32x16xbf16, #tpu.memory_space<vmem>>, vector<1x32x16xbf16>,
    return
  }
  func.func @transform_0(%arg0: i32) -> (i32, i32, i32) {
    %c0_i32 = arith.constant 0 : i32
    %c0_i32_0 = arith.constant 0 : i32
    %c0_i32_1 = arith.constant 0 : i32
    return %arg0, %c0_i32, %c0_i32_0 : i32, i32, i32
  }
  func.func @transform_1(%arg0: i32) -> (i32, i32, i32) {
    %c0_i32 = arith.constant 0 : i32
    %c0_i32_0 = arith.constant 0 : i32
    %c0_i32_1 = arith.constant 0 : i32
    return %arg0, %c0_i32, %c0_i32_0 : i32, i32, i32
  }
  func.func @transform_2(%arg0: i32) -> (i32, i32, i32) {
    %c0_i32 = arith.constant 0 : i32
    %c0_i32_0 = arith.constant 0 : i32
    %c0_i32_1 = arith.constant 0 : i32
    %c0_i32_2 = arith.constant 0 : i32
    return %c0_i32, %c0_i32_0, %c0_i32_1 : i32, i32, i32
  }
  func.func @transform_3(%arg0: i32) -> (i32, i32) {
    %c0_i32 = arith.constant 0 : i32
    %c0_i32_0 = arith.constant 0 : i32
    %c0_i32_1 = arith.constant 0 : i32
    return %c0_i32, %c0_i32_0 : i32, i32
  }
  func.func @transform_4(%arg0: i32) -> (i32, i32) {
    %c0_i32 = arith.constant 0 : i32
    %c0_i32_0 = arith.constant 0 : i32
    %c0_i32_1 = arith.constant 0 : i32
    return %c0_i32, %c0_i32_0 : i32, i32
  }
  func.func @transform_5(%arg0: i32) -> (i32, i32, i32) {
    %c0_i32 = arith.constant 0 : i32
    %c0_i32_0 = arith.constant 0 : i32
    %c0_i32_1 = arith.constant 0 : i32
    return %arg0, %c0_i32, %c0_i32_0 : i32, i32, i32
  }
}

module attributes {stable_mosaic.version = 11 : i64} {
  func.func @conv_block_kernel(%arg0: i32, %arg1: memref<1x32x64xbf16, #tpu.memory_space<vmem>>, %arg2: memref<1x32x64xbf16, #tpu.memory_space<vmem>>, %arg3: memref<3x16x192xbf16, #tpu.memory_space<vmem>>, %arg4: memref<16x1xf32, #tpu.memory_space<vmem>>, %arg5: memref<16x1xf32, #tpu.memory_space<vmem>>, %arg6: memref<1x16x64xbf16, #tpu.memory_space<vmem>>, %arg7: memref<192x320xbf16, #tpu.memory_space<vmem>>) attributes {dimension_semantics = [#tpu.dimension_semantics<parallel>], iteration_bounds = array<i64: 2>, scalar_prefetch = 0 : i64, scratch_operands = 1 : i64, tpu.core_type = #tpu.core_type<tc>, window_params = [{transform_indices = @transform_0, window_bounds = array<i64: 1, 32, 64>}, {transform_indices = @transform_1, window_bounds = array<i64: 1, 32, 64>}, {pipeline_mode = #tpu.pipeline_mode<synchronous>, transform_indices = @transform_2, window_bounds = array<i64: 3, 16, 192>}, {pipeline_mode = #tpu.pipeline_mode<synchronous>, transform_indices = @transform_3, window_bounds = array<i64: 16, 1>}, {pipeline_mode = #tpu.pipeline_mode<synchronous>, transform_indices = @transform_4, window_bounds = array<i64: 16, 1>}, {transform_indices = @transform_5, window_bounds = array<i64: 1, 16, 64>}]} {
    %c0 = arith.constant 0 : index
    %c0_0 = arith.constant 0 : index
    %c0_1 = arith.constant 0 : index
    %0 = vector.load %arg1[%c0, %c0_0, %c0_1] : memref<1x32x64xbf16, #tpu.memory_space<vmem>>, vector<1x32x64xbf16>
    %1 = vector.shape_cast %0 : vector<1x32x64xbf16> to vector<32x64xbf16>
    %c0_2 = arith.constant 0 : index
    %c0_3 = arith.constant 0 : index
    %c0_4 = arith.constant 0 : index
    %2 = vector.load %arg2[%c0_2, %c0_3, %c0_4] : memref<1x32x64xbf16, #tpu.memory_space<vmem>>, vector<1x32x64xbf16>
    %3 = vector.shape_cast %2 : vector<1x32x64xbf16> to vector<32x64xbf16>
    %cst = arith.constant 0.000000e+00 : bf16
    %4 = vector.broadcast %cst : bf16 to vector<192x320xbf16>
    %c0_5 = arith.constant 0 : index
    %c0_6 = arith.constant 0 : index
    %5 = vector.load %arg7[%c0_5, %c0_6] : memref<192x320xbf16, #tpu.memory_space<vmem>>, vector<192x320xbf16>
    tpu.vector_store %arg7[%c0_5, %c0_6], %4 {strides = array<i32>} : memref<192x320xbf16, #tpu.memory_space<vmem>>, vector<192x320xbf16>,
    %c0_7 = arith.constant 0 : index
    %c136 = arith.constant 136 : index
    %6 = vector.load %arg7[%c0_7, %c136] : memref<192x320xbf16, #tpu.memory_space<vmem>>, vector<32x64xbf16>
    tpu.vector_store %arg7[%c0_7, %c136], %1 {strides = array<i32>} : memref<192x320xbf16, #tpu.memory_space<vmem>>, vector<32x64xbf16>,
    %c32 = arith.constant 32 : index
    %c136_8 = arith.constant 136 : index
    %7 = vector.load %arg7[%c32, %c136_8] : memref<192x320xbf16, #tpu.memory_space<vmem>>, vector<32x64xbf16>
    tpu.vector_store %arg7[%c32, %c136_8], %3 {strides = array<i32>} : memref<192x320xbf16, #tpu.memory_space<vmem>>, vector<32x64xbf16>,
    %c64 = arith.constant 64 : index
    %c128 = arith.constant 128 : index
    %8 = vector.load %arg7[%c64, %c128] : memref<192x320xbf16, #tpu.memory_space<vmem>>, vector<32x64xbf16>
    tpu.vector_store %arg7[%c64, %c128], %1 {strides = array<i32>} : memref<192x320xbf16, #tpu.memory_space<vmem>>, vector<32x64xbf16>,
    %c96 = arith.constant 96 : index
    %c128_9 = arith.constant 128 : index
    %9 = vector.load %arg7[%c96, %c128_9] : memref<192x320xbf16, #tpu.memory_space<vmem>>, vector<32x64xbf16>
    tpu.vector_store %arg7[%c96, %c128_9], %3 {strides = array<i32>} : memref<192x320xbf16, #tpu.memory_space<vmem>>, vector<32x64xbf16>,
    %c128_10 = arith.constant 128 : index
    %c120 = arith.constant 120 : index
    %10 = vector.load %arg7[%c128_10, %c120] : memref<192x320xbf16, #tpu.memory_space<vmem>>, vector<32x64xbf16>
    tpu.vector_store %arg7[%c128_10, %c120], %1 {strides = array<i32>} : memref<192x320xbf16, #tpu.memory_space<vmem>>, vector<32x64xbf16>,
    %c160 = arith.constant 160 : index
    %c120_11 = arith.constant 120 : index
    %11 = vector.load %arg7[%c160, %c120_11] : memref<192x320xbf16, #tpu.memory_space<vmem>>, vector<32x64xbf16>
    tpu.vector_store %arg7[%c160, %c120_11], %3 {strides = array<i32>} : memref<192x320xbf16, #tpu.memory_space<vmem>>, vector<32x64xbf16>,
    %12 = tpu.iota {dimensions = array<i32: 1>} : vector<1x64xi32>
    %c8_i32 = arith.constant 8 : i32
    %c0_i32 = arith.constant 0 : i32
    %13 = arith.cmpi eq, %c8_i32, %c0_i32 : i32
    %c1_i32 = arith.constant 1 : i32
    %14 = arith.select %13, %c1_i32, %c8_i32 : i32
    %15 = vector.broadcast %14 : i32 to vector<1x64xi32>
    %16 = arith.remsi %12, %15 : vector<1x64xi32>
    %c0_i32_12 = arith.constant 0 : i32
    %17 = vector.broadcast %c0_i32_12 : i32 to vector<1x64xi32>
    %18 = arith.cmpi ne, %16, %17 : vector<1x64xi32>
    %c0_i32_13 = arith.constant 0 : i32
    %19 = vector.broadcast %c0_i32_13 : i32 to vector<1x64xi32>
    %20 = arith.cmpi slt, %16, %19 : vector<1x64xi32>
    %c0_i32_14 = arith.constant 0 : i32
    %21 = arith.cmpi slt, %14, %c0_i32_14 : i32
    %22 = vector.broadcast %21 : i1 to vector<1x64xi1>
    %23 = vector.broadcast %22 : vector<1x64xi1> to vector<1x64xi1>
    %24 = arith.xori %20, %23 : vector<1x64xi1>
    %25 = arith.andi %24, %18 : vector<1x64xi1>
    %26 = vector.broadcast %14 : i32 to vector<1x64xi32>
    %27 = arith.addi %16, %26 : vector<1x64xi32>
    %28 = arith.select %25, %27, %16 : vector<1x64xi1>, vector<1x64xi32>
    %c1_i32_15 = arith.constant 1 : i32
    %29 = vector.broadcast %c1_i32_15 : i32 to vector<1x64xi32>
    %30 = arith.cmpi sge, %28, %29 : vector<1x64xi32>
    %c6_i32 = arith.constant 6 : i32
    %31 = vector.broadcast %c6_i32 : i32 to vector<1x64xi32>
    %32 = arith.cmpi sle, %28, %31 : vector<1x64xi32>
    %cst_16 = arith.constant 0.000000e+00 : f32
    %33 = vector.broadcast %cst_16 : f32 to vector<16x64xf32>
    %c0_17 = arith.constant 0 : index
    %c0_18 = arith.constant 0 : index
    %c0_19 = arith.constant 0 : index
    %34 = vector.load %arg3[%c0_17, %c0_18, %c0_19] : memref<3x16x192xbf16, #tpu.memory_space<vmem>>, vector<1x16x192xbf16>
    %35 = vector.shape_cast %34 : vector<1x16x192xbf16> to vector<16x192xbf16>
    %c0_20 = arith.constant 0 : index
    %c127 = arith.constant 127 : index
    %36 = vector.load %arg7[%c0_20, %c127] : memref<192x320xbf16, #tpu.memory_space<vmem>>, vector<192x64xbf16>
    %cst_21 = arith.constant dense<0.000000e+00> : vector<16x64xf32>
    %37 = tpu.matmul %35, %36, %cst_21 {dimension_numbers = #tpu.dot_dimension_numbers<[1], [0], [0], [1], [0, 0, 1, 1], [], []>} : vector<16x192xbf16>, vector<192x64xbf16>, vector<16x64xf32> -> vector<16x64xf32>
    %cst_22 = arith.constant 0.000000e+00 : f32
    %38 = vector.shape_cast %30 : vector<1x64xi1> to vector<1x64xi1>
    %39 = vector.broadcast %38 : vector<1x64xi1> to vector<16x64xi1>
    %40 = vector.broadcast %cst_22 : f32 to vector<16x64xf32>
    %41 = arith.select %39, %37, %40 : vector<16x64xi1>, vector<16x64xf32>
    %42 = arith.addf %33, %41 : vector<16x64xf32>
    %c1 = arith.constant 1 : index
    %c0_23 = arith.constant 0 : index
    %c0_24 = arith.constant 0 : index
    %43 = vector.load %arg3[%c1, %c0_23, %c0_24] : memref<3x16x192xbf16, #tpu.memory_space<vmem>>, vector<1x16x192xbf16>
    %44 = vector.shape_cast %43 : vector<1x16x192xbf16> to vector<16x192xbf16>
    %c0_25 = arith.constant 0 : index
    %c128_26 = arith.constant 128 : index
    %45 = vector.load %arg7[%c0_25, %c128_26] : memref<192x320xbf16, #tpu.memory_space<vmem>>, vector<192x64xbf16>
    %cst_27 = arith.constant dense<0.000000e+00> : vector<16x64xf32>
    %46 = tpu.matmul %44, %45, %cst_27 {dimension_numbers = #tpu.dot_dimension_numbers<[1], [0], [0], [1], [0, 0, 1, 1], [], []>} : vector<16x192xbf16>, vector<192x64xbf16>, vector<16x64xf32> -> vector<16x64xf32>
    %47 = arith.addf %42, %46 : vector<16x64xf32>
    %c2 = arith.constant 2 : index
    %c0_28 = arith.constant 0 : index
    %c0_29 = arith.constant 0 : index
    %48 = vector.load %arg3[%c2, %c0_28, %c0_29] : memref<3x16x192xbf16, #tpu.memory_space<vmem>>, vector<1x16x192xbf16>
    %49 = vector.shape_cast %48 : vector<1x16x192xbf16> to vector<16x192xbf16>
    %c0_30 = arith.constant 0 : index
    %c129 = arith.constant 129 : index
    %50 = vector.load %arg7[%c0_30, %c129] : memref<192x320xbf16, #tpu.memory_space<vmem>>, vector<192x64xbf16>
    %cst_31 = arith.constant dense<0.000000e+00> : vector<16x64xf32>
    %51 = tpu.matmul %49, %50, %cst_31 {dimension_numbers = #tpu.dot_dimension_numbers<[1], [0], [0], [1], [0, 0, 1, 1], [], []>} : vector<16x192xbf16>, vector<192x64xbf16>, vector<16x64xf32> -> vector<16x64xf32>
    %cst_32 = arith.constant 0.000000e+00 : f32
    %52 = vector.shape_cast %32 : vector<1x64xi1> to vector<1x64xi1>
    %53 = vector.broadcast %52 : vector<1x64xi1> to vector<16x64xi1>
    %54 = vector.broadcast %cst_32 : f32 to vector<16x64xf32>
    %55 = arith.select %53, %51, %54 : vector<16x64xi1>, vector<16x64xf32>
    %56 = arith.addf %47, %55 : vector<16x64xf32>
    %cst_33 = arith.constant dense<0.000000e+00> : vector<16xf32>
    %57 = vector.multi_reduction <add>, %56, %cst_33 [1] : vector<16x64xf32> to vector<16xf32>
    %58 = vector.shape_cast %57 : vector<16xf32> to vector<16x1xf32>
    %cst_34 = arith.constant 6.400000e+01 : f32
    %59 = vector.broadcast %cst_34 : f32 to vector<16x1xf32>
    %60 = arith.divf %58, %59 : vector<16x1xf32>
    %61 = vector.broadcast %60 : vector<16x1xf32> to vector<16x64xf32>
    %62 = arith.subf %56, %61 : vector<16x64xf32>
    %63 = arith.mulf %62, %62 : vector<16x64xf32>
    %cst_35 = arith.constant dense<0.000000e+00> : vector<16xf32>
    %64 = vector.multi_reduction <add>, %63, %cst_35 [1] : vector<16x64xf32> to vector<16xf32>
    %65 = vector.shape_cast %64 : vector<16xf32> to vector<16x1xf32>
    %cst_36 = arith.constant 6.400000e+01 : f32
    %66 = vector.broadcast %cst_36 : f32 to vector<16x1xf32>
    %67 = arith.divf %65, %66 : vector<16x1xf32>
    %68 = vector.broadcast %60 : vector<16x1xf32> to vector<16x64xf32>
    %69 = arith.subf %56, %68 : vector<16x64xf32>
    %cst_37 = arith.constant 9.99999974E-6 : f32
    %70 = vector.broadcast %cst_37 : f32 to vector<16x1xf32>
    %71 = arith.addf %67, %70 : vector<16x1xf32>
    %72 = math.rsqrt %71 : vector<16x1xf32>
    %73 = vector.broadcast %72 : vector<16x1xf32> to vector<16x64xf32>
    %74 = arith.mulf %69, %73 : vector<16x64xf32>
    %c0_38 = arith.constant 0 : index
    %c0_39 = arith.constant 0 : index
    %75 = vector.load %arg4[%c0_38, %c0_39] : memref<16x1xf32, #tpu.memory_space<vmem>>, vector<16x1xf32>
    %76 = vector.broadcast %75 : vector<16x1xf32> to vector<16x64xf32>
    %77 = arith.mulf %74, %76 : vector<16x64xf32>
    %c0_40 = arith.constant 0 : index
    %c0_41 = arith.constant 0 : index
    %78 = vector.load %arg5[%c0_40, %c0_41] : memref<16x1xf32, #tpu.memory_space<vmem>>, vector<16x1xf32>
    %79 = vector.broadcast %78 : vector<16x1xf32> to vector<16x64xf32>
    %80 = arith.addf %77, %79 : vector<16x64xf32>
    %cst_42 = arith.constant 0.000000e+00 : f32
    %81 = vector.broadcast %cst_42 : f32 to vector<16x64xf32>
    %82 = arith.maximumf %80, %81 : vector<16x64xf32>
    %83 = arith.truncf %82 : vector<16x64xf32> to vector<16x64xbf16>
    %c0_43 = arith.constant 0 : index
    %c0_44 = arith.constant 0 : index
    %c0_45 = arith.constant 0 : index
    %84 = vector.load %arg6[%c0_43, %c0_44, %c0_45] : memref<1x16x64xbf16, #tpu.memory_space<vmem>>, vector<1x16x64xbf16>
    %85 = vector.shape_cast %84 : vector<1x16x64xbf16> to vector<16x64xbf16>
    %86 = vector.shape_cast %83 : vector<16x64xbf16> to vector<1x16x64xbf16>
    tpu.vector_store %arg6[%c0_43, %c0_44, %c0_45], %86 {strides = array<i32>} : memref<1x16x64xbf16, #tpu.memory_space<vmem>>, vector<1x16x64xbf16>,
    return
  }
  func.func @transform_0(%arg0: i32) -> (i32, i32, i32) {
    %c0_i32 = arith.constant 0 : i32
    %c0_i32_0 = arith.constant 0 : i32
    %c0_i32_1 = arith.constant 0 : i32
    return %arg0, %c0_i32, %c0_i32_0 : i32, i32, i32
  }
  func.func @transform_1(%arg0: i32) -> (i32, i32, i32) {
    %c0_i32 = arith.constant 0 : i32
    %c0_i32_0 = arith.constant 0 : i32
    %c0_i32_1 = arith.constant 0 : i32
    return %arg0, %c0_i32, %c0_i32_0 : i32, i32, i32
  }
  func.func @transform_2(%arg0: i32) -> (i32, i32, i32) {
    %c0_i32 = arith.constant 0 : i32
    %c0_i32_0 = arith.constant 0 : i32
    %c0_i32_1 = arith.constant 0 : i32
    %c0_i32_2 = arith.constant 0 : i32
    return %c0_i32, %c0_i32_0, %c0_i32_1 : i32, i32, i32
  }
  func.func @transform_3(%arg0: i32) -> (i32, i32) {
    %c0_i32 = arith.constant 0 : i32
    %c0_i32_0 = arith.constant 0 : i32
    %c0_i32_1 = arith.constant 0 : i32
    return %c0_i32, %c0_i32_0 : i32, i32
  }
  func.func @transform_4(%arg0: i32) -> (i32, i32) {
    %c0_i32 = arith.constant 0 : i32
    %c0_i32_0 = arith.constant 0 : i32
    %c0_i32_1 = arith.constant 0 : i32
    return %c0_i32, %c0_i32_0 : i32, i32
  }
  func.func @transform_5(%arg0: i32) -> (i32, i32, i32) {
    %c0_i32 = arith.constant 0 : i32
    %c0_i32_0 = arith.constant 0 : i32
    %c0_i32_1 = arith.constant 0 : i32
    return %arg0, %c0_i32, %c0_i32_0 : i32, i32, i32
  }
}

module attributes {stable_mosaic.version = 11 : i64} {
  func.func @conv_block_kernel(%arg0: i32, %arg1: memref<1x16x256xbf16, #tpu.memory_space<vmem>>, %arg2: memref<1x16x256xbf16, #tpu.memory_space<vmem>>, %arg3: memref<3x8x96xbf16, #tpu.memory_space<vmem>>, %arg4: memref<8x1xf32, #tpu.memory_space<vmem>>, %arg5: memref<8x1xf32, #tpu.memory_space<vmem>>, %arg6: memref<1x8x256xbf16, #tpu.memory_space<vmem>>, %arg7: memref<96x512xbf16, #tpu.memory_space<vmem>>) attributes {dimension_semantics = [#tpu.dimension_semantics<parallel>], iteration_bounds = array<i64: 2>, scalar_prefetch = 0 : i64, scratch_operands = 1 : i64, tpu.core_type = #tpu.core_type<tc>, window_params = [{transform_indices = @transform_0, window_bounds = array<i64: 1, 16, 256>}, {transform_indices = @transform_1, window_bounds = array<i64: 1, 16, 256>}, {pipeline_mode = #tpu.pipeline_mode<synchronous>, transform_indices = @transform_2, window_bounds = array<i64: 3, 8, 96>}, {pipeline_mode = #tpu.pipeline_mode<synchronous>, transform_indices = @transform_3, window_bounds = array<i64: 8, 1>}, {pipeline_mode = #tpu.pipeline_mode<synchronous>, transform_indices = @transform_4, window_bounds = array<i64: 8, 1>}, {transform_indices = @transform_5, window_bounds = array<i64: 1, 8, 256>}]} {
    %c0 = arith.constant 0 : index
    %c0_0 = arith.constant 0 : index
    %c0_1 = arith.constant 0 : index
    %0 = vector.load %arg1[%c0, %c0_0, %c0_1] : memref<1x16x256xbf16, #tpu.memory_space<vmem>>, vector<1x16x256xbf16>
    %1 = vector.shape_cast %0 : vector<1x16x256xbf16> to vector<16x256xbf16>
    %c0_2 = arith.constant 0 : index
    %c0_3 = arith.constant 0 : index
    %c0_4 = arith.constant 0 : index
    %2 = vector.load %arg2[%c0_2, %c0_3, %c0_4] : memref<1x16x256xbf16, #tpu.memory_space<vmem>>, vector<1x16x256xbf16>
    %3 = vector.shape_cast %2 : vector<1x16x256xbf16> to vector<16x256xbf16>
    %cst = arith.constant 0.000000e+00 : bf16
    %4 = vector.broadcast %cst : bf16 to vector<96x512xbf16>
    %c0_5 = arith.constant 0 : index
    %c0_6 = arith.constant 0 : index
    %5 = vector.load %arg7[%c0_5, %c0_6] : memref<96x512xbf16, #tpu.memory_space<vmem>>, vector<96x512xbf16>
    tpu.vector_store %arg7[%c0_5, %c0_6], %4 {strides = array<i32>} : memref<96x512xbf16, #tpu.memory_space<vmem>>, vector<96x512xbf16>,
    %c0_7 = arith.constant 0 : index
    %c144 = arith.constant 144 : index
    %6 = vector.load %arg7[%c0_7, %c144] : memref<96x512xbf16, #tpu.memory_space<vmem>>, vector<16x256xbf16>
    tpu.vector_store %arg7[%c0_7, %c144], %1 {strides = array<i32>} : memref<96x512xbf16, #tpu.memory_space<vmem>>, vector<16x256xbf16>,
    %c16 = arith.constant 16 : index
    %c144_8 = arith.constant 144 : index
    %7 = vector.load %arg7[%c16, %c144_8] : memref<96x512xbf16, #tpu.memory_space<vmem>>, vector<16x256xbf16>
    tpu.vector_store %arg7[%c16, %c144_8], %3 {strides = array<i32>} : memref<96x512xbf16, #tpu.memory_space<vmem>>, vector<16x256xbf16>,
    %c32 = arith.constant 32 : index
    %c128 = arith.constant 128 : index
    %8 = vector.load %arg7[%c32, %c128] : memref<96x512xbf16, #tpu.memory_space<vmem>>, vector<16x256xbf16>
    tpu.vector_store %arg7[%c32, %c128], %1 {strides = array<i32>} : memref<96x512xbf16, #tpu.memory_space<vmem>>, vector<16x256xbf16>,
    %c48 = arith.constant 48 : index
    %c128_9 = arith.constant 128 : index
    %9 = vector.load %arg7[%c48, %c128_9] : memref<96x512xbf16, #tpu.memory_space<vmem>>, vector<16x256xbf16>
    tpu.vector_store %arg7[%c48, %c128_9], %3 {strides = array<i32>} : memref<96x512xbf16, #tpu.memory_space<vmem>>, vector<16x256xbf16>,
    %c64 = arith.constant 64 : index
    %c112 = arith.constant 112 : index
    %10 = vector.load %arg7[%c64, %c112] : memref<96x512xbf16, #tpu.memory_space<vmem>>, vector<16x256xbf16>
    tpu.vector_store %arg7[%c64, %c112], %1 {strides = array<i32>} : memref<96x512xbf16, #tpu.memory_space<vmem>>, vector<16x256xbf16>,
    %c80 = arith.constant 80 : index
    %c112_10 = arith.constant 112 : index
    %11 = vector.load %arg7[%c80, %c112_10] : memref<96x512xbf16, #tpu.memory_space<vmem>>, vector<16x256xbf16>
    tpu.vector_store %arg7[%c80, %c112_10], %3 {strides = array<i32>} : memref<96x512xbf16, #tpu.memory_space<vmem>>, vector<16x256xbf16>,
    %12 = tpu.iota {dimensions = array<i32: 1>} : vector<1x256xi32>
    %c16_i32 = arith.constant 16 : i32
    %c0_i32 = arith.constant 0 : i32
    %13 = arith.cmpi eq, %c16_i32, %c0_i32 : i32
    %c1_i32 = arith.constant 1 : i32
    %14 = arith.select %13, %c1_i32, %c16_i32 : i32
    %15 = vector.broadcast %14 : i32 to vector<1x256xi32>
    %16 = arith.remsi %12, %15 : vector<1x256xi32>
    %c0_i32_11 = arith.constant 0 : i32
    %17 = vector.broadcast %c0_i32_11 : i32 to vector<1x256xi32>
    %18 = arith.cmpi ne, %16, %17 : vector<1x256xi32>
    %c0_i32_12 = arith.constant 0 : i32
    %19 = vector.broadcast %c0_i32_12 : i32 to vector<1x256xi32>
    %20 = arith.cmpi slt, %16, %19 : vector<1x256xi32>
    %c0_i32_13 = arith.constant 0 : i32
    %21 = arith.cmpi slt, %14, %c0_i32_13 : i32
    %22 = vector.broadcast %21 : i1 to vector<1x256xi1>
    %23 = vector.broadcast %22 : vector<1x256xi1> to vector<1x256xi1>
    %24 = arith.xori %20, %23 : vector<1x256xi1>
    %25 = arith.andi %24, %18 : vector<1x256xi1>
    %26 = vector.broadcast %14 : i32 to vector<1x256xi32>
    %27 = arith.addi %16, %26 : vector<1x256xi32>
    %28 = arith.select %25, %27, %16 : vector<1x256xi1>, vector<1x256xi32>
    %c1_i32_14 = arith.constant 1 : i32
    %29 = vector.broadcast %c1_i32_14 : i32 to vector<1x256xi32>
    %30 = arith.cmpi sge, %28, %29 : vector<1x256xi32>
    %c14_i32 = arith.constant 14 : i32
    %31 = vector.broadcast %c14_i32 : i32 to vector<1x256xi32>
    %32 = arith.cmpi sle, %28, %31 : vector<1x256xi32>
    %cst_15 = arith.constant 0.000000e+00 : f32
    %33 = vector.broadcast %cst_15 : f32 to vector<8x256xf32>
    %c0_16 = arith.constant 0 : index
    %c0_17 = arith.constant 0 : index
    %c0_18 = arith.constant 0 : index
    %34 = vector.load %arg3[%c0_16, %c0_17, %c0_18] : memref<3x8x96xbf16, #tpu.memory_space<vmem>>, vector<1x8x96xbf16>
    %35 = vector.shape_cast %34 : vector<1x8x96xbf16> to vector<8x96xbf16>
    %c0_19 = arith.constant 0 : index
    %c127 = arith.constant 127 : index
    %36 = vector.load %arg7[%c0_19, %c127] : memref<96x512xbf16, #tpu.memory_space<vmem>>, vector<96x256xbf16>
    %cst_20 = arith.constant dense<0.000000e+00> : vector<8x256xf32>
    %37 = tpu.matmul %35, %36, %cst_20 {dimension_numbers = #tpu.dot_dimension_numbers<[1], [0], [0], [1], [0, 0, 1, 1], [], []>} : vector<8x96xbf16>, vector<96x256xbf16>, vector<8x256xf32> -> vector<8x256xf32>
    %cst_21 = arith.constant 0.000000e+00 : f32
    %38 = vector.shape_cast %30 : vector<1x256xi1> to vector<1x256xi1>
    %39 = vector.broadcast %38 : vector<1x256xi1> to vector<8x256xi1>
    %40 = vector.broadcast %cst_21 : f32 to vector<8x256xf32>
    %41 = arith.select %39, %37, %40 : vector<8x256xi1>, vector<8x256xf32>
    %42 = arith.addf %33, %41 : vector<8x256xf32>
    %c1 = arith.constant 1 : index
    %c0_22 = arith.constant 0 : index
    %c0_23 = arith.constant 0 : index
    %43 = vector.load %arg3[%c1, %c0_22, %c0_23] : memref<3x8x96xbf16, #tpu.memory_space<vmem>>, vector<1x8x96xbf16>
    %44 = vector.shape_cast %43 : vector<1x8x96xbf16> to vector<8x96xbf16>
    %c0_24 = arith.constant 0 : index
    %c128_25 = arith.constant 128 : index
    %45 = vector.load %arg7[%c0_24, %c128_25] : memref<96x512xbf16, #tpu.memory_space<vmem>>, vector<96x256xbf16>
    %cst_26 = arith.constant dense<0.000000e+00> : vector<8x256xf32>
    %46 = tpu.matmul %44, %45, %cst_26 {dimension_numbers = #tpu.dot_dimension_numbers<[1], [0], [0], [1], [0, 0, 1, 1], [], []>} : vector<8x96xbf16>, vector<96x256xbf16>, vector<8x256xf32> -> vector<8x256xf32>
    %47 = arith.addf %42, %46 : vector<8x256xf32>
    %c2 = arith.constant 2 : index
    %c0_27 = arith.constant 0 : index
    %c0_28 = arith.constant 0 : index
    %48 = vector.load %arg3[%c2, %c0_27, %c0_28] : memref<3x8x96xbf16, #tpu.memory_space<vmem>>, vector<1x8x96xbf16>
    %49 = vector.shape_cast %48 : vector<1x8x96xbf16> to vector<8x96xbf16>
    %c0_29 = arith.constant 0 : index
    %c129 = arith.constant 129 : index
    %50 = vector.load %arg7[%c0_29, %c129] : memref<96x512xbf16, #tpu.memory_space<vmem>>, vector<96x256xbf16>
    %cst_30 = arith.constant dense<0.000000e+00> : vector<8x256xf32>
    %51 = tpu.matmul %49, %50, %cst_30 {dimension_numbers = #tpu.dot_dimension_numbers<[1], [0], [0], [1], [0, 0, 1, 1], [], []>} : vector<8x96xbf16>, vector<96x256xbf16>, vector<8x256xf32> -> vector<8x256xf32>
    %cst_31 = arith.constant 0.000000e+00 : f32
    %52 = vector.shape_cast %32 : vector<1x256xi1> to vector<1x256xi1>
    %53 = vector.broadcast %52 : vector<1x256xi1> to vector<8x256xi1>
    %54 = vector.broadcast %cst_31 : f32 to vector<8x256xf32>
    %55 = arith.select %53, %51, %54 : vector<8x256xi1>, vector<8x256xf32>
    %56 = arith.addf %47, %55 : vector<8x256xf32>
    %cst_32 = arith.constant dense<0.000000e+00> : vector<8xf32>
    %57 = vector.multi_reduction <add>, %56, %cst_32 [1] : vector<8x256xf32> to vector<8xf32>
    %58 = vector.shape_cast %57 : vector<8xf32> to vector<8x1xf32>
    %cst_33 = arith.constant 2.560000e+02 : f32
    %59 = vector.broadcast %cst_33 : f32 to vector<8x1xf32>
    %60 = arith.divf %58, %59 : vector<8x1xf32>
    %61 = vector.broadcast %60 : vector<8x1xf32> to vector<8x256xf32>
    %62 = arith.subf %56, %61 : vector<8x256xf32>
    %63 = arith.mulf %62, %62 : vector<8x256xf32>
    %cst_34 = arith.constant dense<0.000000e+00> : vector<8xf32>
    %64 = vector.multi_reduction <add>, %63, %cst_34 [1] : vector<8x256xf32> to vector<8xf32>
    %65 = vector.shape_cast %64 : vector<8xf32> to vector<8x1xf32>
    %cst_35 = arith.constant 2.560000e+02 : f32
    %66 = vector.broadcast %cst_35 : f32 to vector<8x1xf32>
    %67 = arith.divf %65, %66 : vector<8x1xf32>
    %68 = vector.broadcast %60 : vector<8x1xf32> to vector<8x256xf32>
    %69 = arith.subf %56, %68 : vector<8x256xf32>
    %cst_36 = arith.constant 9.99999974E-6 : f32
    %70 = vector.broadcast %cst_36 : f32 to vector<8x1xf32>
    %71 = arith.addf %67, %70 : vector<8x1xf32>
    %72 = math.rsqrt %71 : vector<8x1xf32>
    %73 = vector.broadcast %72 : vector<8x1xf32> to vector<8x256xf32>
    %74 = arith.mulf %69, %73 : vector<8x256xf32>
    %c0_37 = arith.constant 0 : index
    %c0_38 = arith.constant 0 : index
    %75 = vector.load %arg4[%c0_37, %c0_38] : memref<8x1xf32, #tpu.memory_space<vmem>>, vector<8x1xf32>
    %76 = vector.broadcast %75 : vector<8x1xf32> to vector<8x256xf32>
    %77 = arith.mulf %74, %76 : vector<8x256xf32>
    %c0_39 = arith.constant 0 : index
    %c0_40 = arith.constant 0 : index
    %78 = vector.load %arg5[%c0_39, %c0_40] : memref<8x1xf32, #tpu.memory_space<vmem>>, vector<8x1xf32>
    %79 = vector.broadcast %78 : vector<8x1xf32> to vector<8x256xf32>
    %80 = arith.addf %77, %79 : vector<8x256xf32>
    %cst_41 = arith.constant 0.000000e+00 : f32
    %81 = vector.broadcast %cst_41 : f32 to vector<8x256xf32>
    %82 = arith.maximumf %80, %81 : vector<8x256xf32>
    %83 = arith.truncf %82 : vector<8x256xf32> to vector<8x256xbf16>
    %c0_42 = arith.constant 0 : index
    %c0_43 = arith.constant 0 : index
    %c0_44 = arith.constant 0 : index
    %84 = vector.load %arg6[%c0_42, %c0_43, %c0_44] : memref<1x8x256xbf16, #tpu.memory_space<vmem>>, vector<1x8x256xbf16>
    %85 = vector.shape_cast %84 : vector<1x8x256xbf16> to vector<8x256xbf16>
    %86 = vector.shape_cast %83 : vector<8x256xbf16> to vector<1x8x256xbf16>
    tpu.vector_store %arg6[%c0_42, %c0_43, %c0_44], %86 {strides = array<i32>} : memref<1x8x256xbf16, #tpu.memory_space<vmem>>, vector<1x8x256xbf16>,
    return
  }
  func.func @transform_0(%arg0: i32) -> (i32, i32, i32) {
    %c0_i32 = arith.constant 0 : i32
    %c0_i32_0 = arith.constant 0 : i32
    %c0_i32_1 = arith.constant 0 : i32
    return %arg0, %c0_i32, %c0_i32_0 : i32, i32, i32
  }
  func.func @transform_1(%arg0: i32) -> (i32, i32, i32) {
    %c0_i32 = arith.constant 0 : i32
    %c0_i32_0 = arith.constant 0 : i32
    %c0_i32_1 = arith.constant 0 : i32
    return %arg0, %c0_i32, %c0_i32_0 : i32, i32, i32
  }
  func.func @transform_2(%arg0: i32) -> (i32, i32, i32) {
    %c0_i32 = arith.constant 0 : i32
    %c0_i32_0 = arith.constant 0 : i32
    %c0_i32_1 = arith.constant 0 : i32
    %c0_i32_2 = arith.constant 0 : i32
    return %c0_i32, %c0_i32_0, %c0_i32_1 : i32, i32, i32
  }
  func.func @transform_3(%arg0: i32) -> (i32, i32) {
    %c0_i32 = arith.constant 0 : i32
    %c0_i32_0 = arith.constant 0 : i32
    %c0_i32_1 = arith.constant 0 : i32
    return %c0_i32, %c0_i32_0 : i32, i32
  }
  func.func @transform_4(%arg0: i32) -> (i32, i32) {
    %c0_i32 = arith.constant 0 : i32
    %c0_i32_0 = arith.constant 0 : i32
    %c0_i32_1 = arith.constant 0 : i32
    return %c0_i32, %c0_i32_0 : i32, i32
  }
  func.func @transform_5(%arg0: i32) -> (i32, i32, i32) {
    %c0_i32 = arith.constant 0 : i32
    %c0_i32_0 = arith.constant 0 : i32
    %c0_i32_1 = arith.constant 0 : i32
    return %arg0, %c0_i32, %c0_i32_0 : i32, i32, i32
  }
}

module attributes {stable_mosaic.version = 11 : i64} {
  func.func @conv_block_out_kernel(%arg0: i32, %arg1: memref<1x8x1024xbf16, #tpu.memory_space<vmem>>, %arg2: memref<1x8x1024xbf16, #tpu.memory_space<vmem>>, %arg3: memref<3x8x48xbf16, #tpu.memory_space<vmem>>, %arg4: memref<8x1xf32, #tpu.memory_space<vmem>>, %arg5: memref<8x1xf32, #tpu.memory_space<vmem>>, %arg6: memref<1x8xbf16, #tpu.memory_space<vmem>>, %arg7: memref<1x1xf32, #tpu.memory_space<vmem>>, %arg8: memref<1x1x1024xf32, #tpu.memory_space<vmem>>, %arg9: memref<48x1280xbf16, #tpu.memory_space<vmem>>) attributes {dimension_semantics = [#tpu.dimension_semantics<parallel>], iteration_bounds = array<i64: 2>, scalar_prefetch = 0 : i64, scratch_operands = 1 : i64, tpu.core_type = #tpu.core_type<tc>, window_params = [{transform_indices = @transform_0, window_bounds = array<i64: 1, 8, 1024>}, {transform_indices = @transform_1, window_bounds = array<i64: 1, 8, 1024>}, {pipeline_mode = #tpu.pipeline_mode<synchronous>, transform_indices = @transform_2, window_bounds = array<i64: 3, 8, 48>}, {pipeline_mode = #tpu.pipeline_mode<synchronous>, transform_indices = @transform_3, window_bounds = array<i64: 8, 1>}, {pipeline_mode = #tpu.pipeline_mode<synchronous>, transform_indices = @transform_4, window_bounds = array<i64: 8, 1>}, {pipeline_mode = #tpu.pipeline_mode<synchronous>, transform_indices = @transform_5, window_bounds = array<i64: 1, 8>}, {pipeline_mode = #tpu.pipeline_mode<synchronous>, transform_indices = @transform_6, window_bounds = array<i64: 1, 1>}, {transform_indices = @transform_7, window_bounds = array<i64: 1, 1, 1024>}]} {
    %c0 = arith.constant 0 : index
    %c0_0 = arith.constant 0 : index
    %c0_1 = arith.constant 0 : index
    %0 = vector.load %arg1[%c0, %c0_0, %c0_1] : memref<1x8x1024xbf16, #tpu.memory_space<vmem>>, vector<1x8x1024xbf16>
    %1 = vector.shape_cast %0 : vector<1x8x1024xbf16> to vector<8x1024xbf16>
    %c0_2 = arith.constant 0 : index
    %c0_3 = arith.constant 0 : index
    %c0_4 = arith.constant 0 : index
    %2 = vector.load %arg2[%c0_2, %c0_3, %c0_4] : memref<1x8x1024xbf16, #tpu.memory_space<vmem>>, vector<1x8x1024xbf16>
    %3 = vector.shape_cast %2 : vector<1x8x1024xbf16> to vector<8x1024xbf16>
    %cst = arith.constant 0.000000e+00 : bf16
    %4 = vector.broadcast %cst : bf16 to vector<48x1280xbf16>
    %c0_5 = arith.constant 0 : index
    %c0_6 = arith.constant 0 : index
    %5 = vector.load %arg9[%c0_5, %c0_6] : memref<48x1280xbf16, #tpu.memory_space<vmem>>, vector<48x1280xbf16>
    tpu.vector_store %arg9[%c0_5, %c0_6], %4 {strides = array<i32>} : memref<48x1280xbf16, #tpu.memory_space<vmem>>, vector<48x1280xbf16>,
    %c0_7 = arith.constant 0 : index
    %c160 = arith.constant 160 : index
    %6 = vector.load %arg9[%c0_7, %c160] : memref<48x1280xbf16, #tpu.memory_space<vmem>>, vector<8x1024xbf16>
    tpu.vector_store %arg9[%c0_7, %c160], %1 {strides = array<i32>} : memref<48x1280xbf16, #tpu.memory_space<vmem>>, vector<8x1024xbf16>,
    %c8 = arith.constant 8 : index
    %c160_8 = arith.constant 160 : index
    %7 = vector.load %arg9[%c8, %c160_8] : memref<48x1280xbf16, #tpu.memory_space<vmem>>, vector<8x1024xbf16>
    tpu.vector_store %arg9[%c8, %c160_8], %3 {strides = array<i32>} : memref<48x1280xbf16, #tpu.memory_space<vmem>>, vector<8x1024xbf16>,
    %c16 = arith.constant 16 : index
    %c128 = arith.constant 128 : index
    %8 = vector.load %arg9[%c16, %c128] : memref<48x1280xbf16, #tpu.memory_space<vmem>>, vector<8x1024xbf16>
    tpu.vector_store %arg9[%c16, %c128], %1 {strides = array<i32>} : memref<48x1280xbf16, #tpu.memory_space<vmem>>, vector<8x1024xbf16>,
    %c24 = arith.constant 24 : index
    %c128_9 = arith.constant 128 : index
    %9 = vector.load %arg9[%c24, %c128_9] : memref<48x1280xbf16, #tpu.memory_space<vmem>>, vector<8x1024xbf16>
    tpu.vector_store %arg9[%c24, %c128_9], %3 {strides = array<i32>} : memref<48x1280xbf16, #tpu.memory_space<vmem>>, vector<8x1024xbf16>,
    %c32 = arith.constant 32 : index
    %c96 = arith.constant 96 : index
    %10 = vector.load %arg9[%c32, %c96] : memref<48x1280xbf16, #tpu.memory_space<vmem>>, vector<8x1024xbf16>
    tpu.vector_store %arg9[%c32, %c96], %1 {strides = array<i32>} : memref<48x1280xbf16, #tpu.memory_space<vmem>>, vector<8x1024xbf16>,
    %c40 = arith.constant 40 : index
    %c96_10 = arith.constant 96 : index
    %11 = vector.load %arg9[%c40, %c96_10] : memref<48x1280xbf16, #tpu.memory_space<vmem>>, vector<8x1024xbf16>
    tpu.vector_store %arg9[%c40, %c96_10], %3 {strides = array<i32>} : memref<48x1280xbf16, #tpu.memory_space<vmem>>, vector<8x1024xbf16>,
    %12 = tpu.iota {dimensions = array<i32: 1>} : vector<1x1024xi32>
    %c32_i32 = arith.constant 32 : i32
    %c0_i32 = arith.constant 0 : i32
    %13 = arith.cmpi eq, %c32_i32, %c0_i32 : i32
    %c1_i32 = arith.constant 1 : i32
    %14 = arith.select %13, %c1_i32, %c32_i32 : i32
    %15 = vector.broadcast %14 : i32 to vector<1x1024xi32>
    %16 = arith.remsi %12, %15 : vector<1x1024xi32>
    %c0_i32_11 = arith.constant 0 : i32
    %17 = vector.broadcast %c0_i32_11 : i32 to vector<1x1024xi32>
    %18 = arith.cmpi ne, %16, %17 : vector<1x1024xi32>
    %c0_i32_12 = arith.constant 0 : i32
    %19 = vector.broadcast %c0_i32_12 : i32 to vector<1x1024xi32>
    %20 = arith.cmpi slt, %16, %19 : vector<1x1024xi32>
    %c0_i32_13 = arith.constant 0 : i32
    %21 = arith.cmpi slt, %14, %c0_i32_13 : i32
    %22 = vector.broadcast %21 : i1 to vector<1x1024xi1>
    %23 = vector.broadcast %22 : vector<1x1024xi1> to vector<1x1024xi1>
    %24 = arith.xori %20, %23 : vector<1x1024xi1>
    %25 = arith.andi %24, %18 : vector<1x1024xi1>
    %26 = vector.broadcast %14 : i32 to vector<1x1024xi32>
    %27 = arith.addi %16, %26 : vector<1x1024xi32>
    %28 = arith.select %25, %27, %16 : vector<1x1024xi1>, vector<1x1024xi32>
    %c1_i32_14 = arith.constant 1 : i32
    %29 = vector.broadcast %c1_i32_14 : i32 to vector<1x1024xi32>
    %30 = arith.cmpi sge, %28, %29 : vector<1x1024xi32>
    %c30_i32 = arith.constant 30 : i32
    %31 = vector.broadcast %c30_i32 : i32 to vector<1x1024xi32>
    %32 = arith.cmpi sle, %28, %31 : vector<1x1024xi32>
    %cst_15 = arith.constant 0.000000e+00 : f32
    %33 = vector.broadcast %cst_15 : f32 to vector<8x1024xf32>
    %c0_16 = arith.constant 0 : index
    %c0_17 = arith.constant 0 : index
    %c0_18 = arith.constant 0 : index
    %34 = vector.load %arg3[%c0_16, %c0_17, %c0_18] : memref<3x8x48xbf16, #tpu.memory_space<vmem>>, vector<1x8x48xbf16>
    %35 = vector.shape_cast %34 : vector<1x8x48xbf16> to vector<8x48xbf16>
    %c0_19 = arith.constant 0 : index
    %c127 = arith.constant 127 : index
    %36 = vector.load %arg9[%c0_19, %c127] : memref<48x1280xbf16, #tpu.memory_space<vmem>>, vector<48x1024xbf16>
    %cst_20 = arith.constant dense<0.000000e+00> : vector<8x1024xf32>
    %37 = tpu.matmul %35, %36, %cst_20 {dimension_numbers = #tpu.dot_dimension_numbers<[1], [0], [0], [1], [0, 0, 1, 1], [], []>} : vector<8x48xbf16>, vector<48x1024xbf16>, vector<8x1024xf32> -> vector<8x1024xf32>
    %cst_21 = arith.constant 0.000000e+00 : f32
    %38 = vector.shape_cast %30 : vector<1x1024xi1> to vector<1x1024xi1>
    %39 = vector.broadcast %38 : vector<1x1024xi1> to vector<8x1024xi1>
    %40 = vector.broadcast %cst_21 : f32 to vector<8x1024xf32>
    %41 = arith.select %39, %37, %40 : vector<8x1024xi1>, vector<8x1024xf32>
    %42 = arith.addf %33, %41 : vector<8x1024xf32>
    %c1 = arith.constant 1 : index
    %c0_22 = arith.constant 0 : index
    %c0_23 = arith.constant 0 : index
    %43 = vector.load %arg3[%c1, %c0_22, %c0_23] : memref<3x8x48xbf16, #tpu.memory_space<vmem>>, vector<1x8x48xbf16>
    %44 = vector.shape_cast %43 : vector<1x8x48xbf16> to vector<8x48xbf16>
    %c0_24 = arith.constant 0 : index
    %c128_25 = arith.constant 128 : index
    %45 = vector.load %arg9[%c0_24, %c128_25] : memref<48x1280xbf16, #tpu.memory_space<vmem>>, vector<48x1024xbf16>
    %cst_26 = arith.constant dense<0.000000e+00> : vector<8x1024xf32>
    %46 = tpu.matmul %44, %45, %cst_26 {dimension_numbers = #tpu.dot_dimension_numbers<[1], [0], [0], [1], [0, 0, 1, 1], [], []>} : vector<8x48xbf16>, vector<48x1024xbf16>, vector<8x1024xf32> -> vector<8x1024xf32>
    %47 = arith.addf %42, %46 : vector<8x1024xf32>
    %c2 = arith.constant 2 : index
    %c0_27 = arith.constant 0 : index
    %c0_28 = arith.constant 0 : index
    %48 = vector.load %arg3[%c2, %c0_27, %c0_28] : memref<3x8x48xbf16, #tpu.memory_space<vmem>>, vector<1x8x48xbf16>
    %49 = vector.shape_cast %48 : vector<1x8x48xbf16> to vector<8x48xbf16>
    %c0_29 = arith.constant 0 : index
    %c129 = arith.constant 129 : index
    %50 = vector.load %arg9[%c0_29, %c129] : memref<48x1280xbf16, #tpu.memory_space<vmem>>, vector<48x1024xbf16>
    %cst_30 = arith.constant dense<0.000000e+00> : vector<8x1024xf32>
    %51 = tpu.matmul %49, %50, %cst_30 {dimension_numbers = #tpu.dot_dimension_numbers<[1], [0], [0], [1], [0, 0, 1, 1], [], []>} : vector<8x48xbf16>, vector<48x1024xbf16>, vector<8x1024xf32> -> vector<8x1024xf32>
    %cst_31 = arith.constant 0.000000e+00 : f32
    %52 = vector.shape_cast %32 : vector<1x1024xi1> to vector<1x1024xi1>
    %53 = vector.broadcast %52 : vector<1x1024xi1> to vector<8x1024xi1>
    %54 = vector.broadcast %cst_31 : f32 to vector<8x1024xf32>
    %55 = arith.select %53, %51, %54 : vector<8x1024xi1>, vector<8x1024xf32>
    %56 = arith.addf %47, %55 : vector<8x1024xf32>
    %cst_32 = arith.constant dense<0.000000e+00> : vector<8xf32>
    %57 = vector.multi_reduction <add>, %56, %cst_32 [1] : vector<8x1024xf32> to vector<8xf32>
    %58 = vector.shape_cast %57 : vector<8xf32> to vector<8x1xf32>
    %cst_33 = arith.constant 1.024000e+03 : f32
    %59 = vector.broadcast %cst_33 : f32 to vector<8x1xf32>
    %60 = arith.divf %58, %59 : vector<8x1xf32>
    %61 = vector.broadcast %60 : vector<8x1xf32> to vector<8x1024xf32>
    %62 = arith.subf %56, %61 : vector<8x1024xf32>
    %63 = arith.mulf %62, %62 : vector<8x1024xf32>
    %cst_34 = arith.constant dense<0.000000e+00> : vector<8xf32>
    %64 = vector.multi_reduction <add>, %63, %cst_34 [1] : vector<8x1024xf32> to vector<8xf32>
    %65 = vector.shape_cast %64 : vector<8xf32> to vector<8x1xf32>
    %cst_35 = arith.constant 1.024000e+03 : f32
    %66 = vector.broadcast %cst_35 : f32 to vector<8x1xf32>
    %67 = arith.divf %65, %66 : vector<8x1xf32>
    %68 = vector.broadcast %60 : vector<8x1xf32> to vector<8x1024xf32>
    %69 = arith.subf %56, %68 : vector<8x1024xf32>
    %cst_36 = arith.constant 9.99999974E-6 : f32
    %70 = vector.broadcast %cst_36 : f32 to vector<8x1xf32>
    %71 = arith.addf %67, %70 : vector<8x1xf32>
    %72 = math.rsqrt %71 : vector<8x1xf32>
    %73 = vector.broadcast %72 : vector<8x1xf32> to vector<8x1024xf32>
    %74 = arith.mulf %69, %73 : vector<8x1024xf32>
    %c0_37 = arith.constant 0 : index
    %c0_38 = arith.constant 0 : index
    %75 = vector.load %arg4[%c0_37, %c0_38] : memref<8x1xf32, #tpu.memory_space<vmem>>, vector<8x1xf32>
    %76 = vector.broadcast %75 : vector<8x1xf32> to vector<8x1024xf32>
    %77 = arith.mulf %74, %76 : vector<8x1024xf32>
    %c0_39 = arith.constant 0 : index
    %c0_40 = arith.constant 0 : index
    %78 = vector.load %arg5[%c0_39, %c0_40] : memref<8x1xf32, #tpu.memory_space<vmem>>, vector<8x1xf32>
    %79 = vector.broadcast %78 : vector<8x1xf32> to vector<8x1024xf32>
    %80 = arith.addf %77, %79 : vector<8x1024xf32>
    %cst_41 = arith.constant 0.000000e+00 : f32
    %81 = vector.broadcast %cst_41 : f32 to vector<8x1024xf32>
    %82 = arith.maximumf %80, %81 : vector<8x1024xf32>
    %c0_42 = arith.constant 0 : index
    %c0_43 = arith.constant 0 : index
    %83 = vector.load %arg6[%c0_42, %c0_43] : memref<1x8xbf16, #tpu.memory_space<vmem>>, vector<1x8xbf16>
    %84 = arith.truncf %82 : vector<8x1024xf32> to vector<8x1024xbf16>
    %cst_44 = arith.constant dense<0.000000e+00> : vector<1x1024xf32>
    %85 = tpu.matmul %83, %84, %cst_44 {dimension_numbers = #tpu.dot_dimension_numbers<[1], [0], [0], [1], [0, 0, 1, 1], [], []>} : vector<1x8xbf16>, vector<8x1024xbf16>, vector<1x1024xf32> -> vector<1x1024xf32>
    %c0_45 = arith.constant 0 : index
    %c0_46 = arith.constant 0 : index
    %86 = vector.load %arg7[%c0_45, %c0_46] : memref<1x1xf32, #tpu.memory_space<vmem>>, vector<1x1xf32>
    %87 = vector.broadcast %86 : vector<1x1xf32> to vector<1x1024xf32>
    %88 = arith.addf %85, %87 : vector<1x1024xf32>
    %cst_47 = arith.constant 0.000000e+00 : f32
    %89 = vector.broadcast %cst_47 : f32 to vector<1x1024xf32>
    %90 = arith.minimumf %88, %89 : vector<1x1024xf32>
    %91 = math.absf %88 : vector<1x1024xf32>
    %cst_48 = arith.constant 0.000000e+00 : f32
    %92 = vector.broadcast %cst_48 : f32 to vector<1x1024xf32>
    %93 = arith.subf %92, %91 : vector<1x1024xf32>
    %94 = math.exp %93 : vector<1x1024xf32>
    %cst_49 = arith.constant 1.000000e+00 : f32
    %95 = vector.broadcast %cst_49 : f32 to vector<1x1024xf32>
    %96 = arith.addf %95, %94 : vector<1x1024xf32>
    %97 = math.log %96 : vector<1x1024xf32>
    %98 = arith.subf %90, %97 : vector<1x1024xf32>
    %c0_50 = arith.constant 0 : index
    %c0_51 = arith.constant 0 : index
    %c0_52 = arith.constant 0 : index
    %99 = vector.load %arg8[%c0_50, %c0_51, %c0_52] : memref<1x1x1024xf32, #tpu.memory_space<vmem>>, vector<1x1x1024xf32>
    %100 = vector.shape_cast %99 : vector<1x1x1024xf32> to vector<1x1024xf32>
    %101 = vector.shape_cast %98 : vector<1x1024xf32> to vector<1x1x1024xf32>
    tpu.vector_store %arg8[%c0_50, %c0_51, %c0_52], %101 {strides = array<i32>} : memref<1x1x1024xf32, #tpu.memory_space<vmem>>, vector<1x1x1024xf32>,
    return
  }
  func.func @transform_0(%arg0: i32) -> (i32, i32, i32) {
    %c0_i32 = arith.constant 0 : i32
    %c0_i32_0 = arith.constant 0 : i32
    %c0_i32_1 = arith.constant 0 : i32
    return %arg0, %c0_i32, %c0_i32_0 : i32, i32, i32
  }
  func.func @transform_1(%arg0: i32) -> (i32, i32, i32) {
    %c0_i32 = arith.constant 0 : i32
    %c0_i32_0 = arith.constant 0 : i32
    %c0_i32_1 = arith.constant 0 : i32
    return %arg0, %c0_i32, %c0_i32_0 : i32, i32, i32
  }
  func.func @transform_2(%arg0: i32) -> (i32, i32, i32) {
    %c0_i32 = arith.constant 0 : i32
    %c0_i32_0 = arith.constant 0 : i32
    %c0_i32_1 = arith.constant 0 : i32
    %c0_i32_2 = arith.constant 0 : i32
    return %c0_i32, %c0_i32_0, %c0_i32_1 : i32, i32, i32
  }
  func.func @transform_3(%arg0: i32) -> (i32, i32) {
    %c0_i32 = arith.constant 0 : i32
    %c0_i32_0 = arith.constant 0 : i32
    %c0_i32_1 = arith.constant 0 : i32
    return %c0_i32, %c0_i32_0 : i32, i32
  }
  func.func @transform_4(%arg0: i32) -> (i32, i32) {
    %c0_i32 = arith.constant 0 : i32
    %c0_i32_0 = arith.constant 0 : i32
    %c0_i32_1 = arith.constant 0 : i32
    return %c0_i32, %c0_i32_0 : i32, i32
  }
  func.func @transform_5(%arg0: i32) -> (i32, i32) {
    %c0_i32 = arith.constant 0 : i32
    %c0_i32_0 = arith.constant 0 : i32
    %c0_i32_1 = arith.constant 0 : i32
    return %c0_i32, %c0_i32_0 : i32, i32
  }
  func.func @transform_6(%arg0: i32) -> (i32, i32) {
    %c0_i32 = arith.constant 0 : i32
    %c0_i32_0 = arith.constant 0 : i32
    %c0_i32_1 = arith.constant 0 : i32
    return %c0_i32, %c0_i32_0 : i32, i32
  }
  func.func @transform_7(%arg0: i32) -> (i32, i32, i32) {
    %c0_i32 = arith.constant 0 : i32
    %c0_i32_0 = arith.constant 0 : i32
    %c0_i32_1 = arith.constant 0 : i32
    return %arg0, %c0_i32, %c0_i32_0 : i32, i32, i32
  }
}

</mosaic_0001>

<bundles_post_ra>
// kernel: attention_forward.10
= control target key start
LH: loop header
LB: loop body
LE: loop exit
PB: predicated region body
PF: predicated region fallthrough
CT: control target
= control target key end

     0   :  { %s838_s15 = smov 0   ;;  %s904_s0 = inlined_call_operand.vmem [shape: bf16[2,8,256], index: 0, kind: input, shape index: {}]   ;;  %s905_s1 = inlined_call_operand.vmem [shape: bf16[3,16,24], index: 1, kind: input, shape index: {}]   ;;  %s906_s2 = inlined_call_operand.vmem [shape: f32[16,1], index: 2, kind: input, shape index: {}]   ;;  %s907_s3 = inlined_call_operand.vmem [shape: f32[16,1], index: 3, kind: input, shape index: {}]   ;;  %s908_s4 = inlined_call_operand.vmem [shape: bf16[2,16,256], index: 4, kind: output, shape index: {}]  }
   0x1 LB: > { %s721_s16 = sadd.s32 4294967295, %s806_s15   ;;  %p725_p0 = scmp.ge.s32.totalorder %s806_s15, 1  ;;  %s806_s15 = sphi %s838_s15, %s14_s15  }
   0x2   : > { %p162_p1 = scmp.lt.s32.totalorder %s806_s15, 3 }
   0x4   : > { %p163_p2 = pnand %p725_p0, %p162_p1 }
   0x5   : > { %p188_p3 = scmp.lt.s32.totalorder (!%p163_p2), %s721_s16, 1  ;;  %v808_v0 = vmov (!%p163_p2), 0   ;;  %s809_s21 = smov (!%p163_p2), 16   ;;  %vm214_vm0 = vcmask (!%p163_p2), 1043584   ;;  %vm215_vm1 = vcmask (!%p163_p2), 1047556   ;;  %vm210_vm2 = vcmask (!%p163_p2), 130048  }
   0x6   : > { %166 = sbr.rel (%p163_p2) target bundleno = 831 (0x33f), region = 36  ;;  %202 = vst [vmem:[#allocation2 + $0x10] sm:$0xff] (!%p163_p2), %v808_v0  ;;  %203 = vst [vmem:[#allocation2 + $0x18] sm:$0xff] (!%p163_p2), %v808_v0  ;;  %360 = vmatprep.mubr.bf16.mxu0 (!%p163_p2), %v808_v0  ;;  %450 = vmatprep.mubr.bf16.mxu1 (!%p163_p2), %v808_v0  ;;  %s810_s22 = smov (!%p163_p2), 112   ;;  %vm218_vm3 = vcmask (!%p163_p2), 125952   ;;  %vm228_vm5 = vcmask (!%p163_p2), 1044352   ;;  %v233_v53 = vlaneseq (!%p163_p2) }
   0x7   : > { %200 = vst [vmem:[#allocation2] sm:$0xff] (!%p163_p2), %v808_v0  ;;  %201 = vst [vmem:[#allocation2 + $0x8] sm:$0xff] (!%p163_p2), %v808_v0  ;;  %780 = vset.pattern.permute.xlu1 (!%p163_p2), %v808_v0  ;;  %781 = vset.pattern.permute.xlu0 (!%p163_p2), %v808_v0  ;;  %vm224_vm6 = vcmask (!%p163_p2), 916480   ;;  %vm231_vm7 = vcmask (!%p163_p2), 912384   ;;  %s811_s23 = smov (!%p163_p2), 1   ;;  %vm321_vm9 = vcmask (!%p163_p2), 1043456  }
   0x8   : > { %204 = vst [vmem:[#allocation2 + $0x20] sm:$0xff] (!%p163_p2), %v808_v0  ;;  %205 = vst [vmem:[#allocation2 + $0x28] sm:$0xff] (!%p163_p2), %v808_v0  ;;  %s812_s24 = smov (!%p163_p2), 127   ;;  %vm317_vm10 = vcmask (!%p163_p2), 195584   ;;  %v794_v21 = vld [vmem:[%s905_s1 + $0x8] sm:$0xff] (!%p163_p2)   ;;  %vm310_vm11 = vcmask (!%p163_p2), 7168  }
   0x9   : > { %vm216_vm4 = vmor (!%p163_p2), %vm215_vm1, %vm214_vm0  ;;  %vm512_vm12 = vcmask (!%p163_p2), 1039360   ;;  %v793_v39 = vld [vmem:[%s905_s1] sm:$0xff] (!%p163_p2)   ;;  %v795_v48 = vld [vmem:[%s905_s1 + $0x10] sm:$0xff] (!%p163_p2)   ;;  %v234_v54 = vand.u32 (!%p163_p2), 127, %v233_v53 }
   0xa   : > { %vm229_vm8 = vmor (!%p163_p2), %vm215_vm1, %vm228_vm5 }
   0xb   : > { %v235_v55 = vadd.s32 (!%p163_p2), 128, %v234_v54  ;;  %v240_v56 = vand.u32 (!%p163_p2), 15, %v234_v54 }
   0xd   : > { %s910_s16 = smov (!%p188_p3, %s721_s16), 1  ;;  %v247_v57 = vand.u32 15, %v235_v55  ;;  %vm260_vm13 = vcmp.ge.s32.totalorder %v240_v56, 1  ;;  %vm262_vm15 = vcmp.le.s32.totalorder %v240_v56, 14 }
   0xe   : > { %s763_s17 = sshll.u32 %s910_s16, 3  ;;  %v782_v9 = vld [vmem:[#allocation2] ss:$16 sps:$4 sm:$0xff]   ;;  %s764_s13 = sshll.u32 %s910_s16, 4 }
   0xf   : > { %s192_s20 = scalar_lea.vmem %s904_s0, %s763_s17  ;;  %v792_v24 = vld [vmem:[#allocation2 + $0x2c] ss:$0 sps:$4 sm:$0xff]   ;;  %vm261_vm14 = vcmp.ge.s32.totalorder %v247_v57, 1  ;;  %vm263_vm0 = vcmp.le.s32.totalorder %v247_v57, 14  ;;  %s197_s18 = scalar_lea.vmem %s908_s4, %s764_s13 }
  0x10   : > { %v199_v1 = vld [vmem:[%s192_s20] sm:$0xff] }
  0x11   : > { %207 = vrot.lane.b32.xlu0 %v199_v1, %s809_s21  ;;  %220 = vst [vmem:[#allocation2 + $0x14] sm:$0xff] %v199_v1 }
  0x15   : > { %221 = vrot.lane.b32.xlu0 %v199_v1, %s810_s22 }
  0x19   : > { %298 = vrot.lane.b32.xlu0 %v782_v9, %s811_s23 }
  0x83   : > { %v208_v2 = vpop.permute.xlu0 %207 }
  0x84   : > { %v209_v3 = vrot.slane %v208_v2, 4 }
  0x86   : > { %v211_v4 = vsel %vm210_vm2, %v209_v3, %v208_v2  ;;  %219 = vst.msk [vmem:[#allocation2 + $0xc] sm:$0xf] %vm218_vm3, %v209_v3 }
  0x87   : > { %217 = vst.msk [vmem:[#allocation2 + $0x4] sm:$0xff] %vm216_vm4, %v211_v4  ;;  %v222_v5 = vpop.permute.xlu0 %221 }
  0x88   : > { %v223_v6 = vrot.slane %v222_v5, 4 }
  0x8a   : > { %v225_v7 = vsel %vm224_vm6, %v223_v6, %v222_v5  ;;  %232 = vst.msk [vmem:[#allocation2 + $0x28] sm:$0xf] %vm231_vm7, %v223_v6 }
  0x8b   : > { %230 = vst.msk [vmem:[#allocation2 + $0x20] sm:$0xff] %vm229_vm8, %v225_v7  ;;  %v299_v25 = vpop.permute.xlu0 %298 }
  0x8d   : > { %v788_v19 = vld [vmem:[#allocation2 + $0xc] ss:$16 sps:$4 sm:$0xff]  }
  0x8e   : > { %v386_v8 = vld [vmem:[#allocation2 + $0x4] sm:$0xff] }
  0x8f   : > { %v743_v10 = vcombine.high %v386_v8, %v199_v1  ;;  %v742_v11 = vcombine.low %v386_v8, %v199_v1  ;;  %v789_v20 = vld [vmem:[#allocation2 + $0x4] ss:$16 sps:$4 sm:$0xff]   ;;  %v790_v22 = vld [vmem:[#allocation2 + $0x8] ss:$16 sps:$4 sm:$0xff]  }
  0x91   : > { %418 = vmatprep.subr.bf16.mxu1 %v743_v10  ;;  %v784_v12 = vld [vmem:[#allocation2 + $0x28] ss:$0 sps:$4 sm:$0xff]  }
  0x92   : > { %419 = vmatpush1.bf16.msra.mxu1 %v742_v11  ;;  %v388_v13 = vld [vmem:[#allocation2 + $0x24] sm:$0xff]  ;;  %308 = vrot.lane.b32.xlu1 %v784_v12, %s811_s23 }
  0x93   : > { %v270_v14 = vld [vmem:[#allocation2 + $0x20] sm:$0xff]  ;;  %v745_v15 = vcombine.high %v388_v13, %v388_v13  ;;  %v744_v17 = vcombine.low %v388_v13, %v388_v13 }
  0x94   : > { %v735_v16 = vcombine.high %v270_v14, %v270_v14  ;;  %v734_v23 = vcombine.low %v270_v14, %v270_v14 }
  0x95   : > { %746 = vmatprep.subr.msk.bf16.mxu1 %vm321_vm9, %v745_v15  ;;  %v413_v18 = vsel %vm321_vm9, %v744_v17, 0 }
  0x96   : > { %306 = vrot.lane.b32.xlu0 %v735_v16, %s811_s23  ;;  %421 = vmatpush1.bf16.msra.mxu1 %v413_v18 }
  0x97   : > { %504 = vrot.lane.b32.xlu1 %v788_v19, %s812_s24 }
  0x99   : > { %747 = vmatmul.mubr.msk.bf16.vlgmr.msra.gmra.mrb[0].mxu1 %vm317_vm10, %v794_v21  ;;  %v632_v21 = vld [vmem:[%s907_s3] sm:$0xff] }
  0x9a   : > { %502 = vrot.lane.b32.xlu0 %v743_v10, %s812_s24 }
  0x9b   : > { %300 = vrot.lane.b32.xlu1 %v789_v20, %s811_s23  ;;  %v616_v20 = vld [vmem:[%s906_s2] sm:$0xff] }
  0x9e   : > { %500 = vrot.lane.b32.xlu0 %v742_v11, %s812_s24 }
  0x9f   : > { %302 = vrot.lane.b32.xlu1 %v790_v22, %s811_s23  ;;  %v633_v22 = vld [vmem:[%s907_s3 + $0x8] sm:$0xff] }
  0xa2   : > { %508 = vrot.lane.b32.xlu0 %v745_v15, %s812_s24 }
  0xa3   : > { %304 = vrot.lane.b32.xlu1 %v734_v23, %s811_s23 }
  0xa7   : > { %506 = vrot.lane.b32.xlu1 %v744_v17, %s812_s24 }
  0xab   : > { %510 = vrot.lane.b32.xlu1 %v792_v24, %s812_s24 }
 0x104   : > { %v309_v26 = vpop.permute.xlu1 %308 }
 0x108   : > { %v307_v27 = vpop.permute.xlu0 %306 }
 0x109   : > { %v505_v28 = vpop.permute.xlu1 %504  ;;  %v314_v34 = vsel %vm310_vm11, %v307_v27, %v309_v26 }
 0x10c   : > { %v503_v30 = vpop.permute.xlu0 %502 }
 0x10d   : > { %v301_v29 = vpop.permute.xlu1 %300  ;;  %v514_v40 = vsel %vm512_vm12, %v503_v30, %v505_v28 }
 0x10e   : > { %v311_v33 = vsel %vm310_vm11, %v299_v25, %v301_v29 }
 0x110   : > { %v501_v35 = vpop.permute.xlu0 %500 }
 0x111   : > { %v303_v31 = vpop.permute.xlu1 %302  ;;  %v513_v42 = vsel %vm512_vm12, %v501_v35, %v503_v30 }
 0x112   : > { %v312_v32 = vsel %vm310_vm11, %v301_v29, %v303_v31 }
 0x113   : > { %328 = vmatprep.subr.bf16.mxu0 %v312_v32 }
 0x114   : > { %329 = vmatpush1.bf16.msra.mxu0 %v311_v33  ;;  %v509_v43 = vpop.permute.xlu0 %508 }
 0x115   : > { %v305_v36 = vpop.permute.xlu1 %304  ;;  %737 = vmatprep.subr.msk.bf16.mxu0 %vm321_vm9, %v314_v34 }
 0x116   : > { %v313_v37 = vsel %vm310_vm11, %v305_v36, %v307_v27 }
 0x117   : > { %v323_v38 = vsel %vm321_vm9, %v313_v37, 0  ;;  %v617_v37 = vld [vmem:[%s906_s2 + $0x8] sm:$0xff] }
 0x118   : > { %331 = vmatpush1.bf16.msra.mxu0 %v323_v38 }
 0x119   : > { %v507_v41 = vpop.permute.xlu1 %506  ;;  %528 = vmatprep.subr.bf16.mxu0 %v514_v40 }
 0x11a   : > { %v515_v44 = vsel %vm512_vm12, %v507_v41, %v509_v43 }
 0x11b   : > { %738 = vmatmul.mubr.msk.bf16.vlgmr.msra.gmra.mrb[0].mxu0 %vm317_vm10, %v793_v39  ;;  %v523_v47 = vsel %vm321_vm9, %v515_v44, 0 }
 0x11c   : > { %529 = vmatpush1.bf16.msra.mxu0 %v513_v42  ;;  %560 = vmatprep.mubr.bf16.mxu0 %v808_v0 }
 0x11d   : > { %v511_v45 = vpop.permute.xlu1 %510 }
 0x11e   : > { %v516_v46 = vsel %vm512_vm12, %v509_v43, %v511_v45 }
 0x11f   : > { %757 = vmatprep.subr.msk.bf16.mxu0 %vm321_vm9, %v516_v46 }
 0x120   : > { %531 = vmatpush1.bf16.msra.mxu0 %v523_v47 }
 0x123   : > { %758 = vmatmul.mubr.msk.bf16.vlgmr.msra.gmra.mrb[4].mxu0 %vm317_vm10, %v795_v48 }
 0x16c   : > { %v452_v49 = vpop.f32.mrb[0].mxu1 }
 0x16d   : > { %v454_v50 = vpop.f32.mrb[1].mxu1 }
 0x16e   : > { %v456_v51 = vpop.f32.mrb[2].mxu1 }
 0x16f   : > { %v458_v52 = vpop.f32.mrb[3].mxu1 }
 0x1ee   : > { %v362_v58 = vpop.f32.mrb[0].mxu0 }
 0x1ef   : > { %v375_v59 = vsel %vm260_vm13, %v362_v58, 0.0  ;;  %v364_v60 = vpop.f32.mrb[1].mxu0 }
 0x1f0   : > { %v376_v61 = vsel %vm261_vm14, %v364_v60, 0.0  ;;  %v461_v62 = vadd.f32 %v452_v49, %v375_v59  ;;  %v366_v63 = vpop.f32.mrb[2].mxu0 }
 0x1f1   : > { %v377_v0 = vsel %vm260_vm13, %v366_v63, 0.0  ;;  %v462_v1 = vadd.f32 %v454_v50, %v376_v61  ;;  %v368_v2 = vpop.f32.mrb[3].mxu0 }
 0x1f2   : > { %v378_v3 = vsel %vm261_vm14, %v368_v2, 0.0  ;;  %v463_v4 = vadd.f32 %v456_v51, %v377_v0 }
 0x1f3   : > { %v464_v5 = vadd.f32 %v458_v52, %v378_v3 }
 0x1f6   : > { %v562_v6 = vpop.f32.mrb[4].mxu0 }
 0x1f7   : > { %v575_v7 = vsel %vm262_vm15, %v562_v6, 0.0  ;;  %v564_v8 = vpop.f32.mrb[5].mxu0 }
 0x1f8   : > { %v579_v9 = vadd.f32 %v575_v7, %v461_v62  ;;  %v576_v10 = vsel %vm263_vm0, %v564_v8, 0.0  ;;  %v566_v11 = vpop.f32.mrb[6].mxu0 }
 0x1f9   : > { %v580_v12 = vadd.f32 %v576_v10, %v462_v1  ;;  %v577_v13 = vsel %vm262_vm15, %v566_v11, 0.0  ;;  %v568_v14 = vpop.f32.mrb[7].mxu0 }
 0x1fa   : > { %v581_v15 = vadd.f32 %v577_v13, %v463_v4  ;;  %v578_v16 = vsel %vm263_vm0, %v568_v14, 0.0 }
 0x1fb   : > { %v582_v17 = vadd.f32 %v578_v16, %v464_v5  ;;  %v583_v18 = vadd.f32 %v580_v12, %v579_v9 }
 0x1fd   : > { %584 = vadd.xlane.f32.xlu0 %v583_v18  ;;  %v586_v19 = vadd.f32 %v582_v17, %v581_v15 }
 0x1ff   : > { %587 = vadd.xlane.f32.xlu1 %v586_v19 }
 0x210   : > { %620 = vperm.xlu1 %780, %v616_v20  }
 0x214   : > { %636 = vperm.xlu1 %780, %v632_v21  }
 0x218   : > { %641 = vperm.xlu1 %780, %v633_v22  }
 0x28a   : > { %v585_v23 = vpop.xlane.xlu0 %584 }
 0x28b   : > { %v590_v24 = vmul.f32 0.00390625, %v585_v23 }
 0x28c   : > { %v588_v25 = vpop.xlane.xlu1 %587 }
 0x28d   : > { %v592_v26 = vsub.f32 %v579_v9, %v590_v24  ;;  %v593_v27 = vsub.f32 %v580_v12, %v590_v24  ;;  %v591_v28 = vmul.f32 0.00390625, %v588_v25 }
 0x28f   : > { %v594_v29 = vsub.f32 %v581_v15, %v591_v28  ;;  %v595_v30 = vsub.f32 %v582_v17, %v591_v28  ;;  %v596_v31 = vmul.f32 %v592_v26, %v592_v26  ;;  %v597_v32 = vmul.f32 %v593_v27, %v593_v27 }
 0x290   : > { %v621_v44 = vpop.permute.xlu1 %620 }
 0x291   : > { %v600_v33 = vadd.f32 %v597_v32, %v596_v31  ;;  %v598_v34 = vmul.f32 %v594_v29, %v594_v29  ;;  %v599_v35 = vmul.f32 %v595_v30, %v595_v30 }
 0x293   : > { %601 = vadd.xlane.f32.xlu0 %v600_v33  ;;  %v603_v36 = vadd.f32 %v599_v35, %v598_v34 }
 0x294   : > { %v637_v48 = vpop.permute.xlu1 %636 }
 0x297   : > { %604 = vadd.xlane.f32.xlu0 %v603_v36 }
 0x298   : > { %v642_v61 = vpop.permute.xlu1 %641 }
 0x2ad   : > { %625 = vperm.xlu0 %781, %v617_v37  }
 0x320   : > { %v602_v38 = vpop.xlane.xlu0 %601 }
 0x321   : > { %v606_v39 = vmul.f32 0.00390625, %v602_v38 }
 0x323   : > { %v608_v40 = vadd.f32 1e-05, %v606_v39 }
 0x324   : > { %v605_v41 = vpop.xlane.xlu0 %604 }
 0x325   : > { %796 = vrsqrt.f32 %v608_v40  ;;  %v607_v42 = vmul.f32 0.00390625, %v605_v41 }
 0x327   : > { %v609_v43 = vadd.f32 1e-05, %v607_v42 }
 0x329   : > { %798 = vrsqrt.f32 %v609_v43 }
 0x32c   : > { %v626_v52 = vpop.permute.xlu0 %625 }
 0x32f   : > { %v797_v45 = vpop.eup %796 }
 0x330   : > { %v612_v46 = vmul.f32 %v797_v45, %v592_v26  ;;  %v613_v47 = vmul.f32 %v797_v45, %v593_v27 }
 0x332   : > { %v628_v49 = vmul.f32 %v621_v44, %v612_v46  ;;  %v629_v50 = vmul.f32 %v621_v44, %v613_v47 }
 0x333   : > { %v799_v51 = vpop.eup %798 }
 0x334   : > { %v644_v53 = vadd.f32 %v637_v48, %v628_v49  ;;  %v645_v54 = vadd.f32 %v637_v48, %v629_v50  ;;  %v614_v55 = vmul.f32 %v799_v51, %v594_v29  ;;  %v615_v56 = vmul.f32 %v799_v51, %v595_v30 }
 0x336   : > { %v648_v57 = vmax.f32 %v644_v53, 0.0  ;;  %v649_v58 = vmax.f32 %v645_v54, 0.0  ;;  %v630_v59 = vmul.f32 %v626_v52, %v614_v55  ;;  %v631_v60 = vmul.f32 %v626_v52, %v615_v56 }
 0x338   : > { %v765_v62 = vpack.c.bf16 %v649_v58, %v648_v57  ;;  %v646_v63 = vadd.f32 %v642_v61, %v630_v59  ;;  %v647_v0 = vadd.f32 %v642_v61, %v631_v60 }
 0x33a   : > { %664 = vst [vmem:[%s197_s18] sm:$0xff] %v765_v62  ;;  %v650_v1 = vmax.f32 %v646_v63, 0.0  ;;  %v651_v2 = vmax.f32 %v647_v0, 0.0 }
 0x33c   : > { %v766_v3 = vpack.c.bf16 %v651_v2, %v650_v1 }
 0x33e   : > { %665 = vst [vmem:[%s197_s18 + $0x8] sm:$0xff] %v766_v3 }
 0x33f PF: > { %s14_s15 = sadd.s32 1, %s806_s15  }
 0x340   : > { %p11_p4 = scmp.ge.s32.totalorder %s14_s15, 4  }
 0x342   :  { %13 = sbr.rel (!%p11_p4) target bundleno = 1 (0x1), region = 68 }

// kernel: attention_forward.9
= control target key start
LH: loop header
LB: loop body
LE: loop exit
PB: predicated region body
PF: predicated region fallthrough
CT: control target
= control target key end

     0   :  { %s1835_s15 = smov 0   ;;  %s2157_s0 = inlined_call_operand.vmem [shape: f32[2,4,1024], index: 0, kind: input, shape index: {}]   ;;  %s2158_s1 = inlined_call_operand.vmem [shape: bf16[3,8,24], index: 1, kind: input, shape index: {}]   ;;  %s2159_s2 = inlined_call_operand.vmem [shape: f32[8,1], index: 2, kind: input, shape index: {}]   ;;  %s2160_s3 = inlined_call_operand.vmem [shape: f32[8,1], index: 3, kind: input, shape index: {}]   ;;  %s2161_s4 = inlined_call_operand.vmem [shape: bf16[2,8,1024], index: 4, kind: output, shape index: {}]  }
   0x1 LB: > { %s1625_s16 = sadd.s32 4294967295, %s1803_s15   ;;  %p1629_p0 = scmp.ge.s32.totalorder %s1803_s15, 1  ;;  %s1803_s15 = sphi %s1835_s15, %s14_s15  }
   0x2   : > { %p162_p1 = scmp.lt.s32.totalorder %s1803_s15, 3 }
   0x4   : > { %p163_p2 = pnand %p1629_p0, %p162_p1 }
   0x5   : > { %p1843_p3 = scmp.lt.s32.totalorder (!%p163_p2), %s1625_s16, 1  ;;  %v1805_v0 = vmov (!%p163_p2), 0   ;;  %s1806_s22 = smov (!%p163_p2), 32   ;;  %vm284_vm0 = vcmask (!%p163_p2), 1041664   ;;  %vm285_vm1 = vcmask (!%p163_p2), 1045508   ;;  %vm270_vm2 = vcmask (!%p163_p2), 261120  }
   0x6   : > { %166 = sbr.rel (%p163_p2) target bundleno = 896 (0x380), region = 36  ;;  %210 = vst [vmem:[#allocation2 + $0x38] sm:$0xff] (!%p163_p2), %v1805_v0  ;;  %211 = vst [vmem:[#allocation2 + $0x40] sm:$0xff] (!%p163_p2), %v1805_v0  ;;  %653 = vmatprep.mubr.bf16.mxu0 (!%p163_p2), %v1805_v0  ;;  %694 = vmatprep.mubr.bf16.mxu1 (!%p163_p2), %v1805_v0  ;;  %s1807_s23 = smov (!%p163_p2), 96   ;;  %vm326_vm4 = vcmask (!%p163_p2), 1042176   ;;  %vm313_vm5 = vcmask (!%p163_p2), 785408  }
   0x7   : > { %203 = vst [vmem:[#allocation2] sm:$0xff] (!%p163_p2), %v1805_v0  ;;  %204 = vst [vmem:[#allocation2 + $0x8] sm:$0xff] (!%p163_p2), %v1805_v0  ;;  %1745 = vset.pattern.permute.xlu0 (!%p163_p2), %v1805_v0  ;;  %1746 = vset.pattern.permute.xlu1 (!%p163_p2), %v1805_v0  ;;  %vm272_vm6 = vcmask (!%p163_p2), 1043456   ;;  %vm291_vm8 = vcmask (!%p163_p2), 254976   ;;  %vm332_vm9 = vcmask (!%p163_p2), 779264   ;;  %s1808_s24 = smov (!%p163_p2), 1  }
   0x8   : > { %205 = vst [vmem:[#allocation2 + $0x10] sm:$0xff] (!%p163_p2), %v1805_v0  ;;  %206 = vst [vmem:[#allocation2 + $0x18] sm:$0xff] (!%p163_p2), %v1805_v0  ;;  %s1809_s25 = smov (!%p163_p2), 127   ;;  %vm567_vm10 = vcmask (!%p163_p2), 7168   ;;  %vm592_vm11 = vcmask (!%p163_p2), 195584   ;;  %vm1203_vm12 = vcmask (!%p163_p2), 1039360  }
   0x9   : > { %207 = vst [vmem:[#allocation2 + $0x20] sm:$0xff] (!%p163_p2), %v1805_v0  ;;  %208 = vst [vmem:[#allocation2 + $0x28] sm:$0xff] (!%p163_p2), %v1805_v0 }
   0xa   : > { %209 = vst [vmem:[#allocation2 + $0x30] sm:$0xff] (!%p163_p2), %v1805_v0  ;;  %212 = vst [vmem:[#allocation2 + $0x48] sm:$0xff] (!%p163_p2), %v1805_v0 }
   0xb   : > { %213 = vst [vmem:[#allocation2 + $0x50] sm:$0xff] (!%p163_p2), %v1805_v0  ;;  %214 = vst [vmem:[#allocation2 + $0x58] sm:$0xff] (!%p163_p2), %v1805_v0 }
   0xc   : > { %215 = vst [vmem:[#allocation2 + $0x60] sm:$0xff] (!%p163_p2), %v1805_v0  ;;  %216 = vst [vmem:[#allocation2 + $0x68] sm:$0xff] (!%p163_p2), %v1805_v0 }
   0xd   : > { %217 = vst [vmem:[#allocation2 + $0x70] sm:$0xff] %v1805_v0  ;;  %s2168_s16 = smov (!%p1843_p3, %s1625_s16), 1  ;;  %vm286_vm3 = vmor %vm285_vm1, %vm284_vm0 }
   0xe   : > { %s1722_s18 = sshll.u32 %s2168_s16, 5  ;;  %vm327_vm7 = vmor %vm285_vm1, %vm326_vm4 }
   0xf   : > { %s192_s21 = scalar_lea.vmem %s2157_s0, %s1722_s18  ;;  %s197_s12 = scalar_lea.vmem %s2161_s4, %s1722_s18 }
  0x10   : > { %v201_v1 = vld [vmem:[%s192_s21 + $0x10] sm:$0xff]  ;;  %v199_v2 = vld [vmem:[%s192_s21] sm:$0xff]  ;;  %v200_v3 = vld [vmem:[%s192_s21 + $0x8] sm:$0xff] }
  0x11   : > { %v224_v4 = vcombine.high %v201_v1, %v201_v1  ;;  %v222_v5 = vcombine.high %v199_v2, %v199_v2  ;;  %v223_v6 = vcombine.high %v200_v3, %v200_v3  ;;  %v202_v7 = vld [vmem:[%s192_s21 + $0x18] sm:$0xff]  ;;  %v1753_v40 = vld [vmem:[#allocation2] ss:$40 sps:$4 sm:$0xff]  }
  0x12   : > { %v225_v8 = vcombine.high %v202_v7, %v202_v7 }
  0x13   : > { %v1726_v9 = vpack.c.bf16 %v224_v4, %v201_v1  ;;  %v1724_v10 = vpack.c.bf16 %v222_v5, %v199_v2  ;;  %v1725_v11 = vpack.c.bf16 %v223_v6, %v200_v3 }
  0x14   : > { %v1727_v12 = vpack.c.bf16 %v225_v8, %v202_v7 }
  0x15   : > { %262 = vrot.lane.b32.xlu1 %v1726_v9, %s1806_s22  ;;  %299 = vst [vmem:[#allocation2 + $0x3c] sm:$0x33] %v1726_v9  ;;  %258 = vrot.lane.b32.xlu0 %v1724_v10, %s1806_s22  ;;  %297 = vst [vmem:[#allocation2 + $0x2c] sm:$0x33] %v1724_v10 }
  0x16   : > { %298 = vst [vmem:[#allocation2 + $0x34] sm:$0x33] %v1725_v11  ;;  %300 = vst [vmem:[#allocation2 + $0x44] sm:$0x33] %v1727_v12 }
  0x19   : > { %301 = vrot.lane.b32.xlu1 %v1724_v10, %s1807_s23  ;;  %260 = vrot.lane.b32.xlu0 %v1725_v11, %s1806_s22 }
  0x1d   : > { %264 = vrot.lane.b32.xlu1 %v1727_v12, %s1806_s22  ;;  %303 = vrot.lane.b32.xlu0 %v1725_v11, %s1807_s23 }
  0x21   : > { %307 = vrot.lane.b32.xlu1 %v1727_v12, %s1807_s23  ;;  %305 = vrot.lane.b32.xlu0 %v1726_v9, %s1807_s23 }
  0x87   : > { %v263_v13 = vpop.permute.xlu1 %262  ;;  %v259_v14 = vpop.permute.xlu0 %258 }
  0x88   : > { %v266_v15 = vrot.slane %v259_v14, 4  ;;  %v268_v19 = vrot.slane %v263_v13, 4 }
  0x8a   : > { %v271_v16 = vsel %vm270_vm2, %v266_v15, %v259_v14 }
  0x8b   : > { %287 = vst.msk [vmem:[#allocation2 + $0x4] sm:$0x33] %vm286_vm3, %v271_v16  ;;  %v302_v17 = vpop.permute.xlu1 %301  ;;  %v261_v18 = vpop.permute.xlu0 %260 }
  0x8c   : > { %v309_v20 = vrot.slane %v302_v17, 4  ;;  %v267_v21 = vrot.slane %v261_v18, 4 }
  0x8e   : > { %v314_v22 = vsel %vm313_vm5, %v309_v20, %v302_v17  ;;  %v273_v23 = vsel %vm272_vm6, %v266_v15, %v267_v21  ;;  %v275_v24 = vsel %vm272_vm6, %v267_v21, %v268_v19 }
  0x8f   : > { %328 = vst.msk [vmem:[#allocation2 + $0x50] sm:$0x33] %vm327_vm7, %v314_v22  ;;  %v274_v25 = vsel %vm270_vm2, %v273_v23, %v261_v18  ;;  %v276_v26 = vsel %vm270_vm2, %v275_v24, %v263_v13  ;;  %v265_v27 = vpop.permute.xlu1 %264  ;;  %v304_v28 = vpop.permute.xlu0 %303  ;;  %v1794_v23 = vld [vmem:[#allocation2 + $0x74] ss:$0 sps:$4 sm:$0xff]  }
  0x90   : > { %288 = vst [vmem:[#allocation2 + $0xc] sm:$0x33] %v274_v25  ;;  %289 = vst [vmem:[#allocation2 + $0x14] sm:$0x33] %v276_v26  ;;  %v269_v29 = vrot.slane %v265_v27, 4  ;;  %v310_v30 = vrot.slane %v304_v28, 4 }
  0x92   : > { %v277_v31 = vsel %vm272_vm6, %v268_v19, %v269_v29  ;;  %292 = vst.msk [vmem:[#allocation2 + $0x24] sm:$0x3] %vm291_vm8, %v269_v29  ;;  %v315_v32 = vsel %vm272_vm6, %v309_v20, %v310_v30  ;;  %v1751_v33 = vld [vmem:[#allocation2 + $0x4] ss:$40 sps:$4 sm:$0xff]   ;;  %v1893_v48 = vld [vmem:[#allocation2 + $0x8] ss:$40 sps:$4 sm:$0xff]  }
  0x93   : > { %v278_v34 = vsel %vm270_vm2, %v277_v31, %v265_v27  ;;  %v316_v35 = vsel %vm313_vm5, %v315_v32, %v304_v28  ;;  %v308_v36 = vpop.permute.xlu1 %307  ;;  %v306_v37 = vpop.permute.xlu0 %305  ;;  %533 = vrot.lane.b32.xlu0 %v1751_v33, %s1808_s24  ;;  %v1761_v51 = vld [vmem:[#allocation2 + $0x8] ss:$40 sps:$4 sm:$0xff]   ;;  %v1910_v2 = vld [vmem:[#allocation2 + $0x4] ss:$40 sps:$4 sm:$0xff]  }
  0x94   : > { %290 = vst [vmem:[#allocation2 + $0x1c] sm:$0x33] %v278_v34  ;;  %329 = vst [vmem:[#allocation2 + $0x58] sm:$0x33] %v316_v35  ;;  %v312_v38 = vrot.slane %v308_v36, 4  ;;  %v311_v39 = vrot.slane %v306_v37, 4 }
  0x96   : > { %333 = vst.msk [vmem:[#allocation2 + $0x70] sm:$0x3] %vm332_vm9, %v312_v38  ;;  %v317_v41 = vsel %vm272_vm6, %v310_v30, %v311_v39  ;;  %v319_v42 = vsel %vm272_vm6, %v311_v39, %v312_v38  ;;  %v466_v45 = vld [vmem:[#allocation2 + $0x50] sm:$0xff] }
  0x97   : > { %v318_v43 = vsel %vm313_vm5, %v317_v41, %v306_v37  ;;  %v320_v44 = vsel %vm313_vm5, %v319_v42, %v308_v36  ;;  %531 = vrot.lane.b32.xlu0 %v1753_v40, %s1808_s24  ;;  %v1648_v46 = vcombine.high %v466_v45, %v466_v45  ;;  %v1647_v49 = vcombine.low %v466_v45, %v466_v45  ;;  %v1759_v50 = vld [vmem:[#allocation2 + $0x10] ss:$40 sps:$4 sm:$0xff]   ;;  %v1763_v52 = vld [vmem:[#allocation2 + $0x14] ss:$40 sps:$4 sm:$0xff]  }
  0x98   : > { %330 = vst [vmem:[#allocation2 + $0x60] sm:$0x33] %v318_v43  ;;  %331 = vst [vmem:[#allocation2 + $0x68] sm:$0x33] %v320_v44  ;;  %v1764_v54 = vld [vmem:[#allocation2 + $0xc] ss:$40 sps:$4 sm:$0xff]  }
  0x99   : > { %v1769_v59 = vld [vmem:[#allocation2 + $0x18] ss:$40 sps:$4 sm:$0xff]   ;;  %v1915_v4 = vld [vmem:[#allocation2 + $0x14] ss:$40 sps:$4 sm:$0xff]   ;;  %v1778_v6 = vld [vmem:[#allocation2 + $0x24] ss:$40 sps:$4 sm:$0xff]  }
  0x9a   : > { %v1925_v8 = vld [vmem:[#allocation2 + $0xc] ss:$40 sps:$4 sm:$0xff]   ;;  %v1927_v9 = vld [vmem:[#allocation2 + $0x18] ss:$40 sps:$4 sm:$0xff]  }
  0x9b   : > { %551 = vrot.lane.b32.xlu0 %v1648_v46, %s1808_s24  ;;  %v467_v53 = vld [vmem:[#allocation2 + $0x58] sm:$0xff]  ;;  %v1773_v1 = vld [vmem:[#allocation2 + $0x20] ss:$40 sps:$4 sm:$0xff]  }
  0x9c   : > { %v1650_v55 = vcombine.high %v467_v53, %v467_v53  ;;  %v1649_v56 = vcombine.low %v467_v53, %v467_v53  ;;  %v1767_v57 = vld [vmem:[#allocation2 + $0x1c] ss:$40 sps:$4 sm:$0xff]   ;;  %v1102_v5 = vld [vmem:[#allocation2 + $0x54] sm:$0xff]  ;;  %v1943_v14 = vld [vmem:[#allocation2 + $0x20] ss:$40 sps:$4 sm:$0xff]  }
  0x9d   : > { %v1755_v47 = vld [vmem:[#allocation2 + $0x70] ss:$0 sps:$4 sm:$0xff]   ;;  %v1920_v7 = vcombine.high %v1102_v5, %v1102_v5  ;;  %v1941_v13 = vcombine.low %v1102_v5, %v1102_v5  ;;  %v1957_v19 = vld [vmem:[#allocation2 + $0x1c] ss:$40 sps:$4 sm:$0xff]   ;;  %v455_v44 = vld [vmem:[%s2158_s1] sm:$0xf] }
  0x9e   : > { %565 = vrot.lane.b32.xlu1 %v1755_v47, %s1808_s24  ;;  %v1933_v11 = vld [vmem:[#allocation2 + $0x10] ss:$40 sps:$4 sm:$0xff]  }
  0x9f   : > { %1169 = vrot.lane.b32.xlu0 %v1893_v48, %s1809_s25  ;;  %v468_v58 = vld [vmem:[#allocation2 + $0x60] sm:$0xff]  ;;  %v469_v61 = vld [vmem:[#allocation2 + $0x68] sm:$0xff] }
  0xa0   : > { %v1652_v60 = vcombine.high %v468_v58, %v468_v58  ;;  %v1651_v62 = vcombine.low %v468_v58, %v468_v58  ;;  %v1654_v63 = vcombine.high %v469_v61, %v469_v61  ;;  %v1653_v3 = vcombine.low %v469_v61, %v469_v61  ;;  %v1103_v10 = vld [vmem:[#allocation2 + $0x5c] sm:$0xff]  ;;  %v1104_v15 = vld [vmem:[#allocation2 + $0x64] sm:$0xff]  ;;  %v1105_v18 = vld [vmem:[#allocation2 + $0x6c] sm:$0xff] }
  0xa1   : > { %v1935_v12 = vcombine.high %v1103_v10, %v1103_v10  ;;  %v1949_v16 = vcombine.low %v1103_v10, %v1103_v10  ;;  %v1951_v17 = vcombine.high %v1104_v15, %v1104_v15  ;;  %v1959_v20 = vcombine.high %v1105_v18, %v1105_v18 }
  0xa2   : > { %549 = vrot.lane.b32.xlu1 %v1647_v49, %s1808_s24  ;;  %v1965_v21 = vcombine.low %v1104_v15, %v1104_v15  ;;  %v1969_v22 = vcombine.low %v1105_v18, %v1105_v18 }
  0xa3   : > { %539 = vrot.lane.b32.xlu0 %v1759_v50, %s1808_s24 }
  0xa6   : > { %535 = vrot.lane.b32.xlu1 %v1761_v51, %s1808_s24 }
  0xa7   : > { %541 = vrot.lane.b32.xlu0 %v1763_v52, %s1808_s24 }
  0xaa   : > { %537 = vrot.lane.b32.xlu1 %v1764_v54, %s1808_s24 }
  0xab   : > { %555 = vrot.lane.b32.xlu0 %v1650_v55, %s1808_s24 }
  0xae   : > { %553 = vrot.lane.b32.xlu1 %v1649_v56, %s1808_s24 }
  0xaf   : > { %545 = vrot.lane.b32.xlu0 %v1767_v57, %s1808_s24 }
  0xb2   : > { %543 = vrot.lane.b32.xlu1 %v1769_v59, %s1808_s24 }
  0xb3   : > { %559 = vrot.lane.b32.xlu0 %v1652_v60, %s1808_s24 }
  0xb6   : > { %557 = vrot.lane.b32.xlu1 %v1651_v62, %s1808_s24 }
  0xb7   : > { %563 = vrot.lane.b32.xlu0 %v1654_v63, %s1808_s24 }
  0xba   : > { %547 = vrot.lane.b32.xlu1 %v1773_v1, %s1808_s24 }
  0xbb   : > { %1167 = vrot.lane.b32.xlu0 %v1910_v2, %s1809_s25 }
  0xbe   : > { %561 = vrot.lane.b32.xlu1 %v1653_v3, %s1808_s24 }
  0xbf   : > { %1175 = vrot.lane.b32.xlu0 %v1915_v4, %s1809_s25 }
  0xc2   : > { %1183 = vrot.lane.b32.xlu1 %v1778_v6, %s1809_s25 }
  0xc3   : > { %1187 = vrot.lane.b32.xlu0 %v1920_v7, %s1809_s25 }
  0xc6   : > { %1171 = vrot.lane.b32.xlu1 %v1925_v8, %s1809_s25 }
  0xc7   : > { %1177 = vrot.lane.b32.xlu0 %v1927_v9, %s1809_s25 }
  0xca   : > { %1173 = vrot.lane.b32.xlu1 %v1933_v11, %s1809_s25 }
  0xcb   : > { %1191 = vrot.lane.b32.xlu0 %v1935_v12, %s1809_s25 }
  0xce   : > { %1185 = vrot.lane.b32.xlu1 %v1941_v13, %s1809_s25 }
  0xcf   : > { %1181 = vrot.lane.b32.xlu0 %v1943_v14, %s1809_s25 }
  0xd2   : > { %1189 = vrot.lane.b32.xlu1 %v1949_v16, %s1809_s25 }
  0xd3   : > { %1195 = vrot.lane.b32.xlu0 %v1951_v17, %s1809_s25 }
  0xd6   : > { %1179 = vrot.lane.b32.xlu1 %v1957_v19, %s1809_s25 }
  0xd7   : > { %1199 = vrot.lane.b32.xlu0 %v1959_v20, %s1809_s25 }
  0xda   : > { %1193 = vrot.lane.b32.xlu1 %v1965_v21, %s1809_s25 }
  0xde   : > { %1197 = vrot.lane.b32.xlu1 %v1969_v22, %s1809_s25 }
  0xe2   : > { %1201 = vrot.lane.b32.xlu1 %v1794_v23, %s1809_s25 }
 0x105   : > { %v534_v24 = vpop.permute.xlu0 %533 }
 0x109   : > { %v532_v25 = vpop.permute.xlu0 %531 }
 0x10a   : > { %v568_v34 = vsel %vm567_vm10, %v532_v25, %v534_v24 }
 0x10d   : > { %v552_v26 = vpop.permute.xlu0 %551 }
 0x110   : > { %v566_v27 = vpop.permute.xlu1 %565 }
 0x111   : > { %v1974_v28 = vpop.permute.xlu0 %1169 }
 0x114   : > { %v550_v29 = vpop.permute.xlu1 %549 }
 0x115   : > { %v540_v30 = vpop.permute.xlu0 %539  ;;  %v576_v39 = vsel %vm567_vm10, %v550_v29, %v552_v26 }
 0x116   : > { %v598_v43 = vsel %vm272_vm6, %v576_v39, 0 }
 0x118   : > { %v536_v31 = vpop.permute.xlu1 %535 }
 0x119   : > { %v542_v32 = vpop.permute.xlu0 %541  ;;  %v569_v33 = vsel %vm567_vm10, %v534_v24, %v536_v31 }
 0x11a   : > { %621 = vmatprep.subr.bf16.mxu0 %v569_v33  ;;  %v572_v49 = vsel %vm567_vm10, %v540_v30, %v542_v32 }
 0x11b   : > { %622 = vmatpush1.bf16.msra.mxu0 %v568_v34 }
 0x11c   : > { %v538_v35 = vpop.permute.xlu1 %537 }
 0x11d   : > { %v556_v36 = vpop.permute.xlu0 %555  ;;  %v571_v37 = vsel %vm567_vm10, %v538_v35, %v540_v30  ;;  %v570_v38 = vsel %vm567_vm10, %v536_v31, %v538_v35 }
 0x11e   : > { %662 = vmatprep.subr.bf16.mxu1 %v571_v37 }
 0x11f   : > { %663 = vmatpush1.bf16.msra.mxu1 %v570_v38 }
 0x120   : > { %v554_v40 = vpop.permute.xlu1 %553 }
 0x121   : > { %v577_v41 = vsel %vm567_vm10, %v552_v26, %v554_v40  ;;  %v546_v42 = vpop.permute.xlu0 %545  ;;  %v578_v50 = vsel %vm567_vm10, %v554_v40, %v556_v36 }
 0x122   : > { %1656 = vmatprep.subr.msk.bf16.mxu0 %vm272_vm6, %v577_v41  ;;  %v604_v54 = vsel %vm272_vm6, %v578_v50, 0 }
 0x123   : > { %624 = vmatpush1.bf16.msra.mxu0 %v598_v43 }
 0x124   : > { %v544_v45 = vpop.permute.xlu1 %543 }
 0x125   : > { %v560_v46 = vpop.permute.xlu0 %559  ;;  %v573_v47 = vsel %vm567_vm10, %v542_v32, %v544_v45  ;;  %v574_v58 = vsel %vm567_vm10, %v544_v45, %v546_v42 }
 0x126   : > { %703 = vmatprep.subr.bf16.mxu0 %v573_v47  ;;  %1657 = vmatmul.mubr.msk.bf16.vlgmr.msra.gmra.mrb[0].mxu0 %vm592_vm11, %v455_v44 }
 0x127   : > { %704 = vmatpush1.bf16.msra.mxu0 %v572_v49  ;;  %735 = vmatprep.mubr.bf16.mxu0 %v1805_v0  ;;  %v334_v49 = vlaneseq }
 0x128   : > { %v558_v51 = vpop.permute.xlu1 %557 }
 0x129   : > { %v579_v52 = vsel %vm567_vm10, %v556_v36, %v558_v51  ;;  %v564_v53 = vpop.permute.xlu0 %563  ;;  %v580_v59 = vsel %vm567_vm10, %v558_v51, %v560_v46 }
 0x12a   : > { %1658 = vmatprep.subr.msk.bf16.mxu1 %vm272_vm6, %v579_v52  ;;  %v583_v60 = vsel %vm567_vm10, %v564_v53, %v566_v27  ;;  %v610_v3 = vsel %vm272_vm6, %v580_v59, 0  ;;  %v1689_v27 = vld [vmem:[%s2158_s1 + $0x8] sm:$0xf]  ;;  %v2088_v52 = vand.u32 127, %v334_v49 }
 0x12b   : > { %665 = vmatpush1.bf16.msra.mxu1 %v604_v54 }
 0x12c   : > { %v548_v55 = vpop.permute.xlu1 %547  ;;  %v2091_v54 = vadd.s32 256, %v2088_v52  ;;  %v347_v59 = vand.u32 31, %v2088_v52 }
 0x12d   : > { %v1168_v56 = vpop.permute.xlu0 %1167  ;;  %v575_v57 = vsel %vm567_vm10, %v546_v42, %v548_v55  ;;  %v2094_v55 = vadd.s32 128, %v2088_v52 }
 0x12e   : > { %1659 = vmatmul.mubr.msk.bf16.vlgmr.msra.gmra.mrb[0].mxu1 %vm592_vm11, %v455_v44  ;;  %744 = vmatprep.subr.bf16.mxu1 %v575_v57  ;;  %v1204_v18 = vsel %vm1203_vm12, %v1168_v56, %v1974_v28  ;;  %v2097_v56 = vadd.s32 384, %v2088_v52  ;;  %vm439_vm13 = vcmp.ge.s32.totalorder %v347_v59, 1  ;;  %vm447_vm5 = vcmp.le.s32.totalorder %v347_v59, 30 }
 0x12f   : > { %745 = vmatpush1.bf16.msra.mxu1 %v574_v58  ;;  %776 = vmatprep.mubr.bf16.mxu1 %v1805_v0 }
 0x130   : > { %v562_v61 = vpop.permute.xlu1 %561  ;;  %1662 = vmatprep.subr.msk.bf16.mxu1 %vm272_vm6, %v583_v60  ;;  %v361_v60 = vand.u32 31, %v2091_v54 }
 0x131   : > { %v581_v62 = vsel %vm567_vm10, %v560_v46, %v562_v61  ;;  %v582_v63 = vsel %vm567_vm10, %v562_v61, %v564_v53  ;;  %v2004_v1 = vpop.permute.xlu0 %1175 }
 0x132   : > { %v616_v5 = vsel %vm272_vm6, %v582_v63, 0  ;;  %1660 = vmatprep.subr.msk.bf16.mxu0 %vm272_vm6, %v581_v62  ;;  %v354_v63 = vand.u32 31, %v2094_v55  ;;  %vm441_vm14 = vcmp.ge.s32.totalorder %v361_v60, 1  ;;  %vm449_vm7 = vcmp.le.s32.totalorder %v361_v60, 30 }
 0x133   : > { %706 = vmatpush1.bf16.msra.mxu0 %v610_v3  ;;  %747 = vmatpush1.bf16.msra.mxu1 %v616_v5 }
 0x134   : > { %v2009_v6 = vpop.permute.xlu1 %1183  ;;  %918 = vmatprep.subr.bf16.mxu0 %v1893_v48  ;;  %959 = vmatprep.subr.bf16.mxu1 %v1933_v11  ;;  %v895_v11 = vsel %vm272_vm6, %v1941_v13, 0  ;;  %vm2111_vm15 = vcmp.ge.s32.totalorder %v354_v63, 1 }
 0x135   : > { %v1188_v10 = vpop.permute.xlu0 %1187 }
 0x136   : > { %1661 = vmatmul.mubr.msk.bf16.vlgmr.msra.gmra.mrb[4].mxu0 %vm592_vm11, %v455_v44  ;;  %1663 = vmatmul.mubr.msk.bf16.vlgmr.msra.gmra.mrb[4].mxu1 %vm592_vm11, %v455_v44 }
 0x137   : > { %919 = vmatpush1.bf16.msra.mxu0 %v1910_v2  ;;  %960 = vmatpush1.bf16.msra.mxu1 %v1925_v8  ;;  %v901_v2 = vsel %vm272_vm6, %v1949_v16, 0 }
 0x138   : > { %v1172_v15 = vpop.permute.xlu1 %1171  ;;  %1681 = vmatprep.subr.msk.bf16.mxu0 %vm272_vm6, %v1920_v7  ;;  %1683 = vmatprep.subr.msk.bf16.mxu1 %vm272_vm6, %v1935_v12  ;;  %v1664_v7 = vld [vmem:[%s2158_s1 + $0x4] sm:$0xf] }
 0x139   : > { %950 = vmatprep.mubr.bf16.mxu0 %v1805_v0  ;;  %991 = vmatprep.mubr.bf16.mxu1 %v1805_v0  ;;  %v1178_v48 = vpop.permute.xlu0 %1177 }
 0x13a   : > { %v1208_v31 = vsel %vm1203_vm12, %v2004_v1, %v1178_v48 }
 0x13b   : > { %921 = vmatpush1.bf16.msra.mxu0 %v895_v11  ;;  %962 = vmatpush1.bf16.msra.mxu1 %v901_v2 }
 0x13c   : > { %v1174_v8 = vpop.permute.xlu1 %1173  ;;  %1000 = vmatprep.subr.bf16.mxu0 %v1927_v9  ;;  %1041 = vmatprep.subr.bf16.mxu1 %v1943_v14  ;;  %v907_v9 = vsel %vm272_vm6, %v1965_v21, 0  ;;  %v1205_v14 = vsel %vm1203_vm12, %v1974_v28, %v1172_v15 }
 0x13d   : > { %v1192_v12 = vpop.permute.xlu0 %1191  ;;  %v1207_v16 = vsel %vm1203_vm12, %v1174_v8, %v2004_v1  ;;  %v368_v1 = vand.u32 31, %v2097_v56 }
 0x13e   : > { %1682 = vmatmul.mubr.msk.bf16.vlgmr.msra.gmra.mrb[8].mxu0 %vm592_vm11, %v1664_v7  ;;  %1684 = vmatmul.mubr.msk.bf16.vlgmr.msra.gmra.mrb[8].mxu1 %vm592_vm11, %v1664_v7 }
 0x13f   : > { %1001 = vmatpush1.bf16.msra.mxu0 %v1915_v4  ;;  %1042 = vmatpush1.bf16.msra.mxu1 %v1957_v19  ;;  %v913_v4 = vsel %vm272_vm6, %v1969_v22, 0  ;;  %v1206_v19 = vsel %vm1203_vm12, %v1172_v15, %v1174_v8  ;;  %v2104_v15 = vadd.s32 512, %v2088_v52  ;;  %vm2117_vm0 = vcmp.ge.s32.totalorder %v368_v1, 1 }
 0x140   : > { %v1186_v13 = vpop.permute.xlu1 %1185  ;;  %1685 = vmatprep.subr.msk.bf16.mxu0 %vm272_vm6, %v1951_v17  ;;  %1687 = vmatprep.subr.msk.bf16.mxu1 %vm272_vm6, %v1959_v20  ;;  %v2125_v8 = vadd.s32 896, %v2088_v52  ;;  %vm450_vm8 = vcmp.le.s32.totalorder %v368_v1, 30 }
 0x141   : > { %1032 = vmatprep.mubr.bf16.mxu0 %v1805_v0  ;;  %1073 = vmatprep.mubr.bf16.mxu1 %v1805_v0  ;;  %v1182_v20 = vpop.permute.xlu0 %1181  ;;  %v1212_v21 = vsel %vm1203_vm12, %v1186_v13, %v1188_v10 }
 0x142   : > { %v1232_v24 = vsel %vm272_vm6, %v1212_v21, 0  ;;  %v1211_v34 = vsel %vm1203_vm12, %v1182_v20, %v2009_v6 }
 0x143   : > { %1003 = vmatpush1.bf16.msra.mxu0 %v907_v9  ;;  %1044 = vmatpush1.bf16.msra.mxu1 %v913_v4  ;;  %v375_v9 = vand.u32 31, %v2104_v15 }
 0x144   : > { %v1190_v17 = vpop.permute.xlu1 %1189  ;;  %1255 = vmatprep.subr.bf16.mxu0 %v1205_v14  ;;  %1296 = vmatprep.subr.bf16.mxu1 %v1207_v16 }
 0x145   : > { %v1213_v22 = vsel %vm1203_vm12, %v1188_v10, %v1190_v17  ;;  %v1214_v25 = vsel %vm1203_vm12, %v1190_v17, %v1192_v12  ;;  %v1196_v28 = vpop.permute.xlu0 %1195  ;;  %vm443_vm1 = vcmp.ge.s32.totalorder %v375_v9, 1  ;;  %vm451_vm9 = vcmp.le.s32.totalorder %v375_v9, 30 }
 0x146   : > { %1686 = vmatmul.mubr.msk.bf16.vlgmr.msra.gmra.mrb[12].mxu0 %vm592_vm11, %v1664_v7  ;;  %1688 = vmatmul.mubr.msk.bf16.vlgmr.msra.gmra.mrb[12].mxu1 %vm592_vm11, %v1664_v7  ;;  %v1238_v32 = vsel %vm272_vm6, %v1214_v25, 0  ;;  %v2122_v7 = vadd.s32 640, %v2088_v52 }
 0x147   : > { %1256 = vmatpush1.bf16.msra.mxu0 %v1204_v18  ;;  %1297 = vmatpush1.bf16.msra.mxu1 %v1206_v19 }
 0x148   : > { %v1180_v23 = vpop.permute.xlu1 %1179  ;;  %1708 = vmatprep.subr.msk.bf16.mxu0 %vm272_vm6, %v1213_v22  ;;  %1287 = vmatprep.mubr.bf16.mxu0 %v1805_v0 }
 0x149   : > { %1328 = vmatprep.mubr.bf16.mxu1 %v1805_v0  ;;  %v1209_v26 = vsel %vm1203_vm12, %v1178_v48, %v1180_v23  ;;  %v1210_v37 = vsel %vm1203_vm12, %v1180_v23, %v1182_v20  ;;  %v1200_v38 = vpop.permute.xlu0 %1199  ;;  %v2107_v48 = vadd.s32 768, %v2088_v52  ;;  %v382_v23 = vand.u32 31, %v2122_v7 }
 0x14b   : > { %1258 = vmatpush1.bf16.msra.mxu0 %v1232_v24  ;;  %v389_v4 = vand.u32 31, %v2107_v48  ;;  %v396_v24 = vand.u32 31, %v2125_v8  ;;  %vm444_vm3 = vcmp.ge.s32.totalorder %v382_v23, 1  ;;  %vm452_vm10 = vcmp.le.s32.totalorder %v382_v23, 30  ;;  %v1498_v48 = vld [vmem:[%s2159_s2] sm:$0xff] }
 0x14c   : > { %v1194_v29 = vpop.permute.xlu1 %1193  ;;  %1337 = vmatprep.subr.bf16.mxu0 %v1209_v26 }
 0x14d   : > { %v1215_v30 = vsel %vm1203_vm12, %v1192_v12, %v1194_v29  ;;  %v1216_v33 = vsel %vm1203_vm12, %v1194_v29, %v1196_v28  ;;  %vm445_vm2 = vcmp.ge.s32.totalorder %v389_v4, 1  ;;  %vm446_vm4 = vcmp.ge.s32.totalorder %v396_v24, 1 }
 0x14e   : > { %1709 = vmatmul.mubr.msk.bf16.vlgmr.msra.gmra.mrb[16].mxu0 %vm592_vm11, %v1689_v27  ;;  %1710 = vmatprep.subr.msk.bf16.mxu1 %vm272_vm6, %v1215_v30  ;;  %v1244_v39 = vsel %vm272_vm6, %v1216_v33, 0 }
 0x14f   : > { %1299 = vmatpush1.bf16.msra.mxu1 %v1238_v32  ;;  %1338 = vmatpush1.bf16.msra.mxu0 %v1208_v31 }
 0x150   : > { %v1198_v35 = vpop.permute.xlu1 %1197  ;;  %1378 = vmatprep.subr.bf16.mxu1 %v1211_v34  ;;  %1369 = vmatprep.mubr.bf16.mxu0 %v1805_v0 }
 0x151   : > { %v1217_v36 = vsel %vm1203_vm12, %v1196_v28, %v1198_v35  ;;  %v1218_v40 = vsel %vm1203_vm12, %v1198_v35, %v1200_v38 }
 0x152   : > { %1711 = vmatmul.mubr.msk.bf16.vlgmr.msra.gmra.mrb[16].mxu1 %vm592_vm11, %v1689_v27  ;;  %1712 = vmatprep.subr.msk.bf16.mxu0 %vm272_vm6, %v1217_v36  ;;  %v1250_v43 = vsel %vm272_vm6, %v1218_v40, 0 }
 0x153   : > { %1340 = vmatpush1.bf16.msra.mxu0 %v1244_v39  ;;  %1379 = vmatpush1.bf16.msra.mxu1 %v1210_v37 }
 0x154   : > { %v1202_v41 = vpop.permute.xlu1 %1201  ;;  %1410 = vmatprep.mubr.bf16.mxu1 %v1805_v0 }
 0x155   : > { %v1219_v42 = vsel %vm1203_vm12, %v1200_v38, %v1202_v41  ;;  %vm454_vm12 = vcmp.le.s32.totalorder %v396_v24, 30 }
 0x156   : > { %1713 = vmatmul.mubr.msk.bf16.vlgmr.msra.gmra.mrb[20].mxu0 %vm592_vm11, %v1689_v27  ;;  %1714 = vmatprep.subr.msk.bf16.mxu1 %vm272_vm6, %v1219_v42  ;;  %vm448_vm6 = vcmp.le.s32.totalorder %v354_v63, 30 }
 0x157   : > { %1381 = vmatpush1.bf16.msra.mxu1 %v1250_v43 }
 0x15a   : > { %1715 = vmatmul.mubr.msk.bf16.vlgmr.msra.gmra.mrb[20].mxu1 %vm592_vm11, %v1689_v27  ;;  %vm453_vm11 = vcmp.le.s32.totalorder %v389_v4, 30 }
 0x1f9   : > { %v655_v44 = vpop.f32.mrb[0].mxu0 }
 0x1fa   : > { %v657_v45 = vpop.f32.mrb[1].mxu0  ;;  %v801_v12 = vsel %vm439_vm13, %v655_v44, 0.0 }
 0x1fb   : > { %v659_v46 = vpop.f32.mrb[2].mxu0  ;;  %v802_v17 = vsel %vm2111_vm15, %v657_v45, 0.0 }
 0x1fc   : > { %v660_v47 = vpop.f32.mrb[3].mxu0 }
 0x201   : > { %v696_v50 = vpop.f32.mrb[0].mxu1 }
 0x202   : > { %v698_v51 = vpop.f32.mrb[1].mxu1  ;;  %v803_v13 = vsel %vm441_vm14, %v696_v50, 0.0 }
 0x203   : > { %v700_v0 = vpop.f32.mrb[2].mxu1  ;;  %v804_v18 = vsel %vm2117_vm0, %v698_v51, 0.0 }
 0x204   : > { %v701_v53 = vpop.f32.mrb[3].mxu1 }
 0x209   : > { %v737_v57 = vpop.f32.mrb[4].mxu0  ;;  %v778_v58 = vpop.f32.mrb[4].mxu1 }
 0x20a   : > { %v739_v61 = vpop.f32.mrb[5].mxu0  ;;  %v780_v62 = vpop.f32.mrb[5].mxu1  ;;  %v805_v31 = vsel %vm443_vm1, %v737_v57, 0.0  ;;  %v807_v32 = vsel %vm445_vm2, %v778_v58, 0.0 }
 0x20b   : > { %v741_v3 = vpop.f32.mrb[6].mxu0  ;;  %v782_v5 = vpop.f32.mrb[6].mxu1  ;;  %v806_v35 = vsel %vm444_vm3, %v739_v61, 0.0  ;;  %v808_v36 = vsel %vm446_vm4, %v780_v62, 0.0 }
 0x20c   : > { %v742_v6 = vpop.f32.mrb[7].mxu0  ;;  %v783_v10 = vpop.f32.mrb[7].mxu1 }
 0x211   : > { %v952_v14 = vpop.f32.mrb[8].mxu0  ;;  %v993_v16 = vpop.f32.mrb[8].mxu1 }
 0x212   : > { %v1082_v19 = vadd.f32 %v952_v14, %v801_v12  ;;  %v1084_v20 = vadd.f32 %v993_v16, %v803_v13  ;;  %v954_v21 = vpop.f32.mrb[9].mxu0  ;;  %v995_v22 = vpop.f32.mrb[9].mxu1 }
 0x213   : > { %v1083_v25 = vadd.f32 %v954_v21, %v802_v17  ;;  %v1085_v26 = vadd.f32 %v995_v22, %v804_v18  ;;  %v956_v27 = vpop.f32.mrb[10].mxu0  ;;  %v997_v28 = vpop.f32.mrb[10].mxu1 }
 0x214   : > { %v957_v29 = vpop.f32.mrb[11].mxu0  ;;  %v998_v30 = vpop.f32.mrb[11].mxu1 }
 0x219   : > { %v1034_v33 = vpop.f32.mrb[12].mxu0  ;;  %v1075_v34 = vpop.f32.mrb[12].mxu1 }
 0x21a   : > { %v1086_v37 = vadd.f32 %v1034_v33, %v805_v31  ;;  %v1088_v38 = vadd.f32 %v1075_v34, %v807_v32  ;;  %v1036_v39 = vpop.f32.mrb[13].mxu0  ;;  %v1077_v40 = vpop.f32.mrb[13].mxu1 }
 0x21b   : > { %v1087_v41 = vadd.f32 %v1036_v39, %v806_v35  ;;  %v1089_v42 = vadd.f32 %v1077_v40, %v808_v36  ;;  %v1038_v43 = vpop.f32.mrb[14].mxu0  ;;  %v1079_v44 = vpop.f32.mrb[14].mxu1 }
 0x21c   : > { %v1039_v45 = vpop.f32.mrb[15].mxu0  ;;  %v1080_v46 = vpop.f32.mrb[15].mxu1 }
 0x221   : > { %v1289_v47 = vpop.f32.mrb[16].mxu0 }
 0x222   : > { %v1435_v49 = vsel %vm447_vm5, %v1289_v47, 0.0  ;;  %v1291_v50 = vpop.f32.mrb[17].mxu0 }
 0x223   : > { %v1443_v51 = vadd.f32 %v1435_v49, %v1082_v19  ;;  %v1436_v52 = vsel %vm448_vm6, %v1291_v50, 0.0  ;;  %v1293_v0 = vpop.f32.mrb[18].mxu0  ;;  %v1512_v49 = vld [vmem:[%s2160_s3] sm:$0xff] }
 0x224   : > { %v1444_v53 = vadd.f32 %v1436_v52, %v1083_v25  ;;  %v1294_v55 = vpop.f32.mrb[19].mxu0 }
 0x225   : > { %v1330_v57 = vpop.f32.mrb[16].mxu1 }
 0x226   : > { %v1451_v58 = vadd.f32 %v1444_v53, %v1443_v51  ;;  %v1437_v61 = vsel %vm449_vm7, %v1330_v57, 0.0  ;;  %v1332_v62 = vpop.f32.mrb[17].mxu1 }
 0x227   : > { %v1445_v59 = vadd.f32 %v1437_v61, %v1084_v20  ;;  %v1438_v63 = vsel %vm450_vm8, %v1332_v62, 0.0  ;;  %v1334_v3 = vpop.f32.mrb[18].mxu1 }
 0x228   : > { %v1446_v5 = vadd.f32 %v1438_v63, %v1085_v26  ;;  %v1335_v6 = vpop.f32.mrb[19].mxu1 }
 0x229   : > { %v1452_v10 = vadd.f32 %v1451_v58, %v1445_v59  ;;  %v1371_v15 = vpop.f32.mrb[20].mxu0 }
 0x22a   : > { %v1439_v54 = vsel %vm451_vm9, %v1371_v15, 0.0  ;;  %v1373_v60 = vpop.f32.mrb[21].mxu0 }
 0x22b   : > { %v1453_v11 = vadd.f32 %v1452_v10, %v1446_v5  ;;  %v1447_v2 = vadd.f32 %v1439_v54, %v1086_v37  ;;  %v1440_v7 = vsel %vm452_vm10, %v1373_v60, 0.0  ;;  %v1375_v56 = vpop.f32.mrb[22].mxu0 }
 0x22c   : > { %v1448_v1 = vadd.f32 %v1440_v7, %v1087_v41  ;;  %v1376_v8 = vpop.f32.mrb[23].mxu0 }
 0x22d   : > { %v1454_v12 = vadd.f32 %v1453_v11, %v1447_v2  ;;  %v1412_v13 = vpop.f32.mrb[20].mxu1 }
 0x22e   : > { %v1441_v9 = vsel %vm453_vm11, %v1412_v13, 0.0  ;;  %v1414_v14 = vpop.f32.mrb[21].mxu1 }
 0x22f   : > { %v1455_v16 = vadd.f32 %v1454_v12, %v1448_v1  ;;  %v1449_v17 = vadd.f32 %v1441_v9, %v1088_v38  ;;  %v1442_v18 = vsel %vm454_vm12, %v1414_v14, 0.0  ;;  %v1416_v19 = vpop.f32.mrb[22].mxu1 }
 0x230   : > { %v1450_v20 = vadd.f32 %v1442_v18, %v1089_v42  ;;  %v1417_v21 = vpop.f32.mrb[23].mxu1 }
 0x231   : > { %v1456_v22 = vadd.f32 %v1455_v16, %v1449_v17 }
 0x233   : > { %v1457_v23 = vadd.f32 %v1456_v22, %v1450_v20 }
 0x235   : > { %1458 = vadd.xlane.f32.xlu0 %v1457_v23 }
 0x24b   : > { %1501 = vperm.xlu0 %1745, %v1498_v48  }
 0x2c2   : > { %v1459_v4 = vpop.xlane.xlu0 %1458 }
 0x2c3   : > { %v1461_v24 = vmul.f32 0.0009765625, %v1459_v4 }
 0x2c5   : > { %v1462_v25 = vsub.f32 %v1443_v51, %v1461_v24  ;;  %v1463_v26 = vsub.f32 %v1444_v53, %v1461_v24  ;;  %v1464_v27 = vsub.f32 %v1445_v59, %v1461_v24  ;;  %v1465_v28 = vsub.f32 %v1446_v5, %v1461_v24 }
 0x2c6   : > { %v1466_v31 = vsub.f32 %v1447_v2, %v1461_v24  ;;  %v1467_v34 = vsub.f32 %v1448_v1, %v1461_v24  ;;  %v1468_v37 = vsub.f32 %v1449_v17, %v1461_v24  ;;  %v1469_v40 = vsub.f32 %v1450_v20, %v1461_v24 }
 0x2c7   : > { %v1470_v29 = vmul.f32 %v1462_v25, %v1462_v25  ;;  %v1471_v30 = vmul.f32 %v1463_v26, %v1463_v26  ;;  %v1472_v32 = vmul.f32 %v1464_v27, %v1464_v27  ;;  %v1473_v35 = vmul.f32 %v1465_v28, %v1465_v28 }
 0x2c8   : > { %v1474_v38 = vmul.f32 %v1466_v31, %v1466_v31  ;;  %v1475_v41 = vmul.f32 %v1467_v34, %v1467_v34  ;;  %v1476_v43 = vmul.f32 %v1468_v37, %v1468_v37  ;;  %v1477_v45 = vmul.f32 %v1469_v40, %v1469_v40 }
 0x2c9   : > { %v1478_v33 = vadd.f32 %v1471_v30, %v1470_v29 }
 0x2ca   : > { %v1502_v53 = vpop.permute.xlu0 %1501 }
 0x2cb   : > { %v1479_v36 = vadd.f32 %v1478_v33, %v1472_v32 }
 0x2cd   : > { %v1480_v39 = vadd.f32 %v1479_v36, %v1473_v35 }
 0x2cf   : > { %v1481_v42 = vadd.f32 %v1480_v39, %v1474_v38 }
 0x2d1   : > { %v1482_v44 = vadd.f32 %v1481_v42, %v1475_v41 }
 0x2d3   : > { %v1483_v46 = vadd.f32 %v1482_v44, %v1476_v43 }
 0x2d5   : > { %v1484_v47 = vadd.f32 %v1483_v46, %v1477_v45 }
 0x2d7   : > { %1485 = vadd.xlane.f32.xlu1 %v1484_v47 }
 0x2e8   : > { %1515 = vperm.xlu1 %1746, %v1512_v49  }
 0x364   : > { %v1486_v50 = vpop.xlane.xlu1 %1485 }
 0x365   : > { %v1487_v51 = vmul.f32 0.0009765625, %v1486_v50 }
 0x367   : > { %v1488_v52 = vadd.f32 1e-05, %v1487_v51 }
 0x368   : > { %v1516_v5 = vpop.permute.xlu1 %1515 }
 0x369   : > { %1795 = vrsqrt.f32 %v1488_v52 }
 0x373   : > { %v1796_v0 = vpop.eup %1795 }
 0x374   : > { %v1490_v55 = vmul.f32 %v1796_v0, %v1462_v25  ;;  %v1491_v57 = vmul.f32 %v1796_v0, %v1463_v26  ;;  %v1492_v58 = vmul.f32 %v1796_v0, %v1464_v27  ;;  %v1493_v61 = vmul.f32 %v1796_v0, %v1465_v28 }
 0x375   : > { %v1494_v62 = vmul.f32 %v1796_v0, %v1466_v31  ;;  %v1495_v59 = vmul.f32 %v1796_v0, %v1467_v34  ;;  %v1496_v63 = vmul.f32 %v1796_v0, %v1468_v37  ;;  %v1497_v3 = vmul.f32 %v1796_v0, %v1469_v40 }
 0x376   : > { %v1504_v6 = vmul.f32 %v1502_v53, %v1490_v55  ;;  %v1505_v10 = vmul.f32 %v1502_v53, %v1491_v57  ;;  %v1506_v15 = vmul.f32 %v1502_v53, %v1492_v58  ;;  %v1507_v54 = vmul.f32 %v1502_v53, %v1493_v61 }
 0x377   : > { %v1508_v60 = vmul.f32 %v1502_v53, %v1494_v62  ;;  %v1509_v11 = vmul.f32 %v1502_v53, %v1495_v59  ;;  %v1510_v2 = vmul.f32 %v1502_v53, %v1496_v63  ;;  %v1511_v7 = vmul.f32 %v1502_v53, %v1497_v3 }
 0x378   : > { %v1518_v56 = vadd.f32 %v1516_v5, %v1504_v6  ;;  %v1519_v1 = vadd.f32 %v1516_v5, %v1505_v10  ;;  %v1520_v8 = vadd.f32 %v1516_v5, %v1506_v15  ;;  %v1521_v12 = vadd.f32 %v1516_v5, %v1507_v54 }
 0x379   : > { %v1522_v13 = vadd.f32 %v1516_v5, %v1508_v60  ;;  %v1523_v9 = vadd.f32 %v1516_v5, %v1509_v11  ;;  %v1524_v14 = vadd.f32 %v1516_v5, %v1510_v2  ;;  %v1525_v16 = vadd.f32 %v1516_v5, %v1511_v7 }
 0x37a   : > { %v1526_v17 = vmax.f32 %v1518_v56, 0.0  ;;  %v1527_v18 = vmax.f32 %v1519_v1, 0.0  ;;  %v1528_v19 = vmax.f32 %v1520_v8, 0.0  ;;  %v1529_v20 = vmax.f32 %v1521_v12, 0.0 }
 0x37b   : > { %v1530_v21 = vmax.f32 %v1522_v13, 0.0  ;;  %v1531_v22 = vmax.f32 %v1523_v9, 0.0  ;;  %v1532_v23 = vmax.f32 %v1524_v14, 0.0  ;;  %v1533_v48 = vmax.f32 %v1525_v16, 0.0 }
 0x37c   : > { %v1728_v4 = vpack.c.bf16 %v1527_v18, %v1526_v17  ;;  %v1729_v24 = vpack.c.bf16 %v1529_v20, %v1528_v19 }
 0x37d   : > { %v1730_v25 = vpack.c.bf16 %v1531_v22, %v1530_v21  ;;  %v1731_v26 = vpack.c.bf16 %v1533_v48, %v1532_v23 }
 0x37e   : > { %1566 = vst [vmem:[%s197_s12] sm:$0xff] %v1728_v4  ;;  %1567 = vst [vmem:[%s197_s12 + $0x8] sm:$0xff] %v1729_v24 }
 0x37f   : > { %1568 = vst [vmem:[%s197_s12 + $0x10] sm:$0xff] %v1730_v25  ;;  %1569 = vst [vmem:[%s197_s12 + $0x18] sm:$0xff] %v1731_v26 }
 0x380 PF: > { %s14_s15 = sadd.s32 1, %s1803_s15  }
 0x381   : > { %p11_p4 = scmp.ge.s32.totalorder %s14_s15, 4  }
 0x383   :  { %13 = sbr.rel (!%p11_p4) target bundleno = 1 (0x1), region = 68 }

// kernel: attention_forward.11
= control target key start
LH: loop header
LB: loop body
LE: loop exit
PB: predicated region body
PF: predicated region fallthrough
CT: control target
= control target key end

     0   :  { %s864_s15 = smov 0   ;;  %s948_s0 = inlined_call_operand.vmem [shape: bf16[2,16,64], index: 0, kind: input, shape index: {}]   ;;  %s949_s1 = inlined_call_operand.vmem [shape: bf16[3,32,48], index: 1, kind: input, shape index: {}]   ;;  %s950_s2 = inlined_call_operand.vmem [shape: f32[32,1], index: 2, kind: input, shape index: {}]   ;;  %s951_s3 = inlined_call_operand.vmem [shape: f32[32,1], index: 3, kind: input, shape index: {}]   ;;  %s952_s4 = inlined_call_operand.vmem [shape: bf16[2,32,64], index: 4, kind: output, shape index: {}]  }
   0x1 LB: > { %s709_s16 = sadd.s32 4294967295, %s832_s15   ;;  %p713_p0 = scmp.ge.s32.totalorder %s832_s15, 1  ;;  %s832_s15 = sphi %s864_s15, %s14_s15  }
   0x2   : > { %p162_p1 = scmp.lt.s32.totalorder %s832_s15, 3 }
   0x4   : > { %p163_p2 = pnand %p713_p0, %p162_p1 }
   0x5   : > { %p188_p3 = scmp.lt.s32.totalorder (!%p163_p2), %s709_s16, 1  ;;  %vm203_vm0 = vcmask (!%p163_p2), 523264   ;;  %v834_v0 = vmov (!%p163_p2), 0   ;;  %s835_s17 = smov (!%p163_p2), 1   ;;  %vm219_vm1 = vcmask (!%p163_p2), 588864   ;;  %vm226_vm2 = vcmask (!%p163_p2), 1048512  }
   0x6   : > { %166 = sbr.rel (%p163_p2) target bundleno = 824 (0x338), region = 36  ;;  %206 = vst [vmem:[#allocation2 + $0x20] sm:$0xff] (!%p163_p2), %v834_v0  ;;  %202 = vst [vmem:[#allocation2 + $0x8] sm:$0xff] (!%p163_p2), %v834_v0  ;;  %810 = vset.pattern.permute.xlu1 (!%p163_p2), %v834_v0  ;;  %809 = vset.pattern.permute.xlu0 (!%p163_p2), %v834_v0  ;;  %s836_s22 = smov (!%p163_p2), 8   ;;  %vm228_vm3 = vcmask (!%p163_p2), 457728   ;;  %v811_v4 = vld [vmem:[%s949_s1] sm:$0xff] (!%p163_p2)   ;;  %v230_v30 = vlaneseq (!%p163_p2) }
   0x7   : > { %208 = vst [vmem:[#allocation2 + $0x30] sm:$0xff] (!%p163_p2), %v834_v0  ;;  %209 = vst [vmem:[#allocation2 + $0x38] sm:$0xff] (!%p163_p2), %v834_v0  ;;  %272 = vrot.lane.b32.xlu1 (!%p163_p2), %v834_v0, %s835_s17  ;;  %s837_s23 = smov (!%p163_p2), 120   ;;  %vm291_vm4 = vcmask (!%p163_p2), 392192   ;;  %v813_v5 = vld [vmem:[%s949_s1 + $0x10] sm:$0xff] (!%p163_p2)   ;;  %s838_s28 = smov (!%p163_p2), 127  }
   0x8   : > { %772 = vmatprep.mubr.msk.bf16.mxu0 (!%p163_p2), %vm291_vm4, %v811_v4  ;;  %782 = vmatprep.mubr.msk.bf16.mxu1 (!%p163_p2), %vm291_vm4, %v813_v5  ;;  %v814_v10 = vld [vmem:[%s949_s1 + $0x18] sm:$0xff] (!%p163_p2)   ;;  %vm284_vm5 = vcmask (!%p163_p2), 7168   ;;  %v812_v20 = vld [vmem:[%s949_s1 + $0x8] sm:$0xff] (!%p163_p2)   ;;  %v815_v22 = vld [vmem:[%s949_s1 + $0x20] sm:$0xff] (!%p163_p2)   ;;  %v231_v31 = vand.u32 (!%p163_p2), 127, %v230_v30  ;;  %vm649_vm8 = vcmask (!%p163_p2), 519168  }
   0x9   : > { %v816_v25 = vld [vmem:[%s949_s1 + $0x28] sm:$0xff] (!%p163_p2)   ;;  %v575_v62 = vld [vmem:[%s950_s2 + $0x10] sm:$0xff] (!%p163_p2)  ;;  %v576_v63 = vld [vmem:[%s950_s2 + $0x18] sm:$0xff] (!%p163_p2) }
   0xa   : > { %v236_v32 = vand.u32 (!%p163_p2), 7, %v231_v31  ;;  %v574_v61 = vld [vmem:[%s950_s2 + $0x8] sm:$0xff] (!%p163_p2) }
   0xc   : > { %vm244_vm6 = vcmp.ge.s32.totalorder (!%p163_p2), %v236_v32, 1  ;;  %vm245_vm7 = vcmp.le.s32.totalorder (!%p163_p2), %v236_v32, 6 }
   0xd   : > { %s954_s16 = smov (!%p188_p3, %s709_s16), 1 }
   0xe   : > { %s745_s18 = sshll.u32 %s954_s16, 3  ;;  %s746_s29 = sshll.u32 %s954_s16, 4 }
   0xf   : > { %s192_s21 = scalar_lea.vmem %s948_s0, %s745_s18  ;;  %s197_s6 = scalar_lea.vmem %s952_s4, %s746_s29 }
  0x10   : > { %v199_v1 = vld [vmem:[%s192_s21] sm:$0xff]  }
  0x11   : > { %216 = vrot.lane.b32.xlu0 %v199_v1, %s836_s22  ;;  %222 = vst.msk [vmem:[#allocation2 + $0x20] sm:$0xff] %vm203_vm0, %v199_v1 }
  0x15   : > { %223 = vrot.lane.b32.xlu0 %v199_v1, %s837_s23  ;;  %v602_v1 = vld [vmem:[%s951_s3 + $0x8] sm:$0xff] }
  0x18   : > { %v253_v7 = vld [vmem:[#allocation2 + $0x20] sm:$0xff] }
  0x19   : > { %276 = vrot.lane.b32.xlu0 %v834_v0, %s835_s17  ;;  %v601_v0 = vld [vmem:[%s951_s3] sm:$0xff] }
  0x79   : > { %v273_v11 = vpop.permute.xlu1 %272 }
  0x83   : > { %v217_v2 = vpop.permute.xlu0 %216 }
  0x84   : > { %220 = vst.msk [vmem:[#allocation2 + $0x8] sm:$0xff] %vm219_vm1, %v217_v2  ;;  %v603_v2 = vld [vmem:[%s951_s3 + $0x10] sm:$0xff] }
  0x87   : > { %v224_v3 = vpop.permute.xlu0 %223 }
  0x88   : > { %227 = vst.msk [vmem:[#allocation2 + $0x30] sm:$0xff] %vm226_vm2, %v224_v3 }
  0x89   : > { %229 = vst.msk [vmem:[#allocation2 + $0x38] sm:$0xff] %vm228_vm3, %v224_v3 }
  0x8b   : > { %v251_v6 = vld [vmem:[#allocation2 + $0x8] sm:$0xff]  ;;  %v277_v12 = vpop.permute.xlu0 %276 }
  0x8c   : > { %274 = vrot.lane.b32.xlu1 %v251_v6, %s835_s17  ;;  %776 = vmatprep.subr.bf16.mxu1 %v251_v6 }
  0x8d   : > { %777 = vmatpush3.bf16.msra.mxu1 %v251_v6 }
  0x8e   : > { %778 = vmatprep.subr.bf16.mxu1 %v253_v7 }
  0x8f   : > { %v254_v8 = vld [vmem:[#allocation2 + $0x30] sm:$0xff] }
  0x90   : > { %v255_v9 = vld [vmem:[#allocation2 + $0x38] sm:$0xff]  ;;  %280 = vrot.lane.b32.xlu0 %v254_v8, %s835_s17  ;;  %278 = vrot.lane.b32.xlu1 %v253_v7, %s835_s17 }
  0x91   : > { %779 = vmatpush3.bf16.msra.mxu1 %v253_v7 }
  0x92   : > { %780 = vmatprep.subr.bf16.mxu1 %v255_v9 }
  0x94   : > { %446 = vrot.lane.b32.xlu0 %v251_v6, %s838_s28  ;;  %282 = vrot.lane.b32.xlu1 %v255_v9, %s835_s17 }
  0x95   : > { %781 = vmatpush3.bf16.msra.mxu1 %v255_v9 }
  0x98   : > { %450 = vrot.lane.b32.xlu0 %v255_v9, %s838_s28  ;;  %448 = vrot.lane.b32.xlu1 %v253_v7, %s838_s28 }
  0x99   : > { %783 = vmatmul.mubr.msk.bf16.vlgmr.msra.gmra.mrb[0].mxu1 %vm291_vm4, %v814_v10 }
  0xfe   : > { %v275_v13 = vpop.permute.xlu1 %274 }
  0xff   : > { %v285_v14 = vsel %vm284_vm5, %v273_v11, %v275_v13 }
 0x100   : > { %766 = vmatprep.subr.bf16.mxu0 %v285_v14 }
 0x101   : > { %767 = vmatpush3.bf16.msra.mxu0 %v285_v14 }
 0x102   : > { %v279_v15 = vpop.permute.xlu1 %278  ;;  %v281_v16 = vpop.permute.xlu0 %280 }
 0x103   : > { %v286_v17 = vsel %vm284_vm5, %v277_v12, %v279_v15 }
 0x104   : > { %768 = vmatprep.subr.bf16.mxu0 %v286_v17 }
 0x105   : > { %769 = vmatpush3.bf16.msra.mxu0 %v286_v17 }
 0x106   : > { %v283_v18 = vpop.permute.xlu1 %282  ;;  %v447_v21 = vpop.permute.xlu0 %446 }
 0x107   : > { %v287_v19 = vsel %vm284_vm5, %v281_v16, %v283_v18 }
 0x108   : > { %770 = vmatprep.subr.bf16.mxu0 %v287_v19 }
 0x109   : > { %771 = vmatpush3.bf16.msra.mxu0 %v287_v19 }
 0x10a   : > { %786 = vmatprep.subr.bf16.mxu0 %v447_v21  ;;  %v449_v23 = vpop.permute.xlu1 %448  ;;  %v451_v24 = vpop.permute.xlu0 %450 }
 0x10c   : > { %773 = vmatmul.mubr.msk.bf16.vlgmr.msra.gmra.mrb[0].mxu0 %vm291_vm4, %v812_v20 }
 0x10d   : > { %787 = vmatpush3.bf16.msra.mxu0 %v447_v21  ;;  %792 = vmatprep.mubr.msk.bf16.mxu0 %vm291_vm4, %v815_v22 }
 0x10e   : > { %788 = vmatprep.subr.bf16.mxu0 %v449_v23 }
 0x111   : > { %789 = vmatpush3.bf16.msra.mxu0 %v449_v23  ;;  %v604_v23 = vld [vmem:[%s951_s3 + $0x18] sm:$0xff] }
 0x112   : > { %790 = vmatprep.subr.bf16.mxu0 %v451_v24 }
 0x115   : > { %791 = vmatpush3.bf16.msra.mxu0 %v451_v24  ;;  %v573_v24 = vld [vmem:[%s950_s2] sm:$0xff] }
 0x118   : > { %793 = vmatmul.mubr.msk.bf16.vlgmr.msra.gmra.mrb[4].mxu0 %vm291_vm4, %v816_v25 }
 0x16c   : > { %v784_v26 = vpop.f32.mrb[0].mxu1 }
 0x16d   : > { %v412_v27 = vpop.f32.mrb[1].mxu1 }
 0x16e   : > { %v785_v28 = vpop.f32.mrb[2].mxu1 }
 0x16f   : > { %v415_v29 = vpop.f32.mrb[3].mxu1 }
 0x1df   : > { %v774_v33 = vpop.f32.mrb[0].mxu0 }
 0x1e0   : > { %v351_v34 = vsel %vm244_vm6, %v774_v33, 0.0  ;;  %v332_v35 = vpop.f32.mrb[1].mxu0 }
 0x1e1   : > { %v349_v36 = vsel %vm244_vm6, %v332_v35, 0.0  ;;  %v429_v37 = vadd.f32 %v784_v26, %v351_v34  ;;  %v775_v38 = vpop.f32.mrb[2].mxu0 }
 0x1e2   : > { %v352_v39 = vsel %vm244_vm6, %v775_v38, 0.0  ;;  %v427_v40 = vadd.f32 %v412_v27, %v349_v36  ;;  %v335_v41 = vpop.f32.mrb[3].mxu0 }
 0x1e3   : > { %v350_v42 = vsel %vm244_vm6, %v335_v41, 0.0  ;;  %v430_v43 = vadd.f32 %v785_v28, %v352_v39 }
 0x1e4   : > { %v428_v44 = vadd.f32 %v415_v29, %v350_v42 }
 0x1eb   : > { %v794_v45 = vpop.f32.mrb[4].mxu0 }
 0x1ec   : > { %v514_v46 = vsel %vm245_vm7, %v794_v45, 0.0  ;;  %v495_v47 = vpop.f32.mrb[5].mxu0 }
 0x1ed   : > { %v518_v48 = vadd.f32 %v514_v46, %v429_v37  ;;  %v512_v49 = vsel %vm245_vm7, %v495_v47, 0.0  ;;  %v795_v50 = vpop.f32.mrb[6].mxu0 }
 0x1ee   : > { %v516_v51 = vadd.f32 %v512_v49, %v427_v40  ;;  %v515_v52 = vsel %vm245_vm7, %v795_v50, 0.0  ;;  %v498_v53 = vpop.f32.mrb[7].mxu0 }
 0x1ef   : > { %v519_v54 = vadd.f32 %v515_v52, %v430_v43  ;;  %v513_v55 = vsel %vm245_vm7, %v498_v53, 0.0  ;;  %v526_v60 = vsel %vm203_vm0, %v518_v48, 0.0 }
 0x1f0   : > { %v517_v56 = vadd.f32 %v513_v55, %v428_v44  ;;  %v520_v57 = vsel %vm203_vm0, %v516_v51, 0.0 }
 0x1f1   : > { %521 = vadd.xlane.f32.xlu1 %v520_v57  ;;  %v529_v59 = vsel %vm203_vm0, %v519_v54, 0.0 }
 0x1f2   : > { %v523_v58 = vsel %vm203_vm0, %v517_v56, 0.0 }
 0x1f3   : > { %524 = vadd.xlane.f32.xlu0 %v523_v58 }
 0x1f5   : > { %530 = vadd.xlane.f32.xlu1 %v529_v59 }
 0x1f7   : > { %527 = vadd.xlane.f32.xlu0 %v526_v60 }
 0x206   : > { %584 = vperm.xlu1 %810, %v574_v61  }
 0x20a   : > { %589 = vperm.xlu1 %810, %v575_v62  }
 0x20e   : > { %594 = vperm.xlu1 %810, %v576_v63  }
 0x212   : > { %607 = vperm.xlu1 %810, %v601_v0  }
 0x216   : > { %612 = vperm.xlu1 %810, %v602_v1  }
 0x21a   : > { %617 = vperm.xlu1 %810, %v603_v2  }
 0x27e   : > { %v522_v3 = vpop.xlane.xlu1 %521 }
 0x27f   : > { %v533_v7 = vmul.f32 0.015625, %v522_v3 }
 0x280   : > { %v525_v4 = vpop.xlane.xlu0 %524 }
 0x281   : > { %v534_v5 = vmul.f32 0.015625, %v525_v4  ;;  %v537_v13 = vsub.f32 %v516_v51, %v533_v7 }
 0x282   : > { %v531_v6 = vpop.xlane.xlu1 %530 }
 0x283   : > { %v536_v8 = vmul.f32 0.015625, %v531_v6  ;;  %v538_v10 = vsub.f32 %v517_v56, %v534_v5  ;;  %v541_v20 = vmul.f32 %v537_v13, %v537_v13 }
 0x284   : > { %v528_v9 = vpop.xlane.xlu0 %527 }
 0x285   : > { %v540_v11 = vsub.f32 %v519_v54, %v536_v8  ;;  %v535_v12 = vmul.f32 0.015625, %v528_v9  ;;  %v542_v18 = vmul.f32 %v538_v10, %v538_v10  ;;  %v545_v22 = vsel %vm203_vm0, %v541_v20, 0.0 }
 0x286   : > { %v585_v25 = vpop.permute.xlu1 %584 }
 0x287   : > { %v539_v14 = vsub.f32 %v518_v48, %v535_v12  ;;  %v544_v15 = vmul.f32 %v540_v11, %v540_v11  ;;  %v548_v21 = vsel %vm203_vm0, %v542_v18, 0.0 }
 0x289   : > { %v554_v16 = vsel %vm203_vm0, %v544_v15, 0.0  ;;  %v543_v17 = vmul.f32 %v539_v14, %v539_v14 }
 0x28a   : > { %555 = vadd.xlane.f32.xlu1 %v554_v16  ;;  %v590_v26 = vpop.permute.xlu1 %589 }
 0x28b   : > { %v551_v19 = vsel %vm203_vm0, %v543_v17, 0.0 }
 0x28c   : > { %552 = vadd.xlane.f32.xlu0 %v551_v19 }
 0x28e   : > { %549 = vadd.xlane.f32.xlu1 %v548_v21  ;;  %v595_v27 = vpop.permute.xlu1 %594 }
 0x290   : > { %546 = vadd.xlane.f32.xlu0 %v545_v22 }
 0x292   : > { %v608_v28 = vpop.permute.xlu1 %607 }
 0x296   : > { %v613_v29 = vpop.permute.xlu1 %612 }
 0x29a   : > { %v618_v30 = vpop.permute.xlu1 %617 }
 0x29f   : > { %622 = vperm.xlu1 %810, %v604_v23  }
 0x2a6   : > { %579 = vperm.xlu0 %809, %v573_v24  }
 0x317   : > { %v556_v31 = vpop.xlane.xlu1 %555 }
 0x318   : > { %v560_v32 = vmul.f32 0.015625, %v556_v31 }
 0x319   : > { %v553_v33 = vpop.xlane.xlu0 %552 }
 0x31a   : > { %v564_v34 = vadd.f32 1e-05, %v560_v32  ;;  %v559_v35 = vmul.f32 0.015625, %v553_v33 }
 0x31b   : > { %v550_v36 = vpop.xlane.xlu1 %549 }
 0x31c   : > { %818 = vrsqrt.f32 %v564_v34  ;;  %v563_v37 = vadd.f32 1e-05, %v559_v35  ;;  %v558_v38 = vmul.f32 0.015625, %v550_v36 }
 0x31d   : > { %v547_v39 = vpop.xlane.xlu0 %546 }
 0x31e   : > { %820 = vrsqrt.f32 %v563_v37  ;;  %v562_v40 = vadd.f32 1e-05, %v558_v38  ;;  %v557_v41 = vmul.f32 0.015625, %v547_v39 }
 0x31f   : > { %v623_v49 = vpop.permute.xlu1 %622 }
 0x320   : > { %822 = vrsqrt.f32 %v562_v40  ;;  %v561_v42 = vadd.f32 1e-05, %v557_v41 }
 0x322   : > { %824 = vrsqrt.f32 %v561_v42 }
 0x325   : > { %v580_v54 = vpop.permute.xlu0 %579 }
 0x326   : > { %v819_v43 = vpop.eup %818 }
 0x327   : > { %v572_v44 = vmul.f32 %v819_v43, %v540_v11 }
 0x328   : > { %v821_v45 = vpop.eup %820 }
 0x329   : > { %v571_v46 = vmul.f32 %v821_v45, %v539_v14  ;;  %v600_v47 = vmul.f32 %v595_v27, %v572_v44 }
 0x32a   : > { %v823_v48 = vpop.eup %822 }
 0x32b   : > { %v599_v50 = vmul.f32 %v590_v26, %v571_v46  ;;  %v570_v51 = vmul.f32 %v823_v48, %v538_v10  ;;  %v628_v52 = vadd.f32 %v623_v49, %v600_v47 }
 0x32c   : > { %v825_v53 = vpop.eup %824 }
 0x32d   : > { %v627_v55 = vadd.f32 %v618_v30, %v599_v50  ;;  %v598_v56 = vmul.f32 %v585_v25, %v570_v51  ;;  %v632_v57 = vmax.f32 %v628_v52, 0.0  ;;  %v569_v58 = vmul.f32 %v825_v53, %v537_v13 }
 0x32f   : > { %v631_v59 = vmax.f32 %v627_v55, 0.0  ;;  %v626_v60 = vadd.f32 %v613_v29, %v598_v56  ;;  %v750_v61 = vpack.c.bf16 %v632_v57, %v632_v57  ;;  %v597_v62 = vmul.f32 %v580_v54, %v569_v58 }
 0x331   : > { %v749_v63 = vpack.c.bf16 %v631_v59, %v631_v59  ;;  %v630_v0 = vmax.f32 %v626_v60, 0.0  ;;  %653 = vst.msk [vmem:[%s197_s6 + $0xc] sm:$0xf] %vm649_vm8, %v750_v61  ;;  %v625_v1 = vadd.f32 %v608_v28, %v597_v62 }
 0x333   : > { %v748_v2 = vpack.c.bf16 %v630_v0, %v630_v0  ;;  %652 = vst.msk [vmem:[%s197_s6 + $0x8] sm:$0xf] %vm649_vm8, %v749_v63  ;;  %v629_v3 = vmax.f32 %v625_v1, 0.0 }
 0x335   : > { %651 = vst.msk [vmem:[%s197_s6 + $0x4] sm:$0xf] %vm649_vm8, %v748_v2  ;;  %v747_v4 = vpack.c.bf16 %v629_v3, %v629_v3 }
 0x337   : > { %650 = vst.msk [vmem:[%s197_s6] sm:$0xf] %vm649_vm8, %v747_v4 }
 0x338 PF: > { %s14_s15 = sadd.s32 1, %s832_s15  }
 0x339   : > { %p11_p4 = scmp.ge.s32.totalorder %s14_s15, 4  }
 0x33b   :  { %13 = sbr.rel (!%p11_p4) target bundleno = 1 (0x1), region = 68 }

// kernel: attention_forward.12
= control target key start
LH: loop header
LB: loop body
LE: loop exit
PB: predicated region body
PF: predicated region fallthrough
CT: control target
= control target key end

     0   :  { %s1291_s15 = smov 0   ;;  %s1601_s0 = inlined_call_operand.vmem [shape: bf16[2,32,16], index: 0, kind: input, shape index: {}]   ;;  %s1602_s1 = inlined_call_operand.vmem [shape: bf16[3,64,96], index: 1, kind: input, shape index: {}]   ;;  %s1603_s2 = inlined_call_operand.vmem [shape: f32[64,1], index: 2, kind: input, shape index: {}]   ;;  %s1604_s3 = inlined_call_operand.vmem [shape: f32[64,1], index: 3, kind: input, shape index: {}]   ;;  %s1605_s4 = inlined_call_operand.vmem [shape: bf16[2,64,16], index: 4, kind: output, shape index: {}]  }
   0x1 LB: > { %s1035_s16 = sadd.s32 4294967295, %s1259_s15   ;;  %p1039_p0 = scmp.ge.s32.totalorder %s1259_s15, 1  ;;  %s1259_s15 = sphi %s1291_s15, %s14_s15  }
   0x2   : > { %p162_p1 = scmp.lt.s32.totalorder %s1259_s15, 3 }
   0x4   : > { %p163_p2 = pnand %p1039_p0, %p162_p1 }
   0x5   : > { %p188_p3 = scmp.lt.s32.totalorder (!%p163_p2), %s1035_s16, 1  ;;  %vm205_vm0 = vcmask (!%p163_p2), 130048   ;;  %v1261_v0 = vmov (!%p163_p2), 0   ;;  %s1262_s21 = smov (!%p163_p2), 124   ;;  %vm251_vm1 = vcmask (!%p163_p2), 1048544   ;;  %vm253_vm2 = vcmask (!%p163_p2), 97280  }
   0x6   : > { %166 = sbr.rel (%p163_p2) target bundleno = 923 (0x39b), region = 36  ;;  %211 = vst [vmem:[#allocation2 + $0x38] sm:$0xff] (!%p163_p2), %v1261_v0  ;;  %204 = vst [vmem:[#allocation2 + $0x8] sm:$0xff] (!%p163_p2), %v1261_v0  ;;  %1221 = vset.pattern.permute.xlu1 (!%p163_p2), %v1261_v0  ;;  %1222 = vset.pattern.permute.xlu0 (!%p163_p2), %v1261_v0  ;;  %s1263_s22 = smov (!%p163_p2), 4   ;;  %vm238_vm3 = vcmask (!%p163_p2), 162848   ;;  %vm362_vm4 = vcmask (!%p163_p2), 785408   ;;  %v257_v59 = vlaneseq (!%p163_p2) }
   0x7   : > { %208 = vst [vmem:[#allocation2 + $0x20] sm:$0xff] (!%p163_p2), %v1261_v0  ;;  %214 = vst [vmem:[#allocation2 + $0x50] sm:$0xff] (!%p163_p2), %v1261_v0  ;;  %s1264_s23 = smov (!%p163_p2), 1   ;;  %v1224_v5 = vld [vmem:[%s1602_s1 + $0x20] sm:$0xff] (!%p163_p2)   ;;  %s1265_s26 = smov (!%p163_p2), 127   ;;  %v1225_v17 = vld [vmem:[%s1602_s1 + $0x28] sm:$0xff] (!%p163_p2)  }
   0x8   : > { %216 = vst [vmem:[#allocation2 + $0x60] sm:$0xff] (!%p163_p2), %v1261_v0  ;;  %217 = vst [vmem:[#allocation2 + $0x68] sm:$0xff] (!%p163_p2), %v1261_v0  ;;  %1168 = vmatprep.mubr.msk.bf16.mxu1 (!%p163_p2), %vm362_vm4, %v1224_v5  ;;  %v1226_v14 = vld [vmem:[%s1602_s1] sm:$0xff] (!%p163_p2)   ;;  %v1229_v18 = vld [vmem:[%s1602_s1 + $0x30] sm:$0xff] (!%p163_p2)   ;;  %vm349_vm5 = vcmask (!%p163_p2), 7168   ;;  %v258_v60 = vand.u32 (!%p163_p2), 127, %v257_v59 }
   0x9   : > { %219 = vst [vmem:[#allocation2 + $0x78] sm:$0xff] (!%p163_p2), %v1261_v0  ;;  %220 = vst [vmem:[#allocation2 + $0x80] sm:$0xff] (!%p163_p2), %v1261_v0  ;;  %1148 = vmatprep.mubr.msk.bf16.mxu0 (!%p163_p2), %vm362_vm4, %v1226_v14  ;;  %v1231_v19 = vld [vmem:[%s1602_s1 + $0x38] sm:$0xff] (!%p163_p2)   ;;  %v1232_v20 = vld [vmem:[%s1602_s1 + $0x50] sm:$0xff] (!%p163_p2)   ;;  %vm971_vm8 = vcmask (!%p163_p2), 125952  }
   0xa   : > { %v1227_v40 = vld [vmem:[%s1602_s1 + $0x8] sm:$0xff] (!%p163_p2)   ;;  %v1228_v42 = vld [vmem:[%s1602_s1 + $0x10] sm:$0xff] (!%p163_p2)   ;;  %v1230_v45 = vld [vmem:[%s1602_s1 + $0x18] sm:$0xff] (!%p163_p2)   ;;  %v263_v61 = vand.u32 (!%p163_p2), 3, %v258_v60 }
   0xb   : > { %v1234_v46 = vld [vmem:[%s1602_s1 + $0x40] sm:$0xff] (!%p163_p2)   ;;  %v1233_v49 = vld [vmem:[%s1602_s1 + $0x58] sm:$0xff] (!%p163_p2)   ;;  %v1235_v50 = vld [vmem:[%s1602_s1 + $0x48] sm:$0xff] (!%p163_p2)  }
   0xc   : > { %vm1373_vm6 = vcmp.ge.s32.totalorder (!%p163_p2), %v263_v61, 1  ;;  %vm1393_vm7 = vcmp.le.s32.totalorder (!%p163_p2), %v263_v61, 2  ;;  %v824_v59 = vld [vmem:[%s1603_s2 + $0x28] sm:$0xff] (!%p163_p2)  ;;  %v825_v60 = vld [vmem:[%s1603_s2 + $0x30] sm:$0xff] (!%p163_p2)  ;;  %v826_v62 = vld [vmem:[%s1603_s2 + $0x38] sm:$0xff] (!%p163_p2) }
   0xd   : > { %s1611_s16 = smov (!%p188_p3, %s1035_s16), 1  ;;  %v820_v61 = vld [vmem:[%s1603_s2 + $0x8] sm:$0xff] }
   0xe   : > { %s1096_s17 = sshll.u32 %s1611_s16, 4  ;;  %s1097_s7 = sshll.u32 %s1611_s16, 5 }
   0xf   : > { %s192_s20 = scalar_lea.vmem %s1601_s0, %s1096_s17  ;;  %s1565_s10 = scalar_lea.vmem %s1605_s4, %s1097_s7 }
  0x10   : > { %v199_v1 = vld [vmem:[%s192_s20] sm:$0xff]   ;;  %v1223_v2 = vld [vmem:[%s192_s20 + $0x8] sm:$0xff]  }
  0x11   : > { %245 = vrot.lane.b32.xlu1 %v199_v1, %s1262_s21  ;;  %243 = vst.msk [vmem:[#allocation2 + $0x38] sm:$0xff] %vm205_vm0, %v199_v1  ;;  %232 = vrot.lane.b32.xlu0 %v199_v1, %s1263_s22  ;;  %244 = vst.msk [vmem:[#allocation2 + $0x50] sm:$0xff] %vm205_vm0, %v1223_v2 }
  0x15   : > { %247 = vrot.lane.b32.xlu1 %v1223_v2, %s1262_s21  ;;  %234 = vrot.lane.b32.xlu0 %v1223_v2, %s1263_s22 }
  0x18   : > { %v286_v12 = vld [vmem:[#allocation2 + $0x38] sm:$0xff]  ;;  %v288_v13 = vld [vmem:[#allocation2 + $0x50] sm:$0xff] }
  0x19   : > { %325 = vrot.lane.b32.xlu0 %v1261_v0, %s1264_s23 }
  0x1d   : > { %329 = vrot.lane.b32.xlu0 %v1261_v0, %s1264_s23 }
  0x21   : > { %333 = vrot.lane.b32.xlu0 %v1261_v0, %s1264_s23 }
  0x25   : > { %337 = vrot.lane.b32.xlu0 %v1261_v0, %s1264_s23 }
  0x83   : > { %v246_v3 = vpop.permute.xlu1 %245  ;;  %v233_v4 = vpop.permute.xlu0 %232 }
  0x84   : > { %252 = vst.msk [vmem:[#allocation2 + $0x60] sm:$0xff] %vm251_vm1, %v246_v3 }
  0x85   : > { %254 = vst.msk [vmem:[#allocation2 + $0x68] sm:$0xff] %vm253_vm2, %v246_v3 }
  0x86   : > { %239 = vst.msk [vmem:[#allocation2 + $0x8] sm:$0xff] %vm238_vm3, %v233_v4 }
  0x87   : > { %v248_v6 = vpop.permute.xlu1 %247  ;;  %v235_v7 = vpop.permute.xlu0 %234 }
  0x88   : > { %255 = vst.msk [vmem:[#allocation2 + $0x78] sm:$0xff] %vm251_vm1, %v248_v6 }
  0x89   : > { %256 = vst.msk [vmem:[#allocation2 + $0x80] sm:$0xff] %vm253_vm2, %v248_v6 }
  0x8a   : > { %240 = vst.msk [vmem:[#allocation2 + $0x20] sm:$0xff] %vm238_vm3, %v235_v7 }
  0x8b   : > { %v289_v8 = vld [vmem:[#allocation2 + $0x60] sm:$0xff]  ;;  %v326_v21 = vpop.permute.xlu0 %325 }
  0x8c   : > { %341 = vrot.lane.b32.xlu0 %v289_v8, %s1264_s23  ;;  %v290_v15 = vld [vmem:[#allocation2 + $0x68] sm:$0xff] }
  0x8d   : > { %v282_v9 = vld [vmem:[#allocation2 + $0x8] sm:$0xff] }
  0x8e   : > { %327 = vrot.lane.b32.xlu1 %v282_v9, %s1264_s23  ;;  %1156 = vmatprep.subr.bf16.mxu1 %v282_v9 }
  0x8f   : > { %1157 = vmatpush3.bf16.msra.mxu1 %v282_v9  ;;  %v291_v10 = vld [vmem:[#allocation2 + $0x78] sm:$0xff]  ;;  %v330_v22 = vpop.permute.xlu0 %329 }
  0x90   : > { %345 = vrot.lane.b32.xlu0 %v291_v10, %s1264_s23  ;;  %v292_v16 = vld [vmem:[#allocation2 + $0x80] sm:$0xff] }
  0x91   : > { %v284_v11 = vld [vmem:[#allocation2 + $0x20] sm:$0xff] }
  0x92   : > { %331 = vrot.lane.b32.xlu1 %v284_v11, %s1264_s23  ;;  %1158 = vmatprep.subr.bf16.mxu1 %v284_v11 }
  0x93   : > { %1159 = vmatpush3.bf16.msra.mxu1 %v284_v11  ;;  %v334_v23 = vpop.permute.xlu0 %333 }
  0x94   : > { %1160 = vmatprep.subr.bf16.mxu1 %v286_v12  ;;  %601 = vrot.lane.b32.xlu0 %v282_v9, %s1265_s26 }
  0x96   : > { %335 = vrot.lane.b32.xlu1 %v286_v12, %s1264_s23 }
  0x97   : > { %1161 = vmatpush3.bf16.msra.mxu1 %v286_v12  ;;  %v338_v24 = vpop.permute.xlu0 %337 }
  0x98   : > { %1162 = vmatprep.subr.bf16.mxu1 %v288_v13  ;;  %605 = vrot.lane.b32.xlu0 %v286_v12, %s1265_s26 }
  0x9a   : > { %339 = vrot.lane.b32.xlu1 %v288_v13, %s1264_s23 }
  0x9b   : > { %1163 = vmatpush3.bf16.msra.mxu1 %v288_v13 }
  0x9c   : > { %1164 = vmatprep.subr.bf16.mxu1 %v290_v15  ;;  %609 = vrot.lane.b32.xlu0 %v290_v15, %s1265_s26 }
  0x9e   : > { %343 = vrot.lane.b32.xlu1 %v290_v15, %s1264_s23 }
  0x9f   : > { %1165 = vmatpush3.bf16.msra.mxu1 %v290_v15 }
  0xa0   : > { %1166 = vmatprep.subr.bf16.mxu1 %v292_v16 }
  0xa2   : > { %347 = vrot.lane.b32.xlu1 %v292_v16, %s1264_s23 }
  0xa3   : > { %1167 = vmatpush3.bf16.msra.mxu1 %v292_v16 }
  0xa6   : > { %603 = vrot.lane.b32.xlu1 %v284_v11, %s1265_s26  ;;  %1169 = vmatmul.mubr.msk.bf16.vlgmr.msra.gmra.mrb[0].mxu1 %vm362_vm4, %v1225_v17 }
  0xa7   : > { %1172 = vmatprep.mubr.msk.bf16.mxu1 %vm362_vm4, %v1229_v18 }
  0xaa   : > { %607 = vrot.lane.b32.xlu1 %v288_v13, %s1265_s26 }
  0xae   : > { %611 = vrot.lane.b32.xlu1 %v292_v16, %s1265_s26  ;;  %1173 = vmatmul.mubr.msk.bf16.gmra.mrb[4].mxu1 %vm362_vm4, %v1231_v19 }
  0xaf   : > { %1192 = vmatprep.mubr.msk.bf16.mxu1 %vm362_vm4, %v1232_v20 }
  0xfe   : > { %v342_v26 = vpop.permute.xlu0 %341 }
 0x100   : > { %v328_v25 = vpop.permute.xlu1 %327 }
 0x101   : > { %v350_v27 = vsel %vm349_vm5, %v326_v21, %v328_v25 }
 0x102   : > { %1136 = vmatprep.subr.bf16.mxu0 %v350_v27  ;;  %v346_v29 = vpop.permute.xlu0 %345 }
 0x103   : > { %1137 = vmatpush3.bf16.msra.mxu0 %v350_v27 }
 0x104   : > { %v332_v28 = vpop.permute.xlu1 %331 }
 0x105   : > { %v351_v30 = vsel %vm349_vm5, %v330_v22, %v332_v28 }
 0x106   : > { %1138 = vmatprep.subr.bf16.mxu0 %v351_v30  ;;  %v602_v31 = vpop.permute.xlu0 %601 }
 0x107   : > { %1139 = vmatpush3.bf16.msra.mxu0 %v351_v30  ;;  %1196 = vmatprep.subr.bf16.mxu1 %v602_v31 }
 0x108   : > { %v336_v32 = vpop.permute.xlu1 %335  ;;  %1202 = vmatpush3.bf16.msra.mxu1 %v602_v31 }
 0x109   : > { %v352_v33 = vsel %vm349_vm5, %v334_v23, %v336_v32 }
 0x10a   : > { %1140 = vmatprep.subr.bf16.mxu0 %v352_v33  ;;  %v606_v43 = vpop.permute.xlu0 %605 }
 0x10b   : > { %1141 = vmatpush3.bf16.msra.mxu0 %v352_v33 }
 0x10c   : > { %v340_v34 = vpop.permute.xlu1 %339 }
 0x10d   : > { %v353_v35 = vsel %vm349_vm5, %v338_v24, %v340_v34 }
 0x10e   : > { %1142 = vmatprep.subr.bf16.mxu0 %v353_v35  ;;  %v610_v47 = vpop.permute.xlu0 %609 }
 0x10f   : > { %1143 = vmatpush3.bf16.msra.mxu0 %v353_v35 }
 0x110   : > { %v344_v36 = vpop.permute.xlu1 %343 }
 0x111   : > { %v354_v37 = vsel %vm349_vm5, %v342_v26, %v344_v36 }
 0x112   : > { %1144 = vmatprep.subr.bf16.mxu0 %v354_v37 }
 0x113   : > { %1145 = vmatpush3.bf16.msra.mxu0 %v354_v37 }
 0x114   : > { %v348_v38 = vpop.permute.xlu1 %347 }
 0x115   : > { %v355_v39 = vsel %vm349_vm5, %v346_v29, %v348_v38 }
 0x116   : > { %1146 = vmatprep.subr.bf16.mxu0 %v355_v39 }
 0x117   : > { %1147 = vmatpush3.bf16.msra.mxu0 %v355_v39 }
 0x118   : > { %1176 = vmatprep.subr.bf16.mxu0 %v602_v31  ;;  %v604_v41 = vpop.permute.xlu1 %603 }
 0x119   : > { %1197 = vmatprep.subr.bf16.mxu1 %v604_v41 }
 0x11a   : > { %1149 = vmatmul.mubr.msk.bf16.vlgmr.msra.gmra.mrb[0].mxu0 %vm362_vm4, %v1227_v40  ;;  %1203 = vmatpush3.bf16.msra.mxu1 %v604_v41 }
 0x11b   : > { %1177 = vmatpush3.bf16.msra.mxu0 %v602_v31  ;;  %1198 = vmatprep.subr.bf16.mxu1 %v606_v43 }
 0x11c   : > { %1178 = vmatprep.subr.bf16.mxu0 %v604_v41  ;;  %1152 = vmatprep.mubr.msk.bf16.mxu0 %vm362_vm4, %v1228_v42  ;;  %v608_v44 = vpop.permute.xlu1 %607 }
 0x11e   : > { %1204 = vmatpush3.bf16.msra.mxu1 %v606_v43 }
 0x11f   : > { %1179 = vmatpush3.bf16.msra.mxu0 %v604_v41  ;;  %1199 = vmatprep.subr.bf16.mxu1 %v608_v44 }
 0x120   : > { %1180 = vmatprep.subr.bf16.mxu0 %v606_v43  ;;  %v612_v48 = vpop.permute.xlu1 %611 }
 0x122   : > { %1153 = vmatmul.mubr.msk.bf16.gmra.mrb[4].mxu0 %vm362_vm4, %v1230_v45  ;;  %1205 = vmatpush3.bf16.msra.mxu1 %v608_v44 }
 0x123   : > { %1181 = vmatpush3.bf16.msra.mxu0 %v606_v43  ;;  %1200 = vmatprep.subr.bf16.mxu1 %v610_v47 }
 0x124   : > { %1182 = vmatprep.subr.bf16.mxu0 %v608_v44  ;;  %1188 = vmatprep.mubr.msk.bf16.mxu0 %vm362_vm4, %v1234_v46 }
 0x126   : > { %1206 = vmatpush3.bf16.msra.mxu1 %v610_v47 }
 0x127   : > { %1183 = vmatpush3.bf16.msra.mxu0 %v608_v44  ;;  %1201 = vmatprep.subr.bf16.mxu1 %v612_v48 }
 0x128   : > { %1184 = vmatprep.subr.bf16.mxu0 %v610_v47 }
 0x12a   : > { %1207 = vmatpush3.bf16.msra.mxu1 %v612_v48 }
 0x12b   : > { %1185 = vmatpush3.bf16.msra.mxu0 %v610_v47 }
 0x12c   : > { %1186 = vmatprep.subr.bf16.mxu0 %v612_v48 }
 0x12d   : > { %1193 = vmatmul.mubr.msk.bf16.vlgmr.msra.gmra.mrb[8].mxu1 %vm362_vm4, %v1233_v49 }
 0x12f   : > { %1187 = vmatpush3.bf16.msra.mxu0 %v612_v48 }
 0x132   : > { %1189 = vmatmul.mubr.msk.bf16.vlgmr.msra.gmra.mrb[8].mxu0 %vm362_vm4, %v1235_v50 }
 0x179   : > { %v1170_v51 = vpop.f32.mrb[0].mxu1 }
 0x17a   : > { %v533_v52 = vpop.f32.mrb[1].mxu1 }
 0x17b   : > { %v1171_v53 = vpop.f32.mrb[2].mxu1 }
 0x17c   : > { %v536_v54 = vpop.f32.mrb[3].mxu1 }
 0x181   : > { %v1174_v55 = vpop.f32.mrb[4].mxu1 }
 0x182   : > { %v549_v56 = vpop.f32.mrb[5].mxu1 }
 0x183   : > { %v1175_v57 = vpop.f32.mrb[6].mxu1 }
 0x184   : > { %v552_v58 = vpop.f32.mrb[7].mxu1 }
 0x1ed   : > { %v1150_v63 = vpop.f32.mrb[0].mxu0 }
 0x1ee   : > { %v444_v0 = vsel %vm1373_vm6, %v1150_v63, 0.0  ;;  %v409_v1 = vpop.f32.mrb[1].mxu0  ;;  %v877_v63 = vld [vmem:[%s1604_s3 + $0x10] sm:$0xff] }
 0x1ef   : > { %v566_v2 = vadd.f32 %v1170_v51, %v444_v0  ;;  %v442_v3 = vsel %vm1373_vm6, %v409_v1, 0.0  ;;  %v1151_v4 = vpop.f32.mrb[2].mxu0  ;;  %v875_v0 = vld [vmem:[%s1604_s3] sm:$0xff] }
 0x1f0   : > { %v564_v5 = vadd.f32 %v533_v52, %v442_v3  ;;  %v445_v6 = vsel %vm1373_vm6, %v1151_v4, 0.0  ;;  %v412_v7 = vpop.f32.mrb[3].mxu0  ;;  %v879_v1 = vld [vmem:[%s1604_s3 + $0x20] sm:$0xff]  ;;  %v878_v4 = vld [vmem:[%s1604_s3 + $0x18] sm:$0xff] }
 0x1f1   : > { %v567_v8 = vadd.f32 %v1171_v53, %v445_v6  ;;  %v443_v9 = vsel %vm1373_vm6, %v412_v7, 0.0 }
 0x1f2   : > { %v565_v10 = vadd.f32 %v536_v54, %v443_v9 }
 0x1f5   : > { %v1154_v11 = vpop.f32.mrb[4].mxu0 }
 0x1f6   : > { %v448_v12 = vsel %vm1373_vm6, %v1154_v11, 0.0  ;;  %v425_v13 = vpop.f32.mrb[5].mxu0 }
 0x1f7   : > { %v570_v14 = vadd.f32 %v1174_v55, %v448_v12  ;;  %v446_v15 = vsel %vm1373_vm6, %v425_v13, 0.0  ;;  %v1155_v16 = vpop.f32.mrb[6].mxu0  ;;  %v819_v55 = vld [vmem:[%s1603_s2] sm:$0xff] }
 0x1f8   : > { %v568_v17 = vadd.f32 %v549_v56, %v446_v15  ;;  %v449_v18 = vsel %vm1373_vm6, %v1155_v16, 0.0  ;;  %v428_v19 = vpop.f32.mrb[7].mxu0  ;;  %v821_v56 = vld [vmem:[%s1603_s2 + $0x10] sm:$0xff] }
 0x1f9   : > { %v571_v20 = vadd.f32 %v1175_v57, %v449_v18  ;;  %v447_v21 = vsel %vm1373_vm6, %v428_v19, 0.0  ;;  %v822_v57 = vld [vmem:[%s1603_s2 + $0x18] sm:$0xff] }
 0x1fa   : > { %v569_v22 = vadd.f32 %v552_v58, %v447_v21  ;;  %v823_v58 = vld [vmem:[%s1603_s2 + $0x20] sm:$0xff] }
 0x200   : > { %v1194_v24 = vpop.f32.mrb[8].mxu1 }
 0x201   : > { %v704_v25 = vsel %vm1393_vm7, %v1194_v24, 0.0  ;;  %v681_v26 = vpop.f32.mrb[9].mxu1 }
 0x202   : > { %v1399_v27 = vadd.f32 %v704_v25, %v570_v14  ;;  %v702_v28 = vsel %vm1393_vm7, %v681_v26, 0.0  ;;  %v1195_v29 = vpop.f32.mrb[10].mxu1 }
 0x203   : > { %v1403_v30 = vadd.f32 %v702_v28, %v568_v17  ;;  %v705_v31 = vsel %vm1393_vm7, %v1195_v29, 0.0  ;;  %v684_v32 = vpop.f32.mrb[11].mxu1 }
 0x204   : > { %v1407_v33 = vadd.f32 %v705_v31, %v571_v20  ;;  %v703_v34 = vsel %vm1393_vm7, %v684_v32, 0.0  ;;  %v732_v35 = vsel %vm205_vm0, %v1399_v27, 0.0 }
 0x205   : > { %v1413_v36 = vadd.f32 %v703_v34, %v569_v22  ;;  %v1190_v37 = vpop.f32.mrb[8].mxu0  ;;  %733 = vadd.xlane.f32.xlu1 %v732_v35  ;;  %v726_v47 = vsel %vm205_vm0, %v1403_v30, 0.0 }
 0x206   : > { %v700_v38 = vsel %vm1393_vm7, %v1190_v37, 0.0  ;;  %v665_v39 = vpop.f32.mrb[9].mxu0  ;;  %v735_v54 = vsel %vm205_vm0, %v1407_v33, 0.0 }
 0x207   : > { %v1417_v40 = vadd.f32 %v700_v38, %v566_v2  ;;  %v698_v41 = vsel %vm1393_vm7, %v665_v39, 0.0  ;;  %v1191_v42 = vpop.f32.mrb[10].mxu0  ;;  %v729_v43 = vsel %vm205_vm0, %v1413_v36, 0.0  ;;  %v876_v2 = vld [vmem:[%s1604_s3 + $0x8] sm:$0xff] }
 0x208   : > { %v1423_v44 = vadd.f32 %v698_v41, %v564_v5  ;;  %v701_v45 = vsel %vm1393_vm7, %v1191_v42, 0.0  ;;  %v668_v46 = vpop.f32.mrb[11].mxu0  ;;  %730 = vadd.xlane.f32.xlu0 %v729_v43  ;;  %v880_v5 = vld [vmem:[%s1604_s3 + $0x28] sm:$0xff]  ;;  %v882_v41 = vld [vmem:[%s1604_s3 + $0x38] sm:$0xff] }
 0x209   : > { %v1429_v48 = vadd.f32 %v701_v45, %v567_v8  ;;  %v699_v49 = vsel %vm1393_vm7, %v668_v46, 0.0  ;;  %727 = vadd.xlane.f32.xlu1 %v726_v47  ;;  %v720_v51 = vsel %vm205_vm0, %v1417_v40, 0.0 }
 0x20a   : > { %v1433_v50 = vadd.f32 %v699_v49, %v565_v10  ;;  %v714_v52 = vsel %vm205_vm0, %v1423_v44, 0.0 }
 0x20b   : > { %v723_v53 = vsel %vm205_vm0, %v1429_v48, 0.0 }
 0x20c   : > { %721 = vadd.xlane.f32.xlu0 %v720_v51  ;;  %v717_v3 = vsel %vm205_vm0, %v1433_v50, 0.0 }
 0x210   : > { %715 = vadd.xlane.f32.xlu0 %v714_v52 }
 0x214   : > { %724 = vadd.xlane.f32.xlu0 %v723_v53 }
 0x218   : > { %736 = vadd.xlane.f32.xlu0 %v735_v54 }
 0x21a   : > { %829 = vperm.xlu1 %1221, %v819_v55  }
 0x21e   : > { %839 = vperm.xlu1 %1221, %v821_v56  }
 0x222   : > { %844 = vperm.xlu1 %1221, %v822_v57   ;;  %v881_v57 = vld [vmem:[%s1604_s3 + $0x30] sm:$0xff] }
 0x226   : > { %849 = vperm.xlu1 %1221, %v823_v58  }
 0x22a   : > { %854 = vperm.xlu1 %1221, %v824_v59  }
 0x22e   : > { %859 = vperm.xlu1 %1221, %v825_v60   ;;  %834 = vperm.xlu0 %1222, %v820_v61  }
 0x232   : > { %864 = vperm.xlu1 %1221, %v826_v62   ;;  %895 = vperm.xlu0 %1222, %v877_v63  }
 0x236   : > { %885 = vperm.xlu1 %1221, %v875_v0   ;;  %905 = vperm.xlu0 %1222, %v879_v1  }
 0x23a   : > { %890 = vperm.xlu1 %1221, %v876_v2  }
 0x25e   : > { %718 = vadd.xlane.f32.xlu1 %v717_v3 }
 0x26f   : > { %900 = vperm.xlu1 %1221, %v878_v4  }
 0x273   : > { %910 = vperm.xlu1 %1221, %v880_v5  }
 0x292   : > { %v734_v6 = vpop.xlane.xlu1 %733 }
 0x293   : > { %v745_v7 = vmul.f32 0.0625, %v734_v6 }
 0x295   : > { %v1488_v8 = vsub.f32 %v1399_v27, %v745_v7  ;;  %v731_v9 = vpop.xlane.xlu0 %730 }
 0x296   : > { %v728_v10 = vpop.xlane.xlu1 %727  ;;  %v744_v27 = vmul.f32 0.0625, %v731_v9 }
 0x297   : > { %v743_v11 = vmul.f32 0.0625, %v728_v10  ;;  %v761_v12 = vmul.f32 %v1488_v8, %v1488_v8 }
 0x298   : > { %v1512_v31 = vsub.f32 %v1413_v36, %v744_v27 }
 0x299   : > { %v1493_v13 = vsub.f32 %v1403_v30, %v743_v11  ;;  %v722_v14 = vpop.xlane.xlu0 %721  ;;  %v781_v15 = vsel %vm205_vm0, %v761_v12, 0.0 }
 0x29a   : > { %v741_v16 = vmul.f32 0.0625, %v722_v14  ;;  %782 = vadd.xlane.f32.xlu1 %v781_v15  ;;  %v760_v39 = vmul.f32 %v1512_v31, %v1512_v31  ;;  %v830_v42 = vpop.permute.xlu1 %829 }
 0x29b   : > { %v759_v17 = vmul.f32 %v1493_v13, %v1493_v13 }
 0x29c   : > { %v1499_v18 = vsub.f32 %v1417_v40, %v741_v16  ;;  %v778_v40 = vsel %vm205_vm0, %v760_v39, 0.0 }
 0x29d   : > { %v716_v19 = vpop.xlane.xlu0 %715  ;;  %v775_v20 = vsel %vm205_vm0, %v759_v17, 0.0 }
 0x29e   : > { %v739_v21 = vmul.f32 0.0625, %v716_v19  ;;  %776 = vadd.xlane.f32.xlu1 %v775_v20  ;;  %v757_v22 = vmul.f32 %v1499_v18, %v1499_v18  ;;  %v840_v43 = vpop.permute.xlu1 %839 }
 0x2a0   : > { %v1505_v23 = vsub.f32 %v1423_v44, %v739_v21  ;;  %v769_v24 = vsel %vm205_vm0, %v757_v22, 0.0 }
 0x2a1   : > { %v725_v25 = vpop.xlane.xlu0 %724 }
 0x2a2   : > { %770 = vadd.xlane.f32.xlu1 %v769_v24  ;;  %v755_v26 = vmul.f32 %v1505_v23, %v1505_v23  ;;  %v742_v32 = vmul.f32 0.0625, %v725_v25  ;;  %v1532_v44 = vpop.permute.xlu1 %844 }
 0x2a4   : > { %v763_v28 = vsel %vm205_vm0, %v755_v26, 0.0  ;;  %v1520_v37 = vsub.f32 %v1429_v48, %v742_v32 }
 0x2a5   : > { %v737_v29 = vpop.xlane.xlu0 %736 }
 0x2a6   : > { %v746_v30 = vmul.f32 0.0625, %v737_v29  ;;  %764 = vadd.xlane.f32.xlu1 %v763_v28  ;;  %v758_v36 = vmul.f32 %v1520_v37, %v1520_v37  ;;  %v850_v45 = vpop.permute.xlu1 %849 }
 0x2a8   : > { %v1515_v34 = vsub.f32 %v1407_v33, %v746_v30  ;;  %v772_v33 = vsel %vm205_vm0, %v758_v36, 0.0 }
 0x2aa   : > { %v762_v35 = vmul.f32 %v1515_v34, %v1515_v34  ;;  %v1534_v46 = vpop.permute.xlu1 %854 }
 0x2ac   : > { %v784_v38 = vsel %vm205_vm0, %v762_v35, 0.0 }
 0x2ad   : > { %785 = vadd.xlane.f32.xlu0 %v784_v38  ;;  %v1557_v61 = vpop.permute.xlu0 %834 }
 0x2ae   : > { %v1536_v47 = vpop.permute.xlu1 %859 }
 0x2b1   : > { %779 = vadd.xlane.f32.xlu0 %v778_v40  ;;  %v896_v0 = vpop.permute.xlu0 %895 }
 0x2b2   : > { %v1538_v48 = vpop.permute.xlu1 %864 }
 0x2b5   : > { %773 = vadd.xlane.f32.xlu0 %v772_v33  ;;  %v906_v6 = vpop.permute.xlu0 %905 }
 0x2b6   : > { %v886_v49 = vpop.permute.xlu1 %885 }
 0x2b7   : > { %920 = vperm.xlu1 %1221, %v882_v41  }
 0x2ba   : > { %v1540_v51 = vpop.permute.xlu1 %890 }
 0x2eb   : > { %v719_v52 = vpop.xlane.xlu1 %718 }
 0x2ec   : > { %v740_v53 = vmul.f32 0.0625, %v719_v52 }
 0x2ee   : > { %v1543_v54 = vsub.f32 %v1433_v50, %v740_v53 }
 0x2ef   : > { %v1551_v58 = vpop.permute.xlu1 %900 }
 0x2f0   : > { %v756_v55 = vmul.f32 %v1543_v54, %v1543_v54 }
 0x2f2   : > { %v766_v56 = vsel %vm205_vm0, %v756_v55, 0.0 }
 0x2f3   : > { %767 = vadd.xlane.f32.xlu0 %v766_v56  ;;  %v1553_v59 = vpop.permute.xlu1 %910 }
 0x309   : > { %915 = vperm.xlu0 %1222, %v881_v57  }
 0x327   : > { %v1555_v60 = vpop.xlane.xlu1 %782 }
 0x32b   : > { %v777_v50 = vpop.xlane.xlu1 %776 }
 0x32c   : > { %v791_v62 = vmul.f32 0.0625, %v777_v50 }
 0x32e   : > { %v799_v63 = vadd.f32 1e-05, %v791_v62 }
 0x32f   : > { %v771_v1 = vpop.xlane.xlu1 %770 }
 0x330   : > { %1237 = vrsqrt.f32 %v799_v63  ;;  %v789_v2 = vmul.f32 0.0625, %v771_v1 }
 0x332   : > { %v797_v3 = vadd.f32 1e-05, %v789_v2 }
 0x333   : > { %v765_v4 = vpop.xlane.xlu1 %764 }
 0x334   : > { %1239 = vrsqrt.f32 %v797_v3  ;;  %v787_v5 = vmul.f32 0.0625, %v765_v4 }
 0x336   : > { %v795_v7 = vadd.f32 1e-05, %v787_v5 }
 0x338   : > { %1241 = vrsqrt.f32 %v795_v7 }
 0x33a   : > { %v1238_v9 = vpop.eup %1237  ;;  %v786_v10 = vpop.xlane.xlu0 %785 }
 0x33b   : > { %v815_v11 = vmul.f32 %v1238_v9, %v1493_v13  ;;  %v794_v12 = vmul.f32 0.0625, %v786_v10 }
 0x33d   : > { %v871_v14 = vmul.f32 %v850_v45, %v815_v11  ;;  %v802_v15 = vadd.f32 1e-05, %v794_v12 }
 0x33e   : > { %v1240_v16 = vpop.eup %1239  ;;  %v780_v17 = vpop.xlane.xlu0 %779 }
 0x33f   : > { %v813_v19 = vmul.f32 %v1240_v16, %v1499_v18  ;;  %v927_v20 = vadd.f32 %v906_v6, %v871_v14  ;;  %1243 = vrsqrt.f32 %v802_v15  ;;  %v792_v21 = vmul.f32 0.0625, %v780_v17 }
 0x341   : > { %v869_v22 = vmul.f32 %v840_v43, %v813_v19  ;;  %v935_v24 = vmax.f32 %v927_v20, 0.0  ;;  %v800_v25 = vadd.f32 1e-05, %v792_v21 }
 0x342   : > { %v1242_v26 = vpop.eup %1241  ;;  %v774_v13 = vpop.xlane.xlu0 %773 }
 0x343   : > { %v925_v27 = vadd.f32 %v896_v0, %v869_v22  ;;  %v811_v28 = vmul.f32 %v1242_v26, %v1505_v23  ;;  %v1102_v18 = vpack.c.bf16 %v935_v24, %v935_v24  ;;  %1245 = vrsqrt.f32 %v800_v25 }
 0x344   : > { %v790_v29 = vmul.f32 0.0625, %v774_v13 }
 0x345   : > { %v933_v30 = vmax.f32 %v925_v27, 0.0  ;;  %v867_v32 = vmul.f32 %v830_v42, %v811_v28  ;;  %976 = vst.msk [vmem:[%s1565_s10 + $0x10] sm:$0xf] %vm971_vm8, %v1102_v18  ;;  %v921_v42 = vpop.permute.xlu1 %920 }
 0x346   : > { %v798_v35 = vadd.f32 1e-05, %v790_v29 }
 0x347   : > { %v1100_v38 = vpack.c.bf16 %v933_v30, %v933_v30  ;;  %v923_v39 = vadd.f32 %v886_v49, %v867_v32 }
 0x348   : > { %1247 = vrsqrt.f32 %v798_v35 }
 0x349   : > { %v1244_v40 = vpop.eup %1243  ;;  %974 = vst.msk [vmem:[%s1565_s10 + $0x8] sm:$0xf] %vm971_vm8, %v1100_v38  ;;  %v931_v36 = vmax.f32 %v923_v39, 0.0 }
 0x34a   : > { %v818_v33 = vmul.f32 %v1244_v40, %v1515_v34 }
 0x34b   : > { %v1098_v23 = vpack.c.bf16 %v931_v36, %v931_v36 }
 0x34c   : > { %v874_v41 = vmul.f32 %v1538_v48, %v818_v33 }
 0x34d   : > { %v1246_v43 = vpop.eup %1245  ;;  %972 = vst.msk [vmem:[%s1565_s10] sm:$0xf] %vm971_vm8, %v1098_v23 }
 0x34e   : > { %v930_v45 = vadd.f32 %v921_v42, %v874_v41  ;;  %v816_v49 = vmul.f32 %v1246_v43, %v1512_v31 }
 0x350   : > { %v938_v52 = vmax.f32 %v930_v45, 0.0  ;;  %v872_v53 = vmul.f32 %v1534_v46, %v816_v49  ;;  %v793_v46 = vmul.f32 0.0625, %v1555_v60 }
 0x352   : > { %v1248_v55 = vpop.eup %1247  ;;  %v1105_v56 = vpack.c.bf16 %v938_v52, %v938_v52  ;;  %v928_v57 = vadd.f32 %v1553_v59, %v872_v53  ;;  %v801_v59 = vadd.f32 1e-05, %v793_v46 }
 0x353   : > { %v814_v34 = vmul.f32 %v1248_v55, %v1520_v37 }
 0x354   : > { %979 = vst.msk [vmem:[%s1565_s10 + $0x1c] sm:$0xf] %vm971_vm8, %v1105_v56  ;;  %v936_v48 = vmax.f32 %v928_v57, 0.0  ;;  %1249 = vrsqrt.f32 %v801_v59 }
 0x355   : > { %v870_v50 = vmul.f32 %v1532_v44, %v814_v34 }
 0x356   : > { %v1103_v62 = vpack.c.bf16 %v936_v48, %v936_v48 }
 0x357   : > { %v926_v63 = vadd.f32 %v1551_v58, %v870_v50 }
 0x358   : > { %977 = vst.msk [vmem:[%s1565_s10 + $0x14] sm:$0xf] %vm971_vm8, %v1103_v62 }
 0x359   : > { %v934_v31 = vmax.f32 %v926_v63, 0.0 }
 0x35b   : > { %v1101_v0 = vpack.c.bf16 %v934_v31, %v934_v31 }
 0x35d   : > { %975 = vst.msk [vmem:[%s1565_s10 + $0xc] sm:$0xf] %vm971_vm8, %v1101_v0 }
 0x35e   : > { %v1250_v37 = vpop.eup %1249 }
 0x35f   : > { %v817_v44 = vmul.f32 %v1250_v37, %v1488_v8 }
 0x361   : > { %v873_v58 = vmul.f32 %v1536_v47, %v817_v44 }
 0x380   : > { %v768_v1 = vpop.xlane.xlu0 %767 }
 0x381   : > { %v788_v2 = vmul.f32 0.0625, %v768_v1 }
 0x383   : > { %v796_v3 = vadd.f32 1e-05, %v788_v2 }
 0x385   : > { %1251 = vrsqrt.f32 %v796_v3 }
 0x388   : > { %v916_v4 = vpop.permute.xlu0 %915 }
 0x389   : > { %v929_v5 = vadd.f32 %v916_v4, %v873_v58 }
 0x38b   : > { %v937_v6 = vmax.f32 %v929_v5, 0.0 }
 0x38d   : > { %v1104_v7 = vpack.c.bf16 %v937_v6, %v937_v6 }
 0x38f   : > { %v1252_v9 = vpop.eup %1251  ;;  %978 = vst.msk [vmem:[%s1565_s10 + $0x18] sm:$0xf] %vm971_vm8, %v1104_v7 }
 0x390   : > { %v812_v60 = vmul.f32 %v1252_v9, %v1543_v54 }
 0x392   : > { %v868_v10 = vmul.f32 %v1557_v61, %v812_v60 }
 0x394   : > { %v924_v11 = vadd.f32 %v1540_v51, %v868_v10 }
 0x396   : > { %v932_v12 = vmax.f32 %v924_v11, 0.0 }
 0x398   : > { %v1099_v14 = vpack.c.bf16 %v932_v12, %v932_v12 }
 0x39a   : > { %973 = vst.msk [vmem:[%s1565_s10 + $0x4] sm:$0xf] %vm971_vm8, %v1099_v14 }
 0x39b PF: > { %s14_s15 = sadd.s32 1, %s1259_s15  }
 0x39c   : > { %p11_p4 = scmp.ge.s32.totalorder %s14_s15, 4  }
 0x39e   :  { %13 = sbr.rel (!%p11_p4) target bundleno = 1 (0x1), region = 68 }

// kernel: attention_forward.14
= control target key start
LH: loop header
LB: loop body
LE: loop exit
PB: predicated region body
PF: predicated region fallthrough
CT: control target
= control target key end

     0   :  { %s1814_s18 = smov 0   ;;  %s2267_s0 = inlined_call_operand.vmem [shape: bf16[2,64,16], index: 0, kind: input, shape index: {}]   ;;  %s2268_s1 = inlined_call_operand.vmem [shape: bf16[2,64,16], index: 1, kind: input, shape index: {}]   ;;  %s2269_s2 = inlined_call_operand.vmem [shape: bf16[3,32,384], index: 2, kind: input, shape index: {}]   ;;  %s2270_s3 = inlined_call_operand.vmem [shape: f32[32,1], index: 3, kind: input, shape index: {}]   ;;  %s2271_s4 = inlined_call_operand.vmem [shape: f32[32,1], index: 4, kind: input, shape index: {}]   ;;  %s2272_s5 = inlined_call_operand.vmem [shape: bf16[2,32,16], index: 5, kind: output, shape index: {}]  }
   0x1 LB: > { %s1436_s19 = sadd.s32 4294967295, %s1777_s18   ;;  %p1440_p0 = scmp.ge.s32.totalorder %s1777_s18, 1  ;;  %s1777_s18 = sphi %s1814_s18, %s15_s18  }
   0x2   : > { %p197_p1 = scmp.lt.s32.totalorder %s1777_s18, 3 }
   0x4   : > { %p198_p2 = pnand %p1440_p0, %p197_p1 }
   0x5   : > { %p1824_p3 = scmp.lt.s32.totalorder (!%p198_p2), %s1436_s19, 1  ;;  %vm264_vm0 = vcmask (!%p198_p2), 130048   ;;  %v1779_v0 = vmov (!%p198_p2), 0   ;;  %s1780_s28 = smov (!%p198_p2), 4   ;;  %vm367_vm1 = vcmask (!%p198_p2), 162848   ;;  %vm436_vm2 = vcmask (!%p198_p2), 1048544  }
   0x6   : > { %201 = sbr.rel (%p198_p2) target bundleno = 917 (0x395), region = 40  ;;  %288 = vst [vmem:[#allocation2 + $0xc8] sm:$0xff] (!%p198_p2), %v1779_v0  ;;  %263 = vst [vmem:[#allocation2 + $0x8] sm:$0xff] (!%p198_p2), %v1779_v0  ;;  %1729 = vset.pattern.permute.xlu1 (!%p198_p2), %v1779_v0  ;;  %1730 = vset.pattern.permute.xlu0 (!%p198_p2), %v1779_v0  ;;  %s1781_s29 = smov (!%p198_p2), 124   ;;  %vm438_vm3 = vcmask (!%p198_p2), 97280   ;;  %vm714_vm4 = vcmask (!%p198_p2), 7168  }
   0x7   : > { %267 = vst [vmem:[#allocation2 + $0x20] sm:$0xff] (!%p198_p2), %v1779_v0  ;;  %270 = vst [vmem:[#allocation2 + $0x38] sm:$0xff] (!%p198_p2), %v1779_v0  ;;  %s1782_s30 = smov (!%p198_p2), 1   ;;  %v1740_v51 = vld [vmem:[%s2269_s2 + $0x4] ss:$12 sps:$4 sm:$0xff] (!%p198_p2)   ;;  %s1783_s10 = smov (!%p198_p2), 127  }
   0x8   : > { %273 = vst [vmem:[#allocation2 + $0x50] sm:$0xff] (!%p198_p2), %v1779_v0  ;;  %276 = vst [vmem:[#allocation2 + $0x68] sm:$0xff] (!%p198_p2), %v1779_v0  ;;  %795 = vmatprep.mubr.bf16.mxu0 (!%p198_p2), %v1740_v51  ;;  %v1744_v59 = vld [vmem:[%s2269_s2 + $0x8] ss:$12 sps:$4 sm:$0xff] (!%p198_p2)   ;;  %vm1364_vm7 = vcmask (!%p198_p2), 125952  }
   0x9   : > { %279 = vst [vmem:[#allocation2 + $0x80] sm:$0xff] (!%p198_p2), %v1779_v0  ;;  %282 = vst [vmem:[#allocation2 + $0x98] sm:$0xff] (!%p198_p2), %v1779_v0  ;;  %1632 = vmatprep.mubr.bf16.mxu1 (!%p198_p2), %v1744_v59 }
   0xa   : > { %285 = vst [vmem:[#allocation2 + $0xb0] sm:$0xff] (!%p198_p2), %v1779_v0  ;;  %291 = vst [vmem:[#allocation2 + $0xe0] sm:$0xff] (!%p198_p2), %v1779_v0 }
   0xb   : > { %294 = vst [vmem:[#allocation2 + $0xf8] sm:$0xff] (!%p198_p2), %v1779_v0  ;;  %297 = vst [vmem:[#allocation2 + $0x110] sm:$0xff] (!%p198_p2), %v1779_v0 }
   0xc   : > { %300 = vst [vmem:[#allocation2 + $0x128] sm:$0xff] (!%p198_p2), %v1779_v0  ;;  %303 = vst [vmem:[#allocation2 + $0x140] sm:$0xff] (!%p198_p2), %v1779_v0 }
   0xd   : > { %306 = vst [vmem:[#allocation2 + $0x158] sm:$0xff] %v1779_v0  ;;  %309 = vst [vmem:[#allocation2 + $0x170] sm:$0xff] %v1779_v0  ;;  %s2279_s19 = smov (!%p1824_p3, %s1436_s19), 1 }
   0xe   : > { %311 = vst [vmem:[#allocation2 + $0x180] sm:$0xff] %v1779_v0  ;;  %312 = vst [vmem:[#allocation2 + $0x188] sm:$0xff] %v1779_v0  ;;  %s1495_s21 = sshll.u32 %s2279_s19, 5  ;;  %s1497_s13 = sshll.u32 %s2279_s19, 4 }
   0xf   : > { %314 = vst [vmem:[#allocation2 + $0x198] sm:$0xff] %v1779_v0  ;;  %315 = vst [vmem:[#allocation2 + $0x1a0] sm:$0xff] %v1779_v0  ;;  %s234_s24 = scalar_lea.vmem %s2267_s0, %s1495_s21  ;;  %s239_s27 = scalar_lea.vmem %s2268_s1, %s1495_s21 }
  0x10   : > { %317 = vst [vmem:[#allocation2 + $0x1b0] sm:$0xff] %v1779_v0  ;;  %318 = vst [vmem:[#allocation2 + $0x1b8] sm:$0xff] %v1779_v0  ;;  %v246_v1 = vld [vmem:[%s234_s24] sm:$0xff]   ;;  %v1731_v2 = vld [vmem:[%s234_s24 + $0x10] sm:$0xff]   ;;  %s244_s16 = scalar_lea.vmem %s2272_s5, %s1497_s13 }
  0x11   : > { %320 = vst [vmem:[#allocation2 + $0x1c8] sm:$0xff] %v1779_v0  ;;  %321 = vst [vmem:[#allocation2 + $0x1d0] sm:$0xff] %v1779_v0  ;;  %v1732_v3 = vld [vmem:[%s234_s24 + $0x8] sm:$0xff]   ;;  %355 = vrot.lane.b32.xlu0 %v246_v1, %s1780_s28  ;;  %359 = vrot.lane.b32.xlu1 %v1731_v2, %s1780_s28  ;;  %v1733_v4 = vld [vmem:[%s234_s24 + $0x18] sm:$0xff]  }
  0x12   : > { %323 = vst [vmem:[#allocation2 + $0x1e0] sm:$0xff] %v1779_v0  ;;  %324 = vst [vmem:[#allocation2 + $0x1e8] sm:$0xff] %v1779_v0  ;;  %v1734_v5 = vld [vmem:[%s239_s27] sm:$0xff]   ;;  %v1735_v6 = vld [vmem:[%s239_s27 + $0x8] sm:$0xff]  }
  0x13   : > { %326 = vst [vmem:[#allocation2 + $0x1f8] sm:$0xff] %v1779_v0  ;;  %327 = vst [vmem:[#allocation2 + $0x200] sm:$0xff] %v1779_v0  ;;  %v1736_v7 = vld [vmem:[%s239_s27 + $0x10] sm:$0xff]   ;;  %v1737_v8 = vld [vmem:[%s239_s27 + $0x18] sm:$0xff]  }
  0x14   : > { %329 = vst [vmem:[#allocation2 + $0x210] sm:$0xff] %v1779_v0  ;;  %330 = vst [vmem:[#allocation2 + $0x218] sm:$0xff] %v1779_v0 }
  0x15   : > { %332 = vst [vmem:[#allocation2 + $0x228] sm:$0xff] %v1779_v0  ;;  %333 = vst [vmem:[#allocation2 + $0x230] sm:$0xff] %v1779_v0  ;;  %357 = vrot.lane.b32.xlu0 %v1732_v3, %s1780_s28  ;;  %424 = vrot.lane.b32.xlu1 %v246_v1, %s1781_s29 }
  0x16   : > { %412 = vst.msk [vmem:[#allocation2 + $0xc8] sm:$0xff] %vm264_vm0, %v246_v1  ;;  %414 = vst.msk [vmem:[#allocation2 + $0xf8] sm:$0xff] %vm264_vm0, %v1731_v2 }
  0x17   : > { %413 = vst.msk [vmem:[#allocation2 + $0xe0] sm:$0xff] %vm264_vm0, %v1732_v3  ;;  %415 = vst.msk [vmem:[#allocation2 + $0x110] sm:$0xff] %vm264_vm0, %v1733_v4 }
  0x18   : > { %420 = vst.msk [vmem:[#allocation2 + $0x128] sm:$0xff] %vm264_vm0, %v1734_v5  ;;  %421 = vst.msk [vmem:[#allocation2 + $0x140] sm:$0xff] %vm264_vm0, %v1735_v6 }
  0x19   : > { %422 = vst.msk [vmem:[#allocation2 + $0x158] sm:$0xff] %vm264_vm0, %v1736_v7  ;;  %423 = vst.msk [vmem:[#allocation2 + $0x170] sm:$0xff] %vm264_vm0, %v1737_v8  ;;  %426 = vrot.lane.b32.xlu1 %v1732_v3, %s1781_s29  ;;  %361 = vrot.lane.b32.xlu0 %v1733_v4, %s1780_s28 }
  0x1d   : > { %392 = vrot.lane.b32.xlu0 %v1734_v5, %s1780_s28  ;;  %428 = vrot.lane.b32.xlu1 %v1731_v2, %s1781_s29  ;;  %v1883_v9 = vld [vmem:[#allocation2 + $0xc8] sm:$0xff]  ;;  %v1895_v11 = vld [vmem:[#allocation2 + $0xf8] sm:$0xff] }
  0x1e   : > { %v1889_v10 = vld [vmem:[#allocation2 + $0xe0] sm:$0xff]  ;;  %v1901_v12 = vld [vmem:[#allocation2 + $0x110] sm:$0xff] }
  0x1f   : > { %v1907_v13 = vld [vmem:[#allocation2 + $0x128] sm:$0xff]  ;;  %v1913_v14 = vld [vmem:[#allocation2 + $0x140] sm:$0xff] }
  0x20   : > { %v1919_v15 = vld [vmem:[#allocation2 + $0x158] sm:$0xff]  ;;  %v1925_v16 = vld [vmem:[#allocation2 + $0x170] sm:$0xff] }
  0x21   : > { %430 = vrot.lane.b32.xlu1 %v1733_v4, %s1781_s29  ;;  %394 = vrot.lane.b32.xlu0 %v1735_v6, %s1780_s28 }
  0x25   : > { %396 = vrot.lane.b32.xlu0 %v1736_v7, %s1780_s28  ;;  %446 = vrot.lane.b32.xlu1 %v1734_v5, %s1781_s29 }
  0x29   : > { %448 = vrot.lane.b32.xlu1 %v1735_v6, %s1781_s29  ;;  %398 = vrot.lane.b32.xlu0 %v1737_v8, %s1780_s28 }
  0x2d   : > { %450 = vrot.lane.b32.xlu0 %v1736_v7, %s1781_s29  ;;  %452 = vrot.lane.b32.xlu1 %v1737_v8, %s1781_s29 }
  0x31   : > { %1690 = vrot.lane.b32.xlu0 %v1779_v0, %s1782_s30  ;;  %652 = vrot.lane.b32.xlu1 %v1883_v9, %s1782_s30 }
  0x35   : > { %656 = vrot.lane.b32.xlu0 %v1889_v10, %s1782_s30  ;;  %1695 = vrot.lane.b32.xlu1 %v1779_v0, %s1782_s30 }
  0x39   : > { %1700 = vrot.lane.b32.xlu0 %v1779_v0, %s1782_s30  ;;  %660 = vrot.lane.b32.xlu1 %v1895_v11, %s1782_s30 }
  0x3d   : > { %664 = vrot.lane.b32.xlu0 %v1901_v12, %s1782_s30  ;;  %1705 = vrot.lane.b32.xlu1 %v1779_v0, %s1782_s30 }
  0x41   : > { %1710 = vrot.lane.b32.xlu0 %v1779_v0, %s1782_s30  ;;  %668 = vrot.lane.b32.xlu1 %v1907_v13, %s1782_s30 }
  0x45   : > { %672 = vrot.lane.b32.xlu0 %v1913_v14, %s1782_s30  ;;  %1715 = vrot.lane.b32.xlu1 %v1779_v0, %s1782_s30 }
  0x49   : > { %1720 = vrot.lane.b32.xlu0 %v1779_v0, %s1782_s30  ;;  %676 = vrot.lane.b32.xlu1 %v1919_v15, %s1782_s30 }
  0x4d   : > { %680 = vrot.lane.b32.xlu0 %v1925_v16, %s1782_s30  ;;  %1725 = vrot.lane.b32.xlu1 %v1779_v0, %s1782_s30 }
  0x83   : > { %v356_v17 = vpop.permute.xlu0 %355  ;;  %v360_v18 = vpop.permute.xlu1 %359 }
  0x84   : > { %368 = vst.msk [vmem:[#allocation2 + $0x8] sm:$0xff] %vm367_vm1, %v356_v17  ;;  %370 = vst.msk [vmem:[#allocation2 + $0x38] sm:$0xff] %vm367_vm1, %v360_v18 }
  0x87   : > { %v358_v19 = vpop.permute.xlu0 %357  ;;  %v425_v20 = vpop.permute.xlu1 %424 }
  0x88   : > { %369 = vst.msk [vmem:[#allocation2 + $0x20] sm:$0xff] %vm367_vm1, %v358_v19 }
  0x89   : > { %437 = vst.msk [vmem:[#allocation2 + $0x180] sm:$0xff] %vm436_vm2, %v425_v20 }
  0x8a   : > { %439 = vst.msk [vmem:[#allocation2 + $0x188] sm:$0xff] %vm438_vm3, %v425_v20 }
  0x8b   : > { %v1936_v21 = vld [vmem:[#allocation2 + $0x8] sm:$0xff]  ;;  %v427_v22 = vpop.permute.xlu1 %426  ;;  %v362_v23 = vpop.permute.xlu0 %361  ;;  %v1943_v24 = vld [vmem:[#allocation2 + $0x38] sm:$0xff] }
  0x8c   : > { %620 = vrot.lane.b32.xlu0 %v1936_v21, %s1782_s30  ;;  %440 = vst.msk [vmem:[#allocation2 + $0x198] sm:$0xff] %vm436_vm2, %v427_v22 }
  0x8d   : > { %441 = vst.msk [vmem:[#allocation2 + $0x1a0] sm:$0xff] %vm438_vm3, %v427_v22 }
  0x8e   : > { %371 = vst.msk [vmem:[#allocation2 + $0x50] sm:$0xff] %vm367_vm1, %v362_v23 }
  0x8f   : > { %v1945_v25 = vld [vmem:[#allocation2 + $0x20] sm:$0xff]  ;;  %v393_v26 = vpop.permute.xlu0 %392  ;;  %v429_v27 = vpop.permute.xlu1 %428 }
  0x90   : > { %628 = vrot.lane.b32.xlu0 %v1943_v24, %s1782_s30  ;;  %624 = vrot.lane.b32.xlu1 %v1945_v25, %s1782_s30  ;;  %404 = vst.msk [vmem:[#allocation2 + $0x68] sm:$0xff] %vm367_vm1, %v393_v26  ;;  %v522_v29 = vld [vmem:[#allocation2 + $0x180] sm:$0xff] }
  0x91   : > { %442 = vst.msk [vmem:[#allocation2 + $0x1b0] sm:$0xff] %vm436_vm2, %v429_v27  ;;  %v1954_v28 = vld [vmem:[#allocation2 + $0x188] sm:$0xff] }
  0x92   : > { %443 = vst.msk [vmem:[#allocation2 + $0x1b8] sm:$0xff] %vm438_vm3, %v429_v27 }
  0x93   : > { %v431_v30 = vpop.permute.xlu1 %430  ;;  %v395_v31 = vpop.permute.xlu0 %394  ;;  %v524_v32 = vld [vmem:[#allocation2 + $0x198] sm:$0xff] }
  0x94   : > { %684 = vrot.lane.b32.xlu0 %v1954_v28, %s1782_s30  ;;  %682 = vrot.lane.b32.xlu1 %v522_v29, %s1782_s30  ;;  %444 = vst.msk [vmem:[#allocation2 + $0x1c8] sm:$0xff] %vm436_vm2, %v431_v30  ;;  %v1972_v37 = vld [vmem:[#allocation2 + $0x1a0] sm:$0xff] }
  0x95   : > { %445 = vst.msk [vmem:[#allocation2 + $0x1d0] sm:$0xff] %vm438_vm3, %v431_v30  ;;  %v1962_v33 = vld [vmem:[#allocation2 + $0x50] sm:$0xff] }
  0x96   : > { %405 = vst.msk [vmem:[#allocation2 + $0x80] sm:$0xff] %vm367_vm1, %v395_v31 }
  0x97   : > { %v397_v34 = vpop.permute.xlu0 %396  ;;  %v447_v35 = vpop.permute.xlu1 %446  ;;  %v1970_v36 = vld [vmem:[#allocation2 + $0x68] sm:$0xff] }
  0x98   : > { %686 = vrot.lane.b32.xlu0 %v524_v32, %s1782_s30  ;;  %632 = vrot.lane.b32.xlu1 %v1962_v33, %s1782_s30  ;;  %406 = vst.msk [vmem:[#allocation2 + $0x98] sm:$0xff] %vm367_vm1, %v397_v34  ;;  %v526_v41 = vld [vmem:[#allocation2 + $0x1b0] sm:$0xff] }
  0x99   : > { %458 = vst.msk [vmem:[#allocation2 + $0x1e0] sm:$0xff] %vm436_vm2, %v447_v35  ;;  %v1981_v40 = vld [vmem:[#allocation2 + $0x1b8] sm:$0xff] }
  0x9a   : > { %459 = vst.msk [vmem:[#allocation2 + $0x1e8] sm:$0xff] %vm438_vm3, %v447_v35 }
  0x9b   : > { %v449_v38 = vpop.permute.xlu1 %448  ;;  %v399_v39 = vpop.permute.xlu0 %398  ;;  %v528_v44 = vld [vmem:[#allocation2 + $0x1c8] sm:$0xff] }
  0x9c   : > { %636 = vrot.lane.b32.xlu0 %v1970_v36, %s1782_s30  ;;  %688 = vrot.lane.b32.xlu1 %v1972_v37, %s1782_s30  ;;  %460 = vst.msk [vmem:[#allocation2 + $0x1f8] sm:$0xff] %vm436_vm2, %v449_v38  ;;  %v2000_v49 = vld [vmem:[#allocation2 + $0x1d0] sm:$0xff] }
  0x9d   : > { %461 = vst.msk [vmem:[#allocation2 + $0x200] sm:$0xff] %vm438_vm3, %v449_v38  ;;  %v1990_v45 = vld [vmem:[#allocation2 + $0x80] sm:$0xff] }
  0x9e   : > { %407 = vst.msk [vmem:[#allocation2 + $0xb0] sm:$0xff] %vm367_vm1, %v399_v39 }
  0x9f   : > { %v451_v42 = vpop.permute.xlu0 %450  ;;  %v453_v43 = vpop.permute.xlu1 %452  ;;  %v1998_v48 = vld [vmem:[#allocation2 + $0x98] sm:$0xff] }
  0xa0   : > { %692 = vrot.lane.b32.xlu0 %v1981_v40, %s1782_s30  ;;  %690 = vrot.lane.b32.xlu1 %v526_v41, %s1782_s30  ;;  %462 = vst.msk [vmem:[#allocation2 + $0x210] sm:$0xff] %vm436_vm2, %v451_v42  ;;  %464 = vst.msk [vmem:[#allocation2 + $0x228] sm:$0xff] %vm436_vm2, %v453_v43  ;;  %v530_v54 = vld [vmem:[#allocation2 + $0x1e0] sm:$0xff] }
  0xa1   : > { %463 = vst.msk [vmem:[#allocation2 + $0x218] sm:$0xff] %vm438_vm3, %v451_v42  ;;  %465 = vst.msk [vmem:[#allocation2 + $0x230] sm:$0xff] %vm438_vm3, %v453_v43  ;;  %v2010_v53 = vld [vmem:[#allocation2 + $0x1e8] sm:$0xff] }
  0xa3   : > { %v1992_v46 = vpop.permute.xlu0 %1690  ;;  %v653_v50 = vpop.permute.xlu1 %652  ;;  %v532_v55 = vld [vmem:[#allocation2 + $0x1f8] sm:$0xff] }
  0xa4   : > { %694 = vrot.lane.b32.xlu0 %v528_v44, %s1782_s30  ;;  %640 = vrot.lane.b32.xlu1 %v1990_v45, %s1782_s30  ;;  %v1692_v47 = vunpack.i.l.bf16 %v1992_v46  ;;  %v2020_v58 = vld [vmem:[#allocation2 + $0x200] sm:$0xff]  ;;  %v1693_v22 = vunpack.i.h.bf16 %v1992_v46 }
  0xa5   : > { %v2015_v56 = vld [vmem:[#allocation2 + $0xb0] sm:$0xff] }
  0xa6   : > { %v723_v52 = vsel %vm714_vm4, %v1692_v47, %v653_v50 }
  0xa7   : > { %1502 = vmatprep.subr.bf16.mxu0 %v723_v52  ;;  %v534_v57 = vld [vmem:[#allocation2 + $0x210] sm:$0xff]  ;;  %v536_v60 = vld [vmem:[#allocation2 + $0x228] sm:$0xff]  ;;  %v657_v63 = vpop.permute.xlu0 %656  ;;  %v1696_v0 = vpop.permute.xlu1 %1695 }
  0xa8   : > { %644 = vrot.lane.b32.xlu0 %v1998_v48, %s1782_s30  ;;  %696 = vrot.lane.b32.xlu1 %v2000_v49, %s1782_s30  ;;  %v2028_v61 = vld [vmem:[#allocation2 + $0x218] sm:$0xff]  ;;  %v2033_v62 = vld [vmem:[#allocation2 + $0x230] sm:$0xff]  ;;  %v1697_v20 = vunpack.i.l.bf16 %v1696_v0  ;;  %v1698_v31 = vunpack.i.h.bf16 %v1696_v0 }
  0xaa   : > { %v724_v30 = vsel %vm714_vm4, %v1697_v20, %v657_v63 }
  0xab   : > { %v1701_v1 = vpop.permute.xlu0 %1700  ;;  %v661_v2 = vpop.permute.xlu1 %660 }
  0xac   : > { %700 = vrot.lane.b32.xlu0 %v2010_v53, %s1782_s30  ;;  %698 = vrot.lane.b32.xlu1 %v530_v54, %s1782_s30  ;;  %v1702_v29 = vunpack.i.l.bf16 %v1701_v1  ;;  %v1703_v41 = vunpack.i.h.bf16 %v1701_v1 }
  0xae   : > { %v725_v39 = vsel %vm714_vm4, %v1702_v29, %v661_v2 }
  0xaf   : > { %v665_v3 = vpop.permute.xlu0 %664  ;;  %v1706_v4 = vpop.permute.xlu1 %1705 }
  0xb0   : > { %702 = vrot.lane.b32.xlu0 %v532_v55, %s1782_s30  ;;  %648 = vrot.lane.b32.xlu1 %v2015_v56, %s1782_s30  ;;  %v1707_v38 = vunpack.i.l.bf16 %v1706_v4  ;;  %v1708_v51 = vunpack.i.h.bf16 %v1706_v4 }
  0xb2   : > { %v726_v50 = vsel %vm714_vm4, %v1707_v38, %v665_v3 }
  0xb3   : > { %v1711_v5 = vpop.permute.xlu0 %1710  ;;  %v669_v6 = vpop.permute.xlu1 %668 }
  0xb4   : > { %706 = vrot.lane.b32.xlu0 %v534_v57, %s1782_s30  ;;  %704 = vrot.lane.b32.xlu1 %v2020_v58, %s1782_s30  ;;  %v1712_v47 = vunpack.i.l.bf16 %v1711_v5 }
  0xb6   : > { %v727_v59 = vsel %vm714_vm4, %v1712_v47, %v669_v6 }
  0xb7   : > { %v673_v7 = vpop.permute.xlu0 %672  ;;  %v1716_v8 = vpop.permute.xlu1 %1715 }
  0xb8   : > { %710 = vrot.lane.b32.xlu0 %v536_v60, %s1782_s30  ;;  %708 = vrot.lane.b32.xlu1 %v2028_v61, %s1782_s30  ;;  %v1717_v57 = vunpack.i.l.bf16 %v1716_v8  ;;  %v1713_v60 = vunpack.i.h.bf16 %v1711_v5  ;;  %v1718_v5 = vunpack.i.h.bf16 %v1716_v8 }
  0xba   : > { %v728_v3 = vsel %vm714_vm4, %v1717_v57, %v673_v7 }
  0xbb   : > { %v2085_v17 = vpop.permute.xlu0 %1720  ;;  %v677_v18 = vpop.permute.xlu1 %676 }
  0xbc   : > { %1071 = vrot.lane.b32.xlu0 %v1883_v9, %s1783_s10  ;;  %712 = vrot.lane.b32.xlu1 %v2033_v62, %s1782_s30  ;;  %v1722_v6 = vunpack.i.l.bf16 %v2085_v17 }
  0xbe   : > { %v729_v7 = vsel %vm714_vm4, %v1722_v6, %v677_v18 }
  0xbf   : > { %v2087_v19 = vpop.permute.xlu0 %680  ;;  %v2090_v23 = vpop.permute.xlu1 %1725 }
  0xc0   : > { %1073 = vrot.lane.b32.xlu0 %v1889_v10, %s1783_s10  ;;  %1077 = vrot.lane.b32.xlu1 %v1901_v12, %s1783_s10 }
  0xc4   : > { %1075 = vrot.lane.b32.xlu0 %v1895_v11, %s1783_s10  ;;  %1055 = vrot.lane.b32.xlu1 %v1936_v21, %s1783_s10 }
  0xc8   : > { %1079 = vrot.lane.b32.xlu0 %v1907_v13, %s1783_s10  ;;  %1057 = vrot.lane.b32.xlu1 %v1945_v25, %s1783_s10 }
  0xcc   : > { %1087 = vrot.lane.b32.xlu0 %v1954_v28, %s1783_s10  ;;  %1059 = vrot.lane.b32.xlu1 %v1943_v24, %s1783_s10 }
  0xd0   : > { %1061 = vrot.lane.b32.xlu0 %v1962_v33, %s1783_s10  ;;  %1089 = vrot.lane.b32.xlu1 %v1972_v37, %s1783_s10 }
  0xd4   : > { %1091 = vrot.lane.b32.xlu0 %v1981_v40, %s1783_s10  ;;  %1063 = vrot.lane.b32.xlu1 %v1970_v36, %s1783_s10 }
  0xd8   : > { %1065 = vrot.lane.b32.xlu0 %v1990_v45, %s1783_s10  ;;  %1081 = vrot.lane.b32.xlu1 %v1913_v14, %s1783_s10 }
  0xdc   : > { %1083 = vrot.lane.b32.xlu0 %v1919_v15, %s1783_s10  ;;  %1093 = vrot.lane.b32.xlu1 %v2000_v49, %s1783_s10 }
  0xe0   : > { %1095 = vrot.lane.b32.xlu0 %v2010_v53, %s1783_s10  ;;  %1067 = vrot.lane.b32.xlu1 %v1998_v48, %s1783_s10 }
  0xe4   : > { %1069 = vrot.lane.b32.xlu0 %v2015_v56, %s1783_s10  ;;  %1085 = vrot.lane.b32.xlu1 %v1925_v16, %s1783_s10 }
  0xe8   : > { %1099 = vrot.lane.b32.xlu0 %v2028_v61, %s1783_s10  ;;  %1097 = vrot.lane.b32.xlu1 %v2020_v58, %s1783_s10 }
  0xec   : > { %1101 = vrot.lane.b32.xlu1 %v2033_v62, %s1783_s10 }
  0xfe   : > { %v621_v26 = vpop.permute.xlu0 %620 }
  0xff   : > { %v715_v27 = vsel %vm714_vm4, %v1693_v22, %v621_v26 }
 0x100   : > { %1503 = vmatpush3.bf16.msra.mxu0 %v715_v27 }
 0x101   : > { %1504 = vmatprep.subr.bf16.mxu0 %v724_v30  ;;  %v1727_v30 = vunpack.i.l.bf16 %v2090_v23 }
 0x102   : > { %v629_v32 = vpop.permute.xlu0 %628  ;;  %v625_v34 = vpop.permute.xlu1 %624 }
 0x103   : > { %v716_v35 = vsel %vm714_vm4, %v1698_v31, %v625_v34  ;;  %v717_v44 = vsel %vm714_vm4, %v1703_v41, %v629_v32  ;;  %v1723_v31 = vunpack.i.h.bf16 %v2085_v17  ;;  %v730_v8 = vsel %vm714_vm4, %v1727_v30, %v2087_v19 }
 0x104   : > { %1505 = vmatpush3.bf16.msra.mxu0 %v716_v35  ;;  %v1728_v17 = vunpack.i.h.bf16 %v2090_v23 }
 0x105   : > { %1506 = vmatprep.subr.bf16.mxu0 %v725_v39 }
 0x106   : > { %v685_v42 = vpop.permute.xlu0 %684  ;;  %v683_v43 = vpop.permute.xlu1 %682 }
 0x107   : > { %v731_v46 = vsel %vm714_vm4, %v683_v43, %v685_v42 }
 0x108   : > { %1507 = vmatpush3.bf16.msra.mxu0 %v717_v44  ;;  %1616 = vmatprep.subr.bf16.mxu1 %v731_v46 }
 0x109   : > { %1508 = vmatprep.subr.bf16.mxu0 %v726_v50  ;;  %1617 = vmatpush3.bf16.msra.mxu1 %v731_v46  ;;  %v1738_v46 = vld [vmem:[%s2269_s2] ss:$12 sps:$4 sm:$0xff]   ;;  %v1741_v50 = vld [vmem:[%s2269_s2 + $0x1c] ss:$12 sps:$4 sm:$0xff]  }
 0x10a   : > { %v687_v52 = vpop.permute.xlu0 %686  ;;  %v633_v54 = vpop.permute.xlu1 %632 }
 0x10b   : > { %v718_v55 = vsel %vm714_vm4, %v1708_v51, %v633_v54  ;;  %v1743_v54 = vld [vmem:[%s2269_s2 + $0x18] ss:$12 sps:$4 sm:$0xff]  }
 0x10c   : > { %1509 = vmatpush3.bf16.msra.mxu0 %v718_v55 }
 0x10d   : > { %1510 = vmatprep.subr.bf16.mxu0 %v727_v59  ;;  %v1745_v59 = vld [vmem:[%s2269_s2 + $0x20] ss:$12 sps:$4 sm:$0xff]  }
 0x10e   : > { %v637_v63 = vpop.permute.xlu0 %636  ;;  %v689_v0 = vpop.permute.xlu1 %688 }
 0x10f   : > { %v719_v1 = vsel %vm714_vm4, %v1713_v60, %v637_v63  ;;  %v732_v2 = vsel %vm714_vm4, %v687_v52, %v689_v0  ;;  %v1752_v60 = vld [vmem:[%s2269_s2 + $0x38] ss:$12 sps:$4 sm:$0xff]  }
 0x110   : > { %1511 = vmatpush3.bf16.msra.mxu0 %v719_v1  ;;  %1618 = vmatprep.subr.bf16.mxu1 %v732_v2 }
 0x111   : > { %1512 = vmatprep.subr.bf16.mxu0 %v728_v3  ;;  %1619 = vmatpush3.bf16.msra.mxu1 %v732_v2 }
 0x112   : > { %v693_v4 = vpop.permute.xlu0 %692  ;;  %v691_v20 = vpop.permute.xlu1 %690 }
 0x113   : > { %v733_v22 = vsel %vm714_vm4, %v691_v20, %v693_v4  ;;  %v1754_v4 = vld [vmem:[%s2269_s2 + $0x60] ss:$12 sps:$4 sm:$0xff]   ;;  %v1757_v20 = vld [vmem:[%s2269_s2 + $0x7c] ss:$12 sps:$4 sm:$0xff]  }
 0x114   : > { %1620 = vmatprep.subr.bf16.mxu1 %v733_v22 }
 0x115   : > { %1621 = vmatpush3.bf16.msra.mxu1 %v733_v22 }
 0x116   : > { %v695_v26 = vpop.permute.xlu0 %694  ;;  %v641_v27 = vpop.permute.xlu1 %640 }
 0x117   : > { %v720_v29 = vsel %vm714_vm4, %v1718_v5, %v641_v27  ;;  %v1759_v5 = vld [vmem:[%s2269_s2 + $0x78] ss:$12 sps:$4 sm:$0xff]   ;;  %v1761_v27 = vld [vmem:[%s2269_s2 + $0x80] ss:$12 sps:$4 sm:$0xff]  }
 0x118   : > { %1513 = vmatpush3.bf16.msra.mxu0 %v720_v29 }
 0x119   : > { %1514 = vmatprep.subr.bf16.mxu0 %v729_v7 }
 0x11a   : > { %v645_v32 = vpop.permute.xlu0 %644  ;;  %v697_v34 = vpop.permute.xlu1 %696 }
 0x11b   : > { %v721_v35 = vsel %vm714_vm4, %v1723_v31, %v645_v32  ;;  %v734_v38 = vsel %vm714_vm4, %v695_v26, %v697_v34 }
 0x11c   : > { %1515 = vmatpush3.bf16.msra.mxu0 %v721_v35  ;;  %1622 = vmatprep.subr.bf16.mxu1 %v734_v38 }
 0x11d   : > { %1516 = vmatprep.subr.bf16.mxu0 %v730_v8  ;;  %1623 = vmatpush3.bf16.msra.mxu1 %v734_v38 }
 0x11e   : > { %v701_v39 = vpop.permute.xlu0 %700  ;;  %v699_v41 = vpop.permute.xlu1 %698 }
 0x11f   : > { %v735_v18 = vsel %vm714_vm4, %v699_v41, %v701_v39 }
 0x120   : > { %1624 = vmatprep.subr.bf16.mxu1 %v735_v18 }
 0x121   : > { %1625 = vmatpush3.bf16.msra.mxu1 %v735_v18 }
 0x122   : > { %v703_v42 = vpop.permute.xlu0 %702  ;;  %v649_v43 = vpop.permute.xlu1 %648 }
 0x123   : > { %v722_v44 = vsel %vm714_vm4, %v1728_v17, %v649_v43 }
 0x124   : > { %1517 = vmatpush3.bf16.msra.mxu0 %v722_v44 }
 0x125   : > { %1540 = vmatprep.subr.bf16.mxu0 %v1883_v9 }
 0x126   : > { %v707_v19 = vpop.permute.xlu0 %706  ;;  %v705_v47 = vpop.permute.xlu1 %704 }
 0x127   : > { %796 = vmatmul.mubr.bf16.vlgmr.msra.gmra.mrb[0].mxu0 %v1738_v46  ;;  %v736_v23 = vsel %vm714_vm4, %v703_v42, %v705_v47 }
 0x128   : > { %1626 = vmatprep.subr.bf16.mxu1 %v736_v23  ;;  %1541 = vmatpush3.bf16.msra.mxu0 %v1936_v21 }
 0x129   : > { %1627 = vmatpush3.bf16.msra.mxu1 %v736_v23  ;;  %1542 = vmatprep.subr.bf16.mxu0 %v1889_v10  ;;  %v1748_v10 = vld [vmem:[%s2269_s2 + $0x34] ss:$12 sps:$4 sm:$0xff]   ;;  %v466_v23 = vlaneseq }
 0x12a   : > { %v711_v51 = vpop.permute.xlu0 %710  ;;  %v709_v52 = vpop.permute.xlu1 %708  ;;  %803 = vmatprep.mubr.bf16.mxu0 %v1741_v50 }
 0x12b   : > { %v737_v9 = vsel %vm714_vm4, %v707_v19, %v709_v52 }
 0x12c   : > { %1628 = vmatprep.subr.bf16.mxu1 %v737_v9  ;;  %1543 = vmatpush3.bf16.msra.mxu0 %v1945_v25 }
 0x12d   : > { %1629 = vmatpush3.bf16.msra.mxu1 %v737_v9  ;;  %1544 = vmatprep.subr.bf16.mxu0 %v1895_v11 }
 0x12e   : > { %v1072_v55 = vpop.permute.xlu0 %1071  ;;  %v713_v21 = vpop.permute.xlu1 %712 }
 0x12f   : > { %v738_v57 = vsel %vm714_vm4, %v711_v51, %v713_v21  ;;  %804 = vmatmul.mubr.bf16.gmra.mrb[4].mxu0 %v1743_v54  ;;  %v467_v21 = vand.u32 127, %v466_v23 }
 0x130   : > { %1630 = vmatprep.subr.bf16.mxu1 %v738_v57  ;;  %1545 = vmatpush3.bf16.msra.mxu0 %v1943_v24 }
 0x131   : > { %1631 = vmatpush3.bf16.msra.mxu1 %v738_v57  ;;  %1546 = vmatprep.subr.bf16.mxu0 %v1901_v12  ;;  %v472_v57 = vand.u32 3, %v467_v21 }
 0x132   : > { %v1074_v11 = vpop.permute.xlu0 %1073  ;;  %1636 = vmatprep.subr.bf16.mxu1 %v1954_v28  ;;  %v1078_v25 = vpop.permute.xlu1 %1077  ;;  %944 = vmatprep.mubr.bf16.mxu0 %v1748_v10 }
 0x133   : > { %vm2200_vm5 = vcmp.ge.s32.totalorder %v472_v57, 1  ;;  %vm2212_vm6 = vcmp.le.s32.totalorder %v472_v57, 2 }
 0x134   : > { %1633 = vmatmul.mubr.bf16.vlgmr.msra.gmra.mrb[0].mxu1 %v1745_v59  ;;  %1547 = vmatpush3.bf16.msra.mxu0 %v1962_v33  ;;  %v1746_v33 = vld [vmem:[%s2269_s2 + $0x30] ss:$12 sps:$4 sm:$0xff]  }
 0x135   : > { %1637 = vmatpush3.bf16.msra.mxu1 %v1954_v28  ;;  %1548 = vmatprep.subr.bf16.mxu0 %v1907_v13 }
 0x136   : > { %v1076_v24 = vpop.permute.xlu0 %1075  ;;  %1638 = vmatprep.subr.bf16.mxu1 %v1972_v37  ;;  %v1056_v12 = vpop.permute.xlu1 %1055  ;;  %1652 = vmatprep.mubr.bf16.mxu1 %v1752_v60 }
 0x138   : > { %1549 = vmatpush3.bf16.msra.mxu0 %v1970_v36 }
 0x139   : > { %1639 = vmatpush3.bf16.msra.mxu1 %v1972_v37  ;;  %1550 = vmatprep.subr.bf16.mxu0 %v1913_v14 }
 0x13a   : > { %v1080_v63 = vpop.permute.xlu0 %1079  ;;  %1640 = vmatprep.subr.bf16.mxu1 %v1981_v40  ;;  %v1058_v0 = vpop.permute.xlu1 %1057 }
 0x13c   : > { %1551 = vmatpush3.bf16.msra.mxu0 %v1990_v45  ;;  %v1756_v45 = vld [vmem:[%s2269_s2 + $0x64] ss:$12 sps:$4 sm:$0xff]  }
 0x13d   : > { %1641 = vmatpush3.bf16.msra.mxu1 %v1981_v40  ;;  %1552 = vmatprep.subr.bf16.mxu0 %v1919_v15  ;;  %v1749_v15 = vld [vmem:[%s2269_s2 + $0x4c] ss:$12 sps:$4 sm:$0xff]   ;;  %v1751_v40 = vld [vmem:[%s2269_s2 + $0x48] ss:$12 sps:$4 sm:$0xff]  }
 0x13e   : > { %1642 = vmatprep.subr.bf16.mxu1 %v2000_v49  ;;  %v1060_v13 = vpop.permute.xlu1 %1059  ;;  %v1088_v28 = vpop.permute.xlu0 %1087 }
 0x140   : > { %1553 = vmatpush3.bf16.msra.mxu0 %v1998_v48 }
 0x141   : > { %1643 = vmatpush3.bf16.msra.mxu1 %v2000_v49  ;;  %1554 = vmatprep.subr.bf16.mxu0 %v1925_v16  ;;  %v1753_v49 = vld [vmem:[%s2269_s2 + $0x50] ss:$12 sps:$4 sm:$0xff]  }
 0x142   : > { %1644 = vmatprep.subr.bf16.mxu1 %v2010_v53  ;;  %v1090_v14 = vpop.permute.xlu1 %1089  ;;  %v1062_v36 = vpop.permute.xlu0 %1061 }
 0x144   : > { %1555 = vmatpush3.bf16.msra.mxu0 %v2015_v56  ;;  %v1760_v56 = vld [vmem:[%s2269_s2 + $0x68] ss:$12 sps:$4 sm:$0xff]  }
 0x145   : > { %1645 = vmatpush3.bf16.msra.mxu1 %v2010_v53  ;;  %1578 = vmatprep.subr.bf16.mxu0 %v1072_v55 }
 0x146   : > { %1646 = vmatprep.subr.bf16.mxu1 %v2020_v58  ;;  %v1064_v16 = vpop.permute.xlu1 %1063  ;;  %v1092_v37 = vpop.permute.xlu0 %1091 }
 0x147   : > { %945 = vmatmul.mubr.bf16.vlgmr.msra.gmra.mrb[8].mxu0 %v1746_v33 }
 0x148   : > { %1579 = vmatpush3.bf16.msra.mxu0 %v1056_v12  ;;  %952 = vmatprep.mubr.bf16.mxu0 %v1749_v15 }
 0x149   : > { %1647 = vmatpush3.bf16.msra.mxu1 %v2020_v58  ;;  %1580 = vmatprep.subr.bf16.mxu0 %v1074_v11 }
 0x14a   : > { %1648 = vmatprep.subr.bf16.mxu1 %v2028_v61  ;;  %v1082_v48 = vpop.permute.xlu1 %1081  ;;  %v1066_v53 = vpop.permute.xlu0 %1065 }
 0x14c   : > { %1581 = vmatpush3.bf16.msra.mxu0 %v1058_v0 }
 0x14d   : > { %1649 = vmatpush3.bf16.msra.mxu1 %v2028_v61  ;;  %1582 = vmatprep.subr.bf16.mxu0 %v1076_v24 }
 0x14e   : > { %1650 = vmatprep.subr.bf16.mxu1 %v2033_v62  ;;  %v1094_v58 = vpop.permute.xlu1 %1093  ;;  %v1084_v61 = vpop.permute.xlu0 %1083 }
 0x14f   : > { %953 = vmatmul.mubr.bf16.gmra.mrb[12].mxu0 %v1751_v40 }
 0x150   : > { %1583 = vmatpush3.bf16.msra.mxu0 %v1060_v13  ;;  %1159 = vmatprep.mubr.bf16.mxu0 %v1756_v45 }
 0x151   : > { %1651 = vmatpush3.bf16.msra.mxu1 %v2033_v62  ;;  %1584 = vmatprep.subr.bf16.mxu0 %v1078_v25 }
 0x152   : > { %1656 = vmatprep.subr.bf16.mxu1 %v1088_v28  ;;  %v1068_v1 = vpop.permute.xlu1 %1067  ;;  %v1096_v62 = vpop.permute.xlu0 %1095 }
 0x154   : > { %1653 = vmatmul.mubr.bf16.vlgmr.msra.gmra.mrb[4].mxu1 %v1753_v49  ;;  %1585 = vmatpush3.bf16.msra.mxu0 %v1062_v36 }
 0x155   : > { %1586 = vmatprep.subr.bf16.mxu0 %v1080_v63  ;;  %1657 = vmatpush3.bf16.msra.mxu1 %v1088_v28 }
 0x156   : > { %1658 = vmatprep.subr.bf16.mxu1 %v1090_v14  ;;  %1672 = vmatprep.mubr.bf16.mxu1 %v1760_v56  ;;  %v1086_v2 = vpop.permute.xlu1 %1085  ;;  %v1070_v3 = vpop.permute.xlu0 %1069 }
 0x158   : > { %1587 = vmatpush3.bf16.msra.mxu0 %v1064_v16 }
 0x159   : > { %1588 = vmatprep.subr.bf16.mxu0 %v1082_v48  ;;  %1659 = vmatpush3.bf16.msra.mxu1 %v1090_v14 }
 0x15a   : > { %1660 = vmatprep.subr.bf16.mxu1 %v1092_v37  ;;  %v1098_v22 = vpop.permute.xlu1 %1097  ;;  %v1100_v6 = vpop.permute.xlu0 %1099 }
 0x15c   : > { %1589 = vmatpush3.bf16.msra.mxu0 %v1066_v53 }
 0x15d   : > { %1661 = vmatpush3.bf16.msra.mxu1 %v1092_v37  ;;  %1590 = vmatprep.subr.bf16.mxu0 %v1084_v61 }
 0x15e   : > { %1662 = vmatprep.subr.bf16.mxu1 %v1094_v58  ;;  %v1102_v26 = vpop.permute.xlu1 %1101 }
 0x160   : > { %1591 = vmatpush3.bf16.msra.mxu0 %v1068_v1 }
 0x161   : > { %1663 = vmatpush3.bf16.msra.mxu1 %v1094_v58  ;;  %1592 = vmatprep.subr.bf16.mxu0 %v1086_v2 }
 0x162   : > { %1664 = vmatprep.subr.bf16.mxu1 %v1096_v62 }
 0x164   : > { %1593 = vmatpush3.bf16.msra.mxu0 %v1070_v3 }
 0x165   : > { %1665 = vmatpush3.bf16.msra.mxu1 %v1096_v62 }
 0x166   : > { %1666 = vmatprep.subr.bf16.mxu1 %v1098_v22 }
 0x167   : > { %1160 = vmatmul.mubr.bf16.vlgmr.msra.gmra.mrb[16].mxu0 %v1754_v4 }
 0x168   : > { %1167 = vmatprep.mubr.bf16.mxu0 %v1757_v20 }
 0x169   : > { %1667 = vmatpush3.bf16.msra.mxu1 %v1098_v22 }
 0x16a   : > { %1668 = vmatprep.subr.bf16.mxu1 %v1100_v6 }
 0x16d   : > { %1669 = vmatpush3.bf16.msra.mxu1 %v1100_v6 }
 0x16e   : > { %1670 = vmatprep.subr.bf16.mxu1 %v1102_v26 }
 0x16f   : > { %1168 = vmatmul.mubr.bf16.gmra.mrb[20].mxu0 %v1759_v5 }
 0x171   : > { %1671 = vmatpush3.bf16.msra.mxu1 %v1102_v26 }
 0x174   : > { %1673 = vmatmul.mubr.bf16.vlgmr.msra.gmra.mrb[8].mxu1 %v1761_v27 }
 0x1fa   : > { %v1518_v29 = vpop.f32.mrb[0].mxu0 }
 0x1fb   : > { %v1519_v30 = vpop.f32.mrb[1].mxu0 }
 0x1fc   : > { %v1520_v7 = vadd.f32 %v1519_v30, %v1518_v29  ;;  %v1521_v31 = vpop.f32.mrb[2].mxu0 }
 0x1fd   : > { %v1522_v32 = vpop.f32.mrb[3].mxu0 }
 0x1fe   : > { %v1523_v34 = vadd.f32 %v1522_v32, %v1521_v31 }
 0x202   : > { %v1524_v35 = vpop.f32.mrb[4].mxu0 }
 0x203   : > { %v1525_v38 = vpop.f32.mrb[5].mxu0 }
 0x204   : > { %v1526_v8 = vadd.f32 %v1525_v38, %v1524_v35  ;;  %v1527_v39 = vpop.f32.mrb[6].mxu0 }
 0x205   : > { %v1528_v41 = vpop.f32.mrb[7].mxu0 }
 0x206   : > { %v1529_v18 = vadd.f32 %v1528_v41, %v1527_v39 }
 0x207   : > { %v1634_v17 = vpop.f32.mrb[0].mxu1 }
 0x208   : > { %v855_v42 = vadd.f32 %v1634_v17, %v1526_v8  ;;  %v846_v43 = vpop.f32.mrb[1].mxu1 }
 0x209   : > { %v847_v44 = vadd.f32 %v1520_v7, %v846_v43  ;;  %v1635_v46 = vpop.f32.mrb[2].mxu1 }
 0x20a   : > { %v858_v19 = vadd.f32 %v1635_v46, %v1529_v18  ;;  %v849_v47 = vpop.f32.mrb[3].mxu1  ;;  %v865_v14 = vsel %vm2200_vm5, %v855_v42, 0.0 }
 0x20b   : > { %v850_v50 = vadd.f32 %v1523_v34, %v849_v47  ;;  %v863_v36 = vsel %vm2200_vm5, %v847_v44, 0.0 }
 0x20c   : > { %v866_v45 = vsel %vm2200_vm5, %v858_v19, 0.0 }
 0x20d   : > { %v864_v53 = vsel %vm2200_vm5, %v850_v50, 0.0 }
 0x21a   : > { %v1556_v51 = vpop.f32.mrb[8].mxu0 }
 0x21b   : > { %v1557_v52 = vpop.f32.mrb[9].mxu0 }
 0x21c   : > { %v1558_v9 = vadd.f32 %v1557_v52, %v1556_v51  ;;  %v1559_v54 = vpop.f32.mrb[10].mxu0  ;;  %v1288_v51 = vld [vmem:[%s2270_s3] sm:$0xff] }
 0x21d   : > { %v1560_v55 = vpop.f32.mrb[11].mxu0 }
 0x21e   : > { %v1561_v10 = vadd.f32 %v1560_v55, %v1559_v54 }
 0x222   : > { %v1562_v59 = vpop.f32.mrb[12].mxu0 }
 0x223   : > { %v1563_v11 = vpop.f32.mrb[13].mxu0 }
 0x224   : > { %v1564_v25 = vadd.f32 %v1563_v11, %v1562_v59  ;;  %v1565_v60 = vpop.f32.mrb[14].mxu0 }
 0x225   : > { %v1566_v24 = vpop.f32.mrb[15].mxu0 }
 0x226   : > { %v1567_v63 = vadd.f32 %v1566_v24, %v1565_v60 }
 0x227   : > { %v1654_v0 = vpop.f32.mrb[4].mxu1 }
 0x228   : > { %v1004_v13 = vadd.f32 %v1654_v0, %v1564_v25  ;;  %v995_v28 = vpop.f32.mrb[5].mxu1 }
 0x229   : > { %v996_v33 = vadd.f32 %v1558_v9, %v995_v28  ;;  %v1655_v15 = vpop.f32.mrb[6].mxu1 }
 0x22a   : > { %v1012_v16 = vadd.f32 %v1004_v13, %v865_v14  ;;  %v1007_v37 = vadd.f32 %v1655_v15, %v1567_v63  ;;  %v998_v40 = vpop.f32.mrb[7].mxu1 }
 0x22b   : > { %v1010_v48 = vadd.f32 %v996_v33, %v863_v36  ;;  %v999_v49 = vadd.f32 %v1561_v10, %v998_v40  ;;  %v1290_v36 = vld [vmem:[%s2270_s3 + $0x10] sm:$0xff]  ;;  %v1289_v40 = vld [vmem:[%s2270_s3 + $0x8] sm:$0xff] }
 0x22c   : > { %v1013_v56 = vadd.f32 %v1007_v37, %v866_v45  ;;  %v1316_v37 = vld [vmem:[%s2271_s4] sm:$0xff]  ;;  %v1317_v45 = vld [vmem:[%s2271_s4 + $0x8] sm:$0xff] }
 0x22d   : > { %v1011_v58 = vadd.f32 %v999_v49, %v864_v53  ;;  %v1319_v49 = vld [vmem:[%s2271_s4 + $0x18] sm:$0xff] }
 0x23a   : > { %v1594_v61 = vpop.f32.mrb[16].mxu0 }
 0x23b   : > { %v1595_v1 = vpop.f32.mrb[17].mxu0 }
 0x23c   : > { %v1596_v62 = vadd.f32 %v1595_v1, %v1594_v61  ;;  %v1597_v2 = vpop.f32.mrb[18].mxu0 }
 0x23d   : > { %v1598_v3 = vpop.f32.mrb[19].mxu0 }
 0x23e   : > { %v1599_v4 = vadd.f32 %v1598_v3, %v1597_v2 }
 0x242   : > { %v1600_v20 = vpop.f32.mrb[20].mxu0 }
 0x243   : > { %v1601_v22 = vpop.f32.mrb[21].mxu0 }
 0x244   : > { %v1602_v6 = vadd.f32 %v1601_v22, %v1600_v20  ;;  %v1603_v5 = vpop.f32.mrb[22].mxu0 }
 0x245   : > { %v1604_v26 = vpop.f32.mrb[23].mxu0 }
 0x246   : > { %v1605_v27 = vadd.f32 %v1604_v26, %v1603_v5 }
 0x247   : > { %v1674_v30 = vpop.f32.mrb[8].mxu1 }
 0x248   : > { %v1219_v7 = vadd.f32 %v1674_v30, %v1602_v6  ;;  %v1210_v31 = vpop.f32.mrb[9].mxu1 }
 0x249   : > { %v1211_v32 = vadd.f32 %v1596_v62, %v1210_v31  ;;  %v1675_v34 = vpop.f32.mrb[10].mxu1 }
 0x24a   : > { %v1229_v35 = vsel %vm2212_vm6, %v1219_v7, 0.0  ;;  %v1222_v38 = vadd.f32 %v1675_v34, %v1605_v27  ;;  %v1213_v8 = vpop.f32.mrb[11].mxu1 }
 0x24b   : > { %v1227_v39 = vsel %vm2212_vm6, %v1211_v32, 0.0  ;;  %v1214_v41 = vadd.f32 %v1599_v4, %v1213_v8  ;;  %v1233_v18 = vadd.f32 %v1229_v35, %v1012_v16  ;;  %v1291_v16 = vld [vmem:[%s2270_s3 + $0x18] sm:$0xff] }
 0x24c   : > { %v1230_v17 = vsel %vm2212_vm6, %v1222_v38, 0.0  ;;  %v1231_v42 = vadd.f32 %v1227_v39, %v1010_v48  ;;  %v1318_v48 = vld [vmem:[%s2271_s4 + $0x10] sm:$0xff] }
 0x24d   : > { %v1228_v43 = vsel %vm2212_vm6, %v1214_v41, 0.0  ;;  %v1234_v44 = vadd.f32 %v1230_v17, %v1013_v56  ;;  %v1241_v50 = vsel %vm264_vm0, %v1233_v18, 0.0 }
 0x24e   : > { %v1235_v46 = vsel %vm264_vm0, %v1231_v42, 0.0  ;;  %v1232_v19 = vadd.f32 %v1228_v43, %v1011_v58 }
 0x24f   : > { %1236 = vadd.xlane.f32.xlu0 %v1235_v46  ;;  %v1244_v23 = vsel %vm264_vm0, %v1234_v44, 0.0 }
 0x250   : > { %v1238_v47 = vsel %vm264_vm0, %v1232_v19, 0.0 }
 0x251   : > { %1239 = vadd.xlane.f32.xlu1 %v1238_v47 }
 0x253   : > { %1242 = vadd.xlane.f32.xlu0 %v1241_v50 }
 0x257   : > { %1245 = vadd.xlane.f32.xlu0 %v1244_v23 }
 0x262   : > { %1294 = vperm.xlu1 %1729, %v1288_v51  }
 0x2dc   : > { %v1237_v52 = vpop.xlane.xlu0 %1236 }
 0x2dd   : > { %v1248_v9 = vmul.f32 0.0625, %v1237_v52 }
 0x2de   : > { %v1240_v54 = vpop.xlane.xlu1 %1239 }
 0x2df   : > { %v1252_v55 = vsub.f32 %v1231_v42, %v1248_v9  ;;  %v1249_v21 = vmul.f32 0.0625, %v1240_v54 }
 0x2e0   : > { %v1243_v10 = vpop.xlane.xlu0 %1242 }
 0x2e1   : > { %v1253_v57 = vsub.f32 %v1232_v19, %v1249_v21  ;;  %v1250_v59 = vmul.f32 0.0625, %v1243_v10  ;;  %v1256_v11 = vmul.f32 %v1252_v55, %v1252_v55 }
 0x2e2   : > { %v1295_v53 = vpop.permute.xlu1 %1294 }
 0x2e3   : > { %v1254_v25 = vsub.f32 %v1233_v18, %v1250_v59  ;;  %v1260_v60 = vsel %vm264_vm0, %v1256_v11, 0.0  ;;  %v1257_v24 = vmul.f32 %v1253_v57, %v1253_v57 }
 0x2e4   : > { %1261 = vadd.xlane.f32.xlu1 %v1260_v60  ;;  %v1246_v12 = vpop.xlane.xlu0 %1245 }
 0x2e5   : > { %v1251_v63 = vmul.f32 0.0625, %v1246_v12  ;;  %v1263_v0 = vsel %vm264_vm0, %v1257_v24, 0.0  ;;  %v1258_v13 = vmul.f32 %v1254_v25, %v1254_v25 }
 0x2e6   : > { %1264 = vadd.xlane.f32.xlu0 %v1263_v0 }
 0x2e7   : > { %v1255_v28 = vsub.f32 %v1234_v44, %v1251_v63  ;;  %v1266_v14 = vsel %vm264_vm0, %v1258_v13, 0.0 }
 0x2e8   : > { %1267 = vadd.xlane.f32.xlu1 %v1266_v14 }
 0x2e9   : > { %v1259_v33 = vmul.f32 %v1255_v28, %v1255_v28 }
 0x2eb   : > { %v1269_v15 = vsel %vm264_vm0, %v1259_v33, 0.0 }
 0x2ec   : > { %1270 = vadd.xlane.f32.xlu0 %v1269_v15 }
 0x2f9   : > { %1304 = vperm.xlu1 %1729, %v1290_v36  }
 0x2fd   : > { %1309 = vperm.xlu1 %1729, %v1291_v16  }
 0x301   : > { %1322 = vperm.xlu1 %1729, %v1316_v37  }
 0x302   : > { %1299 = vperm.xlu0 %1730, %v1289_v40  }
 0x305   : > { %1327 = vperm.xlu1 %1729, %v1317_v45  }
 0x309   : > { %1332 = vperm.xlu1 %1729, %v1318_v48  }
 0x30d   : > { %1337 = vperm.xlu1 %1729, %v1319_v49  }
 0x371   : > { %v1262_v56 = vpop.xlane.xlu1 %1261 }
 0x372   : > { %v1272_v58 = vmul.f32 0.0625, %v1262_v56 }
 0x373   : > { %v1265_v61 = vpop.xlane.xlu0 %1264 }
 0x374   : > { %v1276_v1 = vadd.f32 1e-05, %v1272_v58  ;;  %v1273_v62 = vmul.f32 0.0625, %v1265_v61 }
 0x375   : > { %v1268_v2 = vpop.xlane.xlu1 %1267 }
 0x376   : > { %1763 = vrsqrt.f32 %v1276_v1  ;;  %v1277_v3 = vadd.f32 1e-05, %v1273_v62  ;;  %v1274_v4 = vmul.f32 0.0625, %v1268_v2 }
 0x378   : > { %1765 = vrsqrt.f32 %v1277_v3  ;;  %v1278_v20 = vadd.f32 1e-05, %v1274_v4 }
 0x379   : > { %v1305_v22 = vpop.permute.xlu1 %1304  ;;  %v1271_v6 = vpop.xlane.xlu0 %1270 }
 0x37a   : > { %1767 = vrsqrt.f32 %v1278_v20  ;;  %v1275_v5 = vmul.f32 0.0625, %v1271_v6 }
 0x37c   : > { %v1279_v26 = vadd.f32 1e-05, %v1275_v5 }
 0x37d   : > { %v1310_v27 = vpop.permute.xlu1 %1309 }
 0x37e   : > { %1769 = vrsqrt.f32 %v1279_v26 }
 0x380   : > { %v1764_v29 = vpop.eup %1763 }
 0x381   : > { %v1284_v30 = vmul.f32 %v1764_v29, %v1252_v55  ;;  %v1323_v7 = vpop.permute.xlu1 %1322  ;;  %v1300_v32 = vpop.permute.xlu0 %1299 }
 0x382   : > { %v1766_v31 = vpop.eup %1765 }
 0x383   : > { %v1312_v34 = vmul.f32 %v1295_v53, %v1284_v30  ;;  %v1285_v35 = vmul.f32 %v1766_v31, %v1253_v57 }
 0x384   : > { %v1768_v38 = vpop.eup %1767 }
 0x385   : > { %v1286_v8 = vmul.f32 %v1768_v38, %v1254_v25  ;;  %v1340_v39 = vadd.f32 %v1323_v7, %v1312_v34  ;;  %v1313_v41 = vmul.f32 %v1300_v32, %v1285_v35  ;;  %v1328_v18 = vpop.permute.xlu1 %1327 }
 0x387   : > { %v1314_v17 = vmul.f32 %v1305_v22, %v1286_v8  ;;  %v1344_v42 = vmax.f32 %v1340_v39, 0.0  ;;  %v1341_v43 = vadd.f32 %v1328_v18, %v1313_v41 }
 0x388   : > { %v1770_v44 = vpop.eup %1769 }
 0x389   : > { %v1287_v46 = vmul.f32 %v1770_v44, %v1255_v28  ;;  %v1498_v19 = vpack.c.bf16 %v1344_v42, %v1344_v42  ;;  %v1345_v47 = vmax.f32 %v1341_v43, 0.0  ;;  %v1333_v50 = vpop.permute.xlu1 %1332 }
 0x38a   : > { %v1342_v23 = vadd.f32 %v1333_v50, %v1314_v17 }
 0x38b   : > { %v1315_v51 = vmul.f32 %v1310_v27, %v1287_v46  ;;  %1365 = vst.msk [vmem:[%s244_s16] sm:$0xf] %vm1364_vm7, %v1498_v19  ;;  %v1499_v52 = vpack.c.bf16 %v1345_v47, %v1345_v47 }
 0x38c   : > { %v1346_v9 = vmax.f32 %v1342_v23, 0.0 }
 0x38d   : > { %1366 = vst.msk [vmem:[%s244_s16 + $0x4] sm:$0xf] %vm1364_vm7, %v1499_v52  ;;  %v1338_v54 = vpop.permute.xlu1 %1337 }
 0x38e   : > { %v1500_v55 = vpack.c.bf16 %v1346_v9, %v1346_v9  ;;  %v1343_v21 = vadd.f32 %v1338_v54, %v1315_v51 }
 0x390   : > { %1367 = vst.msk [vmem:[%s244_s16 + $0x8] sm:$0xf] %vm1364_vm7, %v1500_v55  ;;  %v1347_v10 = vmax.f32 %v1343_v21, 0.0 }
 0x392   : > { %v1501_v57 = vpack.c.bf16 %v1347_v10, %v1347_v10 }
 0x394   : > { %1368 = vst.msk [vmem:[%s244_s16 + $0xc] sm:$0xf] %vm1364_vm7, %v1501_v57 }
 0x395 PF: > { %s15_s18 = sadd.s32 1, %s1777_s18  }
 0x396   : > { %p12_p4 = scmp.ge.s32.totalorder %s15_s18, 4  }
 0x398   :  { %14 = sbr.rel (!%p12_p4) target bundleno = 1 (0x1), region = 75 }

// kernel: attention_forward.15
= control target key start
LH: loop header
LB: loop body
LE: loop exit
PB: predicated region body
PF: predicated region fallthrough
CT: control target
= control target key end

     0   :  { %s959_s18 = smov 0   ;;  %s1153_s0 = inlined_call_operand.vmem [shape: bf16[2,32,64], index: 0, kind: input, shape index: {}]   ;;  %s1154_s1 = inlined_call_operand.vmem [shape: bf16[2,32,64], index: 1, kind: input, shape index: {}]   ;;  %s1155_s2 = inlined_call_operand.vmem [shape: bf16[3,16,192], index: 2, kind: input, shape index: {}]   ;;  %s1156_s3 = inlined_call_operand.vmem [shape: f32[16,1], index: 3, kind: input, shape index: {}]   ;;  %s1157_s4 = inlined_call_operand.vmem [shape: f32[16,1], index: 4, kind: input, shape index: {}]   ;;  %s1158_s5 = inlined_call_operand.vmem [shape: bf16[2,16,64], index: 5, kind: output, shape index: {}]  }
   0x1 LB: > { %s847_s19 = sadd.s32 4294967295, %s922_s18   ;;  %p851_p0 = scmp.ge.s32.totalorder %s922_s18, 1  ;;  %s922_s18 = sphi %s959_s18, %s15_s18  }
   0x2   : > { %p197_p1 = scmp.lt.s32.totalorder %s922_s18, 3 }
   0x4   : > { %p198_p2 = pnand %p851_p0, %p197_p1 }
   0x5   : > { %p967_p3 = scmp.lt.s32.totalorder (!%p198_p2), %s847_s19, 1  ;;  %vm256_vm0 = vcmask (!%p198_p2), 523264   ;;  %v924_v0 = vmov (!%p198_p2), 0   ;;  %s925_s28 = smov (!%p198_p2), 8   ;;  %vm307_vm1 = vcmask (!%p198_p2), 588864   ;;  %vm342_vm2 = vcmask (!%p198_p2), 1048512  }
   0x6   : > { %201 = sbr.rel (%p198_p2) target bundleno = 888 (0x378), region = 40  ;;  %268 = vst [vmem:[#allocation2 + $0x68] sm:$0xff] (!%p198_p2), %v924_v0  ;;  %255 = vst [vmem:[#allocation2 + $0x8] sm:$0xff] (!%p198_p2), %v924_v0  ;;  %571 = vmatprep.subr.bf16.mxu1 (!%p198_p2), %v924_v0  ;;  %509 = vmatprep.subr.bf16.mxu0 (!%p198_p2), %v924_v0  ;;  %s926_s29 = smov (!%p198_p2), 120   ;;  %vm344_vm3 = vcmask (!%p198_p2), 457728   ;;  %vm481_vm4 = vcmask (!%p198_p2), 7168  }
   0x7   : > { %259 = vst [vmem:[#allocation2 + $0x20] sm:$0xff] (!%p198_p2), %v924_v0  ;;  %262 = vst [vmem:[#allocation2 + $0x38] sm:$0xff] (!%p198_p2), %v924_v0  ;;  %897 = vset.pattern.permute.xlu1 (!%p198_p2), %v924_v0  ;;  %898 = vset.pattern.permute.xlu0 (!%p198_p2), %v924_v0  ;;  %s927_s30 = smov (!%p198_p2), 1   ;;  %s928_s6 = smov (!%p198_p2), 127   ;;  %v904_v26 = vld [vmem:[%s1155_s2 + $0x4] ss:$8 sps:$4 sm:$0xff] (!%p198_p2)  }
   0x8   : > { %265 = vst [vmem:[#allocation2 + $0x50] sm:$0xff] (!%p198_p2), %v924_v0  ;;  %271 = vst [vmem:[#allocation2 + $0x80] sm:$0xff] (!%p198_p2), %v924_v0  ;;  %864 = vmatprep.mubr.msk.bf16.mxu0 (!%p198_p2), %vm256_vm0, %v904_v26  ;;  %v907_v28 = vld [vmem:[%s1155_s2 + $0x14] ss:$8 sps:$4 sm:$0xff] (!%p198_p2)   ;;  %v905_v31 = vld [vmem:[%s1155_s2 + $0x10] ss:$8 sps:$4 sm:$0xff] (!%p198_p2)  }
   0x9   : > { %274 = vst [vmem:[#allocation2 + $0x98] sm:$0xff] (!%p198_p2), %v924_v0  ;;  %277 = vst [vmem:[#allocation2 + $0xb0] sm:$0xff] (!%p198_p2), %v924_v0  ;;  %869 = vmatprep.mubr.msk.bf16.mxu1 (!%p198_p2), %vm256_vm0, %v907_v28  ;;  %vm777_vm7 = vcmask (!%p198_p2), 519168  }
   0xa   : > { %279 = vst [vmem:[#allocation2 + $0xc0] sm:$0xff] (!%p198_p2), %v924_v0  ;;  %280 = vst [vmem:[#allocation2 + $0xc8] sm:$0xff] (!%p198_p2), %v924_v0 }
   0xb   : > { %282 = vst [vmem:[#allocation2 + $0xd8] sm:$0xff] (!%p198_p2), %v924_v0  ;;  %283 = vst [vmem:[#allocation2 + $0xe0] sm:$0xff] (!%p198_p2), %v924_v0 }
   0xc   : > { %285 = vst [vmem:[#allocation2 + $0xf0] sm:$0xff] (!%p198_p2), %v924_v0  ;;  %286 = vst [vmem:[#allocation2 + $0xf8] sm:$0xff] (!%p198_p2), %v924_v0 }
   0xd   : > { %288 = vst [vmem:[#allocation2 + $0x108] sm:$0xff] %v924_v0  ;;  %289 = vst [vmem:[#allocation2 + $0x110] sm:$0xff] %v924_v0  ;;  %s1161_s19 = smov (!%p967_p3, %s847_s19), 1 }
   0xe   : > { %s879_s21 = sshll.u32 %s1161_s19, 4 }
   0xf   : > { %s234_s24 = scalar_lea.vmem %s1153_s0, %s879_s21  ;;  %s239_s27 = scalar_lea.vmem %s1154_s1, %s879_s21 }
  0x10   : > { %v246_v1 = vld [vmem:[%s234_s24] sm:$0xff]   ;;  %v900_v3 = vld [vmem:[%s234_s24 + $0x8] sm:$0xff]  }
  0x11   : > { %v899_v2 = vld [vmem:[%s239_s27] sm:$0xff]   ;;  %301 = vrot.lane.b32.xlu0 %v246_v1, %s925_s28  ;;  %330 = vst.msk [vmem:[#allocation2 + $0x68] sm:$0xff] %vm256_vm0, %v246_v1  ;;  %v901_v4 = vld [vmem:[%s239_s27 + $0x8] sm:$0xff]   ;;  %331 = vst.msk [vmem:[#allocation2 + $0x80] sm:$0xff] %vm256_vm0, %v900_v3 }
  0x12   : > { %320 = vrot.lane.b32.xlu1 %v899_v2, %s925_s28  ;;  %334 = vst.msk [vmem:[#allocation2 + $0x98] sm:$0xff] %vm256_vm0, %v899_v2  ;;  %335 = vst.msk [vmem:[#allocation2 + $0xb0] sm:$0xff] %vm256_vm0, %v901_v4 }
  0x15   : > { %303 = vrot.lane.b32.xlu0 %v900_v3, %s925_s28 }
  0x16   : > { %322 = vrot.lane.b32.xlu1 %v901_v4, %s925_s28 }
  0x18   : > { %v385_v19 = vld [vmem:[#allocation2 + $0x68] sm:$0xff]  ;;  %v387_v21 = vld [vmem:[#allocation2 + $0x80] sm:$0xff] }
  0x19   : > { %336 = vrot.lane.b32.xlu0 %v246_v1, %s926_s29  ;;  %v389_v23 = vld [vmem:[#allocation2 + $0x98] sm:$0xff]  ;;  %v391_v24 = vld [vmem:[#allocation2 + $0xb0] sm:$0xff] }
  0x1a   : > { %338 = vrot.lane.b32.xlu1 %v900_v3, %s926_s29 }
  0x1d   : > { %348 = vrot.lane.b32.xlu0 %v899_v2, %s926_s29 }
  0x1e   : > { %350 = vrot.lane.b32.xlu1 %v901_v4, %s926_s29  ;;  %s881_s29 = sshll.u32 %s1161_s19, 3 }
  0x1f   : > { %s244_s7 = scalar_lea.vmem %s1158_s5, %s881_s29 }
  0x21   : > { %433 = vrot.lane.b32.xlu0 %v924_v0, %s927_s30 }
  0x25   : > { %437 = vrot.lane.b32.xlu0 %v924_v0, %s927_s30 }
  0x29   : > { %441 = vrot.lane.b32.xlu0 %v924_v0, %s927_s30 }
  0x2d   : > { %445 = vrot.lane.b32.xlu0 %v924_v0, %s927_s30 }
  0x31   : > { %449 = vrot.lane.b32.xlu0 %v924_v0, %s927_s30 }
  0x35   : > { %453 = vrot.lane.b32.xlu0 %v924_v0, %s927_s30 }
  0x39   : > { %457 = vrot.lane.b32.xlu0 %v924_v0, %s927_s30 }
  0x3d   : > { %461 = vrot.lane.b32.xlu0 %v924_v0, %s927_s30 }
  0x83   : > { %v302_v5 = vpop.permute.xlu0 %301 }
  0x84   : > { %v321_v6 = vpop.permute.xlu1 %320  ;;  %308 = vst.msk [vmem:[#allocation2 + $0x8] sm:$0xff] %vm307_vm1, %v302_v5  ;;  %v902_v5 = vld [vmem:[%s1155_s2] ss:$8 sps:$4 sm:$0xff]  }
  0x85   : > { %326 = vst.msk [vmem:[#allocation2 + $0x38] sm:$0xff] %vm307_vm1, %v321_v6  ;;  %v908_v6 = vld [vmem:[%s1155_s2 + $0x24] ss:$8 sps:$4 sm:$0xff]  }
  0x87   : > { %v304_v7 = vpop.permute.xlu0 %303 }
  0x88   : > { %v323_v8 = vpop.permute.xlu1 %322  ;;  %309 = vst.msk [vmem:[#allocation2 + $0x20] sm:$0xff] %vm307_vm1, %v304_v7 }
  0x89   : > { %327 = vst.msk [vmem:[#allocation2 + $0x50] sm:$0xff] %vm307_vm1, %v323_v8 }
  0x8b   : > { %v337_v9 = vpop.permute.xlu0 %336  ;;  %v377_v10 = vld [vmem:[#allocation2 + $0x8] sm:$0xff] }
  0x8c   : > { %v339_v11 = vpop.permute.xlu1 %338  ;;  %343 = vst.msk [vmem:[#allocation2 + $0xc0] sm:$0xff] %vm342_vm2, %v337_v9  ;;  %435 = vrot.lane.b32.xlu1 %v377_v10, %s927_s30  ;;  %572 = vmatpush1.bf16.msra.mxu1 %v377_v10  ;;  %v381_v15 = vld [vmem:[#allocation2 + $0x38] sm:$0xff] }
  0x8d   : > { %345 = vst.msk [vmem:[#allocation2 + $0xc8] sm:$0xff] %vm344_vm3, %v337_v9  ;;  %347 = vst.msk [vmem:[#allocation2 + $0xe0] sm:$0xff] %vm344_vm3, %v339_v11  ;;  %573 = vmatprep.subr.bf16.mxu1 %v924_v0 }
  0x8e   : > { %346 = vst.msk [vmem:[#allocation2 + $0xd8] sm:$0xff] %vm342_vm2, %v339_v11 }
  0x8f   : > { %v1028_v12 = vld [vmem:[#allocation2 + $0x20] sm:$0xff]  ;;  %v349_v13 = vpop.permute.xlu0 %348 }
  0x90   : > { %v351_v14 = vpop.permute.xlu1 %350  ;;  %439 = vrot.lane.b32.xlu1 %v1028_v12, %s927_s30  ;;  %574 = vmatpush1.bf16.msra.mxu1 %v1028_v12  ;;  %354 = vst.msk [vmem:[#allocation2 + $0xf0] sm:$0xff] %vm342_vm2, %v349_v13  ;;  %v383_v17 = vld [vmem:[#allocation2 + $0x50] sm:$0xff] }
  0x91   : > { %355 = vst.msk [vmem:[#allocation2 + $0xf8] sm:$0xff] %vm344_vm3, %v349_v13  ;;  %357 = vst.msk [vmem:[#allocation2 + $0x110] sm:$0xff] %vm344_vm3, %v351_v14  ;;  %575 = vmatprep.subr.bf16.mxu1 %v924_v0 }
  0x92   : > { %356 = vst.msk [vmem:[#allocation2 + $0x108] sm:$0xff] %vm342_vm2, %v351_v14 }
  0x93   : > { %v392_v16 = vld [vmem:[#allocation2 + $0xc0] sm:$0xff]  ;;  %v434_v32 = vpop.permute.xlu0 %433 }
  0x94   : > { %443 = vrot.lane.b32.xlu1 %v381_v15, %s927_s30  ;;  %576 = vmatpush1.bf16.msra.mxu1 %v381_v15  ;;  %v393_v25 = vld [vmem:[#allocation2 + $0xc8] sm:$0xff]  ;;  %v395_v27 = vld [vmem:[#allocation2 + $0xe0] sm:$0xff] }
  0x95   : > { %465 = vrot.lane.b32.xlu0 %v392_v16, %s927_s30  ;;  %577 = vmatprep.subr.bf16.mxu1 %v924_v0  ;;  %v394_v18 = vld [vmem:[#allocation2 + $0xd8] sm:$0xff] }
  0x97   : > { %v396_v20 = vld [vmem:[#allocation2 + $0xf0] sm:$0xff]  ;;  %v438_v33 = vpop.permute.xlu0 %437 }
  0x98   : > { %447 = vrot.lane.b32.xlu1 %v383_v17, %s927_s30  ;;  %578 = vmatpush1.bf16.msra.mxu1 %v383_v17  ;;  %v397_v29 = vld [vmem:[#allocation2 + $0xf8] sm:$0xff]  ;;  %v399_v30 = vld [vmem:[#allocation2 + $0x110] sm:$0xff] }
  0x99   : > { %469 = vrot.lane.b32.xlu0 %v394_v18, %s927_s30  ;;  %579 = vmatprep.subr.bf16.mxu1 %v924_v0  ;;  %v398_v22 = vld [vmem:[#allocation2 + $0x108] sm:$0xff] }
  0x9b   : > { %v442_v34 = vpop.permute.xlu0 %441 }
  0x9c   : > { %451 = vrot.lane.b32.xlu1 %v385_v19, %s927_s30  ;;  %580 = vmatpush1.bf16.msra.mxu1 %v385_v19 }
  0x9d   : > { %473 = vrot.lane.b32.xlu0 %v396_v20, %s927_s30  ;;  %581 = vmatprep.subr.bf16.mxu1 %v924_v0 }
  0x9f   : > { %v446_v35 = vpop.permute.xlu0 %445 }
  0xa0   : > { %455 = vrot.lane.b32.xlu1 %v387_v21, %s927_s30  ;;  %582 = vmatpush1.bf16.msra.mxu1 %v387_v21 }
  0xa1   : > { %477 = vrot.lane.b32.xlu0 %v398_v22, %s927_s30  ;;  %583 = vmatprep.subr.bf16.mxu1 %v924_v0 }
  0xa3   : > { %v450_v37 = vpop.permute.xlu0 %449 }
  0xa4   : > { %459 = vrot.lane.b32.xlu1 %v389_v23, %s927_s30  ;;  %584 = vmatpush1.bf16.msra.mxu1 %v389_v23 }
  0xa5   : > { %626 = vrot.lane.b32.xlu0 %v377_v10, %s928_s6  ;;  %585 = vmatprep.subr.bf16.mxu1 %v924_v0 }
  0xa7   : > { %v454_v41 = vpop.permute.xlu0 %453 }
  0xa8   : > { %463 = vrot.lane.b32.xlu1 %v391_v24, %s927_s30  ;;  %586 = vmatpush1.bf16.msra.mxu1 %v391_v24 }
  0xa9   : > { %630 = vrot.lane.b32.xlu0 %v381_v15, %s928_s6  ;;  %587 = vmatprep.subr.bf16.mxu1 %v924_v0 }
  0xab   : > { %v458_v45 = vpop.permute.xlu0 %457 }
  0xac   : > { %467 = vrot.lane.b32.xlu1 %v393_v25, %s927_s30  ;;  %588 = vmatpush1.bf16.msra.mxu1 %v393_v25 }
  0xad   : > { %634 = vrot.lane.b32.xlu0 %v385_v19, %s928_s6  ;;  %589 = vmatprep.subr.bf16.mxu1 %v924_v0  ;;  %v910_v19 = vld [vmem:[%s1155_s2 + $0x20] ss:$8 sps:$4 sm:$0xff]  }
  0xaf   : > { %v462_v49 = vpop.permute.xlu0 %461 }
  0xb0   : > { %471 = vrot.lane.b32.xlu1 %v395_v27, %s927_s30  ;;  %590 = vmatpush1.bf16.msra.mxu1 %v395_v27 }
  0xb1   : > { %638 = vrot.lane.b32.xlu0 %v389_v23, %s928_s6  ;;  %591 = vmatprep.subr.bf16.mxu1 %v924_v0 }
  0xb4   : > { %475 = vrot.lane.b32.xlu1 %v397_v29, %s927_s30  ;;  %592 = vmatpush1.bf16.msra.mxu1 %v397_v29 }
  0xb5   : > { %642 = vrot.lane.b32.xlu0 %v393_v25, %s928_s6  ;;  %593 = vmatprep.subr.bf16.mxu1 %v924_v0 }
  0xb8   : > { %479 = vrot.lane.b32.xlu1 %v399_v30, %s927_s30  ;;  %594 = vmatpush1.bf16.msra.mxu1 %v399_v30 }
  0xb9   : > { %646 = vrot.lane.b32.xlu0 %v397_v29, %s928_s6 }
  0xbb   : > { %604 = vmatmul.mubr.bf16.vlgmr.msra.gmra.mrb[0].mxu1 %v905_v31 }
  0xbc   : > { %628 = vrot.lane.b32.xlu1 %v1028_v12, %s928_s6 }
  0xc0   : > { %632 = vrot.lane.b32.xlu1 %v383_v17, %s928_s6 }
  0xc4   : > { %636 = vrot.lane.b32.xlu1 %v387_v21, %s928_s6 }
  0xc8   : > { %640 = vrot.lane.b32.xlu1 %v391_v24, %s928_s6  ;;  %v358_v24 = vlaneseq }
  0xca   : > { %v359_v25 = vand.u32 127, %v358_v24 }
  0xcc   : > { %644 = vrot.lane.b32.xlu1 %v395_v27, %s928_s6  ;;  %v364_v26 = vand.u32 7, %v359_v25 }
  0xce   : > { %vm372_vm5 = vcmp.ge.s32.totalorder %v364_v26, 1  ;;  %vm373_vm6 = vcmp.le.s32.totalorder %v364_v26, 6 }
  0xd0   : > { %648 = vrot.lane.b32.xlu1 %v399_v30, %s928_s6 }
  0xfe   : > { %v436_v36 = vpop.permute.xlu1 %435 }
  0xff   : > { %v482_v38 = vsel %vm481_vm4, %v434_v32, %v436_v36 }
 0x100   : > { %510 = vmatpush1.bf16.msra.mxu0 %v482_v38 }
 0x101   : > { %511 = vmatprep.subr.bf16.mxu0 %v924_v0 }
 0x102   : > { %v440_v39 = vpop.permute.xlu1 %439 }
 0x103   : > { %v483_v40 = vsel %vm481_vm4, %v438_v33, %v440_v39 }
 0x104   : > { %512 = vmatpush1.bf16.msra.mxu0 %v483_v40 }
 0x105   : > { %513 = vmatprep.subr.bf16.mxu0 %v924_v0 }
 0x106   : > { %v444_v42 = vpop.permute.xlu1 %443 }
 0x107   : > { %v484_v43 = vsel %vm481_vm4, %v442_v34, %v444_v42  ;;  %v466_v53 = vpop.permute.xlu0 %465 }
 0x108   : > { %514 = vmatpush1.bf16.msra.mxu0 %v484_v43 }
 0x109   : > { %515 = vmatprep.subr.bf16.mxu0 %v924_v0 }
 0x10a   : > { %v448_v44 = vpop.permute.xlu1 %447 }
 0x10b   : > { %v485_v46 = vsel %vm481_vm4, %v446_v35, %v448_v44  ;;  %v470_v57 = vpop.permute.xlu0 %469  ;;  %v739_v44 = vld [vmem:[%s1156_s3] sm:$0xff] }
 0x10c   : > { %516 = vmatpush1.bf16.msra.mxu0 %v485_v46  ;;  %v754_v46 = vld [vmem:[%s1157_s4 + $0x8] sm:$0xff] }
 0x10d   : > { %517 = vmatprep.subr.bf16.mxu0 %v924_v0 }
 0x10e   : > { %v452_v47 = vpop.permute.xlu1 %451 }
 0x10f   : > { %v486_v48 = vsel %vm481_vm4, %v450_v37, %v452_v47  ;;  %v474_v61 = vpop.permute.xlu0 %473 }
 0x110   : > { %518 = vmatpush1.bf16.msra.mxu0 %v486_v48 }
 0x111   : > { %519 = vmatprep.subr.bf16.mxu0 %v924_v0 }
 0x112   : > { %v456_v50 = vpop.permute.xlu1 %455 }
 0x113   : > { %v487_v51 = vsel %vm481_vm4, %v454_v41, %v456_v50  ;;  %v478_v2 = vpop.permute.xlu0 %477 }
 0x114   : > { %520 = vmatpush1.bf16.msra.mxu0 %v487_v51 }
 0x115   : > { %521 = vmatprep.subr.bf16.mxu0 %v924_v0 }
 0x116   : > { %v460_v52 = vpop.permute.xlu1 %459 }
 0x117   : > { %v488_v54 = vsel %vm481_vm4, %v458_v45, %v460_v52  ;;  %v627_v7 = vpop.permute.xlu0 %626  ;;  %v753_v45 = vld [vmem:[%s1157_s4] sm:$0xff] }
 0x118   : > { %522 = vmatpush1.bf16.msra.mxu0 %v488_v54 }
 0x119   : > { %523 = vmatprep.subr.bf16.mxu0 %v924_v0 }
 0x11a   : > { %v464_v55 = vpop.permute.xlu1 %463 }
 0x11b   : > { %v489_v56 = vsel %vm481_vm4, %v462_v49, %v464_v55  ;;  %v631_v9 = vpop.permute.xlu0 %630 }
 0x11c   : > { %524 = vmatpush1.bf16.msra.mxu0 %v489_v56 }
 0x11d   : > { %525 = vmatprep.subr.bf16.mxu0 %v924_v0 }
 0x11e   : > { %v468_v58 = vpop.permute.xlu1 %467 }
 0x11f   : > { %v490_v59 = vsel %vm481_vm4, %v466_v53, %v468_v58  ;;  %v635_v11 = vpop.permute.xlu0 %634 }
 0x120   : > { %526 = vmatpush1.bf16.msra.mxu0 %v490_v59 }
 0x121   : > { %527 = vmatprep.subr.bf16.mxu0 %v924_v0 }
 0x122   : > { %v472_v60 = vpop.permute.xlu1 %471 }
 0x123   : > { %v491_v62 = vsel %vm481_vm4, %v470_v57, %v472_v60  ;;  %v639_v13 = vpop.permute.xlu0 %638  ;;  %v740_v57 = vld [vmem:[%s1156_s3 + $0x8] sm:$0xff] }
 0x124   : > { %528 = vmatpush1.bf16.msra.mxu0 %v491_v62 }
 0x125   : > { %529 = vmatprep.subr.bf16.mxu0 %v924_v0 }
 0x126   : > { %v476_v63 = vpop.permute.xlu1 %475 }
 0x127   : > { %v492_v1 = vsel %vm481_vm4, %v474_v61, %v476_v63  ;;  %v643_v15 = vpop.permute.xlu0 %642 }
 0x128   : > { %530 = vmatpush1.bf16.msra.mxu0 %v492_v1 }
 0x129   : > { %531 = vmatprep.subr.bf16.mxu0 %v924_v0 }
 0x12a   : > { %v480_v3 = vpop.permute.xlu1 %479 }
 0x12b   : > { %v493_v4 = vsel %vm481_vm4, %v478_v2, %v480_v3  ;;  %v647_v17 = vpop.permute.xlu0 %646 }
 0x12c   : > { %532 = vmatpush1.bf16.msra.mxu0 %v493_v4 }
 0x12d   : > { %665 = vmatprep.subr.bf16.mxu0 %v924_v0 }
 0x12e   : > { %v629_v8 = vpop.permute.xlu1 %628 }
 0x12f   : > { %542 = vmatmul.mubr.bf16.vlgmr.msra.gmra.mrb[0].mxu0 %v902_v5 }
 0x130   : > { %666 = vmatpush1.bf16.msra.mxu0 %v627_v7  ;;  %874 = vmatprep.mubr.msk.bf16.mxu0 %vm256_vm0, %v908_v6 }
 0x131   : > { %667 = vmatprep.subr.bf16.mxu0 %v924_v0 }
 0x132   : > { %v633_v10 = vpop.permute.xlu1 %632 }
 0x134   : > { %668 = vmatpush1.bf16.msra.mxu0 %v629_v8 }
 0x135   : > { %669 = vmatprep.subr.bf16.mxu0 %v924_v0 }
 0x136   : > { %v637_v12 = vpop.permute.xlu1 %636 }
 0x138   : > { %670 = vmatpush1.bf16.msra.mxu0 %v631_v9 }
 0x139   : > { %671 = vmatprep.subr.bf16.mxu0 %v924_v0 }
 0x13a   : > { %v641_v14 = vpop.permute.xlu1 %640 }
 0x13c   : > { %672 = vmatpush1.bf16.msra.mxu0 %v633_v10 }
 0x13d   : > { %673 = vmatprep.subr.bf16.mxu0 %v924_v0 }
 0x13e   : > { %v645_v16 = vpop.permute.xlu1 %644 }
 0x140   : > { %674 = vmatpush1.bf16.msra.mxu0 %v635_v11 }
 0x141   : > { %675 = vmatprep.subr.bf16.mxu0 %v924_v0 }
 0x142   : > { %v649_v18 = vpop.permute.xlu1 %648 }
 0x144   : > { %676 = vmatpush1.bf16.msra.mxu0 %v637_v12 }
 0x145   : > { %677 = vmatprep.subr.bf16.mxu0 %v924_v0 }
 0x148   : > { %678 = vmatpush1.bf16.msra.mxu0 %v639_v13 }
 0x149   : > { %679 = vmatprep.subr.bf16.mxu0 %v924_v0 }
 0x14c   : > { %680 = vmatpush1.bf16.msra.mxu0 %v641_v14 }
 0x14d   : > { %681 = vmatprep.subr.bf16.mxu0 %v924_v0 }
 0x150   : > { %682 = vmatpush1.bf16.msra.mxu0 %v643_v15 }
 0x151   : > { %683 = vmatprep.subr.bf16.mxu0 %v924_v0 }
 0x154   : > { %684 = vmatpush1.bf16.msra.mxu0 %v645_v16 }
 0x155   : > { %685 = vmatprep.subr.bf16.mxu0 %v924_v0 }
 0x158   : > { %686 = vmatpush1.bf16.msra.mxu0 %v647_v17 }
 0x159   : > { %687 = vmatprep.subr.bf16.mxu0 %v924_v0 }
 0x15c   : > { %688 = vmatpush1.bf16.msra.mxu0 %v649_v18 }
 0x15f   : > { %698 = vmatmul.mubr.bf16.vlgmr.msra.gmra.mrb[4].mxu0 %v910_v19 }
 0x18e   : > { %v605_v20 = vpop.f32.mrb[0].mxu1 }
 0x18f   : > { %v607_v21 = vpop.f32.mrb[1].mxu1 }
 0x190   : > { %v608_v22 = vpop.f32.mrb[2].mxu1 }
 0x191   : > { %v610_v23 = vpop.f32.mrb[3].mxu1 }
 0x202   : > { %v543_v27 = vpop.f32.mrb[0].mxu0 }
 0x203   : > { %v552_v28 = vsel %vm372_vm5, %v543_v27, 0.0  ;;  %v545_v29 = vpop.f32.mrb[1].mxu0 }
 0x204   : > { %v612_v30 = vadd.f32 %v605_v20, %v552_v28  ;;  %v546_v0 = vpop.f32.mrb[2].mxu0 }
 0x205   : > { %v553_v31 = vsel %vm372_vm5, %v546_v0, 0.0  ;;  %v548_v32 = vpop.f32.mrb[3].mxu0 }
 0x206   : > { %v613_v33 = vadd.f32 %v608_v22, %v553_v31 }
 0x232   : > { %v699_v34 = vpop.f32.mrb[4].mxu0 }
 0x233   : > { %v708_v35 = vsel %vm373_vm6, %v699_v34, 0.0  ;;  %v701_v36 = vpop.f32.mrb[5].mxu0 }
 0x234   : > { %v710_v37 = vadd.f32 %v708_v35, %v612_v30  ;;  %v702_v38 = vpop.f32.mrb[6].mxu0 }
 0x235   : > { %v709_v39 = vsel %vm373_vm6, %v702_v38, 0.0  ;;  %v704_v40 = vpop.f32.mrb[7].mxu0 }
 0x236   : > { %v711_v41 = vadd.f32 %v709_v39, %v613_v33  ;;  %v712_v42 = vsel %vm256_vm0, %v710_v37, 0.0 }
 0x237   : > { %713 = vadd.xlane.f32.xlu0 %v712_v42 }
 0x238   : > { %v715_v43 = vsel %vm256_vm0, %v711_v41, 0.0 }
 0x239   : > { %716 = vadd.xlane.f32.xlu1 %v715_v43 }
 0x24a   : > { %743 = vperm.xlu1 %897, %v739_v44  }
 0x24e   : > { %757 = vperm.xlu1 %897, %v753_v45  }
 0x252   : > { %762 = vperm.xlu1 %897, %v754_v46  }
 0x2c4   : > { %v714_v47 = vpop.xlane.xlu0 %713 }
 0x2c5   : > { %v719_v48 = vmul.f32 0.015625, %v714_v47 }
 0x2c6   : > { %v717_v49 = vpop.xlane.xlu1 %716 }
 0x2c7   : > { %v721_v50 = vsub.f32 %v710_v37, %v719_v48  ;;  %v720_v51 = vmul.f32 0.015625, %v717_v49 }
 0x2c9   : > { %v722_v52 = vsub.f32 %v711_v41, %v720_v51  ;;  %v723_v53 = vmul.f32 %v721_v50, %v721_v50 }
 0x2ca   : > { %v744_v1 = vpop.permute.xlu1 %743 }
 0x2cb   : > { %v725_v54 = vsel %vm256_vm0, %v723_v53, 0.0  ;;  %v724_v55 = vmul.f32 %v722_v52, %v722_v52 }
 0x2cc   : > { %726 = vadd.xlane.f32.xlu0 %v725_v54 }
 0x2cd   : > { %v728_v56 = vsel %vm256_vm0, %v724_v55, 0.0 }
 0x2ce   : > { %v758_v4 = vpop.permute.xlu1 %757 }
 0x2d0   : > { %729 = vadd.xlane.f32.xlu0 %v728_v56 }
 0x2d2   : > { %v763_v12 = vpop.permute.xlu1 %762 }
 0x2e6   : > { %748 = vperm.xlu0 %898, %v740_v57  }
 0x359   : > { %v727_v58 = vpop.xlane.xlu0 %726 }
 0x35a   : > { %v731_v59 = vmul.f32 0.015625, %v727_v58 }
 0x35c   : > { %v733_v60 = vadd.f32 1e-05, %v731_v59 }
 0x35d   : > { %v730_v61 = vpop.xlane.xlu0 %729 }
 0x35e   : > { %912 = vrsqrt.f32 %v733_v60  ;;  %v732_v62 = vmul.f32 0.015625, %v730_v61 }
 0x360   : > { %v734_v63 = vadd.f32 1e-05, %v732_v62 }
 0x362   : > { %914 = vrsqrt.f32 %v734_v63 }
 0x365   : > { %v749_v7 = vpop.permute.xlu0 %748 }
 0x368   : > { %v913_v2 = vpop.eup %912 }
 0x369   : > { %v737_v3 = vmul.f32 %v913_v2, %v721_v50 }
 0x36b   : > { %v751_v5 = vmul.f32 %v744_v1, %v737_v3 }
 0x36c   : > { %v915_v6 = vpop.eup %914 }
 0x36d   : > { %v765_v8 = vadd.f32 %v758_v4, %v751_v5  ;;  %v738_v9 = vmul.f32 %v915_v6, %v722_v52 }
 0x36f   : > { %v767_v10 = vmax.f32 %v765_v8, 0.0  ;;  %v752_v11 = vmul.f32 %v749_v7, %v738_v9 }
 0x371   : > { %v882_v13 = vpack.c.bf16 %v767_v10, %v767_v10  ;;  %v766_v14 = vadd.f32 %v763_v12, %v752_v11 }
 0x373   : > { %778 = vst.msk [vmem:[%s244_s7] sm:$0xf] %vm777_vm7, %v882_v13  ;;  %v768_v15 = vmax.f32 %v766_v14, 0.0 }
 0x375   : > { %v883_v16 = vpack.c.bf16 %v768_v15, %v768_v15 }
 0x377   : > { %779 = vst.msk [vmem:[%s244_s7 + $0x4] sm:$0xf] %vm777_vm7, %v883_v16 }
 0x378 PF: > { %s15_s18 = sadd.s32 1, %s922_s18  }
 0x379   : > { %p12_p4 = scmp.ge.s32.totalorder %s15_s18, 4  }
 0x37b   :  { %14 = sbr.rel (!%p12_p4) target bundleno = 1 (0x1), region = 75 }

// kernel: attention_forward.13
= control target key start
LH: loop header
LB: loop body
LE: loop exit
PB: predicated region body
PF: predicated region fallthrough
CT: control target
= control target key end

     0   :  { %s3948_s15 = smov 0   ;;  %s5210_s0 = inlined_call_operand.vmem [shape: bf16[2,64,4], index: 0, kind: input, shape index: {}]   ;;  %s5211_s1 = inlined_call_operand.vmem [shape: bf16[3,64,192], index: 1, kind: input, shape index: {}]   ;;  %s5212_s2 = inlined_call_operand.vmem [shape: f32[64,1], index: 2, kind: input, shape index: {}]   ;;  %s5213_s3 = inlined_call_operand.vmem [shape: f32[64,1], index: 3, kind: input, shape index: {}]   ;;  %s5214_s4 = inlined_call_operand.vmem [shape: bf16[80,64], index: 4, kind: input, shape index: {}]   ;;  %s5215_s5 = inlined_call_operand.vmem [shape: f32[80,1], index: 5, kind: input, shape index: {}]   ;;  %s5216_s6 = inlined_call_operand.<no memory space> [shape: f32[1], index: 6, kind: input, shape index: {}]   ;;  %s5217_s7 = inlined_call_operand.vmem [shape: bf16[3,64,384], index: 7, kind: input, shape index: {}]   ;;  %s5218_s8 = inlined_call_operand.vmem [shape: f32[64,1], index: 8, kind: input, shape index: {}]   ;;  %s5219_s9 = inlined_call_operand.vmem [shape: f32[64,1], index: 9, kind: input, shape index: {}]   ;;  %s5220_s10 = inlined_call_operand.vmem [shape: bf16[2,64,4], index: 10, kind: output, shape index: {}]  }
   0x1   :  { %15 = sst [smem:[#allocation4]] %s5216_s6 }
   0x2 LB: > { %s3204_s16 = sadd.s32 4294967295, %s3881_s15   ;;  %p3208_p0 = scmp.ge.s32.totalorder %s3881_s15, 1  ;;  %s3881_s15 = sphi %s3948_s15, %s21_s15  }
   0x3   : > { %p313_p1 = scmp.lt.s32.totalorder %s3881_s15, 3 }
   0x5   : > { %p314_p2 = pnand %p3208_p0, %p313_p1 }
   0x6   : > { %p3958_p3 = scmp.lt.s32.totalorder (!%p314_p2), %s3204_s16, 1  ;;  %vm372_vm0 = vcmask (!%p314_p2), 31744   ;;  %v3883_v0 = vmov (!%p314_p2), 0   ;;  %s3884_s21 = smov (!%p314_p2), 2   ;;  %vm439_vm1 = vcmask (!%p314_p2), 48144   ;;  %vm464_vm2 = vcmask (!%p314_p2), 1048560  }
   0x7   : > { %317 = sbr.rel (%p314_p2) target bundleno = 2934 (0xb76), region = 60  ;;  %384 = vst [vmem:[#allocation2 + $0x68] sm:$0xff] (!%p314_p2), %v3883_v0  ;;  %370 = vst [vmem:[#allocation2] sm:$0xff] (!%p314_p2), %v3883_v0  ;;  %808 = vmatprep.subr.bf16.mxu1 (!%p314_p2), %v3883_v0  ;;  %668 = vmatprep.subr.bf16.mxu0 (!%p314_p2), %v3883_v0  ;;  %s3885_s22 = smov (!%p314_p2), 126   ;;  %vm466_vm3 = vcmask (!%p314_p2), 15360   ;;  %vm655_vm4 = vcmask (!%p314_p2), 523264  }
   0x8   : > { %371 = vst [vmem:[#allocation2 + $0x8] sm:$0xff] (!%p314_p2), %v3883_v0  ;;  %375 = vst [vmem:[#allocation2 + $0x20] sm:$0xff] (!%p314_p2), %v3883_v0  ;;  %3703 = vset.pattern.permute.xlu1 (!%p314_p2), %v3883_v0  ;;  %3704 = vset.pattern.permute.xlu0 (!%p314_p2), %v3883_v0  ;;  %s3886_s23 = smov (!%p314_p2), 1   ;;  %s3887_s24 = smov (!%p314_p2), 127   ;;  %v3751_v26 = vld [vmem:[%s5211_s1 + $0x4] ss:$8 sps:$4 sm:$0xff] (!%p314_p2)  }
   0x9   : > { %378 = vst [vmem:[#allocation2 + $0x38] sm:$0xff] (!%p314_p2), %v3883_v0  ;;  %381 = vst [vmem:[#allocation2 + $0x50] sm:$0xff] (!%p314_p2), %v3883_v0  ;;  %3225 = vmatprep.mubr.msk.bf16.mxu0 (!%p314_p2), %vm655_vm4, %v3751_v26  ;;  %v3754_v28 = vld [vmem:[%s5211_s1 + $0x44] ss:$8 sps:$4 sm:$0xff] (!%p314_p2)   ;;  %v3752_v31 = vld [vmem:[%s5211_s1 + $0x40] ss:$8 sps:$4 sm:$0xff] (!%p314_p2)  }
   0xa   : > { %387 = vst [vmem:[#allocation2 + $0x80] sm:$0xff] (!%p314_p2), %v3883_v0  ;;  %390 = vst [vmem:[#allocation2 + $0x98] sm:$0xff] (!%p314_p2), %v3883_v0  ;;  %3245 = vmatprep.mubr.msk.bf16.mxu1 (!%p314_p2), %vm655_vm4, %v3754_v28  ;;  %v3758_v32 = vld [vmem:[%s5211_s1 + $0x54] ss:$8 sps:$4 sm:$0xff] (!%p314_p2)   ;;  %v3760_v33 = vld [vmem:[%s5211_s1 + $0x50] ss:$8 sps:$4 sm:$0xff] (!%p314_p2)  }
   0xb   : > { %393 = vst [vmem:[#allocation2 + $0xb0] sm:$0xff] (!%p314_p2), %v3883_v0  ;;  %395 = vst [vmem:[#allocation2 + $0xc0] sm:$0xff] (!%p314_p2), %v3883_v0  ;;  %v3764_v34 = vld [vmem:[%s5211_s1 + $0x64] ss:$8 sps:$4 sm:$0xff] (!%p314_p2)   ;;  %v3766_v35 = vld [vmem:[%s5211_s1 + $0x60] ss:$8 sps:$4 sm:$0xff] (!%p314_p2)  }
   0xc   : > { %396 = vst [vmem:[#allocation2 + $0xc8] sm:$0xff] (!%p314_p2), %v3883_v0  ;;  %398 = vst [vmem:[#allocation2 + $0xd8] sm:$0xff] (!%p314_p2), %v3883_v0  ;;  %v3770_v36 = vld [vmem:[%s5211_s1 + $0x74] ss:$8 sps:$4 sm:$0xff] (!%p314_p2)   ;;  %v3772_v37 = vld [vmem:[%s5211_s1 + $0x70] ss:$8 sps:$4 sm:$0xff] (!%p314_p2)  }
   0xd   : > { %399 = vst [vmem:[#allocation2 + $0xe0] sm:$0xff] (!%p314_p2), %v3883_v0  ;;  %401 = vst [vmem:[#allocation2 + $0xf0] sm:$0xff] (!%p314_p2), %v3883_v0  ;;  %vm630_vm5 = vcmask (!%p314_p2), 7168   ;;  %vm3889_vm8 = vmmov (!%p314_p2), 0   ;;  %vm1501_vm9 = vcmask (!%p314_p2), 64512   ;;  %vm1575_vm10 = vcmask (!%p314_p2), 27648  }
   0xe   : > { %402 = vst [vmem:[#allocation2 + $0xf8] sm:$0xff] %v3883_v0  ;;  %404 = vst [vmem:[#allocation2 + $0x108] sm:$0xff] %v3883_v0  ;;  %s5227_s16 = smov (!%p3958_p3, %s3204_s16), 1  ;;  %s1719_s19 = sld [smem:[#allocation4]] }
   0xf   : > { %405 = vst [vmem:[#allocation2 + $0x110] sm:$0xff] %v3883_v0  ;;  %1742 = vst [vmem:[#allocation3 + $0x8] sm:$0xff] %v3883_v0  ;;  %s3367_s6 = sshll.u32 %s5227_s16, 5 }
  0x10   : > { %1745 = vst [vmem:[#allocation3 + $0x20] sm:$0xff] %v3883_v0  ;;  %1748 = vst [vmem:[#allocation3 + $0x38] sm:$0xff] %v3883_v0  ;;  %s355_s20 = scalar_lea.vmem %s5210_s0, %s3367_s6  ;;  %s5175_s18 = scalar_lea.vmem %s5220_s10, %s3367_s6 }
  0x11   : > { %1751 = vst [vmem:[#allocation3 + $0x50] sm:$0xff] %v3883_v0  ;;  %1754 = vst [vmem:[#allocation3 + $0x68] sm:$0xff] %v3883_v0  ;;  %v3745_v1 = vld [vmem:[%s355_s20] sm:$0xff]   ;;  %v3746_v2 = vld [vmem:[%s355_s20 + $0x10] sm:$0xff]  }
  0x12   : > { %1757 = vst [vmem:[#allocation3 + $0x80] sm:$0xff] %v3883_v0  ;;  %1760 = vst [vmem:[#allocation3 + $0x98] sm:$0xff] %v3883_v0  ;;  %427 = vrot.lane.b32.xlu0 %v3745_v1, %s3884_s21  ;;  %v3747_v3 = vld [vmem:[%s355_s20 + $0x8] sm:$0xff]   ;;  %431 = vrot.lane.b32.xlu1 %v3746_v2, %s3884_s21  ;;  %v3748_v4 = vld [vmem:[%s355_s20 + $0x18] sm:$0xff]  }
  0x13   : > { %1763 = vst [vmem:[#allocation3 + $0xb0] sm:$0xff] %v3883_v0  ;;  %1766 = vst [vmem:[#allocation3 + $0xc8] sm:$0xff] %v3883_v0 }
  0x14   : > { %1769 = vst [vmem:[#allocation3 + $0xe0] sm:$0xff] %v3883_v0  ;;  %1772 = vst [vmem:[#allocation3 + $0xf8] sm:$0xff] %v3883_v0 }
  0x15   : > { %1775 = vst [vmem:[#allocation3 + $0x110] sm:$0xff] %v3883_v0  ;;  %1778 = vst [vmem:[#allocation3 + $0x128] sm:$0xff] %v3883_v0 }
  0x16   : > { %1781 = vst [vmem:[#allocation3 + $0x140] sm:$0xff] %v3883_v0  ;;  %1784 = vst [vmem:[#allocation3 + $0x158] sm:$0xff] %v3883_v0  ;;  %429 = vrot.lane.b32.xlu0 %v3747_v3, %s3884_s21  ;;  %433 = vrot.lane.b32.xlu1 %v3748_v4, %s3884_s21 }
  0x17   : > { %1787 = vst [vmem:[#allocation3 + $0x170] sm:$0xff] %v3883_v0  ;;  %1789 = vst [vmem:[#allocation3 + $0x180] sm:$0xff] %v3883_v0 }
  0x18   : > { %1790 = vst [vmem:[#allocation3 + $0x188] sm:$0xff] %v3883_v0  ;;  %1792 = vst [vmem:[#allocation3 + $0x198] sm:$0xff] %v3883_v0 }
  0x19   : > { %1793 = vst [vmem:[#allocation3 + $0x1a0] sm:$0xff] %v3883_v0  ;;  %1795 = vst [vmem:[#allocation3 + $0x1b0] sm:$0xff] %v3883_v0 }
  0x1a   : > { %1796 = vst [vmem:[#allocation3 + $0x1b8] sm:$0xff] %v3883_v0  ;;  %1798 = vst [vmem:[#allocation3 + $0x1c8] sm:$0xff] %v3883_v0  ;;  %452 = vrot.lane.b32.xlu0 %v3745_v1, %s3885_s22  ;;  %454 = vrot.lane.b32.xlu1 %v3747_v3, %s3885_s22 }
  0x1b   : > { %1799 = vst [vmem:[#allocation3 + $0x1d0] sm:$0xff] %v3883_v0  ;;  %1801 = vst [vmem:[#allocation3 + $0x1e0] sm:$0xff] %v3883_v0 }
  0x1c   : > { %1802 = vst [vmem:[#allocation3 + $0x1e8] sm:$0xff] %v3883_v0  ;;  %1804 = vst [vmem:[#allocation3 + $0x1f8] sm:$0xff] %v3883_v0 }
  0x1d   : > { %1805 = vst [vmem:[#allocation3 + $0x200] sm:$0xff] %v3883_v0  ;;  %1807 = vst [vmem:[#allocation3 + $0x210] sm:$0xff] %v3883_v0 }
  0x1e   : > { %1808 = vst [vmem:[#allocation3 + $0x218] sm:$0xff] %v3883_v0  ;;  %1810 = vst [vmem:[#allocation3 + $0x228] sm:$0xff] %v3883_v0  ;;  %456 = vrot.lane.b32.xlu0 %v3746_v2, %s3885_s22  ;;  %458 = vrot.lane.b32.xlu1 %v3748_v4, %s3885_s22 }
  0x1f   : > { %1811 = vst [vmem:[#allocation3 + $0x230] sm:$0xff] %v3883_v0  ;;  %448 = vst.msk [vmem:[#allocation2 + $0x68] sm:$0xff] %vm372_vm0, %v3745_v1 }
  0x20   : > { %450 = vst.msk [vmem:[#allocation2 + $0x98] sm:$0xff] %vm372_vm0, %v3746_v2  ;;  %449 = vst.msk [vmem:[#allocation2 + $0x80] sm:$0xff] %vm372_vm0, %v3747_v3 }
  0x21   : > { %451 = vst.msk [vmem:[#allocation2 + $0xb0] sm:$0xff] %vm372_vm0, %v3748_v4 }
  0x22   : > { %582 = vrot.lane.b32.xlu0 %v3883_v0, %s3886_s23 }
  0x26   : > { %586 = vrot.lane.b32.xlu0 %v3883_v0, %s3886_s23  ;;  %v507_v19 = vld [vmem:[#allocation2 + $0x68] sm:$0xff] }
  0x27   : > { %v509_v21 = vld [vmem:[#allocation2 + $0x80] sm:$0xff]  ;;  %v511_v23 = vld [vmem:[#allocation2 + $0x98] sm:$0xff] }
  0x28   : > { %v513_v24 = vld [vmem:[#allocation2 + $0xb0] sm:$0xff] }
  0x2a   : > { %590 = vrot.lane.b32.xlu0 %v3883_v0, %s3886_s23 }
  0x2e   : > { %594 = vrot.lane.b32.xlu0 %v3883_v0, %s3886_s23 }
  0x32   : > { %598 = vrot.lane.b32.xlu0 %v3883_v0, %s3886_s23 }
  0x36   : > { %602 = vrot.lane.b32.xlu0 %v3883_v0, %s3886_s23 }
  0x3a   : > { %606 = vrot.lane.b32.xlu0 %v3883_v0, %s3886_s23 }
  0x3e   : > { %610 = vrot.lane.b32.xlu0 %v3883_v0, %s3886_s23 }
  0x84   : > { %v428_v5 = vpop.permute.xlu0 %427  ;;  %v432_v6 = vpop.permute.xlu1 %431 }
  0x85   : > { %440 = vst.msk [vmem:[#allocation2 + $0x8] sm:$0xff] %vm439_vm1, %v428_v5  ;;  %442 = vst.msk [vmem:[#allocation2 + $0x38] sm:$0xff] %vm439_vm1, %v432_v6 }
  0x88   : > { %v430_v7 = vpop.permute.xlu0 %429  ;;  %v434_v8 = vpop.permute.xlu1 %433 }
  0x89   : > { %441 = vst.msk [vmem:[#allocation2 + $0x20] sm:$0xff] %vm439_vm1, %v430_v7  ;;  %443 = vst.msk [vmem:[#allocation2 + $0x50] sm:$0xff] %vm439_vm1, %v434_v8 }
  0x8c   : > { %v453_v9 = vpop.permute.xlu0 %452  ;;  %v499_v10 = vld [vmem:[#allocation2 + $0x8] sm:$0xff]  ;;  %v455_v11 = vpop.permute.xlu1 %454  ;;  %v503_v15 = vld [vmem:[#allocation2 + $0x38] sm:$0xff] }
  0x8d   : > { %465 = vst.msk [vmem:[#allocation2 + $0xc0] sm:$0xff] %vm464_vm2, %v453_v9  ;;  %584 = vrot.lane.b32.xlu1 %v499_v10, %s3886_s23  ;;  %809 = vmatpush1.bf16.msra.mxu1 %v499_v10  ;;  %468 = vst.msk [vmem:[#allocation2 + $0xd8] sm:$0xff] %vm464_vm2, %v455_v11 }
  0x8e   : > { %467 = vst.msk [vmem:[#allocation2 + $0xc8] sm:$0xff] %vm466_vm3, %v453_v9  ;;  %469 = vst.msk [vmem:[#allocation2 + $0xe0] sm:$0xff] %vm466_vm3, %v455_v11  ;;  %810 = vmatprep.subr.bf16.mxu1 %v3883_v0  ;;  %v3749_v11 = vld [vmem:[%s5211_s1] ss:$8 sps:$4 sm:$0xff]  }
  0x90   : > { %v4065_v12 = vld [vmem:[#allocation2 + $0x20] sm:$0xff]  ;;  %v457_v13 = vpop.permute.xlu0 %456  ;;  %v459_v14 = vpop.permute.xlu1 %458  ;;  %v505_v17 = vld [vmem:[#allocation2 + $0x50] sm:$0xff] }
  0x91   : > { %588 = vrot.lane.b32.xlu1 %v4065_v12, %s3886_s23  ;;  %811 = vmatpush1.bf16.msra.mxu1 %v4065_v12  ;;  %470 = vst.msk [vmem:[#allocation2 + $0xf0] sm:$0xff] %vm464_vm2, %v457_v13  ;;  %472 = vst.msk [vmem:[#allocation2 + $0x108] sm:$0xff] %vm464_vm2, %v459_v14 }
  0x92   : > { %471 = vst.msk [vmem:[#allocation2 + $0xf8] sm:$0xff] %vm466_vm3, %v457_v13  ;;  %812 = vmatprep.subr.bf16.mxu1 %v3883_v0  ;;  %473 = vst.msk [vmem:[#allocation2 + $0x110] sm:$0xff] %vm466_vm3, %v459_v14 }
  0x94   : > { %v514_v16 = vld [vmem:[#allocation2 + $0xc0] sm:$0xff]  ;;  %v516_v18 = vld [vmem:[#allocation2 + $0xd8] sm:$0xff]  ;;  %v583_v38 = vpop.permute.xlu0 %582 }
  0x95   : > { %592 = vrot.lane.b32.xlu1 %v503_v15, %s3886_s23  ;;  %813 = vmatpush1.bf16.msra.mxu1 %v503_v15  ;;  %v515_v25 = vld [vmem:[#allocation2 + $0xc8] sm:$0xff]  ;;  %v517_v27 = vld [vmem:[#allocation2 + $0xe0] sm:$0xff] }
  0x96   : > { %614 = vrot.lane.b32.xlu0 %v514_v16, %s3886_s23  ;;  %814 = vmatprep.subr.bf16.mxu1 %v3883_v0  ;;  %v3761_v16 = vld [vmem:[%s5211_s1 + $0x24] ss:$8 sps:$4 sm:$0xff]  }
  0x98   : > { %v518_v20 = vld [vmem:[#allocation2 + $0xf0] sm:$0xff]  ;;  %v520_v22 = vld [vmem:[#allocation2 + $0x108] sm:$0xff]  ;;  %v587_v39 = vpop.permute.xlu0 %586 }
  0x99   : > { %596 = vrot.lane.b32.xlu1 %v505_v17, %s3886_s23  ;;  %815 = vmatpush1.bf16.msra.mxu1 %v505_v17  ;;  %v519_v29 = vld [vmem:[#allocation2 + $0xf8] sm:$0xff]  ;;  %v521_v30 = vld [vmem:[#allocation2 + $0x110] sm:$0xff] }
  0x9a   : > { %618 = vrot.lane.b32.xlu0 %v516_v18, %s3886_s23  ;;  %816 = vmatprep.subr.bf16.mxu1 %v3883_v0 }
  0x9c   : > { %v591_v40 = vpop.permute.xlu0 %590 }
  0x9d   : > { %600 = vrot.lane.b32.xlu1 %v507_v19, %s3886_s23  ;;  %817 = vmatpush1.bf16.msra.mxu1 %v507_v19 }
  0x9e   : > { %622 = vrot.lane.b32.xlu0 %v518_v20, %s3886_s23  ;;  %818 = vmatprep.subr.bf16.mxu1 %v3883_v0  ;;  %v3767_v20 = vld [vmem:[%s5211_s1 + $0x34] ss:$8 sps:$4 sm:$0xff]  }
  0xa0   : > { %v595_v41 = vpop.permute.xlu0 %594 }
  0xa1   : > { %604 = vrot.lane.b32.xlu1 %v509_v21, %s3886_s23  ;;  %819 = vmatpush1.bf16.msra.mxu1 %v509_v21 }
  0xa2   : > { %626 = vrot.lane.b32.xlu0 %v520_v22, %s3886_s23  ;;  %820 = vmatprep.subr.bf16.mxu1 %v3883_v0 }
  0xa4   : > { %v599_v43 = vpop.permute.xlu0 %598 }
  0xa5   : > { %608 = vrot.lane.b32.xlu1 %v511_v23, %s3886_s23  ;;  %821 = vmatpush1.bf16.msra.mxu1 %v511_v23 }
  0xa6   : > { %926 = vrot.lane.b32.xlu0 %v499_v10, %s3887_s24  ;;  %822 = vmatprep.subr.bf16.mxu1 %v3883_v0 }
  0xa8   : > { %v603_v47 = vpop.permute.xlu0 %602 }
  0xa9   : > { %612 = vrot.lane.b32.xlu1 %v513_v24, %s3886_s23  ;;  %823 = vmatpush1.bf16.msra.mxu1 %v513_v24 }
  0xaa   : > { %930 = vrot.lane.b32.xlu0 %v503_v15, %s3887_s24  ;;  %824 = vmatprep.subr.bf16.mxu1 %v3883_v0  ;;  %v3757_v15 = vld [vmem:[%s5211_s1 + $0x10] ss:$8 sps:$4 sm:$0xff]  }
  0xac   : > { %v607_v51 = vpop.permute.xlu0 %606 }
  0xad   : > { %616 = vrot.lane.b32.xlu1 %v515_v25, %s3886_s23  ;;  %825 = vmatpush1.bf16.msra.mxu1 %v515_v25 }
  0xae   : > { %934 = vrot.lane.b32.xlu0 %v507_v19, %s3887_s24  ;;  %826 = vmatprep.subr.bf16.mxu1 %v3883_v0  ;;  %v3763_v19 = vld [vmem:[%s5211_s1 + $0x20] ss:$8 sps:$4 sm:$0xff]  }
  0xb0   : > { %v611_v55 = vpop.permute.xlu0 %610 }
  0xb1   : > { %620 = vrot.lane.b32.xlu1 %v517_v27, %s3886_s23  ;;  %827 = vmatpush1.bf16.msra.mxu1 %v517_v27 }
  0xb2   : > { %938 = vrot.lane.b32.xlu0 %v511_v23, %s3887_s24  ;;  %828 = vmatprep.subr.bf16.mxu1 %v3883_v0  ;;  %v3769_v23 = vld [vmem:[%s5211_s1 + $0x30] ss:$8 sps:$4 sm:$0xff]  }
  0xb5   : > { %624 = vrot.lane.b32.xlu1 %v519_v29, %s3886_s23  ;;  %829 = vmatpush1.bf16.msra.mxu1 %v519_v29 }
  0xb6   : > { %942 = vrot.lane.b32.xlu0 %v515_v25, %s3887_s24  ;;  %830 = vmatprep.subr.bf16.mxu1 %v3883_v0 }
  0xb9   : > { %628 = vrot.lane.b32.xlu1 %v521_v30, %s3886_s23  ;;  %831 = vmatpush1.bf16.msra.mxu1 %v521_v30 }
  0xba   : > { %946 = vrot.lane.b32.xlu0 %v519_v29, %s3887_s24 }
  0xbc   : > { %841 = vmatmul.mubr.bf16.vlgmr.msra.gmra.mrb[0].mxu1 %v3752_v31  ;;  %v3773_v31 = vld [vmem:[%s5211_s1 + $0x80] ss:$8 sps:$4 sm:$0xff]  }
  0xbd   : > { %928 = vrot.lane.b32.xlu1 %v4065_v12, %s3887_s24  ;;  %3246 = vmatprep.mubr.msk.bf16.mxu1 %vm655_vm4, %v3758_v32  ;;  %v3755_v12 = vld [vmem:[%s5211_s1 + $0x14] ss:$8 sps:$4 sm:$0xff]  }
  0xbe   : > { %v3776_v32 = vld [vmem:[%s5211_s1 + $0x94] ss:$8 sps:$4 sm:$0xff]  }
  0xc1   : > { %932 = vrot.lane.b32.xlu1 %v505_v17, %s3887_s24 }
  0xc4   : > { %849 = vmatmul.mubr.bf16.gmra.mrb[4].mxu1 %v3760_v33  ;;  %v3778_v33 = vld [vmem:[%s5211_s1 + $0x90] ss:$8 sps:$4 sm:$0xff]  }
  0xc5   : > { %936 = vrot.lane.b32.xlu1 %v509_v21, %s3887_s24  ;;  %3247 = vmatprep.mubr.msk.bf16.mxu1 %vm655_vm4, %v3764_v34  ;;  %v3781_v34 = vld [vmem:[%s5211_s1 + $0xa0] ss:$8 sps:$4 sm:$0xff]  }
  0xc9   : > { %940 = vrot.lane.b32.xlu1 %v513_v24, %s3887_s24  ;;  %v3775_v24 = vld [vmem:[%s5211_s1 + $0x84] ss:$8 sps:$4 sm:$0xff]  }
  0xcc   : > { %857 = vmatmul.mubr.bf16.gmra.mrb[8].mxu1 %v3766_v35  ;;  %v3782_v35 = vld [vmem:[%s5211_s1 + $0xb4] ss:$8 sps:$4 sm:$0xff]  }
  0xcd   : > { %944 = vrot.lane.b32.xlu1 %v517_v27, %s3887_s24  ;;  %3248 = vmatprep.mubr.msk.bf16.mxu1 %vm655_vm4, %v3770_v36  ;;  %v3784_v36 = vld [vmem:[%s5211_s1 + $0xb0] ss:$8 sps:$4 sm:$0xff]  }
  0xd1   : > { %948 = vrot.lane.b32.xlu1 %v521_v30, %s3887_s24 }
  0xd4   : > { %865 = vmatmul.mubr.bf16.gmra.mrb[12].mxu1 %v3772_v37 }
  0xff   : > { %v585_v42 = vpop.permute.xlu1 %584 }
 0x100   : > { %v631_v44 = vsel %vm630_vm5, %v583_v38, %v585_v42 }
 0x101   : > { %669 = vmatpush1.bf16.msra.mxu0 %v631_v44 }
 0x102   : > { %670 = vmatprep.subr.bf16.mxu0 %v3883_v0 }
 0x103   : > { %v589_v45 = vpop.permute.xlu1 %588 }
 0x104   : > { %v632_v46 = vsel %vm630_vm5, %v587_v39, %v589_v45 }
 0x105   : > { %671 = vmatpush1.bf16.msra.mxu0 %v632_v46 }
 0x106   : > { %672 = vmatprep.subr.bf16.mxu0 %v3883_v0 }
 0x107   : > { %v593_v48 = vpop.permute.xlu1 %592 }
 0x108   : > { %v633_v49 = vsel %vm630_vm5, %v591_v40, %v593_v48  ;;  %v615_v59 = vpop.permute.xlu0 %614 }
 0x109   : > { %673 = vmatpush1.bf16.msra.mxu0 %v633_v49 }
 0x10a   : > { %674 = vmatprep.subr.bf16.mxu0 %v3883_v0 }
 0x10b   : > { %v597_v50 = vpop.permute.xlu1 %596 }
 0x10c   : > { %v634_v52 = vsel %vm630_vm5, %v595_v41, %v597_v50  ;;  %v619_v63 = vpop.permute.xlu0 %618 }
 0x10d   : > { %675 = vmatpush1.bf16.msra.mxu0 %v634_v52 }
 0x10e   : > { %676 = vmatprep.subr.bf16.mxu0 %v3883_v0 }
 0x10f   : > { %v601_v53 = vpop.permute.xlu1 %600 }
 0x110   : > { %v635_v54 = vsel %vm630_vm5, %v599_v43, %v601_v53  ;;  %v623_v4 = vpop.permute.xlu0 %622  ;;  %v474_v53 = vlaneseq }
 0x111   : > { %677 = vmatpush1.bf16.msra.mxu0 %v635_v54 }
 0x112   : > { %678 = vmatprep.subr.bf16.mxu0 %v3883_v0  ;;  %v475_v54 = vand.u32 127, %v474_v53 }
 0x113   : > { %v605_v56 = vpop.permute.xlu1 %604 }
 0x114   : > { %v636_v57 = vsel %vm630_vm5, %v603_v47, %v605_v56  ;;  %v627_v8 = vpop.permute.xlu0 %626 }
 0x115   : > { %679 = vmatpush1.bf16.msra.mxu0 %v636_v57 }
 0x116   : > { %680 = vmatprep.subr.bf16.mxu0 %v3883_v0 }
 0x117   : > { %v609_v58 = vpop.permute.xlu1 %608 }
 0x118   : > { %v637_v60 = vsel %vm630_vm5, %v607_v51, %v609_v58  ;;  %v927_v13 = vpop.permute.xlu0 %926 }
 0x119   : > { %681 = vmatpush1.bf16.msra.mxu0 %v637_v60 }
 0x11a   : > { %682 = vmatprep.subr.bf16.mxu0 %v3883_v0 }
 0x11b   : > { %v613_v61 = vpop.permute.xlu1 %612 }
 0x11c   : > { %v638_v62 = vsel %vm630_vm5, %v611_v55, %v613_v61  ;;  %v931_v17 = vpop.permute.xlu0 %930  ;;  %v480_v55 = vand.u32 1, %v475_v54 }
 0x11d   : > { %683 = vmatpush1.bf16.msra.mxu0 %v638_v62 }
 0x11e   : > { %684 = vmatprep.subr.bf16.mxu0 %v3883_v0  ;;  %vm4230_vm6 = vcmp.ge.s32.totalorder %v480_v55, 1  ;;  %vm4250_vm7 = vcmp.le.s32.totalorder %v480_v55, 0 }
 0x11f   : > { %v617_v1 = vpop.permute.xlu1 %616 }
 0x120   : > { %v639_v2 = vsel %vm630_vm5, %v615_v59, %v617_v1  ;;  %v935_v21 = vpop.permute.xlu0 %934 }
 0x121   : > { %685 = vmatpush1.bf16.msra.mxu0 %v639_v2 }
 0x122   : > { %686 = vmatprep.subr.bf16.mxu0 %v3883_v0 }
 0x123   : > { %v621_v3 = vpop.permute.xlu1 %620 }
 0x124   : > { %v640_v5 = vsel %vm630_vm5, %v619_v63, %v621_v3  ;;  %v939_v25 = vpop.permute.xlu0 %938 }
 0x125   : > { %687 = vmatpush1.bf16.msra.mxu0 %v640_v5 }
 0x126   : > { %688 = vmatprep.subr.bf16.mxu0 %v3883_v0 }
 0x127   : > { %v625_v6 = vpop.permute.xlu1 %624 }
 0x128   : > { %v641_v7 = vsel %vm630_vm5, %v623_v4, %v625_v6  ;;  %v943_v27 = vpop.permute.xlu0 %942 }
 0x129   : > { %689 = vmatpush1.bf16.msra.mxu0 %v641_v7 }
 0x12a   : > { %690 = vmatprep.subr.bf16.mxu0 %v3883_v0 }
 0x12b   : > { %v629_v9 = vpop.permute.xlu1 %628 }
 0x12c   : > { %v642_v10 = vsel %vm630_vm5, %v627_v8, %v629_v9  ;;  %v947_v29 = vpop.permute.xlu0 %946 }
 0x12d   : > { %691 = vmatpush1.bf16.msra.mxu0 %v642_v10 }
 0x12e   : > { %974 = vmatprep.subr.bf16.mxu0 %v3883_v0 }
 0x12f   : > { %v929_v14 = vpop.permute.xlu1 %928 }
 0x130   : > { %701 = vmatmul.mubr.bf16.vlgmr.msra.gmra.mrb[0].mxu0 %v3749_v11 }
 0x131   : > { %975 = vmatpush1.bf16.msra.mxu0 %v927_v13  ;;  %3226 = vmatprep.mubr.msk.bf16.mxu0 %vm655_vm4, %v3755_v12 }
 0x132   : > { %976 = vmatprep.subr.bf16.mxu0 %v3883_v0 }
 0x133   : > { %v933_v18 = vpop.permute.xlu1 %932 }
 0x135   : > { %977 = vmatpush1.bf16.msra.mxu0 %v929_v14 }
 0x136   : > { %978 = vmatprep.subr.bf16.mxu0 %v3883_v0 }
 0x137   : > { %v937_v22 = vpop.permute.xlu1 %936 }
 0x138   : > { %709 = vmatmul.mubr.bf16.gmra.mrb[4].mxu0 %v3757_v15 }
 0x139   : > { %979 = vmatpush1.bf16.msra.mxu0 %v931_v17  ;;  %3227 = vmatprep.mubr.msk.bf16.mxu0 %vm655_vm4, %v3761_v16 }
 0x13a   : > { %980 = vmatprep.subr.bf16.mxu0 %v3883_v0 }
 0x13b   : > { %v941_v26 = vpop.permute.xlu1 %940 }
 0x13d   : > { %981 = vmatpush1.bf16.msra.mxu0 %v933_v18 }
 0x13e   : > { %982 = vmatprep.subr.bf16.mxu0 %v3883_v0 }
 0x13f   : > { %v945_v28 = vpop.permute.xlu1 %944 }
 0x140   : > { %717 = vmatmul.mubr.bf16.gmra.mrb[8].mxu0 %v3763_v19 }
 0x141   : > { %983 = vmatpush1.bf16.msra.mxu0 %v935_v21  ;;  %3228 = vmatprep.mubr.msk.bf16.mxu0 %vm655_vm4, %v3767_v20 }
 0x142   : > { %984 = vmatprep.subr.bf16.mxu0 %v3883_v0 }
 0x143   : > { %v949_v30 = vpop.permute.xlu1 %948 }
 0x145   : > { %985 = vmatpush1.bf16.msra.mxu0 %v937_v22 }
 0x146   : > { %986 = vmatprep.subr.bf16.mxu0 %v3883_v0 }
 0x148   : > { %725 = vmatmul.mubr.bf16.gmra.mrb[12].mxu0 %v3769_v23 }
 0x149   : > { %987 = vmatpush1.bf16.msra.mxu0 %v939_v25  ;;  %3265 = vmatprep.mubr.msk.bf16.mxu0 %vm655_vm4, %v3775_v24 }
 0x14a   : > { %988 = vmatprep.subr.bf16.mxu0 %v3883_v0 }
 0x14d   : > { %989 = vmatpush1.bf16.msra.mxu0 %v941_v26 }
 0x14e   : > { %990 = vmatprep.subr.bf16.mxu0 %v3883_v0 }
 0x151   : > { %991 = vmatpush1.bf16.msra.mxu0 %v943_v27 }
 0x152   : > { %992 = vmatprep.subr.bf16.mxu0 %v3883_v0 }
 0x155   : > { %993 = vmatpush1.bf16.msra.mxu0 %v945_v28 }
 0x156   : > { %994 = vmatprep.subr.bf16.mxu0 %v3883_v0 }
 0x159   : > { %995 = vmatpush1.bf16.msra.mxu0 %v947_v29 }
 0x15a   : > { %996 = vmatprep.subr.bf16.mxu0 %v3883_v0  ;;  %v3779_v0 = vld [vmem:[%s5211_s1 + $0xa4] ss:$8 sps:$4 sm:$0xff]  }
 0x15d   : > { %997 = vmatpush1.bf16.msra.mxu0 %v949_v30 }
 0x160   : > { %1007 = vmatmul.mubr.bf16.vlgmr.msra.gmra.mrb[16].mxu0 %v3773_v31 }
 0x161   : > { %3266 = vmatprep.mubr.msk.bf16.mxu0 %vm655_vm4, %v3776_v32 }
 0x168   : > { %1015 = vmatmul.mubr.bf16.gmra.mrb[20].mxu0 %v3778_v33 }
 0x169   : > { %3267 = vmatprep.mubr.msk.bf16.mxu0 %vm655_vm4, %v3779_v0 }
 0x170   : > { %1023 = vmatmul.mubr.bf16.gmra.mrb[24].mxu0 %v3781_v34 }
 0x171   : > { %3268 = vmatprep.mubr.msk.bf16.mxu0 %vm655_vm4, %v3782_v35 }
 0x178   : > { %1031 = vmatmul.mubr.bf16.gmra.mrb[28].mxu0 %v3784_v36 }
 0x18f   : > { %v842_v37 = vpop.f32.mrb[0].mxu1 }
 0x190   : > { %v844_v38 = vpop.f32.mrb[1].mxu1 }
 0x191   : > { %v845_v39 = vpop.f32.mrb[2].mxu1 }
 0x192   : > { %v847_v40 = vpop.f32.mrb[3].mxu1 }
 0x197   : > { %v850_v41 = vpop.f32.mrb[4].mxu1 }
 0x198   : > { %v852_v42 = vpop.f32.mrb[5].mxu1 }
 0x199   : > { %v853_v43 = vpop.f32.mrb[6].mxu1 }
 0x19a   : > { %v855_v44 = vpop.f32.mrb[7].mxu1 }
 0x19f   : > { %v858_v45 = vpop.f32.mrb[8].mxu1 }
 0x1a0   : > { %v860_v46 = vpop.f32.mrb[9].mxu1 }
 0x1a1   : > { %v861_v47 = vpop.f32.mrb[10].mxu1 }
 0x1a2   : > { %v863_v48 = vpop.f32.mrb[11].mxu1 }
 0x1a7   : > { %v866_v49 = vpop.f32.mrb[12].mxu1 }
 0x1a8   : > { %v868_v50 = vpop.f32.mrb[13].mxu1 }
 0x1a9   : > { %v869_v51 = vpop.f32.mrb[14].mxu1 }
 0x1aa   : > { %v871_v52 = vpop.f32.mrb[15].mxu1 }
 0x203   : > { %v702_v57 = vpop.f32.mrb[0].mxu0 }
 0x204   : > { %v735_v58 = vsel %vm4230_vm6, %v702_v57, 0.0  ;;  %v704_v59 = vpop.f32.mrb[1].mxu0 }
 0x205   : > { %v873_v60 = vadd.f32 %v842_v37, %v735_v58  ;;  %v705_v61 = vpop.f32.mrb[2].mxu0 }
 0x206   : > { %v736_v62 = vsel %vm4230_vm6, %v705_v61, 0.0  ;;  %v707_v63 = vpop.f32.mrb[3].mxu0 }
 0x207   : > { %v874_v1 = vadd.f32 %v845_v39, %v736_v62 }
 0x20b   : > { %v710_v2 = vpop.f32.mrb[4].mxu0 }
 0x20c   : > { %v737_v3 = vsel %vm4230_vm6, %v710_v2, 0.0  ;;  %v712_v4 = vpop.f32.mrb[5].mxu0 }
 0x20d   : > { %v713_v5 = vpop.f32.mrb[6].mxu0  ;;  %v875_v6 = vadd.f32 %v850_v41, %v737_v3  ;;  %v1162_v4 = vld [vmem:[%s5212_s2] sm:$0xff] }
 0x20e   : > { %v738_v7 = vsel %vm4230_vm6, %v713_v5, 0.0  ;;  %v715_v8 = vpop.f32.mrb[7].mxu0  ;;  %v1218_v5 = vld [vmem:[%s5213_s3] sm:$0xff] }
 0x20f   : > { %v876_v9 = vadd.f32 %v853_v43, %v738_v7  ;;  %v1219_v7 = vld [vmem:[%s5213_s3 + $0x8] sm:$0xff]  ;;  %v1222_v8 = vld [vmem:[%s5213_s3 + $0x20] sm:$0xff] }
 0x213   : > { %v718_v10 = vpop.f32.mrb[8].mxu0 }
 0x214   : > { %v739_v11 = vsel %vm4230_vm6, %v718_v10, 0.0  ;;  %v720_v12 = vpop.f32.mrb[9].mxu0  ;;  %v1168_v10 = vld [vmem:[%s5212_s2 + $0x30] sm:$0xff] }
 0x215   : > { %v721_v13 = vpop.f32.mrb[10].mxu0  ;;  %v877_v14 = vadd.f32 %v858_v45, %v739_v11  ;;  %v1165_v11 = vld [vmem:[%s5212_s2 + $0x18] sm:$0xff]  ;;  %v1220_v12 = vld [vmem:[%s5213_s3 + $0x10] sm:$0xff] }
 0x216   : > { %v740_v15 = vsel %vm4230_vm6, %v721_v13, 0.0  ;;  %v723_v16 = vpop.f32.mrb[11].mxu0  ;;  %v1221_v13 = vld [vmem:[%s5213_s3 + $0x18] sm:$0xff] }
 0x217   : > { %v878_v17 = vadd.f32 %v861_v47, %v740_v15  ;;  %v1167_v15 = vld [vmem:[%s5212_s2 + $0x28] sm:$0xff] }
 0x218   : > { %v1223_v16 = vld [vmem:[%s5213_s3 + $0x28] sm:$0xff] }
 0x21b   : > { %v726_v18 = vpop.f32.mrb[12].mxu0 }
 0x21c   : > { %v741_v19 = vsel %vm4230_vm6, %v726_v18, 0.0  ;;  %v728_v20 = vpop.f32.mrb[13].mxu0 }
 0x21d   : > { %v729_v21 = vpop.f32.mrb[14].mxu0  ;;  %v879_v22 = vadd.f32 %v866_v49, %v741_v19 }
 0x21e   : > { %v742_v23 = vsel %vm4230_vm6, %v729_v21, 0.0  ;;  %v731_v24 = vpop.f32.mrb[15].mxu0 }
 0x21f   : > { %v880_v25 = vadd.f32 %v869_v51, %v742_v23 }
 0x233   : > { %v1008_v27 = vpop.f32.mrb[16].mxu0 }
 0x234   : > { %v1041_v28 = vsel %vm4250_vm7, %v1008_v27, 0.0  ;;  %v1010_v29 = vpop.f32.mrb[17].mxu0 }
 0x235   : > { %v4256_v30 = vadd.f32 %v1041_v28, %v873_v60  ;;  %v1011_v31 = vpop.f32.mrb[18].mxu0 }
 0x236   : > { %v1042_v32 = vsel %vm4250_vm7, %v1011_v31, 0.0  ;;  %v1013_v33 = vpop.f32.mrb[19].mxu0 }
 0x237   : > { %v4260_v0 = vadd.f32 %v1042_v32, %v874_v1  ;;  %v1057_v34 = vsel %vm372_vm0, %v4256_v30, 0.0 }
 0x238   : > { %1058 = vadd.xlane.f32.xlu0 %v1057_v34 }
 0x239   : > { %v1060_v35 = vsel %vm372_vm0, %v4260_v0, 0.0 }
 0x23a   : > { %1061 = vadd.xlane.f32.xlu1 %v1060_v35 }
 0x23b   : > { %v1016_v36 = vpop.f32.mrb[20].mxu0 }
 0x23c   : > { %v1043_v37 = vsel %vm4250_vm7, %v1016_v36, 0.0  ;;  %v1018_v38 = vpop.f32.mrb[21].mxu0 }
 0x23d   : > { %v4268_v39 = vadd.f32 %v1043_v37, %v875_v6  ;;  %v1019_v40 = vpop.f32.mrb[22].mxu0  ;;  %v1163_v6 = vld [vmem:[%s5212_s2 + $0x8] sm:$0xff] }
 0x23e   : > { %v1044_v41 = vsel %vm4250_vm7, %v1019_v40, 0.0  ;;  %v1021_v42 = vpop.f32.mrb[23].mxu0 }
 0x23f   : > { %v4272_v43 = vadd.f32 %v1044_v41, %v876_v9  ;;  %v1063_v44 = vsel %vm372_vm0, %v4268_v39, 0.0  ;;  %v1164_v9 = vld [vmem:[%s5212_s2 + $0x10] sm:$0xff] }
 0x240   : > { %1064 = vadd.xlane.f32.xlu0 %v1063_v44 }
 0x241   : > { %v1066_v46 = vsel %vm372_vm0, %v4272_v43, 0.0 }
 0x243   : > { %v1024_v45 = vpop.f32.mrb[24].mxu0 }
 0x244   : > { %v1045_v47 = vsel %vm4250_vm7, %v1024_v45, 0.0  ;;  %v1026_v48 = vpop.f32.mrb[25].mxu0  ;;  %1067 = vadd.xlane.f32.xlu0 %v1066_v46 }
 0x245   : > { %v4280_v49 = vadd.f32 %v1045_v47, %v877_v14  ;;  %v1027_v50 = vpop.f32.mrb[26].mxu0  ;;  %v1166_v14 = vld [vmem:[%s5212_s2 + $0x20] sm:$0xff] }
 0x246   : > { %v1046_v51 = vsel %vm4250_vm7, %v1027_v50, 0.0  ;;  %v1029_v52 = vpop.f32.mrb[27].mxu0 }
 0x247   : > { %v4284_v53 = vadd.f32 %v1046_v51, %v878_v17  ;;  %v1069_v54 = vsel %vm372_vm0, %v4280_v49, 0.0  ;;  %v1169_v17 = vld [vmem:[%s5212_s2 + $0x38] sm:$0xff] }
 0x248   : > { %1070 = vadd.xlane.f32.xlu1 %v1069_v54 }
 0x249   : > { %v1072_v55 = vsel %vm372_vm0, %v4284_v53, 0.0 }
 0x24a   : > { %1073 = vadd.xlane.f32.xlu0 %v1072_v55 }
 0x24b   : > { %v1032_v57 = vpop.f32.mrb[28].mxu0 }
 0x24c   : > { %v1047_v58 = vsel %vm4250_vm7, %v1032_v57, 0.0  ;;  %v1034_v59 = vpop.f32.mrb[29].mxu0 }
 0x24d   : > { %v4292_v60 = vadd.f32 %v1047_v58, %v879_v22  ;;  %v1035_v61 = vpop.f32.mrb[30].mxu0  ;;  %v1225_v59 = vld [vmem:[%s5213_s3 + $0x38] sm:$0xff] }
 0x24e   : > { %v1048_v62 = vsel %vm4250_vm7, %v1035_v61, 0.0  ;;  %v1037_v63 = vpop.f32.mrb[31].mxu0  ;;  %v1297_v61 = vld [vmem:[%s5215_s5 + $0x8] sm:$0xff] }
 0x24f   : > { %v4296_v1 = vadd.f32 %v1048_v62, %v880_v25  ;;  %v1075_v2 = vsel %vm372_vm0, %v4292_v60, 0.0  ;;  %v1224_v62 = vld [vmem:[%s5213_s3 + $0x30] sm:$0xff]  ;;  %v1296_v63 = vld [vmem:[%s5215_s5] sm:$0xff] }
 0x250   : > { %1076 = vadd.xlane.f32.xlu1 %v1075_v2 }
 0x251   : > { %v1078_v3 = vsel %vm372_vm0, %v4296_v1, 0.0 }
 0x252   : > { %1079 = vadd.xlane.f32.xlu0 %v1078_v3 }
 0x261   : > { %1172 = vperm.xlu1 %3703, %v1162_v4  }
 0x265   : > { %1228 = vperm.xlu1 %3703, %v1218_v5  }
 0x268   : > { %1177 = vperm.xlu0 %3704, %v1163_v6  }
 0x269   : > { %1233 = vperm.xlu1 %3703, %v1219_v7  }
 0x26c   : > { %1248 = vperm.xlu0 %3704, %v1222_v8  }
 0x26d   : > { %1182 = vperm.xlu1 %3703, %v1164_v9  }
 0x270   : > { %1202 = vperm.xlu0 %3704, %v1168_v10  }
 0x271   : > { %1187 = vperm.xlu1 %3703, %v1165_v11  }
 0x275   : > { %1238 = vperm.xlu1 %3703, %v1220_v12  }
 0x279   : > { %1243 = vperm.xlu1 %3703, %v1221_v13  }
 0x27d   : > { %1192 = vperm.xlu1 %3703, %v1166_v14  }
 0x281   : > { %1197 = vperm.xlu1 %3703, %v1167_v15  }
 0x285   : > { %1253 = vperm.xlu1 %3703, %v1223_v16  }
 0x289   : > { %1207 = vperm.xlu1 %3703, %v1169_v17  }
 0x2c5   : > { %v1059_v18 = vpop.xlane.xlu0 %1058 }
 0x2c6   : > { %v1082_v19 = vmul.f32 0.25, %v1059_v18 }
 0x2c7   : > { %v1062_v20 = vpop.xlane.xlu1 %1061 }
 0x2c8   : > { %v4345_v21 = vsub.f32 %v4256_v30, %v1082_v19  ;;  %v1083_v22 = vmul.f32 0.25, %v1062_v20 }
 0x2ca   : > { %v4348_v23 = vsub.f32 %v4260_v0, %v1083_v22  ;;  %v1098_v24 = vmul.f32 %v4345_v21, %v4345_v21 }
 0x2cc   : > { %v1106_v25 = vsel %vm372_vm0, %v1098_v24, 0.0  ;;  %v1099_v27 = vmul.f32 %v4348_v23, %v4348_v23 }
 0x2cd   : > { %v1065_v28 = vpop.xlane.xlu0 %1064  ;;  %1107 = vadd.xlane.f32.xlu1 %v1106_v25 }
 0x2ce   : > { %v1084_v29 = vmul.f32 0.25, %v1065_v28  ;;  %v1109_v31 = vsel %vm372_vm0, %v1099_v27, 0.0 }
 0x2cf   : > { %1110 = vadd.xlane.f32.xlu0 %v1109_v31 }
 0x2d0   : > { %v4357_v30 = vsub.f32 %v4268_v39, %v1084_v29 }
 0x2d1   : > { %v1068_v32 = vpop.xlane.xlu0 %1067 }
 0x2d2   : > { %v1085_v33 = vmul.f32 0.25, %v1068_v32  ;;  %v1100_v0 = vmul.f32 %v4357_v30, %v4357_v30 }
 0x2d4   : > { %v4362_v34 = vsub.f32 %v4272_v43, %v1085_v33  ;;  %v1112_v35 = vsel %vm372_vm0, %v1100_v0, 0.0 }
 0x2d5   : > { %v1071_v36 = vpop.xlane.xlu1 %1070  ;;  %1113 = vadd.xlane.f32.xlu1 %v1112_v35 }
 0x2d6   : > { %v1086_v37 = vmul.f32 0.25, %v1071_v36  ;;  %v1101_v38 = vmul.f32 %v4362_v34, %v4362_v34 }
 0x2d7   : > { %v1074_v40 = vpop.xlane.xlu0 %1073 }
 0x2d8   : > { %v4368_v39 = vsub.f32 %v4280_v49, %v1086_v37  ;;  %v1087_v41 = vmul.f32 0.25, %v1074_v40  ;;  %v1115_v42 = vsel %vm372_vm0, %v1101_v38, 0.0 }
 0x2d9   : > { %1116 = vadd.xlane.f32.xlu0 %v1115_v42 }
 0x2da   : > { %v4372_v44 = vsub.f32 %v4284_v53, %v1087_v41  ;;  %v1102_v43 = vmul.f32 %v4368_v39, %v4368_v39 }
 0x2dc   : > { %v1118_v45 = vsel %vm372_vm0, %v1102_v43, 0.0  ;;  %v1103_v46 = vmul.f32 %v4372_v44, %v4372_v44 }
 0x2dd   : > { %1119 = vadd.xlane.f32.xlu1 %v1118_v45  ;;  %v1077_v47 = vpop.xlane.xlu1 %1076 }
 0x2de   : > { %v1088_v48 = vmul.f32 0.25, %v1077_v47  ;;  %v1121_v49 = vsel %vm372_vm0, %v1103_v46, 0.0 }
 0x2df   : > { %1122 = vadd.xlane.f32.xlu0 %v1121_v49  ;;  %v1080_v50 = vpop.xlane.xlu0 %1079 }
 0x2e0   : > { %v4381_v51 = vsub.f32 %v4292_v60, %v1088_v48  ;;  %v1089_v52 = vmul.f32 0.25, %v1080_v50  ;;  %v3888_v60 = vmov 0.0  }
 0x2e1   : > { %3553 = vmatprep.subr.bf16.mxu1 %v3888_v60  ;;  %3561 = vmatprep.mubr.msk.bf16.mxu1 %vm3889_vm8, %v3888_v60 }
 0x2e2   : > { %v4384_v53 = vsub.f32 %v4296_v1, %v1089_v52  ;;  %v1104_v54 = vmul.f32 %v4381_v51, %v4381_v51  ;;  %v1173_v1 = vpop.permute.xlu1 %1172 }
 0x2e4   : > { %v1124_v55 = vsel %vm372_vm0, %v1104_v54, 0.0  ;;  %v1105_v57 = vmul.f32 %v4384_v53, %v4384_v53 }
 0x2e5   : > { %1125 = vadd.xlane.f32.xlu1 %v1124_v55 }
 0x2e6   : > { %v1127_v58 = vsel %vm372_vm0, %v1105_v57, 0.0  ;;  %v1229_v2 = vpop.permute.xlu1 %1228 }
 0x2e7   : > { %1128 = vadd.xlane.f32.xlu0 %v1127_v58  ;;  %v1178_v10 = vpop.permute.xlu0 %1177 }
 0x2ea   : > { %v1234_v3 = vpop.permute.xlu1 %1233 }
 0x2eb   : > { %v4415_v12 = vpop.permute.xlu0 %1248 }
 0x2ee   : > { %v1183_v4 = vpop.permute.xlu1 %1182 }
 0x2ef   : > { %v4419_v14 = vpop.permute.xlu0 %1202 }
 0x2f2   : > { %v1188_v5 = vpop.permute.xlu1 %1187 }
 0x2f6   : > { %1263 = vperm.xlu1 %3703, %v1225_v59   ;;  %v1239_v6 = vpop.permute.xlu1 %1238 }
 0x2fa   : > { %1313 = vperm.xlu1 %3703, %v1297_v61   ;;  %v4407_v7 = vpop.permute.xlu1 %1243 }
 0x2fd   : > { %1258 = vperm.xlu0 %3704, %v1224_v62  }
 0x2fe   : > { %v4409_v8 = vpop.permute.xlu1 %1192 }
 0x301   : > { %1308 = vperm.xlu0 %3704, %v1296_v63  }
 0x302   : > { %v4411_v9 = vpop.permute.xlu1 %1197 }
 0x306   : > { %v4413_v11 = vpop.permute.xlu1 %1253 }
 0x30a   : > { %v4417_v13 = vpop.permute.xlu1 %1207 }
 0x35a   : > { %v1108_v15 = vpop.xlane.xlu1 %1107 }
 0x35b   : > { %v1130_v16 = vmul.f32 0.25, %v1108_v15 }
 0x35c   : > { %v1111_v17 = vpop.xlane.xlu0 %1110 }
 0x35d   : > { %v1138_v18 = vadd.f32 1e-05, %v1130_v16  ;;  %v1131_v19 = vmul.f32 0.25, %v1111_v17 }
 0x35f   : > { %3838 = vrsqrt.f32 %v1138_v18  ;;  %v1139_v20 = vadd.f32 1e-05, %v1131_v19 }
 0x361   : > { %3840 = vrsqrt.f32 %v1139_v20 }
 0x362   : > { %v1114_v22 = vpop.xlane.xlu1 %1113 }
 0x363   : > { %v1132_v24 = vmul.f32 0.25, %v1114_v22 }
 0x365   : > { %v1140_v25 = vadd.f32 1e-05, %v1132_v24 }
 0x366   : > { %v1117_v27 = vpop.xlane.xlu0 %1116 }
 0x367   : > { %3842 = vrsqrt.f32 %v1140_v25  ;;  %v1133_v28 = vmul.f32 0.25, %v1117_v27  ;;  %v3785_v27 = vld [vmem:[%s5214_s4] sm:$0xff]  }
 0x369   : > { %v3839_v29 = vpop.eup %3838  ;;  %v1141_v31 = vadd.f32 1e-05, %v1133_v28  ;;  %v3786_v28 = vld [vmem:[%s5214_s4 + $0x8] sm:$0xff]  }
 0x36a   : > { %v1154_v32 = vmul.f32 %v3839_v29, %v4345_v21  ;;  %v1120_v33 = vpop.xlane.xlu1 %1119  ;;  %v3787_v29 = vld [vmem:[%s5214_s4 + $0x10] sm:$0xff]  }
 0x36b   : > { %v3841_v0 = vpop.eup %3840  ;;  %3844 = vrsqrt.f32 %v1141_v31  ;;  %v1134_v35 = vmul.f32 0.25, %v1120_v33  ;;  %v3788_v31 = vld [vmem:[%s5214_s4 + $0x18] sm:$0xff]  }
 0x36c   : > { %v1155_v36 = vmul.f32 %v3841_v0, %v4348_v23  ;;  %v1123_v37 = vpop.xlane.xlu0 %1122  ;;  %v1210_v38 = vmul.f32 %v1173_v1, %v1154_v32  ;;  %v3789_v32 = vld [vmem:[%s5214_s4 + $0x20] sm:$0xff]  }
 0x36d   : > { %v1142_v40 = vadd.f32 1e-05, %v1134_v35  ;;  %v1135_v41 = vmul.f32 0.25, %v1123_v37 }
 0x36e   : > { %v1211_v42 = vmul.f32 %v1178_v10, %v1155_v36  ;;  %v4423_v43 = vadd.f32 %v1229_v2, %v1210_v38 }
 0x36f   : > { %3846 = vrsqrt.f32 %v1142_v40  ;;  %v1143_v45 = vadd.f32 1e-05, %v1135_v41 }
 0x370   : > { %v4425_v46 = vadd.f32 %v1234_v3, %v1211_v42  ;;  %v1274_v49 = vmax.f32 %v4423_v43, 0.0 }
 0x371   : > { %v3843_v47 = vpop.eup %3842  ;;  %3848 = vrsqrt.f32 %v1143_v45 }
 0x372   : > { %v1156_v21 = vmul.f32 %v3843_v47, %v4357_v30  ;;  %v1126_v48 = vpop.xlane.xlu1 %1125  ;;  %v1275_v23 = vmax.f32 %v4425_v46, 0.0 }
 0x373   : > { %v1136_v50 = vmul.f32 0.25, %v1126_v48 }
 0x374   : > { %v1129_v52 = vpop.xlane.xlu0 %1128  ;;  %v4434_v54 = vpack.c.bf16 %v1275_v23, %v1274_v49  ;;  %v1212_v55 = vmul.f32 %v1183_v4, %v1156_v21 }
 0x375   : > { %v3845_v57 = vpop.eup %3844  ;;  %v1144_v58 = vadd.f32 1e-05, %v1136_v50  ;;  %v1137_v59 = vmul.f32 0.25, %v1129_v52 }
 0x376   : > { %v1157_v61 = vmul.f32 %v3845_v57, %v4362_v34  ;;  %3554 = vmatpush3.bf16.msra.mxu1 %v4434_v54  ;;  %1857 = vst.msk [vmem:[#allocation3 + $0x128] sm:$0xff] %vm372_vm0, %v4434_v54  ;;  %v4441_v63 = vadd.f32 %v1239_v6, %v1212_v55 }
 0x377   : > { %3850 = vrsqrt.f32 %v1144_v58  ;;  %v1145_v30 = vadd.f32 1e-05, %v1137_v59  ;;  %3555 = vmatprep.subr.bf16.mxu1 %v3888_v60 }
 0x378   : > { %v1213_v62 = vmul.f32 %v1188_v5, %v1157_v61  ;;  %v1276_v10 = vmax.f32 %v4441_v63, 0.0 }
 0x379   : > { %v3847_v1 = vpop.eup %3846  ;;  %3852 = vrsqrt.f32 %v1145_v30 }
 0x37a   : > { %v1158_v2 = vmul.f32 %v3847_v1, %v4368_v39  ;;  %v4445_v3 = vadd.f32 %v4407_v7, %v1213_v62 }
 0x37b   : > { %v3849_v34 = vpop.eup %3848 }
 0x37c   : > { %v1159_v4 = vmul.f32 %v3849_v34, %v4372_v44  ;;  %v1277_v15 = vmax.f32 %v4445_v3, 0.0  ;;  %v1214_v16 = vmul.f32 %v4409_v8, %v1158_v2  ;;  %v1259_v20 = vpop.permute.xlu0 %1258 }
 0x37e   : > { %v4455_v5 = vpack.c.bf16 %v1277_v15, %v1276_v10  ;;  %v1215_v39 = vmul.f32 %v4411_v9, %v1159_v4  ;;  %v4459_v6 = vadd.f32 %v4415_v12, %v1214_v16 }
 0x380   : > { %3556 = vmatpush3.bf16.msra.mxu1 %v4455_v5  ;;  %1858 = vst.msk [vmem:[#allocation3 + $0x140] sm:$0xff] %vm372_vm0, %v4455_v5  ;;  %v4465_v44 = vadd.f32 %v4413_v11, %v1215_v39  ;;  %v1278_v17 = vmax.f32 %v4459_v6, 0.0  ;;  %v1309_v33 = vpop.permute.xlu0 %1308  ;;  %v1298_v39 = vld [vmem:[%s5215_s5 + $0x10] sm:$0xff] }
 0x381   : > { %v3851_v7 = vpop.eup %3850  ;;  %3557 = vmatprep.subr.bf16.mxu1 %v3888_v60 }
 0x382   : > { %v1160_v8 = vmul.f32 %v3851_v7, %v4381_v51  ;;  %v1279_v9 = vmax.f32 %v4465_v44, 0.0  ;;  %v1264_v51 = vpop.permute.xlu1 %1263  ;;  %v1299_v7 = vld [vmem:[%s5215_s5 + $0x18] sm:$0xff] }
 0x383   : > { %v3853_v18 = vpop.eup %3852 }
 0x384   : > { %v1161_v12 = vmul.f32 %v3853_v18, %v4384_v53  ;;  %v1216_v19 = vmul.f32 %v4419_v14, %v1160_v8  ;;  %v4477_v11 = vpack.c.bf16 %v1279_v9, %v1278_v17  ;;  %v1300_v8 = vld [vmem:[%s5215_s5 + $0x20] sm:$0xff]  ;;  %v1301_v18 = vld [vmem:[%s5215_s5 + $0x28] sm:$0xff] }
 0x386   : > { %v1217_v22 = vmul.f32 %v4417_v13, %v1161_v12  ;;  %v4480_v24 = vadd.f32 %v1259_v20, %v1216_v19  ;;  %3558 = vmatpush3.bf16.msra.mxu1 %v4477_v11  ;;  %1859 = vst.msk [vmem:[#allocation3 + $0x158] sm:$0xff] %vm372_vm0, %v4477_v11  ;;  %v1314_v37 = vpop.permute.xlu1 %1313  ;;  %v1302_v12 = vld [vmem:[%s5215_s5 + $0x30] sm:$0xff]  ;;  %v1303_v19 = vld [vmem:[%s5215_s5 + $0x38] sm:$0xff]  ;;  %v1305_v20 = vld [vmem:[%s5215_s5 + $0x48] sm:$0xff] }
 0x387   : > { %3559 = vmatprep.subr.bf16.mxu1 %v3888_v60 }
 0x388   : > { %v4486_v53 = vadd.f32 %v1264_v51, %v1217_v22  ;;  %v1280_v25 = vmax.f32 %v4480_v24, 0.0 }
 0x38a   : > { %v1281_v14 = vmax.f32 %v4486_v53, 0.0  ;;  %v4645_v53 = vld [vmem:[#allocation3 + $0x128] sm:$0xff] }
 0x38c   : > { %v4494_v13 = vpack.c.bf16 %v1281_v14, %v1280_v25 }
 0x38e   : > { %1860 = vst.msk [vmem:[#allocation3 + $0x170] sm:$0xff] %vm372_vm0, %v4494_v13  ;;  %3560 = vmatpush3.bf16.msra.mxu1 %v4494_v13 }
 0x38f   : > { %3581 = vmatprep.subr.mxu1 %v3888_v60 }
 0x391   : > { %3562 = vmatmul.mubr.msk.bf16.vlgmr.msra.gmra.mrb[16].mxu1 %vm655_vm4, %v3785_v27 }
 0x392   : > { %3565 = vmatprep.mubr.msk.bf16.mxu1 %vm3889_vm8, %v3888_v60 }
 0x399   : > { %3566 = vmatmul.mubr.msk.bf16.gmra.mrb[20].mxu1 %vm655_vm4, %v3786_v28 }
 0x39a   : > { %3569 = vmatprep.mubr.msk.bf16.mxu1 %vm3889_vm8, %v3888_v60 }
 0x3a1   : > { %3570 = vmatmul.mubr.msk.bf16.gmra.mrb[24].mxu1 %vm655_vm4, %v3787_v29 }
 0x3a2   : > { %3573 = vmatprep.mubr.msk.bf16.mxu1 %vm3889_vm8, %v3888_v60 }
 0x3a9   : > { %3574 = vmatmul.mubr.msk.bf16.gmra.mrb[28].mxu1 %vm655_vm4, %v3788_v31 }
 0x3aa   : > { %3577 = vmatprep.mubr.msk.bf16.mxu1 %vm3889_vm8, %v3888_v60 }
 0x3b1   : > { %3578 = vmatmul.mubr.msk.bf16.gmra.mrb[32].mxu1 %vm655_vm4, %v3789_v32 }
 0x3b2   : > { %3583 = vmatprep.mubr.msk.f32.mxu1 %vm3889_vm8, %v3888_v60 }
 0x464   : > { %v1430_v0 = vpop.f32.mrb[16].mxu1 }
 0x465   : > { %v1431_v35 = vadd.f32 %v1430_v0, %v1309_v33  ;;  %v3563_v36 = vpop.f32.mrb[17].mxu1  ;;  %v1304_v33 = vld [vmem:[%s5215_s5 + $0x40] sm:$0xff] }
 0x466   : > { %v1433_v38 = vpop.f32.mrb[18].mxu1 }
 0x467   : > { %v1434_v40 = vadd.f32 %v1433_v38, %v1314_v37  ;;  %1469 = vxpose.xlu0.b32.start.end [1/1] (short) (narrow) %v1431_v35, 8  ;;  %v3564_v41 = vpop.f32.mrb[19].mxu1 }
 0x469   : > { %3582 = vmatpush3.msra.mxu1 %v1434_v40 }
 0x46c   : > { %v1438_v42 = vpop.f32.mrb[20].mxu1 }
 0x46d   : > { %v3567_v45 = vpop.f32.mrb[21].mxu1 }
 0x46e   : > { %v4530_v47 = vpop.f32.mrb[22].mxu1 }
 0x46f   : > { %v3568_v21 = vpop.f32.mrb[23].mxu1 }
 0x474   : > { %v4532_v48 = vpop.f32.mrb[24].mxu1 }
 0x475   : > { %v3571_v50 = vpop.f32.mrb[25].mxu1 }
 0x476   : > { %v4534_v52 = vpop.f32.mrb[26].mxu1 }
 0x477   : > { %v3572_v60 = vpop.f32.mrb[27].mxu1 }
 0x47c   : > { %v4536_v55 = vpop.f32.mrb[28].mxu1 }
 0x47d   : > { %v3575_v57 = vpop.f32.mrb[29].mxu1 }
 0x47e   : > { %v4538_v58 = vpop.f32.mrb[30].mxu1 }
 0x47f   : > { %v3576_v59 = vpop.f32.mrb[31].mxu1 }
 0x484   : > { %v4540_v61 = vpop.f32.mrb[32].mxu1 }
 0x485   : > { %v3579_v30 = vpop.f32.mrb[33].mxu1 }
 0x486   : > { %v4542_v62 = vpop.f32.mrb[34].mxu1 }
 0x487   : > { %v3580_v1 = vpop.f32.mrb[35].mxu1 }
 0x4e7   : > { %v1485_v2 = vpop.trf.xlu0 }
 0x4e8   : > { %3584 = vmatmul.mubr.msk.f32.vlgmr.msra.gmra.mrb[36].mxu1 %vm1501_vm9, %v1485_v2 }
 0x5bb   : > { %v1571_v34 = vpop.f32.mrb[36].mxu1 }
 0x5bc   : > { %v1576_v4 = vsel %vm1575_vm10, %v1571_v34, -inf  ;;  %v3585_v16 = vpop.f32.mrb[37].mxu1 }
 0x5bd   : > { %1577 = vmax.xlane.f32.xlu1 %v1576_v4 }
 0x5ce   : > { %1318 = vperm.xlu1 %3703, %v1298_v39  }
 0x5d2   : > { %1323 = vperm.xlu1 %3703, %v1299_v7  }
 0x5d6   : > { %1328 = vperm.xlu1 %3703, %v1300_v8  }
 0x5da   : > { %1333 = vperm.xlu1 %3703, %v1301_v18  }
 0x5de   : > { %1338 = vperm.xlu1 %3703, %v1302_v12  }
 0x5e2   : > { %1343 = vperm.xlu1 %3703, %v1303_v19  }
 0x5e6   : > { %1353 = vperm.xlu1 %3703, %v1305_v20  }
 0x64a   : > { %v1578_v22 = vpop.xlane.xlu1 %1577 }
 0x64b   : > { %v1579_v51 = vsub.f32 %v1571_v34, %v1578_v22 }
 0x64d   : > { %v1580_v27 = vmul.f32 1.442695, %v1579_v51 }
 0x64e   : > { %v1319_v28 = vpop.permute.xlu1 %1318 }
 0x64f   : > { %3854 = vpow2.f32 %v1580_v27  ;;  %v1439_v29 = vadd.f32 %v1438_v42, %v1319_v28 }
 0x651   : > { %3588 = vmatprep.mubr.msk.f32.mxu1 %vm372_vm0, %v1439_v29 }
 0x652   : > { %v1324_v0 = vpop.permute.xlu1 %1323 }
 0x653   : > { %v1442_v21 = vadd.f32 %v4530_v47, %v1324_v0 }
 0x656   : > { %v1329_v36 = vpop.permute.xlu1 %1328 }
 0x657   : > { %v1447_v60 = vadd.f32 %v4532_v48, %v1329_v36 }
 0x659   : > { %v3855_v31 = vpop.eup %3854 }
 0x65a   : > { %v1582_v32 = vsel %vm1575_vm10, %v3855_v31, 0.0  ;;  %v1334_v37 = vpop.permute.xlu1 %1333 }
 0x65b   : > { %1583 = vadd.xlane.f32.xlu0 %v1582_v32  ;;  %v1450_v59 = vadd.f32 %v4534_v52, %v1334_v37  ;;  %v1720_v52 = vstv %s1719_s19 }
 0x65e   : > { %v1339_v45 = vpop.permute.xlu1 %1338 }
 0x65f   : > { %v1455_v30 = vadd.f32 %v4536_v55, %v1339_v45 }
 0x662   : > { %v1344_v57 = vpop.permute.xlu1 %1343 }
 0x663   : > { %v1458_v47 = vadd.f32 %v4538_v58, %v1344_v57  ;;  %v4709_v57 = vld [vmem:[#allocation3 + $0x140] sm:$0xff] }
 0x666   : > { %v1354_v1 = vpop.permute.xlu1 %1353 }
 0x667   : > { %v1466_v2 = vadd.f32 %v4542_v62, %v1354_v1 }
 0x671   : > { %1348 = vperm.xlu0 %3704, %v1304_v33  }
 0x675   : > { %1839 = vrot.lane.b32.xlu0 %v4455_v5, %s3884_s21 }
 0x679   : > { %1843 = vrot.lane.b32.xlu0 %v4494_v13, %s3884_s21 }
 0x6e8   : > { %v1584_v35 = vpop.xlane.xlu0 %1583 }
 0x6e9   : > { %3856 = vrcp.f32 %v1584_v35 }
 0x6f0   : > { %v1349_v38 = vpop.permute.xlu0 %1348 }
 0x6f1   : > { %v1463_v48 = vadd.f32 %v4540_v61, %v1349_v38 }
 0x6f3   : > { %v3857_v40 = vpop.eup %3856 }
 0x6f4   : > { %v1840_v41 = vpop.permute.xlu0 %1839  ;;  %v1586_v42 = vmul.f32 %v3857_v40, %v3855_v31 }
 0x6f5   : > { %1850 = vst.msk [vmem:[#allocation3 + $0x80] sm:$0xff] %vm439_vm1, %v1840_v41 }
 0x6f6   : > { %3586 = vmatprep.subr.msk.mxu1 %vm372_vm0, %v1586_v42 }
 0x6f7   : > { %3587 = vmatpush3.xpose.msk.msra.mxu1 %vm372_vm0, %v1586_v42 }
 0x6f8   : > { %v1844_v50 = vpop.permute.xlu0 %1843 }
 0x6f9   : > { %1852 = vst.msk [vmem:[#allocation3 + $0xb0] sm:$0xff] %vm439_vm1, %v1844_v50 }
 0x6fa   : > { %3589 = vmatmul.mubr.msk.f32.vlgmr.msra.gmra.mrb[38].mxu1 %vm372_vm0, %v1442_v21 }
 0x6fb   : > { %3591 = vmatprep.mubr.msk.f32.mxu1 %vm372_vm0, %v1447_v60  ;;  %v4707_v60 = vld [vmem:[#allocation3 + $0x158] sm:$0xff] }
 0x6fc   : > { %v4697_v45 = vld [vmem:[#allocation3 + $0x80] sm:$0xff] }
 0x6fe   : > { %3592 = vmatmul.mubr.msk.f32.gmra.mrb[40].mxu1 %vm372_vm0, %v1450_v59  ;;  %v3792_v59 = vld [vmem:[%s5217_s7 + $0x4] ss:$12 sps:$4 sm:$0xff]  }
 0x6ff   : > { %3594 = vmatprep.mubr.msk.f32.mxu1 %vm372_vm0, %v1455_v30  ;;  %2253 = vmatprep.mubr.bf16.mxu0 %v3792_v59 }
 0x700   : > { %v4726_v1 = vld [vmem:[#allocation3 + $0xb0] sm:$0xff] }
 0x702   : > { %3595 = vmatmul.mubr.msk.f32.gmra.mrb[42].mxu1 %vm372_vm0, %v1458_v47 }
 0x703   : > { %3597 = vmatprep.mubr.msk.f32.mxu1 %vm372_vm0, %v1463_v48 }
 0x706   : > { %3598 = vmatmul.mubr.msk.f32.gmra.mrb[44].mxu1 %vm372_vm0, %v1466_v2 }
 0x7cd   : > { %v3590_v55 = vpop.f32.mrb[38].mxu1 }
 0x7ce   : > { %v1722_v34 = vmul.f32 %v3590_v55, %v1720_v52  ;;  %v1680_v4 = vpop.f32.mrb[39].mxu1  ;;  %v4740_v55 = vld [vmem:[#allocation3 + $0x170] sm:$0xff] }
 0x7cf   : > { %v1721_v16 = vmul.f32 %v1720_v52, %v1680_v4 }
 0x7d0   : > { %v1730_v58 = vadd.f32 %v1722_v34, %v1275_v23 }
 0x7d1   : > { %v1729_v61 = vadd.f32 %v1721_v16, %v1274_v49  ;;  %v3593_v39 = vpop.f32.mrb[40].mxu1 }
 0x7d2   : > { %v1724_v7 = vmul.f32 %v3593_v39, %v1720_v52  ;;  %v1690_v8 = vpop.f32.mrb[41].mxu1 }
 0x7d3   : > { %v1737_v18 = vpack.c.bf16 %v1730_v58, %v1729_v61  ;;  %v1723_v12 = vmul.f32 %v1720_v52, %v1690_v8 }
 0x7d4   : > { %v1732_v62 = vadd.f32 %v1724_v7, %v1277_v15 }
 0x7d5   : > { %1853 = vst.msk [vmem:[#allocation3 + $0xc8] sm:$0xff] %vm372_vm0, %v1737_v18  ;;  %v1731_v19 = vadd.f32 %v1723_v12, %v1276_v10  ;;  %1817 = vrot.lane.b32.xlu1 %v1737_v18, %s3884_s21  ;;  %v3596_v46 = vpop.f32.mrb[42].mxu1 }
 0x7d6   : > { %v1726_v23 = vmul.f32 %v3596_v46, %v1720_v52  ;;  %v1700_v20 = vpop.f32.mrb[43].mxu1 }
 0x7d7   : > { %v1725_v43 = vmul.f32 %v1720_v52, %v1700_v20  ;;  %v1738_v49 = vpack.c.bf16 %v1732_v62, %v1731_v19 }
 0x7d8   : > { %v1734_v22 = vadd.f32 %v1726_v23, %v1279_v9  ;;  %v3802_v23 = vld [vmem:[%s5217_s7 + $0x8] ss:$12 sps:$4 sm:$0xff]  }
 0x7d9   : > { %v1733_v51 = vadd.f32 %v1725_v43, %v1278_v17  ;;  %1863 = vrot.lane.b32.xlu0 %v1738_v49, %s3885_s22  ;;  %1854 = vst.msk [vmem:[#allocation3 + $0xe0] sm:$0xff] %vm372_vm0, %v1738_v49  ;;  %1819 = vrot.lane.b32.xlu1 %v1738_v49, %s3884_s21  ;;  %v3599_v63 = vpop.f32.mrb[44].mxu1 }
 0x7da   : > { %v1728_v3 = vmul.f32 %v3599_v63, %v1720_v52  ;;  %v1710_v10 = vpop.f32.mrb[45].mxu1  ;;  %3616 = vmatprep.mubr.bf16.mxu1 %v3802_v23 }
 0x7db   : > { %v1739_v15 = vpack.c.bf16 %v1734_v22, %v1733_v51  ;;  %v1727_v27 = vmul.f32 %v1720_v52, %v1710_v10 }
 0x7dc   : > { %v1736_v28 = vadd.f32 %v1728_v3, %v1281_v14  ;;  %v4625_v17 = vld [vmem:[#allocation3 + $0xc8] sm:$0xff] }
 0x7dd   : > { %1855 = vst.msk [vmem:[#allocation3 + $0xf8] sm:$0xff] %vm372_vm0, %v1739_v15  ;;  %v1735_v6 = vadd.f32 %v1727_v27, %v1280_v25  ;;  %1883 = vrot.lane.b32.xlu0 %v4455_v5, %s3885_s22  ;;  %1821 = vrot.lane.b32.xlu1 %v1739_v15, %s3884_s21  ;;  %v3874_v5 = vld [vmem:[#allocation2] sm:$0xff] }
 0x7de   : > { %v4631_v9 = vpack.i.bf16 %v3874_v5, %v3874_v5 }
 0x7df   : > { %v1740_v44 = vpack.c.bf16 %v1736_v28, %v1735_v6  ;;  %v2989_v28 = vld [vmem:[%s5218_s8] sm:$0xff] }
 0x7e0   : > { %v4655_v14 = vld [vmem:[#allocation3 + $0xe0] sm:$0xff] }
 0x7e1   : > { %1867 = vrot.lane.b32.xlu0 %v1740_v44, %s3885_s22  ;;  %1856 = vst.msk [vmem:[#allocation3 + $0x110] sm:$0xff] %vm372_vm0, %v1740_v44  ;;  %1823 = vrot.lane.b32.xlu1 %v1740_v44, %s3884_s21 }
 0x7e4   : > { %v4639_v24 = vld [vmem:[#allocation3 + $0xf8] sm:$0xff] }
 0x7e5   : > { %1887 = vrot.lane.b32.xlu0 %v4494_v13, %s3885_s22  ;;  %1837 = vrot.lane.b32.xlu1 %v4434_v54, %s3884_s21 }
 0x7e9   : > { %2111 = vrot.lane.b32.xlu0 %v4625_v17, %s3886_s23  ;;  %1841 = vrot.lane.b32.xlu1 %v4477_v11, %s3884_s21 }
 0x7ed   : > { %3711 = vrot.lane.b32.xlu0 %v4631_v9, %s3886_s23  ;;  %1861 = vrot.lane.b32.xlu1 %v1737_v18, %s3885_s22 }
 0x7f1   : > { %3721 = vrot.lane.b32.xlu0 %v4631_v9, %s3886_s23  ;;  %1865 = vrot.lane.b32.xlu1 %v1739_v15, %s3885_s22 }
 0x7f5   : > { %2119 = vrot.lane.b32.xlu0 %v4639_v24, %s3886_s23  ;;  %1881 = vrot.lane.b32.xlu1 %v4434_v54, %s3885_s22  ;;  %v4659_v54 = vld [vmem:[#allocation3 + $0x110] sm:$0xff] }
 0x7f9   : > { %2127 = vrot.lane.b32.xlu0 %v4645_v53, %s3886_s23  ;;  %1885 = vrot.lane.b32.xlu1 %v4477_v11, %s3885_s22 }
 0x7fd   : > { %3706 = vrot.lane.b32.xlu1 %v4631_v9, %s3886_s23 }
 0x801   : > { %3716 = vrot.lane.b32.xlu1 %v4631_v9, %s3886_s23 }
 0x805   : > { %2115 = vrot.lane.b32.xlu1 %v4655_v14, %s3886_s23 }
 0x809   : > { %2123 = vrot.lane.b32.xlu1 %v4659_v54, %s3886_s23 }
 0x847   : > { %v1818_v25 = vpop.permute.xlu1 %1817 }
 0x848   : > { %1829 = vst.msk [vmem:[#allocation3 + $0x8] sm:$0xff] %vm439_vm1, %v1818_v25  ;;  %v2990_v25 = vld [vmem:[%s5218_s8 + $0x8] sm:$0xff] }
 0x84b   : > { %v1864_v11 = vpop.permute.xlu0 %1863  ;;  %v1820_v13 = vpop.permute.xlu1 %1819 }
 0x84c   : > { %1875 = vst.msk [vmem:[#allocation3 + $0x198] sm:$0xff] %vm464_vm2, %v1864_v11 }
 0x84d   : > { %1876 = vst.msk [vmem:[#allocation3 + $0x1a0] sm:$0xff] %vm466_vm3, %v1864_v11 }
 0x84e   : > { %1830 = vst.msk [vmem:[#allocation3 + $0x20] sm:$0xff] %vm439_vm1, %v1820_v13 }
 0x84f   : > { %v1884_v29 = vpop.permute.xlu0 %1883  ;;  %v1822_v31 = vpop.permute.xlu1 %1821  ;;  %v4667_v32 = vld [vmem:[#allocation3 + $0x8] sm:$0xff] }
 0x850   : > { %1895 = vst.msk [vmem:[#allocation3 + $0x1f8] sm:$0xff] %vm464_vm2, %v1884_v29  ;;  %2079 = vrot.lane.b32.xlu1 %v4667_v32, %s3886_s23 }
 0x851   : > { %1896 = vst.msk [vmem:[#allocation3 + $0x200] sm:$0xff] %vm466_vm3, %v1884_v29 }
 0x852   : > { %1831 = vst.msk [vmem:[#allocation3 + $0x38] sm:$0xff] %vm439_vm1, %v1822_v31 }
 0x853   : > { %v1868_v33 = vpop.permute.xlu0 %1867  ;;  %v1824_v0 = vpop.permute.xlu1 %1823  ;;  %v1951_v7 = vld [vmem:[#allocation3 + $0x198] sm:$0xff] }
 0x854   : > { %1879 = vst.msk [vmem:[#allocation3 + $0x1c8] sm:$0xff] %vm464_vm2, %v1868_v33  ;;  %3726 = vrot.lane.b32.xlu1 %v4631_v9, %s3886_s23  ;;  %v4748_v58 = vld [vmem:[#allocation3 + $0x1a0] sm:$0xff] }
 0x855   : > { %v4674_v35 = vld [vmem:[#allocation3 + $0x20] sm:$0xff]  ;;  %1880 = vst.msk [vmem:[#allocation3 + $0x1d0] sm:$0xff] %vm466_vm3, %v1868_v33 }
 0x856   : > { %1832 = vst.msk [vmem:[#allocation3 + $0x50] sm:$0xff] %vm439_vm1, %v1824_v0  ;;  %2083 = vrot.lane.b32.xlu0 %v4674_v35, %s3886_s23 }
 0x857   : > { %v1888_v36 = vpop.permute.xlu0 %1887  ;;  %v1838_v37 = vpop.permute.xlu1 %1837  ;;  %v1959_v43 = vld [vmem:[#allocation3 + $0x1f8] sm:$0xff] }
 0x858   : > { %1899 = vst.msk [vmem:[#allocation3 + $0x228] sm:$0xff] %vm464_vm2, %v1888_v36  ;;  %v4768_v19 = vld [vmem:[#allocation3 + $0x200] sm:$0xff] }
 0x859   : > { %v4683_v38 = vld [vmem:[#allocation3 + $0x38] sm:$0xff]  ;;  %1900 = vst.msk [vmem:[#allocation3 + $0x230] sm:$0xff] %vm466_vm3, %v1888_v36  ;;  %v2994_v36 = vld [vmem:[%s5218_s8 + $0x28] sm:$0xff] }
 0x85a   : > { %1849 = vst.msk [vmem:[#allocation3 + $0x68] sm:$0xff] %vm439_vm1, %v1838_v37  ;;  %3731 = vrot.lane.b32.xlu0 %v4631_v9, %s3886_s23  ;;  %2087 = vrot.lane.b32.xlu1 %v4683_v38, %s3886_s23  ;;  %v2991_v37 = vld [vmem:[%s5218_s8 + $0x10] sm:$0xff] }
 0x85b   : > { %v1842_v40 = vpop.permute.xlu1 %1841  ;;  %v2112_v4 = vpop.permute.xlu0 %2111  ;;  %v1955_v62 = vld [vmem:[#allocation3 + $0x1c8] sm:$0xff] }
 0x85c   : > { %1851 = vst.msk [vmem:[#allocation3 + $0x98] sm:$0xff] %vm439_vm1, %v1842_v40  ;;  %v4758_v8 = vld [vmem:[#allocation3 + $0x1d0] sm:$0xff] }
 0x85d   : > { %v4692_v41 = vld [vmem:[#allocation3 + $0x50] sm:$0xff] }
 0x85e   : > { %2091 = vrot.lane.b32.xlu0 %v4692_v41, %s3886_s23 }
 0x85f   : > { %v1862_v42 = vpop.permute.xlu1 %1861  ;;  %v1963_v51 = vld [vmem:[#allocation3 + $0x228] sm:$0xff]  ;;  %v3712_v63 = vpop.permute.xlu0 %3711 }
 0x860   : > { %1873 = vst.msk [vmem:[#allocation3 + $0x180] sm:$0xff] %vm464_vm2, %v1862_v42  ;;  %v4781_v49 = vld [vmem:[#allocation3 + $0x230] sm:$0xff]  ;;  %v3713_v44 = vunpack.i.l.bf16 %v3712_v63  ;;  %v3714_v31 = vunpack.i.h.bf16 %v3712_v63 }
 0x861   : > { %v4699_v21 = vld [vmem:[#allocation3 + $0x68] sm:$0xff]  ;;  %1874 = vst.msk [vmem:[#allocation3 + $0x188] sm:$0xff] %vm466_vm3, %v1862_v42 }
 0x862   : > { %2099 = vrot.lane.b32.xlu0 %v4697_v45, %s3886_s23  ;;  %2095 = vrot.lane.b32.xlu1 %v4699_v21, %s3886_s23 }
 0x863   : > { %v1866_v50 = vpop.permute.xlu1 %1865  ;;  %v4728_v48 = vld [vmem:[#allocation3 + $0x98] sm:$0xff]  ;;  %v3722_v10 = vpop.permute.xlu0 %3721 }
 0x864   : > { %1877 = vst.msk [vmem:[#allocation3 + $0x1b0] sm:$0xff] %vm464_vm2, %v1866_v50  ;;  %v3723_v59 = vunpack.i.l.bf16 %v3722_v10 }
 0x865   : > { %1878 = vst.msk [vmem:[#allocation3 + $0x1b8] sm:$0xff] %vm466_vm3, %v1866_v50 }
 0x866   : > { %2135 = vrot.lane.b32.xlu0 %v4707_v60, %s3886_s23  ;;  %2131 = vrot.lane.b32.xlu1 %v4709_v57, %s3886_s23 }
 0x867   : > { %v1882_v30 = vpop.permute.xlu1 %1881  ;;  %v1949_v61 = vld [vmem:[#allocation3 + $0x180] sm:$0xff]  ;;  %v2120_v27 = vpop.permute.xlu0 %2119 }
 0x868   : > { %1893 = vst.msk [vmem:[#allocation3 + $0x1e0] sm:$0xff] %vm464_vm2, %v1882_v30  ;;  %v4738_v52 = vld [vmem:[#allocation3 + $0x188] sm:$0xff] }
 0x869   : > { %1894 = vst.msk [vmem:[#allocation3 + $0x1e8] sm:$0xff] %vm466_vm3, %v1882_v30 }
 0x86a   : > { %3741 = vrot.lane.b32.xlu0 %v4631_v9, %s3886_s23  ;;  %3736 = vrot.lane.b32.xlu1 %v4631_v9, %s3886_s23  ;;  %v2992_v9 = vld [vmem:[%s5218_s8 + $0x18] sm:$0xff] }
 0x86b   : > { %v1886_v47 = vpop.permute.xlu1 %1885  ;;  %v1953_v18 = vld [vmem:[#allocation3 + $0x1b0] sm:$0xff]  ;;  %v2128_v11 = vpop.permute.xlu0 %2127 }
 0x86c   : > { %1897 = vst.msk [vmem:[#allocation3 + $0x210] sm:$0xff] %vm464_vm2, %v1886_v47  ;;  %v4753_v39 = vld [vmem:[#allocation3 + $0x1b8] sm:$0xff] }
 0x86d   : > { %1898 = vst.msk [vmem:[#allocation3 + $0x218] sm:$0xff] %vm466_vm3, %v1886_v47 }
 0x86e   : > { %2107 = vrot.lane.b32.xlu0 %v4726_v1, %s3886_s23  ;;  %2103 = vrot.lane.b32.xlu1 %v4728_v48, %s3886_s23 }
 0x86f   : > { %v4736_v2 = vpop.permute.xlu1 %3706  ;;  %v1957_v46 = vld [vmem:[#allocation3 + $0x1e0] sm:$0xff] }
 0x870   : > { %v3708_v34 = vunpack.i.l.bf16 %v4736_v2  ;;  %v4763_v12 = vld [vmem:[#allocation3 + $0x1e8] sm:$0xff]  ;;  %v3709_v5 = vunpack.i.h.bf16 %v4736_v2  ;;  %v2993_v2 = vld [vmem:[%s5218_s8 + $0x20] sm:$0xff] }
 0x872   : > { %2143 = vrot.lane.b32.xlu0 %v4738_v52, %s3886_s23  ;;  %2139 = vrot.lane.b32.xlu1 %v4740_v55, %s3886_s23  ;;  %v2181_v16 = vsel %vm630_vm5, %v3708_v34, %v2112_v4 }
 0x873   : > { %3397 = vmatprep.subr.bf16.mxu0 %v2181_v16  ;;  %v1961_v22 = vld [vmem:[#allocation3 + $0x210] sm:$0xff]  ;;  %v3717_v3 = vpop.permute.xlu1 %3716 }
 0x874   : > { %v4776_v20 = vld [vmem:[#allocation3 + $0x218] sm:$0xff]  ;;  %v3718_v33 = vunpack.i.l.bf16 %v3717_v3  ;;  %v3719_v30 = vunpack.i.h.bf16 %v3717_v3 }
 0x876   : > { %2147 = vrot.lane.b32.xlu0 %v4748_v58, %s3886_s23  ;;  %2141 = vrot.lane.b32.xlu1 %v1949_v61, %s3886_s23  ;;  %v2183_v47 = vsel %vm630_vm5, %v3718_v33, %v2120_v27  ;;  %v3724_v61 = vunpack.i.h.bf16 %v3722_v10 }
 0x877   : > { %v2116_v15 = vpop.permute.xlu1 %2115 }
 0x878   : > { %v2182_v0 = vsel %vm630_vm5, %v3713_v44, %v2116_v15 }
 0x87a   : > { %2151 = vrot.lane.b32.xlu0 %v4753_v39, %s3886_s23  ;;  %2145 = vrot.lane.b32.xlu1 %v1951_v7, %s3886_s23 }
 0x87b   : > { %v2124_v6 = vpop.permute.xlu1 %2123 }
 0x87e   : > { %2155 = vrot.lane.b32.xlu0 %v4758_v8, %s3886_s23  ;;  %2149 = vrot.lane.b32.xlu1 %v1953_v18, %s3886_s23  ;;  %v2184_v18 = vsel %vm630_vm5, %v3723_v59, %v2124_v6  ;;  %v3790_v59 = vld [vmem:[%s5217_s7] ss:$12 sps:$4 sm:$0xff]  }
 0x882   : > { %2159 = vrot.lane.b32.xlu0 %v4763_v12, %s3886_s23  ;;  %2153 = vrot.lane.b32.xlu1 %v1955_v62, %s3886_s23  ;;  %v2995_v62 = vld [vmem:[%s5218_s8 + $0x30] sm:$0xff] }
 0x886   : > { %2163 = vrot.lane.b32.xlu0 %v4768_v19, %s3886_s23  ;;  %2157 = vrot.lane.b32.xlu1 %v1957_v46, %s3886_s23 }
 0x88a   : > { %2167 = vrot.lane.b32.xlu0 %v4776_v20, %s3886_s23  ;;  %2161 = vrot.lane.b32.xlu1 %v1959_v43, %s3886_s23 }
 0x88e   : > { %2171 = vrot.lane.b32.xlu0 %v4781_v49, %s3886_s23  ;;  %2165 = vrot.lane.b32.xlu1 %v1961_v22, %s3886_s23 }
 0x892   : > { %2667 = vrot.lane.b32.xlu0 %v4667_v32, %s3887_s24  ;;  %2169 = vrot.lane.b32.xlu1 %v1963_v51, %s3886_s23 }
 0x896   : > { %2669 = vrot.lane.b32.xlu0 %v4674_v35, %s3887_s24  ;;  %2683 = vrot.lane.b32.xlu1 %v4625_v17, %s3887_s24 }
 0x89a   : > { %2671 = vrot.lane.b32.xlu0 %v4683_v38, %s3887_s24  ;;  %2685 = vrot.lane.b32.xlu1 %v4655_v14, %s3887_s24 }
 0x89e   : > { %2673 = vrot.lane.b32.xlu0 %v4692_v41, %s3887_s24  ;;  %2687 = vrot.lane.b32.xlu1 %v4639_v24, %s3887_s24 }
 0x8a2   : > { %2675 = vrot.lane.b32.xlu0 %v4699_v21, %s3887_s24  ;;  %2689 = vrot.lane.b32.xlu1 %v4659_v54, %s3887_s24 }
 0x8a6   : > { %2677 = vrot.lane.b32.xlu0 %v4697_v45, %s3887_s24  ;;  %2691 = vrot.lane.b32.xlu1 %v4645_v53, %s3887_s24 }
 0x8aa   : > { %2679 = vrot.lane.b32.xlu0 %v4728_v48, %s3887_s24  ;;  %2693 = vrot.lane.b32.xlu1 %v4709_v57, %s3887_s24 }
 0x8ae   : > { %2681 = vrot.lane.b32.xlu0 %v4726_v1, %s3887_s24  ;;  %2695 = vrot.lane.b32.xlu1 %v4707_v60, %s3887_s24 }
 0x8b2   : > { %2701 = vrot.lane.b32.xlu0 %v4748_v58, %s3887_s24  ;;  %2697 = vrot.lane.b32.xlu1 %v4740_v55, %s3887_s24 }
 0x8b6   : > { %2705 = vrot.lane.b32.xlu0 %v4758_v8, %s3887_s24  ;;  %2699 = vrot.lane.b32.xlu1 %v4738_v52, %s3887_s24 }
 0x8ba   : > { %2709 = vrot.lane.b32.xlu0 %v4768_v19, %s3887_s24  ;;  %2703 = vrot.lane.b32.xlu1 %v4753_v39, %s3887_s24 }
 0x8be   : > { %2713 = vrot.lane.b32.xlu0 %v4781_v49, %s3887_s24  ;;  %2707 = vrot.lane.b32.xlu1 %v4763_v12, %s3887_s24 }
 0x8c2   : > { %2999 = vperm.xlu0 %3704, %v2989_v28   ;;  %2711 = vrot.lane.b32.xlu1 %v4776_v20, %s3887_s24  ;;  %v2080_v13 = vpop.permute.xlu1 %2079 }
 0x8c3   : > { %v2173_v29 = vsel %vm630_vm5, %v3709_v5, %v2080_v13 }
 0x8c4   : > { %3398 = vmatpush3.bf16.msra.mxu0 %v2173_v29 }
 0x8c5   : > { %3399 = vmatprep.subr.bf16.mxu0 %v2182_v0 }
 0x8c6   : > { %3014 = vperm.xlu0 %3704, %v2992_v9   ;;  %3004 = vperm.xlu1 %3703, %v2990_v25   ;;  %v3727_v42 = vpop.permute.xlu1 %3726 }
 0x8c7   : > { %v3728_v7 = vunpack.i.l.bf16 %v3727_v42  ;;  %v3729_v43 = vunpack.i.h.bf16 %v3727_v42 }
 0x8c8   : > { %v2084_v40 = vpop.permute.xlu0 %2083 }
 0x8c9   : > { %v2174_v50 = vsel %vm630_vm5, %v3714_v31, %v2084_v40  ;;  %v2185_v22 = vsel %vm630_vm5, %v3728_v7, %v2128_v11 }
 0x8ca   : > { %3024 = vperm.xlu0 %3704, %v2994_v36   ;;  %3009 = vperm.xlu1 %3703, %v2991_v37  }
 0x8cb   : > { %3400 = vmatpush3.bf16.msra.mxu0 %v2174_v50 }
 0x8cc   : > { %3401 = vmatprep.subr.bf16.mxu0 %v2183_v47  ;;  %v3732_v34 = vpop.permute.xlu0 %3731  ;;  %v2088_v4 = vpop.permute.xlu1 %2087 }
 0x8cd   : > { %v2175_v16 = vsel %vm630_vm5, %v3719_v30, %v2088_v4  ;;  %v3733_v10 = vunpack.i.l.bf16 %v3732_v34  ;;  %v3734_v15 = vunpack.i.h.bf16 %v3732_v34 }
 0x8ce   : > { %3019 = vperm.xlu1 %3703, %v2993_v2   ;;  %v3793_v2 = vld [vmem:[%s5217_s7 + $0x1c] ss:$12 sps:$4 sm:$0xff]  }
 0x8cf   : > { %3402 = vmatpush3.bf16.msra.mxu0 %v2175_v16 }
 0x8d0   : > { %3403 = vmatprep.subr.bf16.mxu0 %v2184_v18  ;;  %v2092_v46 = vpop.permute.xlu0 %2091 }
 0x8d1   : > { %v2176_v23 = vsel %vm630_vm5, %v3724_v61, %v2092_v46 }
 0x8d2   : > { %3029 = vperm.xlu1 %3703, %v2995_v62  }
 0x8d3   : > { %3404 = vmatpush3.bf16.msra.mxu0 %v2176_v23 }
 0x8d4   : > { %3405 = vmatprep.subr.bf16.mxu0 %v2185_v22  ;;  %v2100_v51 = vpop.permute.xlu0 %2099  ;;  %v2096_v63 = vpop.permute.xlu1 %2095 }
 0x8d5   : > { %v2177_v3 = vsel %vm630_vm5, %v3729_v43, %v2096_v63  ;;  %v2178_v44 = vsel %vm630_vm5, %v3734_v15, %v2100_v51 }
 0x8d7   : > { %3406 = vmatpush3.bf16.msra.mxu0 %v2177_v3 }
 0x8d8   : > { %v2136_v27 = vpop.permute.xlu0 %2135  ;;  %v2132_v28 = vpop.permute.xlu1 %2131 }
 0x8d9   : > { %v2186_v6 = vsel %vm630_vm5, %v3733_v10, %v2132_v28 }
 0x8da   : > { %3407 = vmatprep.subr.bf16.mxu0 %v2186_v6  ;;  %v3808_v6 = vld [vmem:[%s5217_s7 + $0x7c] ss:$12 sps:$4 sm:$0xff]  }
 0x8db   : > { %3408 = vmatpush3.bf16.msra.mxu0 %v2178_v44 }
 0x8dc   : > { %v3742_v5 = vpop.permute.xlu0 %3741  ;;  %v3737_v9 = vpop.permute.xlu1 %3736 }
 0x8dd   : > { %v3738_v25 = vunpack.i.l.bf16 %v3737_v9  ;;  %v3739_v11 = vunpack.i.h.bf16 %v3737_v9  ;;  %v3744_v0 = vunpack.i.h.bf16 %v3742_v5  ;;  %v3743_v36 = vunpack.i.l.bf16 %v3742_v5  ;;  %v3810_v5 = vld [vmem:[%s5217_s7 + $0x50] ss:$12 sps:$4 sm:$0xff]   ;;  %v3811_v9 = vld [vmem:[%s5217_s7 + $0x78] ss:$12 sps:$4 sm:$0xff]  }
 0x8df   : > { %v2187_v13 = vsel %vm630_vm5, %v3738_v25, %v2136_v27  ;;  %v3806_v27 = vld [vmem:[%s5217_s7 + $0x20] ss:$12 sps:$4 sm:$0xff]  }
 0x8e0   : > { %v2108_v29 = vpop.permute.xlu0 %2107  ;;  %v2104_v31 = vpop.permute.xlu1 %2103  ;;  %3409 = vmatprep.subr.bf16.mxu0 %v2187_v13  ;;  %v3818_v13 = vld [vmem:[%s5217_s7 + $0x68] ss:$12 sps:$4 sm:$0xff]  }
 0x8e1   : > { %v2179_v33 = vsel %vm630_vm5, %v3739_v11, %v2104_v31  ;;  %v2180_v50 = vsel %vm630_vm5, %v3744_v0, %v2108_v29  ;;  %v3812_v11 = vld [vmem:[%s5217_s7 + $0x94] ss:$12 sps:$4 sm:$0xff]   ;;  %v3814_v31 = vld [vmem:[%s5217_s7 + $0x90] ss:$12 sps:$4 sm:$0xff]  }
 0x8e2   : > { %3410 = vmatpush3.bf16.msra.mxu0 %v2179_v33 }
 0x8e4   : > { %v2144_v37 = vpop.permute.xlu0 %2143  ;;  %v2140_v40 = vpop.permute.xlu1 %2139 }
 0x8e5   : > { %v2188_v42 = vsel %vm630_vm5, %v3743_v36, %v2140_v40 }
 0x8e6   : > { %3411 = vmatprep.subr.bf16.mxu0 %v2188_v42 }
 0x8e7   : > { %3412 = vmatpush3.bf16.msra.mxu0 %v2180_v50 }
 0x8e8   : > { %v2148_v30 = vpop.permute.xlu0 %2147  ;;  %v2142_v47 = vpop.permute.xlu1 %2141  ;;  %3449 = vmatprep.subr.bf16.mxu0 %v4625_v17  ;;  %v3795_v17 = vld [vmem:[%s5217_s7 + $0x18] ss:$12 sps:$4 sm:$0xff]  }
 0x8e9   : > { %v2189_v34 = vsel %vm630_vm5, %v2142_v47, %v2144_v37  ;;  %v3824_v47 = vld [vmem:[%s5217_s7 + $0xdc] ss:$12 sps:$4 sm:$0xff]  }
 0x8ea   : > { %2254 = vmatmul.mubr.bf16.vlgmr.msra.gmra.mrb[32].mxu0 %v3790_v59  ;;  %3600 = vmatprep.subr.bf16.mxu1 %v2189_v34  ;;  %v3822_v59 = vld [vmem:[%s5217_s7 + $0x80] ss:$12 sps:$4 sm:$0xff]  }
 0x8eb   : > { %3601 = vmatpush3.bf16.msra.mxu1 %v2189_v34  ;;  %3450 = vmatpush3.bf16.msra.mxu0 %v4667_v32  ;;  %v3796_v32 = vld [vmem:[%s5217_s7 + $0x34] ss:$12 sps:$4 sm:$0xff]   ;;  %v3827_v34 = vld [vmem:[%s5217_s7 + $0xd8] ss:$12 sps:$4 sm:$0xff]  }
 0x8ec   : > { %v2152_v4 = vpop.permute.xlu0 %2151  ;;  %v2146_v16 = vpop.permute.xlu1 %2145  ;;  %3451 = vmatprep.subr.bf16.mxu0 %v4655_v14  ;;  %2261 = vmatprep.mubr.bf16.mxu0 %v3793_v2 }
 0x8ed   : > { %v2190_v61 = vsel %vm630_vm5, %v2146_v16, %v2148_v30  ;;  %v3828_v16 = vld [vmem:[%s5217_s7 + $0xf4] ss:$12 sps:$4 sm:$0xff]  }
 0x8ee   : > { %3602 = vmatprep.subr.bf16.mxu1 %v2190_v61 }
 0x8ef   : > { %3603 = vmatpush3.bf16.msra.mxu1 %v2190_v61  ;;  %3452 = vmatpush3.bf16.msra.mxu0 %v4674_v35  ;;  %v3834_v61 = vld [vmem:[%s5217_s7 + $0xf8] ss:$12 sps:$4 sm:$0xff]  }
 0x8f0   : > { %v2156_v7 = vpop.permute.xlu0 %2155  ;;  %v2150_v18 = vpop.permute.xlu1 %2149  ;;  %3453 = vmatprep.subr.bf16.mxu0 %v4639_v24  ;;  %v3798_v24 = vld [vmem:[%s5217_s7 + $0x30] ss:$12 sps:$4 sm:$0xff]  }
 0x8f1   : > { %v2191_v14 = vsel %vm630_vm5, %v2150_v18, %v2152_v4 }
 0x8f2   : > { %2262 = vmatmul.mubr.bf16.gmra.mrb[36].mxu0 %v3795_v17  ;;  %3604 = vmatprep.subr.bf16.mxu1 %v2191_v14 }
 0x8f3   : > { %3605 = vmatpush3.bf16.msra.mxu1 %v2191_v14  ;;  %3454 = vmatpush3.bf16.msra.mxu0 %v4683_v38  ;;  %v3799_v38 = vld [vmem:[%s5217_s7 + $0x4c] ss:$12 sps:$4 sm:$0xff]  }
 0x8f4   : > { %v2160_v62 = vpop.permute.xlu0 %2159  ;;  %v2154_v46 = vpop.permute.xlu1 %2153  ;;  %3455 = vmatprep.subr.bf16.mxu0 %v4659_v54  ;;  %2269 = vmatprep.mubr.bf16.mxu0 %v3796_v32  ;;  %v3831_v32 = vld [vmem:[%s5217_s7 + $0x10c] ss:$12 sps:$4 sm:$0xff]  }
 0x8f5   : > { %v2192_v35 = vsel %vm630_vm5, %v2154_v46, %v2156_v7  ;;  %v3830_v7 = vld [vmem:[%s5217_s7 + $0xf0] ss:$12 sps:$4 sm:$0xff]  }
 0x8f6   : > { %3606 = vmatprep.subr.bf16.mxu1 %v2192_v35 }
 0x8f7   : > { %3607 = vmatpush3.bf16.msra.mxu1 %v2192_v35  ;;  %3456 = vmatpush3.bf16.msra.mxu0 %v4692_v41  ;;  %v3835_v35 = vld [vmem:[%s5217_s7 + $0xc8] ss:$12 sps:$4 sm:$0xff]  }
 0x8f8   : > { %v2164_v23 = vpop.permute.xlu0 %2163  ;;  %v2158_v43 = vpop.permute.xlu1 %2157  ;;  %3457 = vmatprep.subr.bf16.mxu0 %v4645_v53  ;;  %v3801_v53 = vld [vmem:[%s5217_s7 + $0x48] ss:$12 sps:$4 sm:$0xff]  }
 0x8f9   : > { %v2193_v54 = vsel %vm630_vm5, %v2158_v43, %v2160_v62  ;;  %v3833_v62 = vld [vmem:[%s5217_s7 + $0x108] ss:$12 sps:$4 sm:$0xff]   ;;  %v3837_v43 = vld [vmem:[%s5217_s7 + $0x110] ss:$12 sps:$4 sm:$0xff]  }
 0x8fa   : > { %2270 = vmatmul.mubr.bf16.gmra.mrb[40].mxu0 %v3798_v24  ;;  %3608 = vmatprep.subr.bf16.mxu1 %v2193_v54 }
 0x8fb   : > { %3609 = vmatpush3.bf16.msra.mxu1 %v2193_v54  ;;  %3458 = vmatpush3.bf16.msra.mxu0 %v4699_v21  ;;  %v3805_v21 = vld [vmem:[%s5217_s7 + $0x64] ss:$12 sps:$4 sm:$0xff]  }
 0x8fc   : > { %v2168_v22 = vpop.permute.xlu0 %2167  ;;  %v2162_v51 = vpop.permute.xlu1 %2161  ;;  %3459 = vmatprep.subr.bf16.mxu0 %v4709_v57  ;;  %2277 = vmatprep.mubr.bf16.mxu0 %v3799_v38 }
 0x8fd   : > { %v2194_v41 = vsel %vm630_vm5, %v2162_v51, %v2164_v23  ;;  %v3836_v23 = vld [vmem:[%s5217_s7 + $0xe0] ss:$12 sps:$4 sm:$0xff]  }
 0x8fe   : > { %3610 = vmatprep.subr.bf16.mxu1 %v2194_v41 }
 0x8ff   : > { %3611 = vmatpush3.bf16.msra.mxu1 %v2194_v41  ;;  %3460 = vmatpush3.bf16.msra.mxu0 %v4697_v45 }
 0x900   : > { %v2172_v63 = vpop.permute.xlu0 %2171  ;;  %v2166_v3 = vpop.permute.xlu1 %2165  ;;  %3461 = vmatprep.subr.bf16.mxu0 %v4707_v60  ;;  %v3803_v60 = vld [vmem:[%s5217_s7 + $0x60] ss:$12 sps:$4 sm:$0xff]  }
 0x901   : > { %v2195_v57 = vsel %vm630_vm5, %v2166_v3, %v2168_v22 }
 0x902   : > { %2278 = vmatmul.mubr.bf16.gmra.mrb[44].mxu0 %v3801_v53  ;;  %3612 = vmatprep.subr.bf16.mxu1 %v2195_v57 }
 0x903   : > { %3613 = vmatpush3.bf16.msra.mxu1 %v2195_v57  ;;  %3462 = vmatpush3.bf16.msra.mxu0 %v4728_v48 }
 0x904   : > { %v2668_v10 = vpop.permute.xlu0 %2667  ;;  %v2170_v15 = vpop.permute.xlu1 %2169  ;;  %3463 = vmatprep.subr.bf16.mxu0 %v4740_v55  ;;  %2480 = vmatprep.mubr.bf16.mxu0 %v3805_v21  ;;  %v3807_v55 = vld [vmem:[%s5217_s7 + $0x38] ss:$12 sps:$4 sm:$0xff]  }
 0x905   : > { %v2196_v45 = vsel %vm630_vm5, %v2170_v15, %v2172_v63 }
 0x906   : > { %3614 = vmatprep.subr.bf16.mxu1 %v2196_v45 }
 0x907   : > { %3615 = vmatpush3.bf16.msra.mxu1 %v2196_v45  ;;  %3464 = vmatpush3.bf16.msra.mxu0 %v4726_v1 }
 0x908   : > { %v2670_v48 = vpop.permute.xlu0 %2669  ;;  %3624 = vmatprep.subr.bf16.mxu1 %v4738_v52  ;;  %v2684_v28 = vpop.permute.xlu1 %2683 }
 0x909   : > { %3501 = vmatprep.subr.bf16.mxu0 %v2684_v28 }
 0x90a   : > { %3617 = vmatmul.mubr.bf16.vlgmr.msra.gmra.mrb[48].mxu1 %v3806_v27  ;;  %2481 = vmatmul.mubr.bf16.vlgmr.msra.gmra.mrb[48].mxu0 %v3803_v60 }
 0x90b   : > { %3625 = vmatpush3.bf16.msra.mxu1 %v4738_v52  ;;  %3502 = vmatpush3.bf16.msra.mxu0 %v2668_v10 }
 0x90c   : > { %v2672_v44 = vpop.permute.xlu0 %2671  ;;  %3626 = vmatprep.subr.bf16.mxu1 %v4748_v58  ;;  %v2686_v1 = vpop.permute.xlu1 %2685  ;;  %3620 = vmatprep.mubr.bf16.mxu1 %v3807_v55 }
 0x90d   : > { %3503 = vmatprep.subr.bf16.mxu0 %v2686_v1  ;;  %2488 = vmatprep.mubr.bf16.mxu0 %v3808_v6 }
 0x90f   : > { %3627 = vmatpush3.bf16.msra.mxu1 %v4748_v58  ;;  %3504 = vmatpush3.bf16.msra.mxu0 %v2670_v48 }
 0x910   : > { %v2674_v52 = vpop.permute.xlu0 %2673  ;;  %3628 = vmatprep.subr.bf16.mxu1 %v4753_v39  ;;  %v2688_v25 = vpop.permute.xlu1 %2687 }
 0x911   : > { %3505 = vmatprep.subr.bf16.mxu0 %v2688_v25 }
 0x912   : > { %3621 = vmatmul.mubr.bf16.gmra.mrb[52].mxu1 %v3810_v5  ;;  %2489 = vmatmul.mubr.bf16.gmra.mrb[52].mxu0 %v3811_v9 }
 0x913   : > { %3629 = vmatpush3.bf16.msra.mxu1 %v4753_v39  ;;  %3506 = vmatpush3.bf16.msra.mxu0 %v2672_v44  ;;  %v3815_v39 = vld [vmem:[%s5217_s7 + $0xac] ss:$12 sps:$4 sm:$0xff]  }
 0x914   : > { %v2676_v58 = vpop.permute.xlu0 %2675  ;;  %3630 = vmatprep.subr.bf16.mxu1 %v4758_v8  ;;  %v2690_v29 = vpop.permute.xlu1 %2689  ;;  %2496 = vmatprep.mubr.bf16.mxu0 %v3812_v11 }
 0x915   : > { %3507 = vmatprep.subr.bf16.mxu0 %v2690_v29  ;;  %3640 = vmatprep.mubr.bf16.mxu1 %v3818_v13 }
 0x917   : > { %3631 = vmatpush3.bf16.msra.mxu1 %v4758_v8  ;;  %3508 = vmatpush3.bf16.msra.mxu0 %v2674_v52  ;;  %v3817_v8 = vld [vmem:[%s5217_s7 + $0xa8] ss:$12 sps:$4 sm:$0xff]  }
 0x918   : > { %3632 = vmatprep.subr.bf16.mxu1 %v4763_v12  ;;  %v2692_v33 = vpop.permute.xlu1 %2691  ;;  %v2678_v0 = vpop.permute.xlu0 %2677 }
 0x919   : > { %3509 = vmatprep.subr.bf16.mxu0 %v2692_v33 }
 0x91a   : > { %2497 = vmatmul.mubr.bf16.gmra.mrb[56].mxu0 %v3814_v31 }
 0x91b   : > { %3633 = vmatpush3.bf16.msra.mxu1 %v4763_v12  ;;  %3510 = vmatpush3.bf16.msra.mxu0 %v2676_v58  ;;  %v3821_v12 = vld [vmem:[%s5217_s7 + $0xc4] ss:$12 sps:$4 sm:$0xff]  }
 0x91c   : > { %3634 = vmatprep.subr.bf16.mxu1 %v4768_v19  ;;  %v2694_v36 = vpop.permute.xlu1 %2693  ;;  %2504 = vmatprep.mubr.bf16.mxu0 %v3815_v39  ;;  %v2680_v37 = vpop.permute.xlu0 %2679 }
 0x91d   : > { %3511 = vmatprep.subr.bf16.mxu0 %v2694_v36 }
 0x91f   : > { %3635 = vmatpush3.bf16.msra.mxu1 %v4768_v19  ;;  %3512 = vmatpush3.bf16.msra.mxu0 %v2678_v0  ;;  %v3819_v19 = vld [vmem:[%s5217_s7 + $0xc0] ss:$12 sps:$4 sm:$0xff]  }
 0x920   : > { %3636 = vmatprep.subr.bf16.mxu1 %v4776_v20  ;;  %v2696_v40 = vpop.permute.xlu1 %2695  ;;  %v2682_v50 = vpop.permute.xlu0 %2681 }
 0x921   : > { %3513 = vmatprep.subr.bf16.mxu0 %v2696_v40 }
 0x922   : > { %2505 = vmatmul.mubr.bf16.gmra.mrb[60].mxu0 %v3817_v8 }
 0x923   : > { %3637 = vmatpush3.bf16.msra.mxu1 %v4776_v20  ;;  %3514 = vmatpush3.bf16.msra.mxu0 %v2680_v37  ;;  %v3823_v20 = vld [vmem:[%s5217_s7 + $0x98] ss:$12 sps:$4 sm:$0xff]  }
 0x924   : > { %3638 = vmatprep.subr.bf16.mxu1 %v4781_v49  ;;  %v2698_v42 = vpop.permute.xlu1 %2697  ;;  %2771 = vmatprep.mubr.bf16.mxu0 %v3821_v12  ;;  %v2702_v2 = vpop.permute.xlu0 %2701 }
 0x925   : > { %3515 = vmatprep.subr.bf16.mxu0 %v2698_v42 }
 0x927   : > { %3639 = vmatpush3.bf16.msra.mxu1 %v4781_v49  ;;  %3516 = vmatpush3.bf16.msra.mxu0 %v2682_v50  ;;  %v3826_v49 = vld [vmem:[%s5217_s7 + $0xb0] ss:$12 sps:$4 sm:$0xff]  }
 0x928   : > { %v2700_v30 = vpop.permute.xlu1 %2699  ;;  %v2706_v17 = vpop.permute.xlu0 %2705 }
 0x929   : > { %3648 = vmatprep.subr.bf16.mxu0 %v2700_v30  ;;  %3672 = vmatprep.subr.bf16.mxu1 %v2700_v30 }
 0x92a   : > { %3641 = vmatmul.mubr.bf16.vlgmr.msra.gmra.mrb[56].mxu1 %v3822_v59  ;;  %2772 = vmatmul.mubr.bf16.vlgmr.msra.gmra.mrb[64].mxu0 %v3819_v19 }
 0x92b   : > { %3649 = vmatpush3.bf16.msra.mxu0 %v2700_v30  ;;  %3680 = vmatpush3.bf16.msra.mxu1 %v2700_v30 }
 0x92c   : > { %3673 = vmatprep.subr.bf16.mxu1 %v2702_v2  ;;  %3650 = vmatprep.subr.bf16.mxu0 %v2702_v2  ;;  %v2704_v4 = vpop.permute.xlu1 %2703  ;;  %v2710_v14 = vpop.permute.xlu0 %2709 }
 0x92d   : > { %3644 = vmatprep.mubr.bf16.mxu1 %v3823_v20  ;;  %2779 = vmatprep.mubr.bf16.mxu0 %v3824_v47 }
 0x92f   : > { %3651 = vmatpush3.bf16.msra.mxu0 %v2702_v2  ;;  %3681 = vmatpush3.bf16.msra.mxu1 %v2702_v2 }
 0x930   : > { %3674 = vmatprep.subr.bf16.mxu1 %v2704_v4  ;;  %3652 = vmatprep.subr.bf16.mxu0 %v2704_v4  ;;  %v2708_v18 = vpop.permute.xlu1 %2707  ;;  %v2714_v24 = vpop.permute.xlu0 %2713 }
 0x932   : > { %3645 = vmatmul.mubr.bf16.gmra.mrb[60].mxu1 %v3826_v49  ;;  %2780 = vmatmul.mubr.bf16.gmra.mrb[68].mxu0 %v3827_v34 }
 0x933   : > { %3653 = vmatpush3.bf16.msra.mxu0 %v2704_v4  ;;  %3682 = vmatpush3.bf16.msra.mxu1 %v2704_v4 }
 0x934   : > { %3675 = vmatprep.subr.bf16.mxu1 %v2706_v17  ;;  %3654 = vmatprep.subr.bf16.mxu0 %v2706_v17  ;;  %v2712_v46 = vpop.permute.xlu1 %2711 }
 0x935   : > { %2787 = vmatprep.mubr.bf16.mxu0 %v3828_v16  ;;  %3668 = vmatprep.mubr.bf16.mxu1 %v3834_v61 }
 0x937   : > { %3655 = vmatpush3.bf16.msra.mxu0 %v2706_v17  ;;  %3683 = vmatpush3.bf16.msra.mxu1 %v2706_v17 }
 0x938   : > { %3656 = vmatprep.subr.bf16.mxu0 %v2708_v18  ;;  %3676 = vmatprep.subr.bf16.mxu1 %v2708_v18 }
 0x93a   : > { %2788 = vmatmul.mubr.bf16.gmra.mrb[72].mxu0 %v3830_v7 }
 0x93b   : > { %3657 = vmatpush3.bf16.msra.mxu0 %v2708_v18  ;;  %3684 = vmatpush3.bf16.msra.mxu1 %v2708_v18 }
 0x93c   : > { %3658 = vmatprep.subr.bf16.mxu0 %v2710_v14  ;;  %3677 = vmatprep.subr.bf16.mxu1 %v2710_v14 }
 0x93d   : > { %2795 = vmatprep.mubr.bf16.mxu0 %v3831_v32 }
 0x93f   : > { %3659 = vmatpush3.bf16.msra.mxu0 %v2710_v14  ;;  %3685 = vmatpush3.bf16.msra.mxu1 %v2710_v14 }
 0x940   : > { %3660 = vmatprep.subr.bf16.mxu0 %v2712_v46  ;;  %3678 = vmatprep.subr.bf16.mxu1 %v2712_v46 }
 0x942   : > { %2796 = vmatmul.mubr.bf16.gmra.mrb[76].mxu0 %v3833_v62 }
 0x943   : > { %3661 = vmatpush3.bf16.msra.mxu0 %v2712_v46  ;;  %3686 = vmatpush3.bf16.msra.mxu1 %v2712_v46 }
 0x944   : > { %3662 = vmatprep.subr.bf16.mxu0 %v2714_v24  ;;  %3679 = vmatprep.subr.bf16.mxu1 %v2714_v24 }
 0x945   : > { %3664 = vmatprep.mubr.bf16.mxu0 %v3835_v35 }
 0x947   : > { %3663 = vmatpush3.bf16.msra.mxu0 %v2714_v24  ;;  %3687 = vmatpush3.bf16.msra.mxu1 %v2714_v24 }
 0x94a   : > { %3665 = vmatmul.mubr.bf16.vlgmr.msra.gmra.mrb[80].mxu0 %v3836_v23  ;;  %3669 = vmatmul.mubr.bf16.vlgmr.msra.gmra.mrb[64].mxu1 %v3837_v43 }
 0x9bd   : > { %v3413_v38 = vpop.f32.mrb[32].mxu0 }
 0x9be   : > { %v3414_v54 = vpop.f32.mrb[33].mxu0 }
 0x9bf   : > { %v3415_v22 = vadd.f32 %v3414_v54, %v3413_v38  ;;  %v3416_v51 = vpop.f32.mrb[34].mxu0 }
 0x9c0   : > { %v3417_v41 = vpop.f32.mrb[35].mxu0 }
 0x9c1   : > { %v3418_v53 = vadd.f32 %v3417_v41, %v3416_v51 }
 0x9c5   : > { %v3419_v63 = vpop.f32.mrb[36].mxu0 }
 0x9c6   : > { %v3420_v3 = vpop.f32.mrb[37].mxu0 }
 0x9c7   : > { %v3421_v21 = vadd.f32 %v3420_v3, %v3419_v63  ;;  %v3422_v57 = vpop.f32.mrb[38].mxu0 }
 0x9c8   : > { %v3423_v10 = vpop.f32.mrb[39].mxu0 }
 0x9c9   : > { %v3424_v15 = vadd.f32 %v3423_v10, %v3422_v57 }
 0x9cd   : > { %v3425_v45 = vpop.f32.mrb[40].mxu0 }
 0x9ce   : > { %v3426_v60 = vpop.f32.mrb[41].mxu0 }
 0x9cf   : > { %v3427_v27 = vadd.f32 %v3426_v60, %v3425_v45  ;;  %v3428_v48 = vpop.f32.mrb[42].mxu0 }
 0x9d0   : > { %v3429_v28 = vpop.f32.mrb[43].mxu0 }
 0x9d1   : > { %v3430_v55 = vadd.f32 %v3429_v28, %v3428_v48 }
 0x9d5   : > { %v3431_v6 = vpop.f32.mrb[44].mxu0 }
 0x9d6   : > { %v3432_v44 = vpop.f32.mrb[45].mxu0 }
 0x9d7   : > { %v3433_v1 = vadd.f32 %v3432_v44, %v3431_v6  ;;  %v3434_v5 = vpop.f32.mrb[46].mxu0 }
 0x9d8   : > { %v3435_v9 = vpop.f32.mrb[47].mxu0 }
 0x9d9   : > { %v3436_v52 = vadd.f32 %v3435_v9, %v3434_v5 }
 0x9dd   : > { %v3618_v25 = vpop.f32.mrb[48].mxu1  ;;  %v3465_v11 = vpop.f32.mrb[48].mxu0 }
 0x9de   : > { %v2329_v13 = vadd.f32 %v3618_v25, %v3421_v21  ;;  %v2320_v58 = vpop.f32.mrb[49].mxu1  ;;  %v3466_v29 = vpop.f32.mrb[49].mxu0 }
 0x9df   : > { %v2321_v31 = vadd.f32 %v3415_v22, %v2320_v58  ;;  %v3619_v33 = vpop.f32.mrb[50].mxu1  ;;  %v3467_v39 = vadd.f32 %v3466_v29, %v3465_v11  ;;  %v3468_v0 = vpop.f32.mrb[50].mxu0 }
 0x9e0   : > { %v2332_v36 = vadd.f32 %v3619_v33, %v3424_v15  ;;  %v2323_v8 = vpop.f32.mrb[51].mxu1  ;;  %v3469_v37 = vpop.f32.mrb[51].mxu0  ;;  %v2353_v3 = vsel %vm4230_vm6, %v2329_v13, 0.0 }
 0x9e1   : > { %v2324_v40 = vadd.f32 %v3418_v53, %v2323_v8  ;;  %v3470_v12 = vadd.f32 %v3469_v37, %v3468_v0  ;;  %v2351_v45 = vsel %vm4230_vm6, %v2321_v31, 0.0 }
 0x9e3   : > { %v2352_v5 = vsel %vm4230_vm6, %v2324_v40, 0.0 }
 0x9e5   : > { %v3622_v42 = vpop.f32.mrb[52].mxu1  ;;  %v3471_v50 = vpop.f32.mrb[52].mxu0 }
 0x9e6   : > { %v2345_v19 = vadd.f32 %v3622_v42, %v3433_v1  ;;  %v2336_v59 = vpop.f32.mrb[53].mxu1  ;;  %v3472_v30 = vpop.f32.mrb[53].mxu0 }
 0x9e7   : > { %v2337_v20 = vadd.f32 %v3427_v27, %v2336_v59  ;;  %v3623_v47 = vpop.f32.mrb[54].mxu1  ;;  %v3473_v2 = vadd.f32 %v3472_v30, %v3471_v50  ;;  %v3474_v49 = vpop.f32.mrb[54].mxu0 }
 0x9e8   : > { %v2348_v34 = vadd.f32 %v3623_v47, %v3436_v52  ;;  %v2339_v4 = vpop.f32.mrb[55].mxu1  ;;  %v3475_v16 = vpop.f32.mrb[55].mxu0  ;;  %v2357_v31 = vsel %vm4230_vm6, %v2345_v19, 0.0 }
 0x9e9   : > { %v2340_v61 = vadd.f32 %v3430_v55, %v2339_v4  ;;  %v3476_v17 = vadd.f32 %v3475_v16, %v3474_v49  ;;  %v2354_v55 = vsel %vm4230_vm6, %v2332_v36, 0.0  ;;  %v2355_v8 = vsel %vm4230_vm6, %v2337_v20, 0.0 }
 0x9ea   : > { %v2358_v50 = vsel %vm4230_vm6, %v2348_v34, 0.0 }
 0x9eb   : > { %v2356_v19 = vsel %vm4230_vm6, %v2340_v61, 0.0 }
 0x9ed   : > { %v3477_v7 = vpop.f32.mrb[56].mxu0 }
 0x9ee   : > { %v3478_v18 = vpop.f32.mrb[57].mxu0 }
 0x9ef   : > { %v3479_v32 = vadd.f32 %v3478_v18, %v3477_v7  ;;  %v3480_v14 = vpop.f32.mrb[58].mxu0 }
 0x9f0   : > { %v3481_v62 = vpop.f32.mrb[59].mxu0 }
 0x9f1   : > { %v3482_v46 = vadd.f32 %v3481_v62, %v3480_v14 }
 0x9f5   : > { %v3483_v35 = vpop.f32.mrb[60].mxu0 }
 0x9f6   : > { %v3484_v24 = vpop.f32.mrb[61].mxu0 }
 0x9f7   : > { %v3485_v23 = vadd.f32 %v3484_v24, %v3483_v35  ;;  %v3486_v43 = vpop.f32.mrb[62].mxu0 }
 0x9f8   : > { %v3487_v38 = vpop.f32.mrb[63].mxu0 }
 0x9f9   : > { %v3488_v54 = vadd.f32 %v3487_v38, %v3486_v43 }
 0x9fd   : > { %v3642_v22 = vpop.f32.mrb[56].mxu1  ;;  %v3517_v51 = vpop.f32.mrb[64].mxu0 }
 0x9fe   : > { %v2556_v41 = vadd.f32 %v3642_v22, %v3473_v2  ;;  %v2547_v53 = vpop.f32.mrb[57].mxu1  ;;  %v3518_v63 = vpop.f32.mrb[65].mxu0 }
 0x9ff   : > { %v2548_v21 = vadd.f32 %v3467_v39, %v2547_v53  ;;  %v3643_v57 = vpop.f32.mrb[58].mxu1  ;;  %v3519_v10 = vadd.f32 %v3518_v63, %v3517_v51  ;;  %v3520_v15 = vpop.f32.mrb[66].mxu0 }
 0xa00   : > { %v2580_v60 = vadd.f32 %v2556_v41, %v2353_v3  ;;  %v2559_v27 = vadd.f32 %v3643_v57, %v3476_v17  ;;  %v2550_v48 = vpop.f32.mrb[59].mxu1  ;;  %v3521_v28 = vpop.f32.mrb[67].mxu0 }
 0xa01   : > { %v2578_v6 = vadd.f32 %v2548_v21, %v2351_v45  ;;  %v2551_v44 = vadd.f32 %v3470_v12, %v2550_v48  ;;  %v5020_v1 = vadd.f32 %v3521_v28, %v3520_v15 }
 0xa02   : > { %v2581_v9 = vadd.f32 %v2559_v27, %v2354_v55 }
 0xa03   : > { %v5024_v52 = vadd.f32 %v2551_v44, %v2352_v5 }
 0xa05   : > { %v3646_v25 = vpop.f32.mrb[60].mxu1  ;;  %v3523_v11 = vpop.f32.mrb[68].mxu0 }
 0xa06   : > { %v2572_v13 = vadd.f32 %v3646_v25, %v3485_v23  ;;  %v2563_v58 = vpop.f32.mrb[61].mxu1  ;;  %v3524_v29 = vpop.f32.mrb[69].mxu0 }
 0xa07   : > { %v2564_v33 = vadd.f32 %v3479_v32, %v2563_v58  ;;  %v3647_v39 = vpop.f32.mrb[62].mxu1  ;;  %v3525_v0 = vadd.f32 %v3524_v29, %v3523_v11  ;;  %v3526_v36 = vpop.f32.mrb[70].mxu0 }
 0xa08   : > { %v2584_v37 = vadd.f32 %v2572_v13, %v2357_v31  ;;  %v2575_v40 = vadd.f32 %v3647_v39, %v3488_v54  ;;  %v2566_v12 = vpop.f32.mrb[63].mxu1  ;;  %v3527_v42 = vpop.f32.mrb[71].mxu0 }
 0xa09   : > { %v2582_v59 = vadd.f32 %v2564_v33, %v2355_v8  ;;  %v2567_v30 = vadd.f32 %v3482_v46, %v2566_v12  ;;  %v3528_v47 = vadd.f32 %v3527_v42, %v3526_v36  ;;  %v3045_v8 = vld [vmem:[%s5219_s9] sm:$0xff]  ;;  %v3046_v12 = vld [vmem:[%s5219_s9 + $0x8] sm:$0xff] }
 0xa0a   : > { %v2585_v2 = vadd.f32 %v2575_v40, %v2358_v50  ;;  %v3047_v40 = vld [vmem:[%s5219_s9 + $0x10] sm:$0xff]  ;;  %v3049_v42 = vld [vmem:[%s5219_s9 + $0x20] sm:$0xff]  ;;  %v3048_v50 = vld [vmem:[%s5219_s9 + $0x18] sm:$0xff] }
 0xa0b   : > { %v2583_v49 = vadd.f32 %v2567_v30, %v2356_v19  ;;  %v5093_v30 = vpop.permute.xlu1 %3004 }
 0xa0d   : > { %v3529_v4 = vpop.f32.mrb[72].mxu0 }
 0xa0e   : > { %v3530_v16 = vpop.f32.mrb[73].mxu0 }
 0xa0f   : > { %v3531_v17 = vadd.f32 %v3530_v16, %v3529_v4  ;;  %v3532_v7 = vpop.f32.mrb[74].mxu0  ;;  %v5097_v19 = vpop.permute.xlu1 %3009 }
 0xa10   : > { %v3533_v20 = vpop.f32.mrb[75].mxu0 }
 0xa11   : > { %v3534_v18 = vadd.f32 %v3533_v20, %v3532_v7 }
 0xa15   : > { %v3535_v32 = vpop.f32.mrb[76].mxu0 }
 0xa16   : > { %v3536_v14 = vpop.f32.mrb[77].mxu0 }
 0xa17   : > { %v3537_v62 = vadd.f32 %v3536_v14, %v3535_v32  ;;  %v3538_v35 = vpop.f32.mrb[78].mxu0 }
 0xa18   : > { %v3539_v24 = vpop.f32.mrb[79].mxu0 }
 0xa19   : > { %v3540_v34 = vadd.f32 %v3539_v24, %v3538_v35 }
 0xa1d   : > { %v3666_v23 = vpop.f32.mrb[80].mxu0  ;;  %v3670_v46 = vpop.f32.mrb[64].mxu1 }
 0xa1e   : > { %v2847_v43 = vadd.f32 %v3666_v23, %v3525_v0  ;;  %v2863_v38 = vadd.f32 %v3670_v46, %v3537_v62  ;;  %v2838_v56 = vpop.f32.mrb[81].mxu0  ;;  %v2854_v61 = vpop.f32.mrb[65].mxu1 }
 0xa1f   : > { %v2839_v54 = vadd.f32 %v3519_v10, %v2838_v56  ;;  %v2855_v22 = vadd.f32 %v3531_v17, %v2854_v61  ;;  %v3667_v51 = vpop.f32.mrb[82].mxu0  ;;  %v3671_v41 = vpop.f32.mrb[66].mxu1 }
 0xa20   : > { %v2871_v53 = vsel %vm4250_vm7, %v2847_v43, 0.0  ;;  %v2875_v63 = vsel %vm4250_vm7, %v2863_v38, 0.0  ;;  %v2850_v3 = vadd.f32 %v3667_v51, %v3528_v47  ;;  %v2866_v21 = vadd.f32 %v3671_v41, %v3540_v34  ;;  %v2841_v57 = vpop.f32.mrb[83].mxu0  ;;  %v2857_v15 = vpop.f32.mrb[67].mxu1 }
 0xa21   : > { %v5038_v45 = vadd.f32 %v2871_v53, %v2580_v60  ;;  %v2883_v27 = vadd.f32 %v2875_v63, %v2584_v37  ;;  %v2869_v48 = vsel %vm4250_vm7, %v2839_v54, 0.0  ;;  %v2873_v10 = vsel %vm4250_vm7, %v2855_v22, 0.0  ;;  %v2996_v37 = vld [vmem:[%s5218_s8 + $0x38] sm:$0xff]  ;;  %v5095_v47 = vpop.permute.xlu0 %2999 }
 0xa22   : > { %v5044_v28 = vadd.f32 %v2869_v48, %v2578_v6  ;;  %v2881_v55 = vadd.f32 %v2873_v10, %v2582_v59  ;;  %v2872_v44 = vsel %vm4250_vm7, %v2850_v3, 0.0  ;;  %v2876_v5 = vsel %vm4250_vm7, %v2866_v21, 0.0  ;;  %v3050_v59 = vld [vmem:[%s5219_s9 + $0x28] sm:$0xff] }
 0xa23   : > { %v5050_v25 = vadd.f32 %v2872_v44, %v2581_v9  ;;  %v2884_v60 = vadd.f32 %v2876_v5, %v2585_v2  ;;  %v2842_v11 = vadd.f32 %v5020_v1, %v2841_v57  ;;  %v2858_v13 = vadd.f32 %v3534_v18, %v2857_v15 }
 0xa24   : > { %v2897_v58 = vsel %vm372_vm0, %v2881_v55, 0.0  ;;  %v2903_v39 = vsel %vm372_vm0, %v2883_v27, 0.0  ;;  %v2891_v0 = vsel %vm372_vm0, %v5038_v45, 0.0  ;;  %v2885_v26 = vsel %vm372_vm0, %v5044_v28, 0.0 }
 0xa25   : > { %v2870_v29 = vsel %vm4250_vm7, %v2842_v11, 0.0  ;;  %v2874_v6 = vsel %vm4250_vm7, %v2858_v13, 0.0  ;;  %2898 = vadd.xlane.f32.xlu0 %v2897_v58  ;;  %v2906_v1 = vsel %vm372_vm0, %v2884_v60, 0.0  ;;  %v2894_v36 = vsel %vm372_vm0, %v5050_v25, 0.0  ;;  %v5099_v2 = vpop.permute.xlu0 %3014 }
 0xa26   : > { %v5059_v31 = vadd.f32 %v2870_v29, %v5024_v52  ;;  %v2882_v33 = vadd.f32 %v2874_v6, %v2583_v49  ;;  %v5101_v49 = vpop.permute.xlu1 %3019 }
 0xa28   : > { %v2900_v9 = vsel %vm372_vm0, %v2882_v33, 0.0  ;;  %v2888_v52 = vsel %vm372_vm0, %v5059_v31, 0.0 }
 0xa29   : > { %2901 = vadd.xlane.f32.xlu1 %v2900_v9  ;;  %2904 = vadd.xlane.f32.xlu0 %v2903_v39  ;;  %v5103_v4 = vpop.permute.xlu0 %3024 }
 0xa2a   : > { %v5105_v16 = vpop.permute.xlu1 %3029 }
 0xa2d   : > { %2907 = vadd.xlane.f32.xlu1 %v2906_v1  ;;  %2892 = vadd.xlane.f32.xlu0 %v2891_v0 }
 0xa31   : > { %2886 = vadd.xlane.f32.xlu1 %v2885_v26  ;;  %2889 = vadd.xlane.f32.xlu0 %v2888_v52 }
 0xa35   : > { %2895 = vadd.xlane.f32.xlu1 %v2894_v36 }
 0xa46   : > { %3055 = vperm.xlu1 %3703, %v3045_v8  }
 0xa47   : > { %3034 = vperm.xlu0 %3704, %v2996_v37  }
 0xa4a   : > { %3065 = vperm.xlu1 %3703, %v3047_v40  }
 0xa4b   : > { %3060 = vperm.xlu0 %3704, %v3046_v12  }
 0xa4e   : > { %3075 = vperm.xlu1 %3703, %v3049_v42  }
 0xa4f   : > { %3070 = vperm.xlu0 %3704, %v3048_v50  }
 0xa53   : > { %3080 = vperm.xlu0 %3704, %v3050_v59  }
 0xab2   : > { %v2899_v17 = vpop.xlane.xlu0 %2898 }
 0xab3   : > { %v2913_v7 = vmul.f32 0.25, %v2899_v17 }
 0xab5   : > { %v5107_v20 = vsub.f32 %v2881_v55, %v2913_v7 }
 0xab6   : > { %v2902_v18 = vpop.xlane.xlu1 %2901  ;;  %v2905_v32 = vpop.xlane.xlu0 %2904 }
 0xab7   : > { %v2914_v14 = vmul.f32 0.25, %v2902_v18  ;;  %v2915_v62 = vmul.f32 0.25, %v2905_v32  ;;  %v2929_v35 = vmul.f32 %v5107_v20, %v5107_v20 }
 0xab9   : > { %v5111_v24 = vsub.f32 %v2882_v33, %v2914_v14  ;;  %v5113_v34 = vsub.f32 %v2883_v27, %v2915_v62  ;;  %v2945_v23 = vsel %vm372_vm0, %v2929_v35, 0.0 }
 0xaba   : > { %v2908_v46 = vpop.xlane.xlu1 %2907  ;;  %v2893_v43 = vpop.xlane.xlu0 %2892  ;;  %2946 = vadd.xlane.f32.xlu0 %v2945_v23 }
 0xabb   : > { %v2916_v38 = vmul.f32 0.25, %v2908_v46  ;;  %v2911_v56 = vmul.f32 0.25, %v2893_v43  ;;  %v2930_v61 = vmul.f32 %v5111_v24, %v5111_v24  ;;  %v2931_v54 = vmul.f32 %v5113_v34, %v5113_v34 }
 0xabd   : > { %v5120_v22 = vsub.f32 %v2884_v60, %v2916_v38  ;;  %v5123_v51 = vsub.f32 %v5038_v45, %v2911_v56  ;;  %v2948_v41 = vsel %vm372_vm0, %v2930_v61, 0.0  ;;  %v2951_v53 = vsel %vm372_vm0, %v2931_v54, 0.0 }
 0xabe   : > { %2949 = vadd.xlane.f32.xlu1 %v2948_v41  ;;  %v2887_v63 = vpop.xlane.xlu1 %2886  ;;  %2952 = vadd.xlane.f32.xlu0 %v2951_v53  ;;  %v2890_v3 = vpop.xlane.xlu0 %2889 }
 0xabf   : > { %v2909_v21 = vmul.f32 0.25, %v2887_v63  ;;  %v2932_v57 = vmul.f32 %v5120_v22, %v5120_v22  ;;  %v2927_v15 = vmul.f32 %v5123_v51, %v5123_v51  ;;  %v2910_v45 = vmul.f32 0.25, %v2890_v3 }
 0xac1   : > { %v5132_v27 = vsub.f32 %v5044_v28, %v2909_v21  ;;  %v2954_v48 = vsel %vm372_vm0, %v2932_v57, 0.0  ;;  %v2939_v10 = vsel %vm372_vm0, %v2927_v15, 0.0  ;;  %v5139_v60 = vsub.f32 %v5059_v31, %v2910_v45  ;;  %v3051_v31 = vld [vmem:[%s5219_s9 + $0x30] sm:$0xff] }
 0xac2   : > { %2955 = vadd.xlane.f32.xlu1 %v2954_v48  ;;  %v2896_v55 = vpop.xlane.xlu1 %2895  ;;  %2940 = vadd.xlane.f32.xlu0 %v2939_v10 }
 0xac3   : > { %v2912_v44 = vmul.f32 0.25, %v2896_v55  ;;  %v2925_v5 = vmul.f32 %v5132_v27, %v5132_v27  ;;  %v2926_v29 = vmul.f32 %v5139_v60, %v5139_v60 }
 0xac5   : > { %v5142_v11 = vsub.f32 %v5050_v25, %v2912_v44  ;;  %v2933_v28 = vsel %vm372_vm0, %v2925_v5, 0.0  ;;  %v2936_v6 = vsel %vm372_vm0, %v2926_v29, 0.0  ;;  %v3052_v25 = vld [vmem:[%s5219_s9 + $0x38] sm:$0xff] }
 0xac6   : > { %2934 = vadd.xlane.f32.xlu0 %v2933_v28  ;;  %v3035_v33 = vpop.permute.xlu0 %3034  ;;  %v5159_v39 = vpop.permute.xlu1 %3055 }
 0xac7   : > { %v2928_v13 = vmul.f32 %v5142_v11, %v5142_v11 }
 0xac9   : > { %v2942_v58 = vsel %vm372_vm0, %v2928_v13, 0.0 }
 0xaca   : > { %2943 = vadd.xlane.f32.xlu1 %v2942_v58  ;;  %v5157_v9 = vpop.permute.xlu0 %3060  ;;  %v5163_v0 = vpop.permute.xlu1 %3065 }
 0xace   : > { %2937 = vadd.xlane.f32.xlu1 %v2936_v6  ;;  %v5161_v1 = vpop.permute.xlu0 %3070  ;;  %v3076_v52 = vpop.permute.xlu1 %3075 }
 0xad2   : > { %v3081_v26 = vpop.permute.xlu0 %3080 }
 0xadc   : > { %3090 = vperm.xlu0 %3704, %v3052_v25  }
 0xadf   : > { %3085 = vperm.xlu1 %3703, %v3051_v31  }
 0xb47   : > { %v2947_v36 = vpop.xlane.xlu0 %2946 }
 0xb48   : > { %v2961_v8 = vmul.f32 0.25, %v2947_v36 }
 0xb4a   : > { %v2969_v37 = vadd.f32 1e-05, %v2961_v8 }
 0xb4b   : > { %v2950_v40 = vpop.xlane.xlu1 %2949  ;;  %v2953_v12 = vpop.xlane.xlu0 %2952 }
 0xb4c   : > { %3858 = vrsqrt.f32 %v2969_v37  ;;  %v2962_v42 = vmul.f32 0.25, %v2950_v40  ;;  %v2963_v50 = vmul.f32 0.25, %v2953_v12 }
 0xb4e   : > { %v2970_v59 = vadd.f32 1e-05, %v2962_v42  ;;  %v2971_v17 = vadd.f32 1e-05, %v2963_v50 }
 0xb4f   : > { %v2956_v7 = vpop.xlane.xlu1 %2955  ;;  %v2941_v18 = vpop.xlane.xlu0 %2940 }
 0xb50   : > { %3860 = vrsqrt.f32 %v2970_v59  ;;  %v2964_v32 = vmul.f32 0.25, %v2956_v7  ;;  %v2959_v14 = vmul.f32 0.25, %v2941_v18 }
 0xb51   : > { %3862 = vrsqrt.f32 %v2971_v17 }
 0xb52   : > { %v2972_v62 = vadd.f32 1e-05, %v2964_v32  ;;  %v2967_v35 = vadd.f32 1e-05, %v2959_v14 }
 0xb53   : > { %v2935_v23 = vpop.xlane.xlu0 %2934 }
 0xb54   : > { %3864 = vrsqrt.f32 %v2972_v62  ;;  %v2957_v46 = vmul.f32 0.25, %v2935_v23 }
 0xb55   : > { %3866 = vrsqrt.f32 %v2967_v35 }
 0xb56   : > { %v3859_v43 = vpop.eup %3858  ;;  %v2965_v38 = vadd.f32 1e-05, %v2957_v46 }
 0xb57   : > { %v2985_v56 = vmul.f32 %v3859_v43, %v5107_v20  ;;  %v2944_v61 = vpop.xlane.xlu1 %2943 }
 0xb58   : > { %3868 = vrsqrt.f32 %v2965_v38  ;;  %v2960_v54 = vmul.f32 0.25, %v2944_v61 }
 0xb59   : > { %v3041_v41 = vmul.f32 %v5101_v49, %v2985_v56 }
 0xb5a   : > { %v3861_v53 = vpop.eup %3860  ;;  %v2968_v63 = vadd.f32 1e-05, %v2960_v54 }
 0xb5b   : > { %v3863_v3 = vpop.eup %3862  ;;  %v3097_v21 = vadd.f32 %v3076_v52, %v3041_v41  ;;  %v2986_v57 = vmul.f32 %v3861_v53, %v5111_v24  ;;  %v2938_v15 = vpop.xlane.xlu1 %2937 }
 0xb5c   : > { %3870 = vrsqrt.f32 %v2968_v63  ;;  %v2958_v45 = vmul.f32 0.25, %v2938_v15  ;;  %v2987_v48 = vmul.f32 %v3863_v3, %v5113_v34 }
 0xb5d   : > { %v3105_v10 = vmax.f32 %v3097_v21, 0.0  ;;  %v3042_v20 = vmul.f32 %v5103_v4, %v2986_v57 }
 0xb5e   : > { %v3865_v55 = vpop.eup %3864  ;;  %v2966_v49 = vadd.f32 1e-05, %v2958_v45  ;;  %v3043_v44 = vmul.f32 %v5105_v16, %v2987_v48  ;;  %v3091_v16 = vpop.permute.xlu0 %3090 }
 0xb5f   : > { %v3867_v24 = vpop.eup %3866  ;;  %v3373_v5 = vpack.c.bf16 %v3105_v10, %v3105_v10  ;;  %v3098_v28 = vadd.f32 %v3081_v26, %v3042_v20  ;;  %v2988_v13 = vmul.f32 %v3865_v55, %v5120_v22  ;;  %v3086_v34 = vpop.permute.xlu1 %3085 }
 0xb60   : > { %v2983_v4 = vmul.f32 %v3867_v24, %v5123_v51  ;;  %3872 = vrsqrt.f32 %v2966_v49  ;;  %v3099_v58 = vadd.f32 %v3086_v34, %v3043_v44 }
 0xb61   : > { %3145 = vst.msk [vmem:[%s5175_s18 + $0x10] sm:$0xf] %vm1575_vm10, %v3373_v5  ;;  %v3106_v29 = vmax.f32 %v3098_v28, 0.0  ;;  %v3044_v6 = vmul.f32 %v3035_v33, %v2988_v13 }
 0xb62   : > { %v3869_v25 = vpop.eup %3868  ;;  %v3039_v31 = vmul.f32 %v5097_v19, %v2983_v4  ;;  %v3107_v52 = vmax.f32 %v3099_v58, 0.0 }
 0xb63   : > { %v3374_v36 = vpack.c.bf16 %v3106_v29, %v3106_v29  ;;  %v2981_v26 = vmul.f32 %v3869_v25, %v5132_v27  ;;  %v3100_v22 = vadd.f32 %v3091_v16, %v3044_v6 }
 0xb64   : > { %v3095_v8 = vadd.f32 %v5163_v0, %v3039_v31  ;;  %v3375_v51 = vpack.c.bf16 %v3107_v52, %v3107_v52 }
 0xb65   : > { %3146 = vst.msk [vmem:[%s5175_s18 + $0x14] sm:$0xf] %vm1575_vm10, %v3374_v36  ;;  %v3037_v37 = vmul.f32 %v5095_v47, %v2981_v26  ;;  %v3108_v40 = vmax.f32 %v3100_v22, 0.0 }
 0xb66   : > { %v3871_v33 = vpop.eup %3870  ;;  %v3103_v12 = vmax.f32 %v3095_v8, 0.0  ;;  %3147 = vst.msk [vmem:[%s5175_s18 + $0x18] sm:$0xf] %vm1575_vm10, %v3375_v51 }
 0xb67   : > { %v3093_v19 = vadd.f32 %v5159_v39, %v3037_v37  ;;  %v2984_v27 = vmul.f32 %v3871_v33, %v5142_v11  ;;  %v3376_v42 = vpack.c.bf16 %v3108_v40, %v3108_v40 }
 0xb68   : > { %v3371_v50 = vpack.c.bf16 %v3103_v12, %v3103_v12 }
 0xb69   : > { %v3101_v0 = vmax.f32 %v3093_v19, 0.0  ;;  %v3040_v59 = vmul.f32 %v5099_v2, %v2984_v27  ;;  %3148 = vst.msk [vmem:[%s5175_s18 + $0x1c] sm:$0xf] %vm1575_vm10, %v3376_v42 }
 0xb6a   : > { %v3873_v47 = vpop.eup %3872  ;;  %3143 = vst.msk [vmem:[%s5175_s18 + $0x8] sm:$0xf] %vm1575_vm10, %v3371_v50 }
 0xb6b   : > { %v3369_v17 = vpack.c.bf16 %v3101_v0, %v3101_v0  ;;  %v3096_v7 = vadd.f32 %v5161_v1, %v3040_v59  ;;  %v2982_v18 = vmul.f32 %v3873_v47, %v5139_v60 }
 0xb6d   : > { %3141 = vst.msk [vmem:[%s5175_s18] sm:$0xf] %vm1575_vm10, %v3369_v17  ;;  %v3104_v11 = vmax.f32 %v3096_v7, 0.0  ;;  %v3038_v39 = vmul.f32 %v5093_v30, %v2982_v18 }
 0xb6f   : > { %v3372_v32 = vpack.c.bf16 %v3104_v11, %v3104_v11  ;;  %v3094_v14 = vadd.f32 %v5157_v9, %v3038_v39 }
 0xb71   : > { %3144 = vst.msk [vmem:[%s5175_s18 + $0xc] sm:$0xf] %vm1575_vm10, %v3372_v32  ;;  %v3102_v2 = vmax.f32 %v3094_v14, 0.0 }
 0xb73   : > { %v3370_v62 = vpack.c.bf16 %v3102_v2, %v3102_v2 }
 0xb75   : > { %3142 = vst.msk [vmem:[%s5175_s18 + $0x4] sm:$0xf] %vm1575_vm10, %v3370_v62 }
 0xb76 PF: > { %s21_s15 = sadd.s32 1, %s3881_s15  }
 0xb77   : > { %p18_p4 = scmp.ge.s32.totalorder %s21_s15, 4  }
 0xb79   :  { %20 = sbr.rel (!%p18_p4) target bundleno = 2 (0x2), region = 94 }

// kernel: attention_forward.16
= control target key start
LH: loop header
LB: loop body
LE: loop exit
PB: predicated region body
PF: predicated region fallthrough
CT: control target
= control target key end

     0   :  { %s948_s18 = smov 0   ;;  %s1082_s0 = inlined_call_operand.vmem [shape: bf16[2,16,256], index: 0, kind: input, shape index: {}]   ;;  %s1083_s1 = inlined_call_operand.vmem [shape: bf16[2,16,256], index: 1, kind: input, shape index: {}]   ;;  %s1084_s2 = inlined_call_operand.vmem [shape: bf16[3,8,96], index: 2, kind: input, shape index: {}]   ;;  %s1085_s3 = inlined_call_operand.vmem [shape: f32[8,1], index: 3, kind: input, shape index: {}]   ;;  %s1086_s4 = inlined_call_operand.vmem [shape: f32[8,1], index: 4, kind: input, shape index: {}]   ;;  %s1087_s5 = inlined_call_operand.vmem [shape: bf16[2,8,256], index: 5, kind: output, shape index: {}]  }
   0x1 LB: > { %s840_s19 = sadd.s32 4294967295, %s911_s18   ;;  %p844_p0 = scmp.ge.s32.totalorder %s911_s18, 1  ;;  %s911_s18 = sphi %s948_s18, %s15_s18  }
   0x2   : > { %p197_p1 = scmp.lt.s32.totalorder %s911_s18, 3 }
   0x4   : > { %p198_p2 = pnand %p844_p0, %p197_p1 }
   0x5   : > { %p230_p3 = scmp.lt.s32.totalorder (!%p198_p2), %s840_s19, 1  ;;  %v913_v0 = vmov (!%p198_p2), 0   ;;  %s914_s27 = smov (!%p198_p2), 16   ;;  %vm291_vm0 = vcmask (!%p198_p2), 1047680   ;;  %vm286_vm1 = vcmask (!%p198_p2), 130048   ;;  %vm327_vm2 = vcmask (!%p198_p2), 916480  }
   0x6   : > { %201 = sbr.rel (%p198_p2) target bundleno = 852 (0x354), region = 40  ;;  %251 = vst [vmem:[#allocation2 + $0x8] sm:$0xff] (!%p198_p2), %v913_v0  ;;  %253 = vst [vmem:[#allocation2 + $0x18] sm:$0xff] (!%p198_p2), %v913_v0  ;;  %513 = vmatprep.mubr.bf16.mxu0 (!%p198_p2), %v913_v0  ;;  %567 = vmatprep.mubr.bf16.mxu1 (!%p198_p2), %v913_v0  ;;  %s915_s28 = smov (!%p198_p2), 112   ;;  %vm332_vm3 = vcmask (!%p198_p2), 1048448   ;;  %vm477_vm4 = vcmask (!%p198_p2), 785408  }
   0x7   : > { %255 = vst [vmem:[#allocation2 + $0x28] sm:$0xff] (!%p198_p2), %v913_v0  ;;  %257 = vst [vmem:[#allocation2 + $0x38] sm:$0xff] (!%p198_p2), %v913_v0  ;;  %895 = vset.pattern.permute.xlu0 (!%p198_p2), %v913_v0  ;;  %896 = vset.pattern.permute.xlu1 (!%p198_p2), %v913_v0  ;;  %s916_s29 = smov (!%p198_p2), 1   ;;  %s917_s30 = smov (!%p198_p2), 127   ;;  %v856_v24 = vld [vmem:[%s1084_s2 + $0x4] sm:$0xf] (!%p198_p2) }
   0x8   : > { %266 = vst [vmem:[#allocation2 + $0x80] sm:$0xff] (!%p198_p2), %v913_v0  ;;  %268 = vst [vmem:[#allocation2 + $0x90] sm:$0xff] (!%p198_p2), %v913_v0  ;;  %vm452_vm5 = vcmask (!%p198_p2), 7168   ;;  %vm652_vm6 = vcmask (!%p198_p2), 1039360   ;;  %v379_v63 = vld [vmem:[%s1084_s2] sm:$0xf] (!%p198_p2) }
   0x9   : > { %270 = vst [vmem:[#allocation2 + $0xa0] sm:$0xff] (!%p198_p2), %v913_v0  ;;  %272 = vst [vmem:[#allocation2 + $0xb0] sm:$0xff] (!%p198_p2), %v913_v0 }
   0xd   : > { %s1089_s19 = smov (!%p230_p3, %s840_s19), 1 }
   0xe   : > { %s863_s20 = sshll.u32 %s1089_s19, 4  ;;  %s865_s16 = sshll.u32 %s1089_s19, 3 }
   0xf   : > { %s239_s23 = scalar_lea.vmem %s1083_s1, %s863_s20  ;;  %s234_s26 = scalar_lea.vmem %s1082_s0, %s863_s20 }
  0x10   : > { %v977_v1 = vld [vmem:[%s239_s23] ss:$8 sps:$4 sm:$0xff]   ;;  %v982_v3 = vld [vmem:[%s239_s23 + $0x4] ss:$8 sps:$4 sm:$0xff]   ;;  %s244_s21 = scalar_lea.vmem %s1087_s5, %s865_s16 }
  0x11   : > { %v979_v2 = vld [vmem:[%s234_s26] ss:$8 sps:$4 sm:$0xff]   ;;  %304 = vrot.lane.b32.xlu1 %v977_v1, %s914_s27  ;;  %v984_v4 = vld [vmem:[%s234_s26 + $0x4] ss:$8 sps:$4 sm:$0xff]  }
  0x12   : > { %282 = vrot.lane.b32.xlu0 %v979_v2, %s914_s27 }
  0x15   : > { %306 = vrot.lane.b32.xlu1 %v982_v3, %s914_s27 }
  0x16   : > { %284 = vrot.lane.b32.xlu0 %v984_v4, %s914_s27 }
  0x19   : > { %325 = vrot.lane.b32.xlu1 %v984_v4, %s915_s28 }
  0x1a   : > { %323 = vrot.lane.b32.xlu0 %v979_v2, %s915_s28 }
  0x1d   : > { %339 = vrot.lane.b32.xlu1 %v982_v3, %s915_s28 }
  0x1e   : > { %337 = vrot.lane.b32.xlu0 %v977_v1, %s915_s28 }
  0x21   : > { %430 = vrot.lane.b32.xlu1 %v979_v2, %s916_s29 }
  0x22   : > { %881 = vrot.lane.b32.xlu0 %v913_v0, %s916_s29 }
  0x25   : > { %886 = vrot.lane.b32.xlu1 %v913_v0, %s916_s29 }
  0x26   : > { %432 = vrot.lane.b32.xlu0 %v984_v4, %s916_s29 }
  0x29   : > { %438 = vrot.lane.b32.xlu1 %v982_v3, %s916_s29 }
  0x2a   : > { %436 = vrot.lane.b32.xlu0 %v977_v1, %s916_s29 }
  0x83   : > { %v305_v5 = vpop.permute.xlu1 %304 }
  0x84   : > { %312 = vst.msk [vmem:[#allocation2 + $0x28] sm:$0xff] %vm291_vm0, %v305_v5  ;;  %v283_v6 = vpop.permute.xlu0 %282 }
  0x85   : > { %292 = vst.msk [vmem:[#allocation2 + $0x8] sm:$0xff] %vm291_vm0, %v283_v6 }
  0x87   : > { %v307_v7 = vpop.permute.xlu1 %306 }
  0x88   : > { %v308_v8 = vsel %vm286_vm1, %v305_v5, %v307_v7  ;;  %314 = vst.msk [vmem:[#allocation2 + $0x38] sm:$0xff] %vm286_vm1, %v307_v7  ;;  %v285_v9 = vpop.permute.xlu0 %284 }
  0x89   : > { %v287_v10 = vsel %vm286_vm1, %v283_v6, %v285_v9  ;;  %295 = vst.msk [vmem:[#allocation2 + $0x18] sm:$0xff] %vm286_vm1, %v285_v9 }
  0x8a   : > { %535 = vmatprep.subr.bf16.mxu1 %v287_v10 }
  0x8b   : > { %v326_v11 = vpop.permute.xlu1 %325  ;;  %v384_v12 = vld [vmem:[#allocation2 + $0x28] sm:$0xff] }
  0x8c   : > { %336 = vst.msk [vmem:[#allocation2 + $0x90] sm:$0xff] %vm327_vm2, %v326_v11  ;;  %v324_v13 = vpop.permute.xlu0 %323  ;;  %v381_v14 = vld [vmem:[#allocation2 + $0x8] sm:$0xff]  ;;  %424 = vrot.lane.b32.xlu1 %v384_v12, %s916_s29 }
  0x8d   : > { %v328_v15 = vsel %vm327_vm2, %v324_v13, %v326_v11  ;;  %333 = vst.msk [vmem:[#allocation2 + $0x80] sm:$0xff] %vm332_vm3, %v324_v13  ;;  %418 = vrot.lane.b32.xlu0 %v381_v14, %s916_s29  ;;  %536 = vmatpush1.bf16.msra.mxu1 %v381_v14 }
  0x8e   : > { %537 = vmatprep.subr.bf16.mxu1 %v308_v8 }
  0x8f   : > { %v340_v16 = vpop.permute.xlu1 %339  ;;  %v585_v25 = vld [vmem:[#allocation2 + $0x38] sm:$0xff] }
  0x90   : > { %v338_v17 = vpop.permute.xlu0 %337  ;;  %420 = vrot.lane.b32.xlu1 %v287_v10, %s916_s29  ;;  %347 = vst.msk [vmem:[#allocation2 + $0xb0] sm:$0xff] %vm327_vm2, %v340_v16  ;;  %v582_v23 = vld [vmem:[#allocation2 + $0x18] sm:$0xff] }
  0x91   : > { %345 = vst.msk [vmem:[#allocation2 + $0xa0] sm:$0xff] %vm332_vm3, %v338_v17  ;;  %v341_v18 = vsel %vm327_vm2, %v338_v17, %v340_v16  ;;  %538 = vmatpush1.bf16.msra.mxu1 %v384_v12 }
  0x92   : > { %539 = vmatprep.subr.bf16.mxu1 %v984_v4 }
  0x93   : > { %v394_v19 = vld [vmem:[#allocation2 + $0x90] sm:$0xff]  ;;  %v431_v26 = vpop.permute.xlu1 %430 }
  0x94   : > { %v392_v20 = vld [vmem:[#allocation2 + $0x80] sm:$0xff]  ;;  %444 = vrot.lane.b32.xlu1 %v394_v19, %s916_s29  ;;  %v882_v27 = vpop.permute.xlu0 %881 }
  0x95   : > { %440 = vrot.lane.b32.xlu0 %v392_v20, %s916_s29  ;;  %540 = vmatpush1.bf16.msra.mxu1 %v979_v2  ;;  %v883_v34 = vunpack.i.l.bf16 %v882_v27  ;;  %v884_v40 = vunpack.i.h.bf16 %v882_v27 }
  0x96   : > { %541 = vmatprep.subr.bf16.mxu1 %v982_v3 }
  0x97   : > { %v397_v22 = vld [vmem:[#allocation2 + $0xb0] sm:$0xff]  ;;  %v887_v28 = vpop.permute.xlu1 %886 }
  0x98   : > { %v395_v21 = vld [vmem:[#allocation2 + $0xa0] sm:$0xff]  ;;  %v433_v29 = vpop.permute.xlu0 %432  ;;  %v888_v44 = vunpack.i.l.bf16 %v887_v28  ;;  %v889_v49 = vunpack.i.h.bf16 %v887_v28 }
  0x99   : > { %426 = vrot.lane.b32.xlu0 %v308_v8, %s916_s29  ;;  %446 = vrot.lane.b32.xlu1 %v395_v21, %s916_s29  ;;  %v458_v46 = vsel %vm452_vm5, %v431_v26, %v433_v29 }
  0x9a   : > { %542 = vmatpush1.bf16.msra.mxu1 %v977_v1  ;;  %v457_v50 = vsel %vm452_vm5, %v888_v44, %v431_v26  ;;  %v858_v26 = vld [vmem:[%s1084_s2 + $0x8] sm:$0xf] }
  0x9b   : > { %543 = vmatprep.subr.bf16.mxu1 %v394_v19  ;;  %v439_v30 = vpop.permute.xlu1 %438 }
  0x9c   : > { %v437_v31 = vpop.permute.xlu0 %436 }
  0x9d   : > { %450 = vrot.lane.b32.xlu0 %v397_v22, %s916_s29  ;;  %620 = vrot.lane.b32.xlu1 %v582_v23, %s917_s30  ;;  %v460_v51 = vsel %vm452_vm5, %v437_v31, %v439_v30  ;;  %v459_v54 = vsel %vm452_vm5, %v889_v49, %v437_v31  ;;  %v348_v31 = vlaneseq }
  0x9e   : > { %544 = vmatpush1.bf16.msra.mxu1 %v328_v15 }
  0x9f   : > { %545 = vmatprep.subr.bf16.mxu1 %v397_v22 }
  0xa1   : > { %616 = vrot.lane.b32.xlu0 %v381_v14, %s917_s30  ;;  %622 = vrot.lane.b32.xlu1 %v384_v12, %s917_s30 }
  0xa2   : > { %546 = vmatpush1.bf16.msra.mxu1 %v341_v18 }
  0xa5   : > { %442 = vrot.lane.b32.xlu0 %v328_v15, %s916_s29  ;;  %448 = vrot.lane.b32.xlu1 %v341_v18, %s916_s29 }
  0xa6   : > { %857 = vmatmul.mubr.msk.bf16.vlgmr.msra.gmra.mrb[0].mxu1 %vm477_vm4, %v856_v24 }
  0xa9   : > { %626 = vrot.lane.b32.xlu0 %v585_v25, %s917_s30  ;;  %891 = vrot.lane.b32.xlu1 %v913_v0, %s917_s30 }
  0xad   : > { %618 = vrot.lane.b32.xlu0 %v287_v10, %s917_s30  ;;  %624 = vrot.lane.b32.xlu1 %v308_v8, %s917_s30 }
  0xb1   : > { %630 = vrot.lane.b32.xlu0 %v984_v4, %s917_s30  ;;  %636 = vrot.lane.b32.xlu1 %v982_v3, %s917_s30 }
  0xb5   : > { %628 = vrot.lane.b32.xlu0 %v979_v2, %s917_s30  ;;  %642 = vrot.lane.b32.xlu1 %v394_v19, %s917_s30 }
  0xb9   : > { %634 = vrot.lane.b32.xlu0 %v977_v1, %s917_s30  ;;  %640 = vrot.lane.b32.xlu1 %v328_v15, %s917_s30 }
  0xbd   : > { %644 = vrot.lane.b32.xlu0 %v913_v0, %s917_s30  ;;  %650 = vrot.lane.b32.xlu1 %v913_v0, %s917_s30 }
  0xc1   : > { %648 = vrot.lane.b32.xlu0 %v397_v22, %s917_s30 }
  0xc5   : > { %646 = vrot.lane.b32.xlu0 %v341_v18, %s917_s30 }
  0xfe   : > { %v425_v32 = vpop.permute.xlu1 %424 }
  0xff   : > { %v419_v33 = vpop.permute.xlu0 %418  ;;  %v455_v45 = vsel %vm452_vm5, %v884_v40, %v425_v32 }
 0x100   : > { %v453_v37 = vsel %vm452_vm5, %v883_v34, %v419_v33 }
 0x102   : > { %v421_v35 = vpop.permute.xlu1 %420 }
 0x103   : > { %v454_v36 = vsel %vm452_vm5, %v419_v33, %v421_v35 }
 0x104   : > { %481 = vmatprep.subr.bf16.mxu0 %v454_v36 }
 0x105   : > { %482 = vmatpush1.bf16.msra.mxu0 %v453_v37 }
 0x106   : > { %v445_v38 = vpop.permute.xlu1 %444 }
 0x107   : > { %v441_v39 = vpop.permute.xlu0 %440 }
 0x10b   : > { %v427_v41 = vpop.permute.xlu0 %426  ;;  %v447_v42 = vpop.permute.xlu1 %446 }
 0x10c   : > { %v456_v43 = vsel %vm452_vm5, %v425_v32, %v427_v41  ;;  %v349_v32 = vand.u32 127, %v348_v31 }
 0x10d   : > { %483 = vmatprep.subr.bf16.mxu0 %v456_v43 }
 0x10e   : > { %484 = vmatpush1.bf16.msra.mxu0 %v455_v45  ;;  %v350_v33 = vadd.s32 128, %v349_v32  ;;  %v355_v34 = vand.u32 15, %v349_v32 }
 0x10f   : > { %v451_v47 = vpop.permute.xlu0 %450  ;;  %485 = vmatprep.subr.bf16.mxu0 %v458_v46  ;;  %v621_v48 = vpop.permute.xlu1 %620 }
 0x110   : > { %v362_v35 = vand.u32 15, %v350_v33  ;;  %vm375_vm7 = vcmp.ge.s32.totalorder %v355_v34, 1  ;;  %vm377_vm9 = vcmp.le.s32.totalorder %v355_v34, 14 }
 0x112   : > { %486 = vmatpush1.bf16.msra.mxu0 %v457_v50  ;;  %vm376_vm8 = vcmp.ge.s32.totalorder %v362_v35, 1  ;;  %vm378_vm10 = vcmp.le.s32.totalorder %v362_v35, 14 }
 0x113   : > { %v617_v52 = vpop.permute.xlu0 %616  ;;  %487 = vmatprep.subr.bf16.mxu0 %v460_v51  ;;  %v623_v53 = vpop.permute.xlu1 %622 }
 0x116   : > { %488 = vmatpush1.bf16.msra.mxu0 %v459_v54 }
 0x117   : > { %v443_v55 = vpop.permute.xlu0 %442  ;;  %v449_v56 = vpop.permute.xlu1 %448 }
 0x118   : > { %v462_v57 = vsel %vm452_vm5, %v443_v55, %v445_v38  ;;  %v461_v58 = vsel %vm452_vm5, %v441_v39, %v443_v55  ;;  %v464_v59 = vsel %vm452_vm5, %v449_v56, %v451_v47  ;;  %v463_v62 = vsel %vm452_vm5, %v447_v42, %v449_v56 }
 0x119   : > { %489 = vmatprep.subr.bf16.mxu0 %v462_v57 }
 0x11a   : > { %490 = vmatpush1.bf16.msra.mxu0 %v461_v58 }
 0x11b   : > { %v627_v60 = vpop.permute.xlu0 %626  ;;  %491 = vmatprep.subr.bf16.mxu0 %v464_v59  ;;  %v892_v61 = vpop.permute.xlu1 %891 }
 0x11c   : > { %v893_v5 = vunpack.i.l.bf16 %v892_v61  ;;  %v894_v10 = vunpack.i.h.bf16 %v892_v61  ;;  %v746_v61 = vld [vmem:[%s1085_s3] sm:$0xff] }
 0x11e   : > { %492 = vmatpush1.bf16.msra.mxu0 %v463_v62 }
 0x11f   : > { %v619_v1 = vpop.permute.xlu0 %618  ;;  %v625_v2 = vpop.permute.xlu1 %624 }
 0x120   : > { %v653_v3 = vsel %vm652_vm6, %v617_v52, %v619_v1  ;;  %v654_v4 = vsel %vm652_vm6, %v619_v1, %v621_v48  ;;  %v656_v6 = vsel %vm652_vm6, %v625_v2, %v627_v60  ;;  %v655_v9 = vsel %vm652_vm6, %v623_v53, %v625_v2  ;;  %v754_v53 = vld [vmem:[%s1086_s4] sm:$0xff] }
 0x121   : > { %680 = vmatprep.subr.bf16.mxu0 %v654_v4  ;;  %855 = vmatmul.mubr.msk.bf16.vlgmr.msra.gmra.mrb[0].mxu0 %vm477_vm4, %v379_v63 }
 0x122   : > { %681 = vmatpush1.bf16.msra.mxu0 %v653_v3  ;;  %712 = vmatprep.mubr.bf16.mxu0 %v913_v0 }
 0x123   : > { %v631_v7 = vpop.permute.xlu0 %630  ;;  %682 = vmatprep.subr.bf16.mxu0 %v656_v6  ;;  %v637_v8 = vpop.permute.xlu1 %636 }
 0x124   : > { %v658_v11 = vsel %vm652_vm6, %v631_v7, %v893_v5  ;;  %v660_v15 = vsel %vm652_vm6, %v637_v8, %v894_v10 }
 0x126   : > { %683 = vmatpush1.bf16.msra.mxu0 %v655_v9 }
 0x127   : > { %v629_v12 = vpop.permute.xlu0 %628  ;;  %684 = vmatprep.subr.bf16.mxu0 %v658_v11  ;;  %v643_v13 = vpop.permute.xlu1 %642 }
 0x128   : > { %v657_v14 = vsel %vm652_vm6, %v629_v12, %v631_v7 }
 0x12a   : > { %685 = vmatpush1.bf16.msra.mxu0 %v657_v14 }
 0x12b   : > { %v635_v16 = vpop.permute.xlu0 %634  ;;  %686 = vmatprep.subr.bf16.mxu0 %v660_v15  ;;  %v641_v17 = vpop.permute.xlu1 %640 }
 0x12c   : > { %v659_v0 = vsel %vm652_vm6, %v635_v16, %v637_v8  ;;  %v661_v20 = vsel %vm652_vm6, %v641_v17, %v643_v13 }
 0x12e   : > { %687 = vmatpush1.bf16.msra.mxu0 %v659_v0 }
 0x12f   : > { %v645_v18 = vpop.permute.xlu0 %644  ;;  %v651_v21 = vpop.permute.xlu1 %650 }
 0x130   : > { %v662_v19 = vsel %vm652_vm6, %v643_v13, %v645_v18 }
 0x131   : > { %688 = vmatprep.subr.bf16.mxu0 %v662_v19 }
 0x132   : > { %689 = vmatpush1.bf16.msra.mxu0 %v661_v20 }
 0x133   : > { %v649_v22 = vpop.permute.xlu0 %648 }
 0x134   : > { %v664_v23 = vsel %vm652_vm6, %v649_v22, %v651_v21 }
 0x135   : > { %690 = vmatprep.subr.bf16.mxu0 %v664_v23 }
 0x137   : > { %v647_v24 = vpop.permute.xlu0 %646 }
 0x138   : > { %v663_v25 = vsel %vm652_vm6, %v647_v24, %v649_v22 }
 0x139   : > { %691 = vmatpush1.bf16.msra.mxu0 %v663_v25 }
 0x13c   : > { %859 = vmatmul.mubr.msk.bf16.vlgmr.msra.gmra.mrb[4].mxu0 %vm477_vm4, %v858_v26 }
 0x179   : > { %v569_v27 = vpop.f32.mrb[0].mxu1 }
 0x17a   : > { %v571_v28 = vpop.f32.mrb[1].mxu1 }
 0x17b   : > { %v573_v29 = vpop.f32.mrb[2].mxu1 }
 0x17c   : > { %v574_v30 = vpop.f32.mrb[3].mxu1 }
 0x1f4   : > { %v515_v36 = vpop.f32.mrb[0].mxu0 }
 0x1f5   : > { %v526_v37 = vsel %vm375_vm7, %v515_v36, 0.0  ;;  %v517_v38 = vpop.f32.mrb[1].mxu0 }
 0x1f6   : > { %v527_v39 = vsel %vm376_vm8, %v517_v38, 0.0  ;;  %v519_v40 = vpop.f32.mrb[2].mxu0  ;;  %v576_v41 = vadd.f32 %v569_v27, %v526_v37 }
 0x1f7   : > { %v520_v42 = vpop.f32.mrb[3].mxu0  ;;  %v577_v43 = vadd.f32 %v571_v28, %v527_v39 }
 0x20f   : > { %v714_v44 = vpop.f32.mrb[4].mxu0 }
 0x210   : > { %v725_v45 = vsel %vm377_vm9, %v714_v44, 0.0  ;;  %v716_v46 = vpop.f32.mrb[5].mxu0 }
 0x211   : > { %v727_v47 = vadd.f32 %v725_v45, %v576_v41  ;;  %v726_v48 = vsel %vm378_vm10, %v716_v46, 0.0  ;;  %v718_v49 = vpop.f32.mrb[6].mxu0 }
 0x212   : > { %v728_v50 = vadd.f32 %v726_v48, %v577_v43  ;;  %v719_v51 = vpop.f32.mrb[7].mxu0 }
 0x214   : > { %v729_v52 = vadd.f32 %v728_v50, %v727_v47 }
 0x216   : > { %730 = vadd.xlane.f32.xlu1 %v729_v52 }
 0x227   : > { %757 = vperm.xlu1 %896, %v754_v53  }
 0x2a3   : > { %v731_v54 = vpop.xlane.xlu1 %730 }
 0x2a4   : > { %v733_v55 = vmul.f32 0.00390625, %v731_v54 }
 0x2a6   : > { %v734_v56 = vsub.f32 %v727_v47, %v733_v55  ;;  %v735_v57 = vsub.f32 %v728_v50, %v733_v55 }
 0x2a7   : > { %v758_v6 = vpop.permute.xlu1 %757 }
 0x2a8   : > { %v736_v58 = vmul.f32 %v734_v56, %v734_v56  ;;  %v737_v59 = vmul.f32 %v735_v57, %v735_v57 }
 0x2aa   : > { %v738_v60 = vadd.f32 %v737_v59, %v736_v58 }
 0x2ac   : > { %739 = vadd.xlane.f32.xlu0 %v738_v60 }
 0x2c2   : > { %749 = vperm.xlu0 %895, %v746_v61  }
 0x339   : > { %v740_v62 = vpop.xlane.xlu0 %739 }
 0x33a   : > { %v741_v63 = vmul.f32 0.00390625, %v740_v62 }
 0x33c   : > { %v742_v1 = vadd.f32 1e-05, %v741_v63 }
 0x33e   : > { %903 = vrsqrt.f32 %v742_v1 }
 0x341   : > { %v750_v3 = vpop.permute.xlu0 %749 }
 0x348   : > { %v904_v2 = vpop.eup %903 }
 0x349   : > { %v744_v4 = vmul.f32 %v904_v2, %v734_v56  ;;  %v745_v5 = vmul.f32 %v904_v2, %v735_v57 }
 0x34b   : > { %v752_v7 = vmul.f32 %v750_v3, %v744_v4  ;;  %v753_v8 = vmul.f32 %v750_v3, %v745_v5 }
 0x34d   : > { %v760_v9 = vadd.f32 %v758_v6, %v752_v7  ;;  %v761_v10 = vadd.f32 %v758_v6, %v753_v8 }
 0x34f   : > { %v762_v11 = vmax.f32 %v760_v9, 0.0  ;;  %v763_v12 = vmax.f32 %v761_v10, 0.0 }
 0x351   : > { %v866_v13 = vpack.c.bf16 %v763_v12, %v762_v11 }
 0x353   : > { %772 = vst [vmem:[%s244_s21] sm:$0xff] %v866_v13 }
 0x354 PF: > { %s15_s18 = sadd.s32 1, %s911_s18  }
 0x355   : > { %p12_p4 = scmp.ge.s32.totalorder %s15_s18, 4  }
 0x357   :  { %14 = sbr.rel (!%p12_p4) target bundleno = 1 (0x1), region = 75 }

// kernel: attention_forward.17
= control target key start
LH: loop header
LB: loop body
LE: loop exit
PB: predicated region body
PF: predicated region fallthrough
CT: control target
= control target key end

     0   :  { %s2270_s26 = smov 0   ;;  %s2768_s0 = inlined_call_operand.vmem [shape: bf16[2,8,1024], index: 0, kind: input, shape index: {}]   ;;  %s2769_s1 = inlined_call_operand.vmem [shape: bf16[2,8,1024], index: 1, kind: input, shape index: {}]   ;;  %s2770_s2 = inlined_call_operand.vmem [shape: bf16[3,8,48], index: 2, kind: input, shape index: {}]   ;;  %s2771_s3 = inlined_call_operand.vmem [shape: f32[8,1], index: 3, kind: input, shape index: {}]   ;;  %s2772_s4 = inlined_call_operand.vmem [shape: f32[8,1], index: 4, kind: input, shape index: {}]   ;;  %s2773_s5 = inlined_call_operand.vmem [shape: bf16[1,8], index: 5, kind: input, shape index: {}]   ;;  %s2774_s6 = inlined_call_operand.<no memory space> [shape: f32[1,1], index: 6, kind: input, shape index: {}]   ;;  %s2775_s7 = inlined_call_operand.vmem [shape: f32[2,1,1024], index: 7, kind: output, shape index: {}]  }
   0x1   :  { %v12_v0 = vstv %s2774_s6 }
   0x2   :  { %13 = vst [vmem:[#allocation3] sm:$0x1] %v12_v0 }
   0x3 LB: > { %s2089_s27 = sadd.s32 4294967295, %s2219_s26   ;;  %p2093_p0 = scmp.ge.s32.totalorder %s2219_s26, 1  ;;  %s2219_s26 = sphi %s2270_s26, %s19_s26  }
   0x4   : > { %p249_p1 = scmp.lt.s32.totalorder %s2219_s26, 3 }
   0x6   : > { %p250_p2 = pnand %p2093_p0, %p249_p1 }
   0x7   : > { %p2280_p3 = scmp.lt.s32.totalorder (!%p250_p2), %s2089_s27, 1  ;;  %v2221_v1 = vmov (!%p250_p2), 0   ;;  %s2222_s12 = smov (!%p250_p2), 32   ;;  %vm454_vm0 = vcmask (!%p250_p2), 1047812   ;;  %vm391_vm1 = vcmask (!%p250_p2), 1043712   ;;  %vm374_vm2 = vcmask (!%p250_p2), 261120  }
   0x8   : > { %253 = sbr.rel (%p250_p2) target bundleno = 1227 (0x4cb), region = 48  ;;  %319 = vst [vmem:[#allocation2 + $0x58] sm:$0xff] (!%p250_p2), %v2221_v1  ;;  %308 = vst [vmem:[#allocation2] sm:$0xff] (!%p250_p2), %v2221_v1  ;;  %899 = vmatprep.mubr.bf16.mxu0 (!%p250_p2), %v2221_v1  ;;  %940 = vmatprep.mubr.bf16.mxu1 (!%p250_p2), %v2221_v1  ;;  %s2223_s13 = smov (!%p250_p2), 96   ;;  %vm513_vm3 = vcmask (!%p250_p2), 785408   ;;  %vm530_vm4 = vcmask (!%p250_p2), 1044224  }
   0x9   : > { %309 = vst [vmem:[#allocation2 + $0x8] sm:$0xff] (!%p250_p2), %v2221_v1  ;;  %310 = vst [vmem:[#allocation2 + $0x10] sm:$0xff] (!%p250_p2), %v2221_v1  ;;  %2161 = vset.pattern.permute.xlu1 (!%p250_p2), %v2221_v1  ;;  %2160 = vset.pattern.permute.xlu0 (!%p250_p2), %v2221_v1  ;;  %s2224_s14 = smov (!%p250_p2), 1   ;;  %s2225_s15 = smov (!%p250_p2), 127   ;;  %vm573_vm5 = vcmask (!%p250_p2), 1048324   ;;  %vm400_vm6 = vcmask (!%p250_p2), 257024  }
   0xa   : > { %311 = vst [vmem:[#allocation2 + $0x18] sm:$0xff] (!%p250_p2), %v2221_v1  ;;  %312 = vst [vmem:[#allocation2 + $0x20] sm:$0xff] (!%p250_p2), %v2221_v1  ;;  %vm463_vm7 = vcmask (!%p250_p2), 261124   ;;  %vm582_vm8 = vcmask (!%p250_p2), 785412   ;;  %vm539_vm9 = vcmask (!%p250_p2), 781312   ;;  %vm814_vm10 = vcmask (!%p250_p2), 7168  }
   0xb   : > { %313 = vst [vmem:[#allocation2 + $0x28] sm:$0xff] (!%p250_p2), %v2221_v1  ;;  %314 = vst [vmem:[#allocation2 + $0x30] sm:$0xff] (!%p250_p2), %v2221_v1  ;;  %vm863_vm11 = vcmask (!%p250_p2), 392192   ;;  %vm1350_vm12 = vcmask (!%p250_p2), 1039360  }
   0xc   : > { %315 = vst [vmem:[#allocation2 + $0x38] sm:$0xff] (!%p250_p2), %v2221_v1  ;;  %316 = vst [vmem:[#allocation2 + $0x40] sm:$0xff] (!%p250_p2), %v2221_v1 }
   0xd   : > { %317 = vst [vmem:[#allocation2 + $0x48] sm:$0xff] (!%p250_p2), %v2221_v1  ;;  %320 = vst [vmem:[#allocation2 + $0x60] sm:$0xff] (!%p250_p2), %v2221_v1 }
   0xe   : > { %321 = vst [vmem:[#allocation2 + $0x68] sm:$0xff] (!%p250_p2), %v2221_v1  ;;  %322 = vst [vmem:[#allocation2 + $0x70] sm:$0xff] (!%p250_p2), %v2221_v1 }
   0xf   : > { %323 = vst [vmem:[#allocation2 + $0x78] sm:$0xff] %v2221_v1  ;;  %324 = vst [vmem:[#allocation2 + $0x80] sm:$0xff] %v2221_v1  ;;  %s2778_s27 = smov (!%p2280_p3, %s2089_s27), 1 }
  0x10   : > { %325 = vst [vmem:[#allocation2 + $0x88] sm:$0xff] %v2221_v1  ;;  %326 = vst [vmem:[#allocation2 + $0x90] sm:$0xff] %v2221_v1  ;;  %s2139_s28 = sshll.u32 %s2778_s27, 5  ;;  %s2098_s29 = sshll.u32 %s2778_s27, 3 }
  0x11   : > { %328 = vst [vmem:[#allocation2 + $0xa0] sm:$0xff] %v2221_v1  ;;  %329 = vst [vmem:[#allocation2 + $0xa8] sm:$0xff] %v2221_v1  ;;  %s294_s8 = scalar_lea.vmem %s2769_s1, %s2139_s28  ;;  %s289_s11 = scalar_lea.vmem %s2768_s0, %s2139_s28 }
  0x12   : > { %330 = vst [vmem:[#allocation2 + $0xb0] sm:$0xff] %v2221_v1  ;;  %331 = vst [vmem:[#allocation2 + $0xb8] sm:$0xff] %v2221_v1  ;;  %v304_v2 = vld [vmem:[%s294_s8] sm:$0xff]  ;;  %v305_v3 = vld [vmem:[%s294_s8 + $0x8] sm:$0xff]  ;;  %s298_s9 = scalar_lea.vmem %s2775_s7, %s2098_s29 }
  0x13   : > { %332 = vst [vmem:[#allocation2 + $0xc0] sm:$0xff] %v2221_v1  ;;  %333 = vst [vmem:[#allocation2 + $0xc8] sm:$0xff] %v2221_v1  ;;  %v306_v4 = vld [vmem:[%s294_s8 + $0x10] sm:$0xff]  ;;  %v2107_v5 = vcombine.low %v304_v2, %v304_v2  ;;  %v300_v6 = vld [vmem:[%s289_s11] sm:$0xff]  ;;  %v2108_v7 = vcombine.high %v304_v2, %v304_v2  ;;  %v2110_v9 = vcombine.high %v305_v3, %v305_v3 }
  0x14   : > { %334 = vst [vmem:[#allocation2 + $0xd0] sm:$0xff] %v2221_v1  ;;  %335 = vst [vmem:[#allocation2 + $0xd8] sm:$0xff] %v2221_v1  ;;  %v301_v8 = vld [vmem:[%s289_s11 + $0x8] sm:$0xff]  ;;  %v2109_v10 = vcombine.low %v305_v3, %v305_v3  ;;  %v302_v11 = vld [vmem:[%s289_s11 + $0x10] sm:$0xff]  ;;  %v2099_v12 = vcombine.low %v300_v6, %v300_v6  ;;  %v2100_v13 = vcombine.high %v300_v6, %v300_v6 }
  0x15   : > { %336 = vst [vmem:[#allocation2 + $0xe0] sm:$0xff] %v2221_v1  ;;  %v2102_v14 = vcombine.high %v301_v8, %v301_v8  ;;  %v2101_v15 = vcombine.low %v301_v8, %v301_v8  ;;  %v303_v16 = vld [vmem:[%s289_s11 + $0x18] sm:$0xff]  ;;  %422 = vrot.lane.b32.xlu1 %v2107_v5, %s2222_s12  ;;  %489 = vst [vmem:[#allocation2 + $0x58] sm:$0xf0] %v2107_v5  ;;  %v2104_v18 = vcombine.high %v302_v11, %v302_v11 }
  0x16   : > { %v307_v17 = vld [vmem:[%s294_s8 + $0x18] sm:$0xff]  ;;  %490 = vst [vmem:[#allocation2 + $0x60] sm:$0xf0] %v2108_v7  ;;  %492 = vst [vmem:[#allocation2 + $0x70] sm:$0xf0] %v2110_v9  ;;  %v2103_v19 = vcombine.low %v302_v11, %v302_v11  ;;  %v2112_v20 = vcombine.high %v306_v4, %v306_v4  ;;  %v2111_v21 = vcombine.low %v306_v4, %v306_v4  ;;  %358 = vrot.lane.b32.xlu0 %v2099_v12, %s2222_s12 }
  0x17   : > { %491 = vst [vmem:[#allocation2 + $0x68] sm:$0xf0] %v2109_v10  ;;  %473 = vst [vmem:[#allocation2 + $0x58] sm:$0xf] %v2099_v12  ;;  %v2106_v22 = vcombine.high %v303_v16, %v303_v16  ;;  %v2105_v23 = vcombine.low %v303_v16, %v303_v16  ;;  %v2114_v24 = vcombine.high %v307_v17, %v307_v17 }
  0x18   : > { %474 = vst [vmem:[#allocation2 + $0x60] sm:$0xf] %v2100_v13  ;;  %476 = vst [vmem:[#allocation2 + $0x70] sm:$0xf] %v2102_v14  ;;  %v2113_v25 = vcombine.low %v307_v17, %v307_v17 }
  0x19   : > { %475 = vst [vmem:[#allocation2 + $0x68] sm:$0xf] %v2101_v15  ;;  %478 = vst [vmem:[#allocation2 + $0x80] sm:$0xf] %v2104_v18  ;;  %424 = vrot.lane.b32.xlu1 %v2108_v7, %s2222_s12 }
  0x1a   : > { %477 = vst [vmem:[#allocation2 + $0x78] sm:$0xf] %v2103_v19  ;;  %494 = vst [vmem:[#allocation2 + $0x80] sm:$0xf0] %v2112_v20  ;;  %360 = vrot.lane.b32.xlu0 %v2100_v13, %s2222_s12 }
  0x1b   : > { %493 = vst [vmem:[#allocation2 + $0x78] sm:$0xf0] %v2111_v21  ;;  %480 = vst [vmem:[#allocation2 + $0x90] sm:$0xf] %v2106_v22 }
  0x1c   : > { %479 = vst [vmem:[#allocation2 + $0x88] sm:$0xf] %v2105_v23  ;;  %496 = vst [vmem:[#allocation2 + $0x90] sm:$0xf0] %v2114_v24 }
  0x1d   : > { %495 = vst [vmem:[#allocation2 + $0x88] sm:$0xf0] %v2113_v25  ;;  %364 = vrot.lane.b32.xlu1 %v2102_v14, %s2222_s12 }
  0x1e   : > { %362 = vrot.lane.b32.xlu0 %v2101_v15, %s2222_s12  ;;  %v2344_v26 = vld [vmem:[#allocation2 + $0x58] sm:$0xff] }
  0x1f   : > { %v2352_v28 = vld [vmem:[#allocation2 + $0x60] sm:$0xff]  ;;  %v2360_v30 = vld [vmem:[#allocation2 + $0x70] sm:$0xff] }
  0x20   : > { %v2350_v27 = vld [vmem:[#allocation2 + $0x68] sm:$0xff] }
  0x21   : > { %428 = vrot.lane.b32.xlu1 %v2110_v9, %s2222_s12  ;;  %v2358_v29 = vld [vmem:[#allocation2 + $0x80] sm:$0xff] }
  0x22   : > { %426 = vrot.lane.b32.xlu0 %v2109_v10, %s2222_s12  ;;  %v2368_v32 = vld [vmem:[#allocation2 + $0x78] sm:$0xff] }
  0x23   : > { %v2366_v31 = vld [vmem:[#allocation2 + $0x90] sm:$0xff] }
  0x24   : > { %v2374_v33 = vld [vmem:[#allocation2 + $0x88] sm:$0xff] }
  0x25   : > { %499 = vrot.lane.b32.xlu1 %v2100_v13, %s2223_s13 }
  0x26   : > { %497 = vrot.lane.b32.xlu0 %v2099_v12, %s2223_s13 }
  0x29   : > { %541 = vrot.lane.b32.xlu1 %v2107_v5, %s2223_s13 }
  0x2a   : > { %501 = vrot.lane.b32.xlu0 %v2101_v15, %s2223_s13 }
  0x2d   : > { %545 = vrot.lane.b32.xlu1 %v2109_v10, %s2223_s13 }
  0x2e   : > { %543 = vrot.lane.b32.xlu0 %v2108_v7, %s2223_s13 }
  0x31   : > { %368 = vrot.lane.b32.xlu1 %v2104_v18, %s2222_s12 }
  0x32   : > { %366 = vrot.lane.b32.xlu0 %v2103_v19, %s2222_s12 }
  0x35   : > { %432 = vrot.lane.b32.xlu1 %v2112_v20, %s2222_s12 }
  0x36   : > { %430 = vrot.lane.b32.xlu0 %v2111_v21, %s2222_s12 }
  0x39   : > { %505 = vrot.lane.b32.xlu1 %v2103_v19, %s2223_s13 }
  0x3a   : > { %503 = vrot.lane.b32.xlu0 %v2102_v14, %s2223_s13 }
  0x3d   : > { %549 = vrot.lane.b32.xlu1 %v2111_v21, %s2223_s13 }
  0x3e   : > { %547 = vrot.lane.b32.xlu0 %v2110_v9, %s2223_s13 }
  0x41   : > { %372 = vrot.lane.b32.xlu1 %v2106_v22, %s2222_s12 }
  0x42   : > { %370 = vrot.lane.b32.xlu0 %v2105_v23, %s2222_s12 }
  0x45   : > { %436 = vrot.lane.b32.xlu1 %v2114_v24, %s2222_s12 }
  0x46   : > { %434 = vrot.lane.b32.xlu0 %v2113_v25, %s2222_s12 }
  0x49   : > { %509 = vrot.lane.b32.xlu1 %v2105_v23, %s2223_s13 }
  0x4a   : > { %507 = vrot.lane.b32.xlu0 %v2104_v18, %s2223_s13 }
  0x4d   : > { %553 = vrot.lane.b32.xlu1 %v2113_v25, %s2223_s13 }
  0x4e   : > { %551 = vrot.lane.b32.xlu0 %v2112_v20, %s2223_s13 }
  0x51   : > { %555 = vrot.lane.b32.xlu1 %v2114_v24, %s2223_s13 }
  0x52   : > { %511 = vrot.lane.b32.xlu0 %v2106_v22, %s2223_s13 }
  0x55   : > { %780 = vrot.lane.b32.xlu1 %v2344_v26, %s2224_s14 }
  0x56   : > { %2156 = vrot.lane.b32.xlu0 %v2221_v1, %s2224_s14 }
  0x59   : > { %784 = vrot.lane.b32.xlu1 %v2350_v27, %s2224_s14 }
  0x5a   : > { %782 = vrot.lane.b32.xlu0 %v2352_v28, %s2224_s14 }
  0x5d   : > { %790 = vrot.lane.b32.xlu1 %v2358_v29, %s2224_s14 }
  0x5e   : > { %786 = vrot.lane.b32.xlu0 %v2360_v30, %s2224_s14 }
  0x61   : > { %794 = vrot.lane.b32.xlu1 %v2366_v31, %s2224_s14 }
  0x62   : > { %788 = vrot.lane.b32.xlu0 %v2368_v32, %s2224_s14 }
  0x66   : > { %792 = vrot.lane.b32.xlu0 %v2374_v33, %s2224_s14 }
  0x87   : > { %v423_v34 = vpop.permute.xlu1 %422 }
  0x88   : > { %455 = vst.msk [vmem:[#allocation2 + $0x8] sm:$0xf0] %vm454_vm0, %v423_v34  ;;  %v359_v35 = vpop.permute.xlu0 %358 }
  0x89   : > { %392 = vst.msk [vmem:[#allocation2 + $0x8] sm:$0xf] %vm391_vm1, %v359_v35 }
  0x8b   : > { %v425_v36 = vpop.permute.xlu1 %424 }
  0x8c   : > { %v438_v37 = vsel %vm374_vm2, %v423_v34, %v425_v36  ;;  %v361_v38 = vpop.permute.xlu0 %360 }
  0x8d   : > { %456 = vst [vmem:[#allocation2 + $0x10] sm:$0xf0] %v438_v37  ;;  %v375_v39 = vsel %vm374_vm2, %v359_v35, %v361_v38 }
  0x8e   : > { %393 = vst [vmem:[#allocation2 + $0x10] sm:$0xf] %v375_v39 }
  0x8f   : > { %v365_v40 = vpop.permute.xlu1 %364 }
  0x90   : > { %v363_v41 = vpop.permute.xlu0 %362  ;;  %v2380_v42 = vld [vmem:[#allocation2 + $0x8] sm:$0xff] }
  0x91   : > { %v376_v43 = vsel %vm374_vm2, %v361_v38, %v363_v41  ;;  %v377_v44 = vsel %vm374_vm2, %v363_v41, %v365_v40  ;;  %762 = vrot.lane.b32.xlu0 %v2380_v42, %s2224_s14 }
  0x92   : > { %394 = vst [vmem:[#allocation2 + $0x18] sm:$0xf] %v376_v43  ;;  %395 = vst [vmem:[#allocation2 + $0x20] sm:$0xf] %v377_v44 }
  0x93   : > { %v429_v45 = vpop.permute.xlu1 %428 }
  0x94   : > { %v427_v46 = vpop.permute.xlu0 %426 }
  0x95   : > { %v439_v47 = vsel %vm374_vm2, %v425_v36, %v427_v46  ;;  %v440_v48 = vsel %vm374_vm2, %v427_v46, %v429_v45  ;;  %1296 = vrot.lane.b32.xlu0 %v2380_v42, %s2225_s15 }
  0x96   : > { %457 = vst [vmem:[#allocation2 + $0x18] sm:$0xf0] %v439_v47  ;;  %458 = vst [vmem:[#allocation2 + $0x20] sm:$0xf0] %v440_v48 }
  0x97   : > { %v500_v49 = vpop.permute.xlu1 %499 }
  0x98   : > { %v498_v50 = vpop.permute.xlu0 %497 }
  0x99   : > { %v514_v51 = vsel %vm513_vm3, %v498_v50, %v500_v49  ;;  %531 = vst.msk [vmem:[#allocation2 + $0xa0] sm:$0xf] %vm530_vm4, %v498_v50 }
  0x9a   : > { %532 = vst [vmem:[#allocation2 + $0xa8] sm:$0xf] %v514_v51 }
  0x9b   : > { %v542_v52 = vpop.permute.xlu1 %541 }
  0x9c   : > { %574 = vst.msk [vmem:[#allocation2 + $0xa0] sm:$0xf0] %vm573_vm5, %v542_v52  ;;  %v502_v53 = vpop.permute.xlu0 %501 }
  0x9d   : > { %v515_v54 = vsel %vm513_vm3, %v500_v49, %v502_v53  ;;  %v2392_v55 = vld [vmem:[#allocation2 + $0x20] sm:$0xff]  ;;  %v2443_v49 = vld [vmem:[#allocation2 + $0x10] sm:$0xff]  ;;  %v2451_v51 = vld [vmem:[#allocation2 + $0x18] sm:$0xff] }
  0x9e   : > { %533 = vst [vmem:[#allocation2 + $0xb0] sm:$0xf] %v515_v54  ;;  %768 = vrot.lane.b32.xlu0 %v2392_v55, %s2224_s14 }
  0x9f   : > { %v546_v56 = vpop.permute.xlu1 %545 }
  0xa0   : > { %v544_v57 = vpop.permute.xlu0 %543 }
  0xa1   : > { %v557_v58 = vsel %vm513_vm3, %v542_v52, %v544_v57  ;;  %v558_v59 = vsel %vm513_vm3, %v544_v57, %v546_v56 }
  0xa2   : > { %575 = vst [vmem:[#allocation2 + $0xa8] sm:$0xf0] %v557_v58  ;;  %576 = vst [vmem:[#allocation2 + $0xb0] sm:$0xf0] %v558_v59 }
  0xa3   : > { %v369_v60 = vpop.permute.xlu1 %368  ;;  %v724_v61 = vld [vmem:[#allocation2 + $0xa0] sm:$0xff] }
  0xa4   : > { %v367_v62 = vpop.permute.xlu0 %366  ;;  %796 = vrot.lane.b32.xlu1 %v724_v61, %s2224_s14 }
  0xa5   : > { %v378_v63 = vsel %vm374_vm2, %v365_v40, %v367_v62  ;;  %v379_v0 = vsel %vm374_vm2, %v367_v62, %v369_v60 }
  0xa6   : > { %396 = vst [vmem:[#allocation2 + $0x28] sm:$0xf] %v378_v63  ;;  %397 = vst [vmem:[#allocation2 + $0x30] sm:$0xf] %v379_v0 }
  0xa7   : > { %v433_v2 = vpop.permute.xlu1 %432 }
  0xa8   : > { %v431_v3 = vpop.permute.xlu0 %430 }
  0xa9   : > { %v441_v4 = vsel %vm374_vm2, %v429_v45, %v431_v3  ;;  %v442_v5 = vsel %vm374_vm2, %v431_v3, %v433_v2  ;;  %v2403_v6 = vld [vmem:[#allocation2 + $0xb0] sm:$0xff]  ;;  %v2457_v52 = vld [vmem:[#allocation2 + $0xa8] sm:$0xff] }
  0xaa   : > { %459 = vst [vmem:[#allocation2 + $0x28] sm:$0xf0] %v441_v4  ;;  %460 = vst [vmem:[#allocation2 + $0x30] sm:$0xf0] %v442_v5  ;;  %800 = vrot.lane.b32.xlu0 %v2403_v6, %s2224_s14 }
  0xab   : > { %v506_v7 = vpop.permute.xlu1 %505 }
  0xac   : > { %v504_v8 = vpop.permute.xlu0 %503 }
  0xad   : > { %v516_v9 = vsel %vm513_vm3, %v502_v53, %v504_v8  ;;  %v517_v10 = vsel %vm513_vm3, %v504_v8, %v506_v7 }
  0xae   : > { %534 = vst [vmem:[#allocation2 + $0xb8] sm:$0xf] %v516_v9  ;;  %535 = vst [vmem:[#allocation2 + $0xc0] sm:$0xf] %v517_v10 }
  0xaf   : > { %v550_v11 = vpop.permute.xlu1 %549 }
  0xb0   : > { %v548_v12 = vpop.permute.xlu0 %547 }
  0xb1   : > { %v559_v13 = vsel %vm513_vm3, %v546_v56, %v548_v12  ;;  %v560_v14 = vsel %vm513_vm3, %v548_v12, %v550_v11  ;;  %v2411_v15 = vld [vmem:[#allocation2 + $0x28] sm:$0xff]  ;;  %v2463_v53 = vld [vmem:[#allocation2 + $0x30] sm:$0xff] }
  0xb2   : > { %577 = vst [vmem:[#allocation2 + $0xb8] sm:$0xf0] %v559_v13  ;;  %578 = vst [vmem:[#allocation2 + $0xc0] sm:$0xf0] %v560_v14  ;;  %770 = vrot.lane.b32.xlu0 %v2411_v15, %s2224_s14 }
  0xb3   : > { %v373_v16 = vpop.permute.xlu1 %372 }
  0xb4   : > { %401 = vst.msk [vmem:[#allocation2 + $0x48] sm:$0xf] %vm400_vm6, %v373_v16  ;;  %v371_v17 = vpop.permute.xlu0 %370 }
  0xb5   : > { %v380_v18 = vsel %vm374_vm2, %v369_v60, %v371_v17  ;;  %v381_v19 = vsel %vm374_vm2, %v371_v17, %v373_v16 }
  0xb6   : > { %398 = vst [vmem:[#allocation2 + $0x38] sm:$0xf] %v380_v18  ;;  %399 = vst [vmem:[#allocation2 + $0x40] sm:$0xf] %v381_v19 }
  0xb7   : > { %v437_v20 = vpop.permute.xlu1 %436 }
  0xb8   : > { %464 = vst.msk [vmem:[#allocation2 + $0x48] sm:$0xf0] %vm463_vm7, %v437_v20  ;;  %v435_v21 = vpop.permute.xlu0 %434 }
  0xb9   : > { %v443_v22 = vsel %vm374_vm2, %v433_v2, %v435_v21  ;;  %v444_v23 = vsel %vm374_vm2, %v435_v21, %v437_v20  ;;  %v2419_v24 = vld [vmem:[#allocation2 + $0xb8] sm:$0xff]  ;;  %v2469_v54 = vld [vmem:[#allocation2 + $0xc0] sm:$0xff] }
  0xba   : > { %461 = vst [vmem:[#allocation2 + $0x38] sm:$0xf0] %v443_v22  ;;  %462 = vst [vmem:[#allocation2 + $0x40] sm:$0xf0] %v444_v23  ;;  %802 = vrot.lane.b32.xlu0 %v2419_v24, %s2224_s14 }
  0xbb   : > { %v510_v25 = vpop.permute.xlu1 %509 }
  0xbc   : > { %v508_v34 = vpop.permute.xlu0 %507 }
  0xbd   : > { %v518_v35 = vsel %vm513_vm3, %v506_v7, %v508_v34  ;;  %v519_v36 = vsel %vm513_vm3, %v508_v34, %v510_v25 }
  0xbe   : > { %536 = vst [vmem:[#allocation2 + $0xc8] sm:$0xf] %v518_v35  ;;  %537 = vst [vmem:[#allocation2 + $0xd0] sm:$0xf] %v519_v36 }
  0xbf   : > { %v554_v37 = vpop.permute.xlu1 %553  ;;  %v1250_v58 = vld [vmem:[#allocation2 + $0x48] sm:$0xff] }
  0xc0   : > { %v552_v38 = vpop.permute.xlu0 %551 }
  0xc1   : > { %v561_v39 = vsel %vm513_vm3, %v550_v11, %v552_v38  ;;  %v562_v40 = vsel %vm513_vm3, %v552_v38, %v554_v37  ;;  %v2427_v41 = vld [vmem:[#allocation2 + $0x38] sm:$0xff]  ;;  %v2475_v56 = vld [vmem:[#allocation2 + $0x40] sm:$0xff] }
  0xc2   : > { %579 = vst [vmem:[#allocation2 + $0xc8] sm:$0xf0] %v561_v39  ;;  %580 = vst [vmem:[#allocation2 + $0xd0] sm:$0xf0] %v562_v40  ;;  %774 = vrot.lane.b32.xlu0 %v2427_v41, %s2224_s14 }
  0xc3   : > { %v556_v43 = vpop.permute.xlu1 %555 }
  0xc4   : > { %v563_v44 = vsel %vm513_vm3, %v554_v37, %v556_v43  ;;  %583 = vst.msk [vmem:[#allocation2 + $0xe0] sm:$0xf0] %vm582_vm8, %v556_v43  ;;  %v512_v45 = vpop.permute.xlu0 %511 }
  0xc5   : > { %581 = vst [vmem:[#allocation2 + $0xd8] sm:$0xf0] %v563_v44  ;;  %v520_v46 = vsel %vm513_vm3, %v510_v25, %v512_v45  ;;  %540 = vst.msk [vmem:[#allocation2 + $0xe0] sm:$0xf] %vm539_vm9, %v512_v45 }
  0xc6   : > { %538 = vst [vmem:[#allocation2 + $0xd8] sm:$0xf] %v520_v46  ;;  %v705_v46 = vld [vmem:[%s2770_s2] sm:$0xf] }
  0xc7   : > { %v781_v2 = vpop.permute.xlu1 %780 }
  0xc8   : > { %v2157_v59 = vpop.permute.xlu0 %2156 }
  0xc9   : > { %v2433_v47 = vld [vmem:[#allocation2 + $0xc8] sm:$0xff]  ;;  %v2481_v57 = vld [vmem:[#allocation2 + $0xd0] sm:$0xff]  ;;  %v2158_v17 = vunpack.i.l.bf16 %v2157_v59  ;;  %v2159_v21 = vunpack.i.h.bf16 %v2157_v59 }
  0xca   : > { %806 = vrot.lane.b32.xlu0 %v2433_v47, %s2224_s14 }
  0xcb   : > { %v785_v5 = vpop.permute.xlu1 %784  ;;  %v823_v37 = vsel %vm814_vm10, %v2159_v21, %v781_v2 }
  0xcc   : > { %v2437_v48 = vld [vmem:[#allocation2 + $0xe0] sm:$0xff]  ;;  %v783_v60 = vpop.permute.xlu0 %782 }
  0xcd   : > { %812 = vrot.lane.b32.xlu1 %v2437_v48, %s2224_s14  ;;  %v2447_v50 = vld [vmem:[#allocation2 + $0xd8] sm:$0xff]  ;;  %v824_v23 = vsel %vm814_vm10, %v781_v2, %v783_v60  ;;  %v825_v45 = vsel %vm814_vm10, %v783_v60, %v785_v5 }
  0xce   : > { %1318 = vrot.lane.b32.xlu0 %v2350_v27, %s2225_s15 }
  0xcf   : > { %v2532_v8 = vpop.permute.xlu1 %790 }
  0xd0   : > { %v2514_v61 = vpop.permute.xlu0 %786 }
  0xd1   : > { %764 = vrot.lane.b32.xlu1 %v2443_v49, %s2224_s14  ;;  %v826_v38 = vsel %vm814_vm10, %v785_v5, %v2514_v61 }
  0xd2   : > { %810 = vrot.lane.b32.xlu0 %v2447_v50, %s2224_s14 }
  0xd3   : > { %v795_v11 = vpop.permute.xlu1 %794 }
  0xd4   : > { %v2520_v62 = vpop.permute.xlu0 %788 }
  0xd5   : > { %766 = vrot.lane.b32.xlu1 %v2451_v51, %s2224_s14  ;;  %v828_v60 = vsel %vm814_vm10, %v2520_v62, %v2532_v8 }
  0xd6   : > { %1320 = vrot.lane.b32.xlu0 %v2360_v30, %s2225_s15 }
  0xd8   : > { %v2524_v63 = vpop.permute.xlu0 %792 }
  0xd9   : > { %798 = vrot.lane.b32.xlu1 %v2457_v52, %s2224_s14 }
  0xda   : > { %1298 = vrot.lane.b32.xlu0 %v2443_v49, %s2225_s15 }
  0xdd   : > { %772 = vrot.lane.b32.xlu1 %v2463_v53, %s2224_s14 }
  0xde   : > { %1304 = vrot.lane.b32.xlu0 %v2411_v15, %s2225_s15 }
  0xe1   : > { %804 = vrot.lane.b32.xlu1 %v2469_v54, %s2224_s14 }
  0xe2   : > { %1334 = vrot.lane.b32.xlu0 %v2403_v6, %s2225_s15 }
  0xe5   : > { %776 = vrot.lane.b32.xlu1 %v2475_v56, %s2224_s14 }
  0xe6   : > { %1332 = vrot.lane.b32.xlu0 %v2457_v52, %s2225_s15 }
  0xe9   : > { %808 = vrot.lane.b32.xlu1 %v2481_v57, %s2224_s14 }
  0xea   : > { %1308 = vrot.lane.b32.xlu0 %v2427_v41, %s2225_s15 }
  0xed   : > { %1316 = vrot.lane.b32.xlu1 %v2352_v28, %s2225_s15 }
  0xee   : > { %1340 = vrot.lane.b32.xlu0 %v2433_v47, %s2225_s15 }
  0xf1   : > { %1314 = vrot.lane.b32.xlu1 %v2344_v26, %s2225_s15 }
  0xf2   : > { %1312 = vrot.lane.b32.xlu0 %v1250_v58, %s2225_s15 }
  0xf5   : > { %1322 = vrot.lane.b32.xlu1 %v2368_v32, %s2225_s15 }
  0xf6   : > { %1326 = vrot.lane.b32.xlu0 %v2374_v33, %s2225_s15 }
  0xf9   : > { %1300 = vrot.lane.b32.xlu1 %v2451_v51, %s2225_s15 }
  0xfa   : > { %1330 = vrot.lane.b32.xlu0 %v2221_v1, %s2225_s15 }
  0xfd   : > { %1302 = vrot.lane.b32.xlu1 %v2392_v55, %s2225_s15 }
  0xfe   : > { %1344 = vrot.lane.b32.xlu0 %v2447_v50, %s2225_s15 }
 0x101   : > { %1336 = vrot.lane.b32.xlu1 %v2419_v24, %s2225_s15 }
 0x102   : > { %1348 = vrot.lane.b32.xlu0 %v2221_v1, %s2225_s15 }
 0x103   : > { %v763_v0 = vpop.permute.xlu0 %762 }
 0x104   : > { %v815_v22 = vsel %vm814_vm10, %v2158_v17, %v763_v0 }
 0x105   : > { %1306 = vrot.lane.b32.xlu1 %v2463_v53, %s2225_s15 }
 0x107   : > { %v2530_v3 = vpop.permute.xlu0 %1296 }
 0x109   : > { %1338 = vrot.lane.b32.xlu1 %v2469_v54, %s2225_s15 }
 0x10d   : > { %1310 = vrot.lane.b32.xlu1 %v2475_v56, %s2225_s15 }
 0x110   : > { %v769_v4 = vpop.permute.xlu0 %768 }
 0x111   : > { %1324 = vrot.lane.b32.xlu1 %v2358_v29, %s2225_s15 }
 0x115   : > { %1328 = vrot.lane.b32.xlu1 %v2366_v31, %s2225_s15 }
 0x116   : > { %v797_v13 = vpop.permute.xlu1 %796 }
 0x119   : > { %1342 = vrot.lane.b32.xlu1 %v2481_v57, %s2225_s15 }
 0x11c   : > { %v801_v7 = vpop.permute.xlu0 %800 }
 0x11d   : > { %1346 = vrot.lane.b32.xlu1 %v2437_v48, %s2225_s15 }
 0x124   : > { %v771_v9 = vpop.permute.xlu0 %770 }
 0x12c   : > { %v803_v10 = vpop.permute.xlu0 %802 }
 0x134   : > { %v775_v12 = vpop.permute.xlu0 %774 }
 0x13c   : > { %v2534_v14 = vpop.permute.xlu0 %806 }
 0x13f   : > { %v2536_v16 = vpop.permute.xlu1 %812 }
 0x140   : > { %v2538_v18 = vpop.permute.xlu0 %1318 }
 0x143   : > { %v765_v19 = vpop.permute.xlu1 %764 }
 0x144   : > { %v816_v20 = vsel %vm814_vm10, %v763_v0, %v765_v19  ;;  %v811_v25 = vpop.permute.xlu0 %810  ;;  %v819_v0 = vsel %vm814_vm10, %v769_v4, %v771_v9 }
 0x145   : > { %867 = vmatprep.subr.bf16.mxu0 %v816_v20 }
 0x146   : > { %868 = vmatpush1.bf16.msra.mxu0 %v815_v22  ;;  %v830_v22 = vsel %vm814_vm10, %v2524_v63, %v795_v11  ;;  %v838_v11 = vsel %vm814_vm10, %v811_v25, %v2536_v16 }
 0x147   : > { %869 = vmatprep.subr.bf16.mxu0 %v824_v23  ;;  %v767_v34 = vpop.permute.xlu1 %766 }
 0x148   : > { %v818_v35 = vsel %vm814_vm10, %v767_v34, %v769_v4  ;;  %v817_v36 = vsel %vm814_vm10, %v765_v19, %v767_v34  ;;  %v2550_v44 = vpop.permute.xlu0 %1320  ;;  %v827_v4 = vsel %vm814_vm10, %v2514_v61, %v2520_v62 }
 0x149   : > { %908 = vmatprep.subr.bf16.mxu1 %v818_v35 }
 0x14a   : > { %870 = vmatpush1.bf16.msra.mxu0 %v823_v37  ;;  %909 = vmatpush1.bf16.msra.mxu1 %v817_v36 }
 0x14b   : > { %910 = vmatprep.subr.bf16.mxu1 %v826_v38  ;;  %v799_v39 = vpop.permute.xlu1 %798 }
 0x14c   : > { %v832_v40 = vsel %vm814_vm10, %v799_v39, %v801_v7  ;;  %v831_v43 = vsel %vm814_vm10, %v797_v13, %v799_v39  ;;  %v2563_v2 = vpop.permute.xlu0 %1298 }
 0x14d   : > { %871 = vmatprep.subr.bf16.mxu0 %v832_v40 }
 0x14e   : > { %872 = vmatpush1.bf16.msra.mxu0 %v831_v43  ;;  %911 = vmatpush1.bf16.msra.mxu1 %v825_v45 }
 0x14f   : > { %v773_v58 = vpop.permute.xlu1 %772 }
 0x150   : > { %v820_v59 = vsel %vm814_vm10, %v771_v9, %v773_v58  ;;  %v833_v9 = vsel %vm814_vm10, %v801_v7, %v803_v10  ;;  %v821_v20 = vsel %vm814_vm10, %v773_v58, %v775_v12  ;;  %v2572_v21 = vpop.permute.xlu0 %1304  ;;  %v829_v7 = vsel %vm814_vm10, %v2532_v8, %v2524_v63 }
 0x151   : > { %949 = vmatprep.subr.bf16.mxu0 %v820_v59  ;;  %2115 = vmatmul.mubr.msk.bf16.vlgmr.msra.gmra.mrb[0].mxu0 %vm863_vm11, %v705_v46 }
 0x152   : > { %950 = vmatpush1.bf16.msra.mxu0 %v819_v0  ;;  %981 = vmatprep.mubr.bf16.mxu0 %v2221_v1 }
 0x153   : > { %951 = vmatprep.subr.bf16.mxu0 %v828_v60  ;;  %v805_v5 = vpop.permute.xlu1 %804 }
 0x154   : > { %v834_v13 = vsel %vm814_vm10, %v803_v10, %v805_v5  ;;  %v835_v10 = vsel %vm814_vm10, %v805_v5, %v2534_v14 }
 0x155   : > { %912 = vmatprep.subr.bf16.mxu1 %v834_v13 }
 0x156   : > { %913 = vmatpush1.bf16.msra.mxu1 %v833_v9  ;;  %952 = vmatpush1.bf16.msra.mxu0 %v827_v4 }
 0x157   : > { %v777_v17 = vpop.permute.xlu1 %776 }
 0x158   : > { %v822_v19 = vsel %vm814_vm10, %v775_v12, %v777_v17  ;;  %v2587_v12 = vpop.permute.xlu0 %1334 }
 0x159   : > { %2116 = vmatmul.mubr.msk.bf16.vlgmr.msra.gmra.mrb[0].mxu1 %vm863_vm11, %v705_v46  ;;  %990 = vmatprep.subr.bf16.mxu1 %v822_v19 }
 0x15a   : > { %991 = vmatpush1.bf16.msra.mxu1 %v821_v20  ;;  %1022 = vmatprep.mubr.bf16.mxu1 %v2221_v1  ;;  %v584_v20 = vlaneseq }
 0x15b   : > { %992 = vmatprep.subr.bf16.mxu1 %v830_v22  ;;  %v809_v61 = vpop.permute.xlu1 %808 }
 0x15c   : > { %v836_v62 = vsel %vm814_vm10, %v2534_v14, %v809_v61  ;;  %v837_v34 = vsel %vm814_vm10, %v809_v61, %v811_v25  ;;  %v1333_v8 = vpop.permute.xlu0 %1332  ;;  %v2688_v61 = vand.u32 127, %v584_v20 }
 0x15d   : > { %953 = vmatprep.subr.bf16.mxu0 %v836_v62 }
 0x15e   : > { %954 = vmatpush1.bf16.msra.mxu0 %v835_v10  ;;  %993 = vmatpush1.bf16.msra.mxu1 %v829_v7  ;;  %v586_v10 = vadd.s32 128, %v2688_v61 }
 0x15f   : > { %994 = vmatprep.subr.bf16.mxu1 %v838_v11  ;;  %1068 = vmatprep.subr.bf16.mxu0 %v2443_v49  ;;  %v1317_v23 = vpop.permute.xlu1 %1316 }
 0x161   : > { %2117 = vmatmul.mubr.msk.bf16.vlgmr.msra.gmra.mrb[4].mxu0 %vm863_vm11, %v705_v46 }
 0x162   : > { %995 = vmatpush1.bf16.msra.mxu1 %v837_v34  ;;  %1069 = vmatpush1.bf16.msra.mxu0 %v2380_v42  ;;  %v2609_v42 = vpop.permute.xlu0 %1308  ;;  %v2693_v34 = vadd.s32 256, %v2688_v61 }
 0x163   : > { %1109 = vmatprep.subr.bf16.mxu1 %v2392_v55  ;;  %v1315_v63 = vpop.permute.xlu1 %1314  ;;  %1070 = vmatprep.subr.bf16.mxu0 %v2352_v28  ;;  %v2119_v28 = vld [vmem:[%s2770_s2 + $0x4] sm:$0xf] }
 0x164   : > { %1100 = vmatprep.mubr.bf16.mxu0 %v2221_v1 }
 0x165   : > { %2118 = vmatmul.mubr.msk.bf16.vlgmr.msra.gmra.mrb[4].mxu1 %vm863_vm11, %v705_v46 }
 0x166   : > { %1071 = vmatpush1.bf16.msra.mxu0 %v2344_v26  ;;  %1110 = vmatpush1.bf16.msra.mxu1 %v2451_v51 }
 0x167   : > { %1072 = vmatprep.subr.bf16.mxu0 %v2403_v6  ;;  %v2600_v49 = vpop.permute.xlu1 %1322  ;;  %1111 = vmatprep.subr.bf16.mxu1 %v2360_v30  ;;  %v2619_v30 = vpop.permute.xlu0 %1340 }
 0x168   : > { %1141 = vmatprep.mubr.bf16.mxu1 %v2221_v1  ;;  %v1362_v51 = vsel %vm1350_vm12, %v2550_v44, %v2600_v49 }
 0x16a   : > { %1073 = vmatpush1.bf16.msra.mxu0 %v2457_v52  ;;  %1112 = vmatpush1.bf16.msra.mxu1 %v2350_v27 }
 0x16b   : > { %1113 = vmatprep.subr.bf16.mxu1 %v2469_v54  ;;  %1150 = vmatprep.subr.bf16.mxu0 %v2463_v53  ;;  %v1301_v26 = vpop.permute.xlu1 %1300  ;;  %v1313_v6 = vpop.permute.xlu0 %1312  ;;  %v1361_v53 = vsel %vm1350_vm12, %v2538_v18, %v2550_v44  ;;  %v1367_v54 = vsel %vm1350_vm12, %v1333_v8, %v2587_v12  ;;  %v604_v8 = vand.u32 31, %v586_v10 }
 0x16d   : > { %2120 = vmatmul.mubr.msk.bf16.vlgmr.msra.gmra.mrb[8].mxu0 %vm863_vm11, %v2119_v28  ;;  %vm690_vm14 = vcmp.ge.s32.totalorder %v604_v8, 1  ;;  %vm698_vm6 = vcmp.le.s32.totalorder %v604_v8, 30 }
 0x16e   : > { %1114 = vmatpush1.bf16.msra.mxu1 %v2419_v24  ;;  %1151 = vmatpush1.bf16.msra.mxu0 %v2411_v15  ;;  %v1351_v15 = vsel %vm1350_vm12, %v2530_v3, %v2563_v2  ;;  %v2124_v3 = vld [vmem:[%s2770_s2 + $0x8] sm:$0xf] }
 0x16f   : > { %1191 = vmatprep.subr.bf16.mxu1 %v2475_v56  ;;  %v1303_v27 = vpop.permute.xlu1 %1302  ;;  %1152 = vmatprep.subr.bf16.mxu0 %v2358_v29  ;;  %v1352_v29 = vsel %vm1350_vm12, %v2563_v2, %v1301_v26 }
 0x170   : > { %1182 = vmatprep.mubr.bf16.mxu0 %v2221_v1 }
 0x171   : > { %2121 = vmatmul.mubr.msk.bf16.vlgmr.msra.gmra.mrb[8].mxu1 %vm863_vm11, %v2119_v28 }
 0x172   : > { %1153 = vmatpush1.bf16.msra.mxu0 %v2368_v32  ;;  %1192 = vmatpush1.bf16.msra.mxu1 %v2427_v41  ;;  %v1359_v41 = vsel %vm1350_vm12, %v1315_v63, %v1317_v23 }
 0x173   : > { %1154 = vmatprep.subr.bf16.mxu0 %v2481_v57  ;;  %v1337_v55 = vpop.permute.xlu1 %1336  ;;  %1193 = vmatprep.subr.bf16.mxu1 %v2366_v31  ;;  %v1360_v31 = vsel %vm1350_vm12, %v1317_v23, %v2538_v18 }
 0x174   : > { %1223 = vmatprep.mubr.bf16.mxu1 %v2221_v1 }
 0x176   : > { %1155 = vmatpush1.bf16.msra.mxu0 %v2433_v47  ;;  %1194 = vmatpush1.bf16.msra.mxu1 %v2374_v33  ;;  %v1354_v33 = vsel %vm1350_vm12, %v1303_v27, %v2572_v21  ;;  %v1327_v47 = vpop.permute.xlu0 %1326 }
 0x177   : > { %1195 = vmatprep.subr.bf16.mxu1 %v2437_v48  ;;  %1402 = vmatprep.subr.bf16.mxu0 %v1352_v29  ;;  %v1307_v32 = vpop.permute.xlu1 %1306  ;;  %v1353_v48 = vsel %vm1350_vm12, %v1301_v26, %v1303_v27  ;;  %v611_v26 = vand.u32 31, %v2693_v34 }
 0x178   : > { %v1356_v57 = vsel %vm1350_vm12, %v1307_v32, %v2609_v42  ;;  %v1355_v18 = vsel %vm1350_vm12, %v2572_v21, %v1307_v32 }
 0x179   : > { %2122 = vmatmul.mubr.msk.bf16.vlgmr.msra.gmra.mrb[12].mxu0 %vm863_vm11, %v2119_v28  ;;  %vm691_vm15 = vcmp.ge.s32.totalorder %v611_v26, 1  ;;  %vm699_vm7 = vcmp.le.s32.totalorder %v611_v26, 30 }
 0x17a   : > { %1196 = vmatpush1.bf16.msra.mxu1 %v2447_v50  ;;  %1403 = vmatpush1.bf16.msra.mxu0 %v1351_v15  ;;  %v1368_v50 = vsel %vm1350_vm12, %v2587_v12, %v1337_v55  ;;  %v1331_v14 = vpop.permute.xlu0 %1330 }
 0x17b   : > { %1404 = vmatprep.subr.bf16.mxu0 %v1360_v31  ;;  %1443 = vmatprep.subr.bf16.mxu1 %v1354_v33  ;;  %v1339_v24 = vpop.permute.xlu1 %1338  ;;  %v590_v31 = vadd.s32 640, %v2688_v61 }
 0x17c   : > { %1434 = vmatprep.mubr.bf16.mxu0 %v2221_v1  ;;  %v1370_v56 = vsel %vm1350_vm12, %v1339_v24, %v2619_v30  ;;  %v1369_v25 = vsel %vm1350_vm12, %v1337_v55, %v1339_v24 }
 0x17d   : > { %2123 = vmatmul.mubr.msk.bf16.vlgmr.msra.gmra.mrb[12].mxu1 %vm863_vm11, %v2119_v28 }
 0x17e   : > { %1405 = vmatpush1.bf16.msra.mxu0 %v1359_v41  ;;  %1444 = vmatpush1.bf16.msra.mxu1 %v1353_v48  ;;  %v1345_v38 = vpop.permute.xlu0 %1344 }
 0x17f   : > { %1406 = vmatprep.subr.bf16.mxu0 %v1368_v50  ;;  %1445 = vmatprep.subr.bf16.mxu1 %v1362_v51  ;;  %v1311_v52 = vpop.permute.xlu1 %1310 }
 0x180   : > { %1475 = vmatprep.mubr.bf16.mxu1 %v2221_v1  ;;  %v1358_v36 = vsel %vm1350_vm12, %v1311_v52, %v1313_v6  ;;  %v1357_v39 = vsel %vm1350_vm12, %v2609_v42, %v1311_v52  ;;  %v2701_v6 = vadd.s32 512, %v2688_v61  ;;  %v591_v52 = vadd.s32 768, %v2688_v61 }
 0x182   : > { %1407 = vmatpush1.bf16.msra.mxu0 %v1367_v54  ;;  %1446 = vmatpush1.bf16.msra.mxu1 %v1361_v53  ;;  %v1349_v59 = vpop.permute.xlu0 %1348  ;;  %v625_v51 = vand.u32 31, %v2701_v6 }
 0x183   : > { %1447 = vmatprep.subr.bf16.mxu1 %v1370_v56  ;;  %1484 = vmatprep.subr.bf16.mxu0 %v1356_v57  ;;  %v1325_v16 = vpop.permute.xlu1 %1324  ;;  %v632_v56 = vand.u32 31, %v590_v31  ;;  %v592_v57 = vadd.s32 896, %v2688_v61 }
 0x184   : > { %v1364_v35 = vsel %vm1350_vm12, %v1325_v16, %v1327_v47  ;;  %v1363_v40 = vsel %vm1350_vm12, %v2600_v49, %v1325_v16  ;;  %v2696_v49 = vadd.s32 384, %v2688_v61  ;;  %vm693_vm1 = vcmp.ge.s32.totalorder %v625_v51, 1 }
 0x185   : > { %2125 = vmatmul.mubr.msk.bf16.vlgmr.msra.gmra.mrb[16].mxu0 %vm863_vm11, %v2124_v3  ;;  %vm694_vm2 = vcmp.ge.s32.totalorder %v632_v56, 1  ;;  %vm701_vm9 = vcmp.le.s32.totalorder %v625_v51, 30  ;;  %vm702_vm10 = vcmp.le.s32.totalorder %v632_v56, 30  ;;  %v1690_v56 = vld [vmem:[#allocation3] sm:$0x1] }
 0x186   : > { %1448 = vmatpush1.bf16.msra.mxu1 %v1369_v25  ;;  %1485 = vmatpush1.bf16.msra.mxu0 %v1355_v18  ;;  %v618_v27 = vand.u32 31, %v2696_v49  ;;  %v639_v18 = vand.u32 31, %v591_v52  ;;  %v646_v25 = vand.u32 31, %v592_v57 }
 0x187   : > { %1486 = vmatprep.subr.bf16.mxu0 %v1364_v35  ;;  %1525 = vmatprep.subr.bf16.mxu1 %v1358_v36  ;;  %v1329_v37 = vpop.permute.xlu1 %1328 }
 0x188   : > { %1516 = vmatprep.mubr.bf16.mxu0 %v2221_v1  ;;  %v1366_v43 = vsel %vm1350_vm12, %v1329_v37, %v1331_v14  ;;  %v1365_v58 = vsel %vm1350_vm12, %v1327_v47, %v1329_v37  ;;  %vm692_vm0 = vcmp.ge.s32.totalorder %v618_v27, 1  ;;  %vm695_vm3 = vcmp.ge.s32.totalorder %v639_v18, 1 }
 0x189   : > { %2126 = vmatmul.mubr.msk.bf16.vlgmr.msra.gmra.mrb[16].mxu1 %vm863_vm11, %v2124_v3  ;;  %vm696_vm4 = vcmp.ge.s32.totalorder %v646_v25, 1  ;;  %vm700_vm8 = vcmp.le.s32.totalorder %v618_v27, 30 }
 0x18a   : > { %1487 = vmatpush1.bf16.msra.mxu0 %v1363_v40  ;;  %1526 = vmatpush1.bf16.msra.mxu1 %v1357_v39 }
 0x18b   : > { %1527 = vmatprep.subr.bf16.mxu1 %v1366_v43  ;;  %v1343_v44 = vpop.permute.xlu1 %1342  ;;  %1557 = vmatprep.mubr.bf16.mxu1 %v2221_v1 }
 0x18c   : > { %v1371_v45 = vsel %vm1350_vm12, %v2619_v30, %v1343_v44  ;;  %v1372_v46 = vsel %vm1350_vm12, %v1343_v44, %v1345_v38 }
 0x18d   : > { %1488 = vmatprep.subr.bf16.mxu0 %v1372_v46 }
 0x18e   : > { %1489 = vmatpush1.bf16.msra.mxu0 %v1371_v45  ;;  %1528 = vmatpush1.bf16.msra.mxu1 %v1365_v58 }
 0x18f   : > { %v1347_v0 = vpop.permute.xlu1 %1346 }
 0x190   : > { %v1373_v60 = vsel %vm1350_vm12, %v1345_v38, %v1347_v0  ;;  %v1374_v2 = vsel %vm1350_vm12, %v1347_v0, %v1349_v59  ;;  %vm704_vm12 = vcmp.le.s32.totalorder %v646_v25, 30 }
 0x191   : > { %2127 = vmatmul.mubr.msk.bf16.vlgmr.msra.gmra.mrb[20].mxu0 %vm863_vm11, %v2124_v3  ;;  %1529 = vmatprep.subr.bf16.mxu1 %v1374_v2 }
 0x192   : > { %1530 = vmatpush1.bf16.msra.mxu1 %v1373_v60  ;;  %1761 = vmatprep.mubr.bf16.mxu0 %v2221_v1 }
 0x195   : > { %2128 = vmatmul.mubr.msk.bf16.vlgmr.msra.gmra.mrb[20].mxu1 %vm863_vm11, %v2124_v3  ;;  %vm703_vm11 = vcmp.le.s32.totalorder %v639_v18, 30 }
 0x196   : > { %1802 = vmatprep.mubr.bf16.mxu1 %v2221_v1  ;;  %v597_v1 = vand.u32 31, %v2688_v61 }
 0x198   : > { %vm689_vm13 = vcmp.ge.s32.totalorder %v597_v1, 1  ;;  %vm697_vm5 = vcmp.le.s32.totalorder %v597_v1, 30 }
 0x224   : > { %v901_v5 = vpop.f32.mrb[0].mxu0 }
 0x225   : > { %v903_v13 = vpop.f32.mrb[1].mxu0  ;;  %v1047_v30 = vsel %vm689_vm13, %v901_v5, 0.0  ;;  %vm1704_vm13 = vcmask 1043456  }
 0x226   : > { %v905_v4 = vpop.f32.mrb[2].mxu0  ;;  %v1048_v29 = vsel %vm690_vm14, %v903_v13, 0.0  ;;  %vm1700_vm14 = vcmask 64512  }
 0x227   : > { %v906_v9 = vpop.f32.mrb[3].mxu0 }
 0x22c   : > { %v942_v17 = vpop.f32.mrb[0].mxu1 }
 0x22d   : > { %v944_v19 = vpop.f32.mrb[1].mxu1  ;;  %v1049_v47 = vsel %vm691_vm15, %v942_v17, 0.0 }
 0x22e   : > { %v946_v21 = vpop.f32.mrb[2].mxu1  ;;  %v1050_v50 = vsel %vm692_vm0, %v944_v19, 0.0 }
 0x22f   : > { %v947_v22 = vpop.f32.mrb[3].mxu1 }
 0x234   : > { %v983_v62 = vpop.f32.mrb[4].mxu0 }
 0x235   : > { %v985_v7 = vpop.f32.mrb[5].mxu0  ;;  %v1051_v35 = vsel %vm693_vm1, %v983_v62, 0.0 }
 0x236   : > { %v987_v11 = vpop.f32.mrb[6].mxu0  ;;  %v1052_v37 = vsel %vm694_vm2, %v985_v7, 0.0 }
 0x237   : > { %v988_v12 = vpop.f32.mrb[7].mxu0 }
 0x238   : > { %v1024_v23 = vpop.f32.mrb[4].mxu1 }
 0x239   : > { %v1026_v63 = vpop.f32.mrb[5].mxu1  ;;  %v1053_v45 = vsel %vm695_vm3, %v1024_v23, 0.0 }
 0x23a   : > { %v1028_v28 = vpop.f32.mrb[6].mxu1  ;;  %v1054_v58 = vsel %vm696_vm4, %v1026_v63, 0.0 }
 0x23b   : > { %v1029_v42 = vpop.f32.mrb[7].mxu1 }
 0x240   : > { %v1102_v55 = vpop.f32.mrb[8].mxu0 }
 0x241   : > { %v1232_v32 = vadd.f32 %v1102_v55, %v1047_v30  ;;  %v1104_v15 = vpop.f32.mrb[9].mxu0 }
 0x242   : > { %v1233_v33 = vadd.f32 %v1104_v15, %v1048_v29  ;;  %v1106_v24 = vpop.f32.mrb[10].mxu0 }
 0x243   : > { %v1107_v41 = vpop.f32.mrb[11].mxu0 }
 0x244   : > { %v1143_v48 = vpop.f32.mrb[8].mxu1 }
 0x245   : > { %v1234_v53 = vadd.f32 %v1143_v48, %v1049_v47  ;;  %v1145_v54 = vpop.f32.mrb[9].mxu1 }
 0x246   : > { %v1235_v3 = vadd.f32 %v1145_v54, %v1050_v50  ;;  %v1147_v14 = vpop.f32.mrb[10].mxu1  ;;  %v1659_v54 = vld [vmem:[%s2772_s4] sm:$0xff] }
 0x247   : > { %v1148_v16 = vpop.f32.mrb[11].mxu1 }
 0x24c   : > { %v1184_v36 = vpop.f32.mrb[12].mxu0 }
 0x24d   : > { %v1236_v38 = vadd.f32 %v1184_v36, %v1051_v35  ;;  %v1186_v39 = vpop.f32.mrb[13].mxu0 }
 0x24e   : > { %v1237_v40 = vadd.f32 %v1186_v39, %v1052_v37  ;;  %v1188_v43 = vpop.f32.mrb[14].mxu0 }
 0x24f   : > { %v1189_v44 = vpop.f32.mrb[15].mxu0 }
 0x250   : > { %v1225_v46 = vpop.f32.mrb[12].mxu1 }
 0x251   : > { %v1238_v59 = vadd.f32 %v1225_v46, %v1053_v45  ;;  %v1227_v0 = vpop.f32.mrb[13].mxu1 }
 0x252   : > { %v1239_v60 = vadd.f32 %v1227_v0, %v1054_v58  ;;  %v1229_v2 = vpop.f32.mrb[14].mxu1 }
 0x253   : > { %v1230_v5 = vpop.f32.mrb[15].mxu1 }
 0x258   : > { %v1436_v13 = vpop.f32.mrb[16].mxu0 }
 0x259   : > { %v1582_v4 = vsel %vm697_vm5, %v1436_v13, 0.0  ;;  %v1438_v9 = vpop.f32.mrb[17].mxu0 }
 0x25a   : > { %v1590_v17 = vadd.f32 %v1582_v4, %v1232_v32  ;;  %v1583_v19 = vsel %vm698_vm6, %v1438_v9, 0.0  ;;  %v1440_v21 = vpop.f32.mrb[18].mxu0 }
 0x25b   : > { %v1591_v22 = vadd.f32 %v1583_v19, %v1233_v33  ;;  %v1441_v61 = vpop.f32.mrb[19].mxu0 }
 0x25c   : > { %v1477_v62 = vpop.f32.mrb[16].mxu1 }
 0x25d   : > { %v1584_v7 = vsel %vm699_vm7, %v1477_v62, 0.0  ;;  %v1479_v10 = vpop.f32.mrb[17].mxu1  ;;  %v1598_v11 = vadd.f32 %v1591_v22, %v1590_v17 }
 0x25e   : > { %v1592_v12 = vadd.f32 %v1584_v7, %v1234_v53  ;;  %v1585_v23 = vsel %vm700_vm8, %v1479_v10, 0.0  ;;  %v1481_v34 = vpop.f32.mrb[18].mxu1 }
 0x25f   : > { %v1593_v63 = vadd.f32 %v1585_v23, %v1235_v3  ;;  %v1482_v1 = vpop.f32.mrb[19].mxu1 }
 0x260   : > { %v1599_v8 = vadd.f32 %v1598_v11, %v1592_v12 }
 0x262   : > { %v1600_v30 = vadd.f32 %v1599_v8, %v1593_v63 }
 0x264   : > { %v1518_v49 = vpop.f32.mrb[20].mxu0 }
 0x265   : > { %v1586_v28 = vsel %vm701_vm9, %v1518_v49, 0.0  ;;  %v1520_v42 = vpop.f32.mrb[21].mxu0 }
 0x266   : > { %v1594_v26 = vadd.f32 %v1586_v28, %v1236_v38  ;;  %v1587_v55 = vsel %vm702_vm10, %v1520_v42, 0.0  ;;  %v1522_v29 = vpop.f32.mrb[22].mxu0 }
 0x267   : > { %v1595_v27 = vadd.f32 %v1587_v55, %v1237_v40  ;;  %v1523_v6 = vpop.f32.mrb[23].mxu0 }
 0x268   : > { %v1601_v32 = vadd.f32 %v1600_v30, %v1594_v26  ;;  %v1559_v15 = vpop.f32.mrb[20].mxu1 }
 0x269   : > { %v1588_v31 = vsel %vm703_vm11, %v1559_v15, 0.0  ;;  %v1561_v33 = vpop.f32.mrb[21].mxu1 }
 0x26a   : > { %v1602_v24 = vadd.f32 %v1601_v32, %v1595_v27  ;;  %v1596_v41 = vadd.f32 %v1588_v31, %v1238_v59  ;;  %v1589_v47 = vsel %vm704_vm12, %v1561_v33, 0.0  ;;  %v1563_v48 = vpop.f32.mrb[22].mxu1 }
 0x26b   : > { %v1597_v50 = vadd.f32 %v1589_v47, %v1239_v60  ;;  %v1564_v51 = vpop.f32.mrb[23].mxu1 }
 0x26c   : > { %v1603_v52 = vadd.f32 %v1602_v24, %v1596_v41 }
 0x26e   : > { %v1604_v53 = vadd.f32 %v1603_v52, %v1597_v50 }
 0x270   : > { %1605 = vadd.xlane.f32.xlu1 %v1604_v53 }
 0x281   : > { %1662 = vperm.xlu1 %2161, %v1659_v54  }
 0x285   : > { %1693 = vperm.xlu1 %2161, %v1690_v56  }
 0x2fd   : > { %v1606_v57 = vpop.xlane.xlu1 %1605 }
 0x2fe   : > { %v1608_v3 = vmul.f32 0.0009765625, %v1606_v57 }
 0x300   : > { %v1609_v14 = vsub.f32 %v1590_v17, %v1608_v3  ;;  %v1610_v16 = vsub.f32 %v1591_v22, %v1608_v3  ;;  %v1611_v18 = vsub.f32 %v1592_v12, %v1608_v3  ;;  %v1612_v25 = vsub.f32 %v1593_v63, %v1608_v3  ;;  %v1645_v17 = vld [vmem:[%s2771_s3] sm:$0xff] }
 0x301   : > { %v1613_v37 = vsub.f32 %v1594_v26, %v1608_v3  ;;  %v1614_v40 = vsub.f32 %v1595_v27, %v1608_v3  ;;  %v1615_v45 = vsub.f32 %v1596_v41, %v1608_v3  ;;  %v1616_v59 = vsub.f32 %v1597_v50, %v1608_v3  ;;  %v1663_v30 = vpop.permute.xlu1 %1662 }
 0x302   : > { %v1617_v35 = vmul.f32 %v1609_v14, %v1609_v14  ;;  %v1618_v36 = vmul.f32 %v1610_v16, %v1610_v16  ;;  %v1619_v38 = vmul.f32 %v1611_v18, %v1611_v18  ;;  %v1620_v43 = vmul.f32 %v1612_v25, %v1612_v25 }
 0x303   : > { %v1621_v46 = vmul.f32 %v1613_v37, %v1613_v37  ;;  %v1622_v0 = vmul.f32 %v1614_v40, %v1614_v40  ;;  %v1623_v2 = vmul.f32 %v1615_v45, %v1615_v45  ;;  %v1624_v13 = vmul.f32 %v1616_v59, %v1616_v59 }
 0x304   : > { %v1625_v39 = vadd.f32 %v1618_v36, %v1617_v35 }
 0x306   : > { %v1626_v44 = vadd.f32 %v1625_v39, %v1619_v38 }
 0x308   : > { %v1627_v58 = vadd.f32 %v1626_v44, %v1620_v43 }
 0x30a   : > { %v1628_v60 = vadd.f32 %v1627_v58, %v1621_v46  ;;  %v2725_v46 = vshrl.u32 %v584_v20, 7 }
 0x30c   : > { %v1629_v5 = vadd.f32 %v1628_v60, %v1622_v0  ;;  %v1698_v58 = vsub.s32 0, %v2725_v46 }
 0x30e   : > { %v1630_v4 = vadd.f32 %v1629_v5, %v1623_v2 }
 0x310   : > { %v1631_v9 = vadd.f32 %v1630_v4, %v1624_v13 }
 0x312   : > { %1632 = vadd.xlane.f32.xlu0 %v1631_v9 }
 0x328   : > { %1648 = vperm.xlu0 %2160, %v1645_v17  }
 0x39f   : > { %v1633_v19 = vpop.xlane.xlu0 %1632 }
 0x3a0   : > { %v1634_v21 = vmul.f32 0.0009765625, %v1633_v19 }
 0x3a2   : > { %v1635_v22 = vadd.f32 1e-05, %v1634_v21 }
 0x3a4   : > { %2178 = vrsqrt.f32 %v1635_v22 }
 0x3a7   : > { %v1649_v62 = vpop.permute.xlu0 %1648 }
 0x3ae   : > { %v2179_v61 = vpop.eup %2178 }
 0x3af   : > { %v1638_v7 = vmul.f32 %v2179_v61, %v1610_v16  ;;  %v1640_v10 = vmul.f32 %v2179_v61, %v1612_v25  ;;  %v1637_v11 = vmul.f32 %v2179_v61, %v1609_v14  ;;  %v1639_v12 = vmul.f32 %v2179_v61, %v1611_v18 }
 0x3b0   : > { %v1642_v23 = vmul.f32 %v2179_v61, %v1614_v40  ;;  %v1644_v34 = vmul.f32 %v2179_v61, %v1616_v59  ;;  %v1641_v63 = vmul.f32 %v2179_v61, %v1613_v37  ;;  %v1643_v1 = vmul.f32 %v2179_v61, %v1615_v45  ;;  %v1681_v40 = vld [vmem:[%s2773_s5] sm:$0x1]  ;;  %v1694_v59 = vpop.permute.xlu1 %1693 }
 0x3b1   : > { %v1652_v8 = vmul.f32 %v1649_v62, %v1638_v7  ;;  %v1654_v49 = vmul.f32 %v1649_v62, %v1640_v10  ;;  %v1651_v28 = vmul.f32 %v1649_v62, %v1637_v11  ;;  %v1653_v42 = vmul.f32 %v1649_v62, %v1639_v12  ;;  %v2212_v45 = vld [vmem:[#allocation2] sm:$0xff] }
 0x3b2   : > { %v1656_v26 = vmul.f32 %v1649_v62, %v1642_v23  ;;  %v1658_v55 = vmul.f32 %v1649_v62, %v1644_v34  ;;  %v1655_v29 = vmul.f32 %v1649_v62, %v1641_v63  ;;  %v1657_v27 = vmul.f32 %v1649_v62, %v1643_v1 }
 0x3b3   : > { %v1666_v6 = vadd.f32 %v1663_v30, %v1652_v8  ;;  %v1668_v32 = vadd.f32 %v1663_v30, %v1654_v49  ;;  %v1665_v15 = vadd.f32 %v1663_v30, %v1651_v28  ;;  %v1667_v31 = vadd.f32 %v1663_v30, %v1653_v42 }
 0x3b4   : > { %v1670_v33 = vadd.f32 %v1663_v30, %v1656_v26  ;;  %v1672_v24 = vadd.f32 %v1663_v30, %v1658_v55  ;;  %v1669_v41 = vadd.f32 %v1663_v30, %v1655_v29  ;;  %v1671_v47 = vadd.f32 %v1663_v30, %v1657_v27 }
 0x3b5   : > { %v1674_v48 = vmax.f32 %v1666_v6, 0.0  ;;  %v1676_v50 = vmax.f32 %v1668_v32, 0.0  ;;  %v1673_v51 = vmax.f32 %v1665_v15, 0.0  ;;  %v1675_v52 = vmax.f32 %v1667_v31, 0.0 }
 0x3b6   : > { %v1678_v53 = vmax.f32 %v1670_v33, 0.0  ;;  %v1680_v54 = vmax.f32 %v1672_v24, 0.0  ;;  %v1677_v56 = vmax.f32 %v1669_v41, 0.0  ;;  %v1679_v57 = vmax.f32 %v1671_v47, 0.0 }
 0x3b7   : > { %v1683_v3 = vpack.c.bf16 %v1674_v48, %v1674_v48  ;;  %v1685_v14 = vpack.c.bf16 %v1676_v50, %v1676_v50  ;;  %v1682_v16 = vpack.c.bf16 %v1673_v51, %v1673_v51  ;;  %v1684_v18 = vpack.c.bf16 %v1675_v52, %v1675_v52 }
 0x3b8   : > { %v1687_v25 = vpack.c.bf16 %v1678_v53, %v1678_v53  ;;  %v1689_v35 = vpack.c.bf16 %v1680_v54, %v1680_v54  ;;  %v1686_v38 = vpack.c.bf16 %v1677_v56, %v1677_v56  ;;  %v1688_v39 = vpack.c.bf16 %v1679_v57, %v1679_v57 }
 0x3b9   : > { %2129 = vmatprep.subr.msk.bf16.mxu0 %vm1704_vm13, %v1683_v3  ;;  %2131 = vmatprep.subr.msk.bf16.mxu1 %vm1704_vm13, %v1685_v14  ;;  %v1706_v36 = vsel %vm1704_vm13, %v1682_v16, 0  ;;  %v1712_v37 = vsel %vm1704_vm13, %v1684_v18, 0  ;;  %v1699_v0 = vrot.slane %v1694_v59, %v1698_v58  ;;  %v2226_v58 = vmov 1966171168  }
 0x3ba   : > { %1730 = vmatpush1.bf16.msra.mxu0 %v1706_v36  ;;  %1771 = vmatpush1.bf16.msra.mxu1 %v1712_v37  ;;  %v1718_v43 = vsel %vm1704_vm13, %v1686_v38, 0  ;;  %v1724_v44 = vsel %vm1704_vm13, %v1688_v39, 0  ;;  %v1978_v59 = vunpack.c.l.s4 %v2226_v58 }
 0x3bb   : > { %2133 = vmatprep.subr.msk.bf16.mxu0 %vm1704_vm13, %v1687_v25  ;;  %2135 = vmatprep.subr.msk.bf16.mxu1 %vm1704_vm13, %v1689_v35 }
 0x3bd   : > { %2130 = vmatmul.mubr.msk.bf16.vlgmr.msra.gmra.mrb[24].mxu0 %vm1700_vm14, %v1681_v40  ;;  %2132 = vmatmul.mubr.msk.bf16.vlgmr.msra.gmra.mrb[24].mxu1 %vm1700_vm14, %v1681_v40 }
 0x3be   : > { %1812 = vmatpush1.bf16.msra.mxu0 %v1718_v43  ;;  %1853 = vmatpush1.bf16.msra.mxu1 %v1724_v44 }
 0x3bf   : > { %1843 = vmatprep.mubr.bf16.mxu0 %v2212_v45  ;;  %1884 = vmatprep.mubr.bf16.mxu1 %v2212_v45 }
 0x3c5   : > { %2134 = vmatmul.mubr.msk.bf16.vlgmr.msra.gmra.mrb[28].mxu0 %vm1700_vm14, %v1681_v40  ;;  %2136 = vmatmul.mubr.msk.bf16.vlgmr.msra.gmra.mrb[28].mxu1 %vm1700_vm14, %v1681_v40 }
 0x490   : > { %v1763_v60 = vpop.f32.mrb[24].mxu0  ;;  %v1804_v2 = vpop.f32.mrb[24].mxu1 }
 0x491   : > { %v2728_v5 = vadd.f32 %v1763_v60, %v1699_v0  ;;  %v2730_v13 = vadd.f32 %v1804_v2, %v1699_v0  ;;  %v1765_v4 = vpop.f32.mrb[25].mxu0  ;;  %v1806_v9 = vpop.f32.mrb[25].mxu1 }
 0x492   : > { %v2732_v17 = vadd.f32 %v1765_v4, %v1699_v0  ;;  %v2734_v19 = vadd.f32 %v1806_v9, %v1699_v0  ;;  %v1767_v21 = vpop.f32.mrb[26].mxu0  ;;  %v1808_v22 = vpop.f32.mrb[26].mxu1 }
 0x493   : > { %v1901_v20 = vand.u32 2147483647, %v2728_v5  ;;  %v1903_v61 = vand.u32 2147483647, %v2730_v13  ;;  %v1768_v12 = vpop.f32.mrb[27].mxu0  ;;  %v1809_v23 = vpop.f32.mrb[27].mxu1  ;;  %v1979_v22 = vunpack.c.0.s8 %v1978_v59 }
 0x494   : > { %v1902_v62 = vand.u32 2147483647, %v2732_v17  ;;  %v1904_v7 = vand.u32 2147483647, %v2734_v19  ;;  %v1894_v23 = vmin.f32 %v2732_v17, 0.0 }
 0x495   : > { %v1909_v10 = vsub.f32 0.0, %v1901_v20  ;;  %v1911_v11 = vsub.f32 0.0, %v1903_v61  ;;  %v1893_v20 = vmin.f32 %v2728_v5, 0.0 }
 0x496   : > { %v1910_v34 = vsub.f32 0.0, %v1902_v62  ;;  %v1912_v63 = vsub.f32 0.0, %v1904_v7  ;;  %v1895_v7 = vmin.f32 %v2730_v13, 0.0 }
 0x497   : > { %v1917_v1 = vmul.f32 1.442695, %v1909_v10  ;;  %v1921_v8 = vmul.f32 1.442695, %v1911_v11 }
 0x498   : > { %v1919_v49 = vmul.f32 1.442695, %v1910_v34  ;;  %v1923_v28 = vmul.f32 1.442695, %v1912_v63  ;;  %v1845_v42 = vpop.f32.mrb[28].mxu0  ;;  %v1886_v30 = vpop.f32.mrb[28].mxu1 }
 0x499   : > { %2180 = vpow2.f32 %v1917_v1  ;;  %v2740_v26 = vadd.f32 %v1845_v42, %v1699_v0  ;;  %v2742_v55 = vadd.f32 %v1886_v30, %v1699_v0  ;;  %v1847_v29 = vpop.f32.mrb[29].mxu0  ;;  %v1888_v27 = vpop.f32.mrb[29].mxu1  ;;  %v1896_v1 = vmin.f32 %v2734_v19, 0.0 }
 0x49a   : > { %2182 = vpow2.f32 %v1921_v8  ;;  %v2744_v6 = vadd.f32 %v1847_v29, %v1699_v0  ;;  %v2746_v32 = vadd.f32 %v1888_v27, %v1699_v0  ;;  %v1849_v15 = vpop.f32.mrb[30].mxu0  ;;  %v1890_v31 = vpop.f32.mrb[30].mxu1 }
 0x49b   : > { %2184 = vpow2.f32 %v1919_v49  ;;  %v1905_v33 = vand.u32 2147483647, %v2740_v26  ;;  %v1850_v24 = vpop.f32.mrb[31].mxu0  ;;  %v1891_v41 = vpop.f32.mrb[31].mxu1  ;;  %v1907_v47 = vand.u32 2147483647, %v2742_v55  ;;  %v1982_v49 = vsub.s32 %v1979_v22, %v2725_v46 }
 0x49c   : > { %2186 = vpow2.f32 %v1923_v28  ;;  %v1906_v48 = vand.u32 2147483647, %v2744_v6  ;;  %v1908_v51 = vand.u32 2147483647, %v2746_v32  ;;  %v1897_v13 = vmin.f32 %v2740_v26, 0.0 }
 0x49d   : > { %v1913_v50 = vsub.f32 0.0, %v1905_v33  ;;  %v1915_v52 = vsub.f32 0.0, %v1907_v47  ;;  %v1899_v17 = vmin.f32 %v2742_v55, 0.0  ;;  %v1898_v46 = vmin.f32 %v2744_v6, 0.0 }
 0x49e   : > { %v1914_v53 = vsub.f32 0.0, %v1906_v48  ;;  %v1916_v56 = vsub.f32 0.0, %v1908_v51 }
 0x49f   : > { %v1925_v54 = vmul.f32 1.442695, %v1913_v50  ;;  %v1929_v57 = vmul.f32 1.442695, %v1915_v52  ;;  %v1900_v52 = vmin.f32 %v2746_v32, 0.0 }
 0x4a0   : > { %v1927_v3 = vmul.f32 1.442695, %v1914_v53  ;;  %v1931_v14 = vmul.f32 1.442695, %v1916_v56 }
 0x4a1   : > { %2188 = vpow2.f32 %v1925_v54 }
 0x4a2   : > { %2190 = vpow2.f32 %v1929_v57 }
 0x4a3   : > { %v2181_v16 = vpop.eup %2180  ;;  %2192 = vpow2.f32 %v1927_v3 }
 0x4a4   : > { %v2183_v18 = vpop.eup %2182  ;;  %v1933_v25 = vadd.f32 1.0, %v2181_v16  ;;  %2194 = vpow2.f32 %v1931_v14 }
 0x4a5   : > { %v2185_v35 = vpop.eup %2184  ;;  %v1935_v36 = vadd.f32 1.0, %v2183_v18 }
 0x4a6   : > { %v2187_v37 = vpop.eup %2186  ;;  %2196 = vlog2.f32 %v1933_v25  ;;  %v1934_v38 = vadd.f32 1.0, %v2185_v35 }
 0x4a7   : > { %2198 = vlog2.f32 %v1935_v36  ;;  %v1936_v39 = vadd.f32 1.0, %v2187_v37 }
 0x4a8   : > { %2200 = vlog2.f32 %v1934_v38 }
 0x4a9   : > { %2202 = vlog2.f32 %v1936_v39 }
 0x4ab   : > { %v2189_v40 = vpop.eup %2188 }
 0x4ac   : > { %v2191_v43 = vpop.eup %2190  ;;  %v1937_v44 = vadd.f32 1.0, %v2189_v40 }
 0x4ad   : > { %v2193_v45 = vpop.eup %2192  ;;  %v1939_v0 = vadd.f32 1.0, %v2191_v43 }
 0x4ae   : > { %v2195_v60 = vpop.eup %2194  ;;  %2204 = vlog2.f32 %v1937_v44  ;;  %v1938_v2 = vadd.f32 1.0, %v2193_v45 }
 0x4af   : > { %2206 = vlog2.f32 %v1939_v0  ;;  %v1940_v4 = vadd.f32 1.0, %v2195_v60 }
 0x4b0   : > { %v2197_v9 = vpop.eup %2196  ;;  %2208 = vlog2.f32 %v1938_v2 }
 0x4b1   : > { %v2199_v21 = vpop.eup %2198  ;;  %v1942_v61 = vmul.f32 0.6931472, %v2197_v9  ;;  %2210 = vlog2.f32 %v1940_v4 }
 0x4b2   : > { %v2201_v62 = vpop.eup %2200  ;;  %v1946_v10 = vmul.f32 0.6931472, %v2199_v21 }
 0x4b3   : > { %v2203_v11 = vpop.eup %2202  ;;  %v1957_v12 = vsub.f32 %v1893_v20, %v1942_v61  ;;  %v1944_v34 = vmul.f32 0.6931472, %v2201_v62 }
 0x4b4   : > { %v1959_v63 = vsub.f32 %v1895_v7, %v1946_v10  ;;  %v1948_v8 = vmul.f32 0.6931472, %v2203_v11 }
 0x4b5   : > { %v1958_v28 = vsub.f32 %v1894_v23, %v1944_v34 }
 0x4b6   : > { %v1960_v42 = vsub.f32 %v1896_v1, %v1948_v8 }
 0x4b7   : > { %v1973_v5 = vcombine.low %v1957_v12, %v1958_v28 }
 0x4b8   : > { %v2205_v30 = vpop.eup %2204  ;;  %v1974_v29 = vcombine.low %v1959_v63, %v1960_v42 }
 0x4b9   : > { %v2207_v27 = vpop.eup %2206  ;;  %v1983_v15 = vrot.slane %v1973_v5, %v1982_v49  ;;  %v1950_v31 = vmul.f32 0.6931472, %v2205_v30 }
 0x4ba   : > { %v2209_v33 = vpop.eup %2208  ;;  %v1990_v24 = vrot.slane %v1974_v29, %v1982_v49  ;;  %v1954_v41 = vmul.f32 0.6931472, %v2207_v27 }
 0x4bb   : > { %v2211_v19 = vpop.eup %2210  ;;  %v1961_v47 = vsub.f32 %v1897_v13, %v1950_v31  ;;  %v1952_v48 = vmul.f32 0.6931472, %v2209_v33 }
 0x4bc   : > { %v2005_v50 = vcombine.low %v1983_v15, %v1990_v24  ;;  %v1963_v51 = vsub.f32 %v1899_v17, %v1954_v41  ;;  %v1956_v53 = vmul.f32 0.6931472, %v2211_v19 }
 0x4bd   : > { %v1962_v54 = vsub.f32 %v1898_v46, %v1952_v48 }
 0x4be   : > { %v1964_v56 = vsub.f32 %v1900_v52, %v1956_v53  ;;  %v2013_v16 = vrot.slane %v2005_v50, %v1982_v49 }
 0x4bf   : > { %v1975_v26 = vcombine.low %v1961_v47, %v1962_v54 }
 0x4c0   : > { %v1976_v57 = vcombine.low %v1963_v51, %v1964_v56 }
 0x4c1   : > { %v1997_v3 = vrot.slane %v1975_v26, %v1982_v49 }
 0x4c2   : > { %v2004_v14 = vrot.slane %v1976_v57, %v1982_v49 }
 0x4c4   : > { %v2006_v55 = vcombine.low %v1997_v3, %v2004_v14 }
 0x4c6   : > { %v2020_v18 = vrot.slane %v2006_v55, %v1982_v49 }
 0x4c8   : > { %v2021_v6 = vcombine.low %v2013_v16, %v2020_v18 }
 0x4ca   : > { %2023 = vst [vmem:[%s298_s9] sm:$0xff] %v2021_v6 }
 0x4cb PF: > { %s19_s26 = sadd.s32 1, %s2219_s26  }
 0x4cc   : > { %p16_p4 = scmp.ge.s32.totalorder %s19_s26, 4  }
 0x4ce   :  { %18 = sbr.rel (!%p16_p4) target bundleno = 3 (0x3), region = 83 }

</bundles_post_ra>
